<compile_context>
chip_gen: v7x
topology: tpu7x:2x2x1
jax: 0.10.0
libtpu: 0.0.40
codegen_flags: <defaults>
</compile_context>

<pallas_src>
import jax
import jax.numpy as jnp
import numpy as np
from jax.experimental import pallas as pl
from jax.experimental.pallas import tpu as pltpu

NEG_SLOPE = 0.01  # torch.nn.LeakyReLU default negative_slope


# ----------------------------------------------------------------------------
# In-kernel helpers
# ----------------------------------------------------------------------------
def _conv3x3_lrelu(x_bf, w_ref, b_ref, patch_ref, W, mask_l, mask_r,
                   residual=None):
    """3x3 'same' conv + bias + LeakyReLU (+ optional post-act residual add).

    x_bf      : (Cin, H*W) bf16 value, flat row-major spatial (lane-dense).
    w_ref     : (Cout, 9*Cin) bf16 ref, taps ordered t = dy*3 + dx.
    b_ref     : (Cout, 1) f32 ref.
    patch_ref : (>=9*Cin, H*W) bf16 VMEM scratch (im2col staging).
    mask_l/r  : (1, H*W) bool, col != 0 / col != W-1.
    returns   : (Cout, H*W) f32 value.
    """
    Cin, HW = x_bf.shape
    # One zero-padded flat buffer; each tap is a single static lane-slice.
    # NOTE: pad width W+1 (not W) is load-bearing for the corner taps.
    zpad = jnp.zeros((Cin, W + 1), x_bf.dtype)
    xp = jnp.concatenate([zpad, x_bf, zpad], axis=1)        # (Cin, HW + 2W + 2)
    zero = jnp.zeros((), x_bf.dtype)

    for dy in range(3):
        for dx in range(3):
            # source flat index = p + (dy-1)*W + (dx-1)  -> slice start dy*W+dx
            v = xp[:, dy * W + dx: dy * W + dx + HW]        # (Cin, HW)
            if dx == 0:        # reads column x-1: invalid where x == 0
                v = jnp.where(mask_l, v, zero)
            elif dx == 2:      # reads column x+1: invalid where x == W-1
                v = jnp.where(mask_r, v, zero)
            t = dy * 3 + dx
            patch_ref[t * Cin:(t + 1) * Cin, :] = v         # im2col row block

    # Single fused-K MXU matmul, bf16 operands, f32 accumulation.
    acc = jnp.dot(w_ref[...], patch_ref[:9 * Cin, :],
                  preferred_element_type=jnp.float32)       # (Cout, HW) f32
    acc = acc + b_ref[...]                                  # (Cout, 1) broadcast
    acc = jnp.maximum(acc, NEG_SLOPE * acc)                 # LeakyReLU (mul+max)
    if residual is not None:                                # ResSequential add
        acc = acc + residual
    return acc


def _avgpool2x2(x, pw_ref, H, W):
    """Exact AvgPool2d(2,2): x (C, H*W) f32 -> (C, (H//2)*(W//2)) f32.

    Vertical pair-sum via contiguous lane slices (f32), horizontal average +
    column decimation via one tiny (W, W//2) matmul (entries 0.25, exact in
    bf16), then lane-concat back to the flat pooled layout.
    """
    C = x.shape[0]
    Ho, Wo = H // 2, W // 2
    # rows[yo*C + c, w] = x[c, 2yo, w] + x[c, 2yo+1, w]
    rows = jnp.concatenate(
        [x[:, (2 * yo) * W:(2 * yo + 1) * W]
         + x[:, (2 * yo + 1) * W:(2 * yo + 2) * W]
         for yo in range(Ho)], axis=0)                      # (Ho*C, W), yo-major
    p = jnp.dot(rows.astype(jnp.bfloat16), pw_ref[...],
                preferred_element_type=jnp.float32)         # (Ho*C, Wo)
    # reassemble flat (C, Ho*Wo): lane block yo <- rows [yo*C, (yo+1)*C)
    return jnp.concatenate([p[yo * C:(yo + 1) * C, :] for yo in range(Ho)],
                           axis=1)                          # (C, Ho*Wo) f32


def _make_encoder_kernel(stages, H0, W0, n_in, n_out):
    """Fused encoder: all stages in one kernel body, one sample per grid step."""

    def kernel(*refs):
        in_refs = refs[:n_in]
        out_refs = refs[n_in:n_in + n_out]
        patch_refs = refs[n_in + n_out:]                    # one per stage

        idx = 1
        h = in_refs[0][0].astype(jnp.float32)               # (C, H0*W0) carry
        H, W = H0, W0
        for s, st in enumerate(stages):
            if st["pool"]:
                pw_ref = in_refs[idx]; idx += 1
                h = _avgpool2x2(h, pw_ref, H, W)
                H, W = H // 2, W // 2
            HW = H * W
            col = jax.lax.broadcasted_iota(jnp.int32, (1, HW), 1) % W
            mask_l = col != 0                               # hoisted once/stage
            mask_r = col != (W - 1)
            pr = patch_refs[s]

            w_ref, b_ref = in_refs[idx], in_refs[idx + 1]; idx += 2
            h = _conv3x3_lrelu(h.astype(jnp.bfloat16), w_ref, b_ref, pr, W,
                               mask_l, mask_r)              # conv_norm_act
            if st["res"]:                                   # resblock (2 convs)
                w1, b1, w2, b2 = in_refs[idx:idx + 4]; idx += 4
                y = _conv3x3_lrelu(h.astype(jnp.bfloat16), w1, b1, pr, W,
                                   mask_l, mask_r)
                h = _conv3x3_lrelu(y.astype(jnp.bfloat16), w2, b2, pr, W,
                                   mask_l, mask_r, residual=h)
            out_refs[s][0] = h.astype(out_refs[s].dtype)    # feature level s

    return kernel


# ----------------------------------------------------------------------------
# Host-side glue (weight folding, per-axis pool matrix, single pallas_call)
# ----------------------------------------------------------------------------
def _fold_conv(w, b):
    """OIHW (Cout, Cin, 3, 3) -> (Cout, 9*Cin) bf16 with tap order t=dy*3+dx."""
    cout, cin = w.shape[0], w.shape[1]
    w2 = jnp.transpose(w, (0, 2, 3, 1)).reshape(cout, 9 * cin).astype(jnp.bfloat16)
    b2 = b.reshape(cout, 1).astype(jnp.float32)
    return w2, b2


def _pool_matrix_w(W):
    """(W, W//2) matrix: 0.25 at rows 2*xo, 2*xo+1 of column xo (exact bf16)."""
    Wo = W // 2
    P = np.zeros((W, Wo), np.float32)
    P[2 * np.arange(Wo), np.arange(Wo)] = 0.25
    P[2 * np.arange(Wo) + 1, np.arange(Wo)] = 0.25
    return jnp.asarray(P, jnp.bfloat16)


def encoder_forward(params, x):
    """x: (N, C, H, W) NCHW f32. Returns list of per-stage NCHW features."""
    N, C, H, W = x.shape
    Cp = -(-C // 8) * 8                                     # pad channels to 8
    if Cp != C:
        x = jnp.pad(x, ((0, 0), (0, Cp - C), (0, 0), (0, 0)))
    xf = x.reshape(N, Cp, H * W)                            # lane-dense flat layout

    args = [xf]
    in_specs = [pl.BlockSpec((1, Cp, H * W), lambda n: (n, 0, 0))]
    stages, out_shapes, out_specs, scratch_shapes, feat_hw = [], [], [], [], []

    curC, curH, curW = Cp, H, W
    for stage in params:
        pool = stage["pool"]
        if pool:
            pw = _pool_matrix_w(curW)
            args.append(pw)
            in_specs.append(pl.BlockSpec(pw.shape, lambda n: (0, 0)))
            curH, curW = curH // 2, curW // 2

        w_cna, b_cna = stage["cna"]
        if w_cna.shape[1] != curC:   # first-stage input channels were zero-padded
            w_cna = jnp.pad(w_cna, ((0, 0), (0, curC - w_cna.shape[1]),
                                    (0, 0), (0, 0)))
        convs = [(w_cna, b_cna)]
        res = stage["res"] is not None
        if res:
            convs += list(stage["res"])
        for (w, b) in convs:
            w2, b2 = _fold_conv(w, b)
            args += [w2, b2]
            in_specs += [pl.BlockSpec(w2.shape, lambda n: (0, 0)),
                         pl.BlockSpec(b2.shape, lambda n: (0, 0))]

        Cout = w_cna.shape[0]
        max_cin = max(w.shape[1] for (w, _) in convs)
        stages.append({"pool": pool, "res": res})
        out_shapes.append(jax.ShapeDtypeStruct((N, Cout, curH * curW), x.dtype))
        out_specs.append(pl.BlockSpec((1, Cout, curH * curW),
                                      lambda n: (n, 0, 0)))
        scratch_shapes.append(pltpu.VMEM((9 * max_cin, curH * curW),
                                         jnp.bfloat16))
        feat_hw.append((curH, curW))
        curC = Cout

    kernel = _make_encoder_kernel(stages, H, W,
                                  n_in=len(args), n_out=len(out_shapes))
    feats_flat = pl.pallas_call(
        kernel,
        out_shape=tuple(out_shapes),
        grid=(N,),
        in_specs=in_specs,
        out_specs=tuple(out_specs),
        scratch_shapes=scratch_shapes,
        compiler_params=pltpu.CompilerParams(
            dimension_semantics=("parallel",),   # N=2 -> both v7x TCs busy
            vmem_limit_bytes=32 * 1024 * 1024),
    )(*args)

    feats = []
    for f, (fh, fw) in zip(feats_flat, feat_hw):
        feats.append(f.reshape(N, f.shape[1], fh, fw))      # metadata-only reshape
    return feats


# ----------------------------------------------------------------------------
# Encoder: deterministic parameter init (torch-convention params)
# ----------------------------------------------------------------------------
def init_conv_params(key, cin, cout):
    kw, kb = jax.random.split(key)
    bound = 1.0 / np.sqrt(cin * 9)                          # torch Conv2d-style
    w = jax.random.uniform(kw, (cout, cin, 3, 3), jnp.float32, -bound, bound)
    b = jax.random.uniform(kb, (cout,), jnp.float32, -bound, bound)
    return w, b


def init_encoder_params(key, in_channels, layers):
    layers = list(layers)
    keys = iter(jax.random.split(key, 8 * len(layers) + 8))
    params = []
    params.append({
        "pool": False,
        "cna": init_conv_params(next(keys), in_channels, layers[0]),
        "res": [init_conv_params(next(keys), layers[0], layers[0]) for _ in range(2)],
    })
    cur = layers[0]
    for ch in layers[1:-1]:
        params.append({
            "pool": True,
            "cna": init_conv_params(next(keys), cur, ch),
            "res": [init_conv_params(next(keys), ch, ch) for _ in range(2)],
        })
        cur = ch
    params.append({
        "pool": True,
        "cna": init_conv_params(next(keys), layers[-2], layers[-1]),
        "res": None,
    })
    return params


# ----------------------------------------------------------------------------
# Pure-JAX reference (NCHW, f32, HIGHEST precision)
# ----------------------------------------------------------------------------
def _ref_conv_lrelu(x, w, b, residual=None):
    y = jax.lax.conv_general_dilated(
        x, w, (1, 1), "SAME",
        dimension_numbers=("NCHW", "OIHW", "NCHW"),
        precision=jax.lax.Precision.HIGHEST)
    y = y + b[None, :, None, None]
    y = jnp.where(y > 0, y, NEG_SLOPE * y)
    if residual is not None:
        y = y + residual
    return y


def _ref_pool(x):
    N, C, H, W = x.shape
    return x.reshape(N, C, H // 2, 2, W // 2, 2).mean(axis=(3, 5))


def _ref_forward(params, x):
    feats = []
    for stage in params:
        if stage["pool"]:
            x = _ref_pool(x)
        w, b = stage["cna"]
        x = _ref_conv_lrelu(x, w, b)
        if stage["res"] is not None:
            (w1, b1), (w2, b2) = stage["res"]
            x = _ref_conv_lrelu(_ref_conv_lrelu(x, w1, b1), w2, b2, residual=x)
        feats.append(x)
    return feats


# ----------------------------------------------------------------------------
if __name__ == "__main__":
    key = jax.random.PRNGKey(0)
    kx, kp = jax.random.split(key)

    in_channels = 4
    layers = [8, 16, 32]
    # Torch-side input convention is NCHW; spatial 32 keeps all levels >= 8.
    x = jax.random.normal(kx, (2, in_channels, 32, 32), jnp.float32)

    params = init_encoder_params(kp, in_channels, layers)

    feats = encoder_forward(params, x)
    feats = jax.block_until_ready(feats)

    ref_feats = _ref_forward(params, x)
    for f, r in zip(feats, ref_feats):
        assert f.shape == r.shape and f.dtype == r.dtype
        # MXU operands are bf16 (f32 accumulation), so allow slightly looser
        # tolerance than a pure-f32 path.
        np.testing.assert_allclose(np.asarray(f), np.asarray(r),
                                   atol=5e-2, rtol=5e-2)

    print("KERNEL_OK")
</pallas_src>

<mosaic_0001>
module attributes {stable_mosaic.version = 11 : i64} {
  func.func @kernel(%arg0: i32, %arg1: memref<1x8x1024xf32, #tpu.memory_space<vmem>>, %arg2: memref<8x72xbf16, #tpu.memory_space<vmem>>, %arg3: memref<8x1xf32, #tpu.memory_space<vmem>>, %arg4: memref<8x72xbf16, #tpu.memory_space<vmem>>, %arg5: memref<8x1xf32, #tpu.memory_space<vmem>>, %arg6: memref<8x72xbf16, #tpu.memory_space<vmem>>, %arg7: memref<8x1xf32, #tpu.memory_space<vmem>>, %arg8: memref<32x16xbf16, #tpu.memory_space<vmem>>, %arg9: memref<16x72xbf16, #tpu.memory_space<vmem>>, %arg10: memref<16x1xf32, #tpu.memory_space<vmem>>, %arg11: memref<16x144xbf16, #tpu.memory_space<vmem>>, %arg12: memref<16x1xf32, #tpu.memory_space<vmem>>, %arg13: memref<16x144xbf16, #tpu.memory_space<vmem>>, %arg14: memref<16x1xf32, #tpu.memory_space<vmem>>, %arg15: memref<16x8xbf16, #tpu.memory_space<vmem>>, %arg16: memref<32x144xbf16, #tpu.memory_space<vmem>>, %arg17: memref<32x1xf32, #tpu.memory_space<vmem>>, %arg18: memref<1x8x1024xf32, #tpu.memory_space<vmem>>, %arg19: memref<1x16x256xf32, #tpu.memory_space<vmem>>, %arg20: memref<1x32x64xf32, #tpu.memory_space<vmem>>, %arg21: memref<72x1024xbf16, #tpu.memory_space<vmem>>, %arg22: memref<144x256xbf16, #tpu.memory_space<vmem>>, %arg23: memref<144x64xbf16, #tpu.memory_space<vmem>>) attributes {dimension_semantics = [#tpu.dimension_semantics<parallel>], iteration_bounds = array<i64: 2>, scalar_prefetch = 0 : i64, scratch_operands = 3 : i64, tpu.core_type = #tpu.core_type<tc>, window_params = [{transform_indices = @transform_0, window_bounds = array<i64: 1, 8, 1024>}, {pipeline_mode = #tpu.pipeline_mode<synchronous>, transform_indices = @transform_1, window_bounds = array<i64: 8, 72>}, {pipeline_mode = #tpu.pipeline_mode<synchronous>, transform_indices = @transform_2, window_bounds = array<i64: 8, 1>}, {pipeline_mode = #tpu.pipeline_mode<synchronous>, transform_indices = @transform_3, window_bounds = array<i64: 8, 72>}, {pipeline_mode = #tpu.pipeline_mode<synchronous>, transform_indices = @transform_4, window_bounds = array<i64: 8, 1>}, {pipeline_mode = #tpu.pipeline_mode<synchronous>, transform_indices = @transform_5, window_bounds = array<i64: 8, 72>}, {pipeline_mode = #tpu.pipeline_mode<synchronous>, transform_indices = @transform_6, window_bounds = array<i64: 8, 1>}, {pipeline_mode = #tpu.pipeline_mode<synchronous>, transform_indices = @transform_7, window_bounds = array<i64: 32, 16>}, {pipeline_mode = #tpu.pipeline_mode<synchronous>, transform_indices = @transform_8, window_bounds = array<i64: 16, 72>}, {pipeline_mode = #tpu.pipeline_mode<synchronous>, transform_indices = @transform_9, window_bounds = array<i64: 16, 1>}, {pipeline_mode = #tpu.pipeline_mode<synchronous>, transform_indices = @transform_10, window_bounds = array<i64: 16, 144>}, {pipeline_mode = #tpu.pipeline_mode<synchronous>, transform_indices = @transform_11, window_bounds = array<i64: 16, 1>}, {pipeline_mode = #tpu.pipeline_mode<synchronous>, transform_indices = @transform_12, window_bounds = array<i64: 16, 144>}, {pipeline_mode = #tpu.pipeline_mode<synchronous>, transform_indices = @transform_13, window_bounds = array<i64: 16, 1>}, {pipeline_mode = #tpu.pipeline_mode<synchronous>, transform_indices = @transform_14, window_bounds = array<i64: 16, 8>}, {pipeline_mode = #tpu.pipeline_mode<synchronous>, transform_indices = @transform_15, window_bounds = array<i64: 32, 144>}, {pipeline_mode = #tpu.pipeline_mode<synchronous>, transform_indices = @transform_16, window_bounds = array<i64: 32, 1>}, {transform_indices = @transform_17, window_bounds = array<i64: 1, 8, 1024>}, {transform_indices = @transform_18, window_bounds = array<i64: 1, 16, 256>}, {transform_indices = @transform_19, window_bounds = array<i64: 1, 32, 64>}]} {
    %c0 = arith.constant 0 : index
    %c0_0 = arith.constant 0 : index
    %c0_1 = arith.constant 0 : index
    %0 = vector.load %arg1[%c0, %c0_0, %c0_1] : memref<1x8x1024xf32, #tpu.memory_space<vmem>>, vector<1x8x1024xf32>
    %1 = vector.shape_cast %0 : vector<1x8x1024xf32> to vector<8x1024xf32>
    %2 = tpu.iota {dimensions = array<i32: 1>} : vector<1x1024xi32>
    %c32_i32 = arith.constant 32 : i32
    %c0_i32 = arith.constant 0 : i32
    %3 = arith.cmpi eq, %c32_i32, %c0_i32 : i32
    %c1_i32 = arith.constant 1 : i32
    %4 = arith.select %3, %c1_i32, %c32_i32 : i32
    %5 = vector.broadcast %4 : i32 to vector<1x1024xi32>
    %6 = arith.remsi %2, %5 : vector<1x1024xi32>
    %c0_i32_2 = arith.constant 0 : i32
    %7 = vector.broadcast %c0_i32_2 : i32 to vector<1x1024xi32>
    %8 = arith.cmpi ne, %6, %7 : vector<1x1024xi32>
    %c0_i32_3 = arith.constant 0 : i32
    %9 = vector.broadcast %c0_i32_3 : i32 to vector<1x1024xi32>
    %10 = arith.cmpi slt, %6, %9 : vector<1x1024xi32>
    %c0_i32_4 = arith.constant 0 : i32
    %11 = arith.cmpi slt, %4, %c0_i32_4 : i32
    %12 = vector.broadcast %11 : i1 to vector<1x1024xi1>
    %13 = vector.broadcast %12 : vector<1x1024xi1> to vector<1x1024xi1>
    %14 = arith.xori %10, %13 : vector<1x1024xi1>
    %15 = arith.andi %14, %8 : vector<1x1024xi1>
    %16 = vector.broadcast %4 : i32 to vector<1x1024xi32>
    %17 = arith.addi %6, %16 : vector<1x1024xi32>
    %18 = arith.select %15, %17, %6 : vector<1x1024xi1>, vector<1x1024xi32>
    %c0_i32_5 = arith.constant 0 : i32
    %19 = vector.broadcast %c0_i32_5 : i32 to vector<1x1024xi32>
    %20 = arith.cmpi ne, %18, %19 : vector<1x1024xi32>
    %c31_i32 = arith.constant 31 : i32
    %21 = vector.broadcast %c31_i32 : i32 to vector<1x1024xi32>
    %22 = arith.cmpi ne, %18, %21 : vector<1x1024xi32>
    %23 = arith.truncf %1 : vector<8x1024xf32> to vector<8x1024xbf16>
    %cst = arith.constant 0.000000e+00 : bf16
    %24 = vector.broadcast %cst : bf16 to vector<8x33xbf16>
    %25 = tpu.concatenate %24, %23, %24 in 1 : vector<8x33xbf16>, vector<8x1024xbf16>, vector<8x33xbf16> -> vector<8x1090xbf16>
    %26 = vector.extract_strided_slice %25 {offsets = [0, 0], sizes = [8, 1024], strides = [1, 1]} : vector<8x1090xbf16> to vector<8x1024xbf16>
    %cst_6 = arith.constant 0.000000e+00 : bf16
    %27 = vector.shape_cast %20 : vector<1x1024xi1> to vector<1x1024xi1>
    %28 = vector.broadcast %27 : vector<1x1024xi1> to vector<8x1024xi1>
    %29 = vector.broadcast %cst_6 : bf16 to vector<8x1024xbf16>
    %30 = arith.select %28, %26, %29 : vector<8x1024xi1>, vector<8x1024xbf16>
    %c0_7 = arith.constant 0 : index
    %c0_8 = arith.constant 0 : index
    %31 = vector.load %arg21[%c0_7, %c0_8] : memref<72x1024xbf16, #tpu.memory_space<vmem>>, vector<8x1024xbf16>
    tpu.vector_store %arg21[%c0_7, %c0_8], %30 {strides = array<i32>} : memref<72x1024xbf16, #tpu.memory_space<vmem>>, vector<8x1024xbf16>,
    %32 = vector.extract_strided_slice %25 {offsets = [0, 1], sizes = [8, 1024], strides = [1, 1]} : vector<8x1090xbf16> to vector<8x1024xbf16>
    %c8 = arith.constant 8 : index
    %c0_9 = arith.constant 0 : index
    %33 = vector.load %arg21[%c8, %c0_9] : memref<72x1024xbf16, #tpu.memory_space<vmem>>, vector<8x1024xbf16>
    tpu.vector_store %arg21[%c8, %c0_9], %32 {strides = array<i32>} : memref<72x1024xbf16, #tpu.memory_space<vmem>>, vector<8x1024xbf16>,
    %34 = vector.extract_strided_slice %25 {offsets = [0, 2], sizes = [8, 1024], strides = [1, 1]} : vector<8x1090xbf16> to vector<8x1024xbf16>
    %cst_10 = arith.constant 0.000000e+00 : bf16
    %35 = vector.shape_cast %22 : vector<1x1024xi1> to vector<1x1024xi1>
    %36 = vector.broadcast %35 : vector<1x1024xi1> to vector<8x1024xi1>
    %37 = vector.broadcast %cst_10 : bf16 to vector<8x1024xbf16>
    %38 = arith.select %36, %34, %37 : vector<8x1024xi1>, vector<8x1024xbf16>
    %c16 = arith.constant 16 : index
    %c0_11 = arith.constant 0 : index
    %39 = vector.load %arg21[%c16, %c0_11] : memref<72x1024xbf16, #tpu.memory_space<vmem>>, vector<8x1024xbf16>
    tpu.vector_store %arg21[%c16, %c0_11], %38 {strides = array<i32>} : memref<72x1024xbf16, #tpu.memory_space<vmem>>, vector<8x1024xbf16>,
    %40 = vector.extract_strided_slice %25 {offsets = [0, 32], sizes = [8, 1024], strides = [1, 1]} : vector<8x1090xbf16> to vector<8x1024xbf16>
    %cst_12 = arith.constant 0.000000e+00 : bf16
    %41 = vector.shape_cast %20 : vector<1x1024xi1> to vector<1x1024xi1>
    %42 = vector.broadcast %41 : vector<1x1024xi1> to vector<8x1024xi1>
    %43 = vector.broadcast %cst_12 : bf16 to vector<8x1024xbf16>
    %44 = arith.select %42, %40, %43 : vector<8x1024xi1>, vector<8x1024xbf16>
    %c24 = arith.constant 24 : index
    %c0_13 = arith.constant 0 : index
    %45 = vector.load %arg21[%c24, %c0_13] : memref<72x1024xbf16, #tpu.memory_space<vmem>>, vector<8x1024xbf16>
    tpu.vector_store %arg21[%c24, %c0_13], %44 {strides = array<i32>} : memref<72x1024xbf16, #tpu.memory_space<vmem>>, vector<8x1024xbf16>,
    %46 = vector.extract_strided_slice %25 {offsets = [0, 33], sizes = [8, 1024], strides = [1, 1]} : vector<8x1090xbf16> to vector<8x1024xbf16>
    %c32 = arith.constant 32 : index
    %c0_14 = arith.constant 0 : index
    %47 = vector.load %arg21[%c32, %c0_14] : memref<72x1024xbf16, #tpu.memory_space<vmem>>, vector<8x1024xbf16>
    tpu.vector_store %arg21[%c32, %c0_14], %46 {strides = array<i32>} : memref<72x1024xbf16, #tpu.memory_space<vmem>>, vector<8x1024xbf16>,
    %48 = vector.extract_strided_slice %25 {offsets = [0, 34], sizes = [8, 1024], strides = [1, 1]} : vector<8x1090xbf16> to vector<8x1024xbf16>
    %cst_15 = arith.constant 0.000000e+00 : bf16
    %49 = vector.shape_cast %22 : vector<1x1024xi1> to vector<1x1024xi1>
    %50 = vector.broadcast %49 : vector<1x1024xi1> to vector<8x1024xi1>
    %51 = vector.broadcast %cst_15 : bf16 to vector<8x1024xbf16>
    %52 = arith.select %50, %48, %51 : vector<8x1024xi1>, vector<8x1024xbf16>
    %c40 = arith.constant 40 : index
    %c0_16 = arith.constant 0 : index
    %53 = vector.load %arg21[%c40, %c0_16] : memref<72x1024xbf16, #tpu.memory_space<vmem>>, vector<8x1024xbf16>
    tpu.vector_store %arg21[%c40, %c0_16], %52 {strides = array<i32>} : memref<72x1024xbf16, #tpu.memory_space<vmem>>, vector<8x1024xbf16>,
    %54 = vector.extract_strided_slice %25 {offsets = [0, 64], sizes = [8, 1024], strides = [1, 1]} : vector<8x1090xbf16> to vector<8x1024xbf16>
    %cst_17 = arith.constant 0.000000e+00 : bf16
    %55 = vector.shape_cast %20 : vector<1x1024xi1> to vector<1x1024xi1>
    %56 = vector.broadcast %55 : vector<1x1024xi1> to vector<8x1024xi1>
    %57 = vector.broadcast %cst_17 : bf16 to vector<8x1024xbf16>
    %58 = arith.select %56, %54, %57 : vector<8x1024xi1>, vector<8x1024xbf16>
    %c48 = arith.constant 48 : index
    %c0_18 = arith.constant 0 : index
    %59 = vector.load %arg21[%c48, %c0_18] : memref<72x1024xbf16, #tpu.memory_space<vmem>>, vector<8x1024xbf16>
    tpu.vector_store %arg21[%c48, %c0_18], %58 {strides = array<i32>} : memref<72x1024xbf16, #tpu.memory_space<vmem>>, vector<8x1024xbf16>,
    %60 = vector.extract_strided_slice %25 {offsets = [0, 65], sizes = [8, 1024], strides = [1, 1]} : vector<8x1090xbf16> to vector<8x1024xbf16>
    %c56 = arith.constant 56 : index
    %c0_19 = arith.constant 0 : index
    %61 = vector.load %arg21[%c56, %c0_19] : memref<72x1024xbf16, #tpu.memory_space<vmem>>, vector<8x1024xbf16>
    tpu.vector_store %arg21[%c56, %c0_19], %60 {strides = array<i32>} : memref<72x1024xbf16, #tpu.memory_space<vmem>>, vector<8x1024xbf16>,
    %62 = vector.extract_strided_slice %25 {offsets = [0, 66], sizes = [8, 1024], strides = [1, 1]} : vector<8x1090xbf16> to vector<8x1024xbf16>
    %cst_20 = arith.constant 0.000000e+00 : bf16
    %63 = vector.shape_cast %22 : vector<1x1024xi1> to vector<1x1024xi1>
    %64 = vector.broadcast %63 : vector<1x1024xi1> to vector<8x1024xi1>
    %65 = vector.broadcast %cst_20 : bf16 to vector<8x1024xbf16>
    %66 = arith.select %64, %62, %65 : vector<8x1024xi1>, vector<8x1024xbf16>
    %c64 = arith.constant 64 : index
    %c0_21 = arith.constant 0 : index
    %67 = vector.load %arg21[%c64, %c0_21] : memref<72x1024xbf16, #tpu.memory_space<vmem>>, vector<8x1024xbf16>
    tpu.vector_store %arg21[%c64, %c0_21], %66 {strides = array<i32>} : memref<72x1024xbf16, #tpu.memory_space<vmem>>, vector<8x1024xbf16>,
    %c0_22 = arith.constant 0 : index
    %c0_23 = arith.constant 0 : index
    %68 = vector.load %arg2[%c0_22, %c0_23] : memref<8x72xbf16, #tpu.memory_space<vmem>>, vector<8x72xbf16>
    %c0_24 = arith.constant 0 : index
    %c0_25 = arith.constant 0 : index
    %69 = vector.load %arg21[%c0_24, %c0_25] : memref<72x1024xbf16, #tpu.memory_space<vmem>>, vector<72x1024xbf16>
    %cst_26 = arith.constant dense<0.000000e+00> : vector<8x1024xf32>
    %70 = tpu.matmul %68, %69, %cst_26 {dimension_numbers = #tpu.dot_dimension_numbers<[1], [0], [0], [1], [0, 0, 1, 1], [], []>} : vector<8x72xbf16>, vector<72x1024xbf16>, vector<8x1024xf32> -> vector<8x1024xf32>
    %c0_27 = arith.constant 0 : index
    %c0_28 = arith.constant 0 : index
    %71 = vector.load %arg3[%c0_27, %c0_28] : memref<8x1xf32, #tpu.memory_space<vmem>>, vector<8x1xf32>
    %72 = vector.broadcast %71 : vector<8x1xf32> to vector<8x1024xf32>
    %73 = arith.addf %70, %72 : vector<8x1024xf32>
    %cst_29 = arith.constant 0.00999999977 : f32
    %74 = vector.broadcast %cst_29 : f32 to vector<8x1024xf32>
    %75 = arith.mulf %74, %73 : vector<8x1024xf32>
    %76 = arith.maximumf %73, %75 : vector<8x1024xf32>
    %77 = arith.truncf %76 : vector<8x1024xf32> to vector<8x1024xbf16>
    %cst_30 = arith.constant 0.000000e+00 : bf16
    %78 = vector.broadcast %cst_30 : bf16 to vector<8x33xbf16>
    %79 = tpu.concatenate %78, %77, %78 in 1 : vector<8x33xbf16>, vector<8x1024xbf16>, vector<8x33xbf16> -> vector<8x1090xbf16>
    %80 = vector.extract_strided_slice %79 {offsets = [0, 0], sizes = [8, 1024], strides = [1, 1]} : vector<8x1090xbf16> to vector<8x1024xbf16>
    %cst_31 = arith.constant 0.000000e+00 : bf16
    %81 = vector.shape_cast %20 : vector<1x1024xi1> to vector<1x1024xi1>
    %82 = vector.broadcast %81 : vector<1x1024xi1> to vector<8x1024xi1>
    %83 = vector.broadcast %cst_31 : bf16 to vector<8x1024xbf16>
    %84 = arith.select %82, %80, %83 : vector<8x1024xi1>, vector<8x1024xbf16>
    %c0_32 = arith.constant 0 : index
    %c0_33 = arith.constant 0 : index
    %85 = vector.load %arg21[%c0_32, %c0_33] : memref<72x1024xbf16, #tpu.memory_space<vmem>>, vector<8x1024xbf16>
    tpu.vector_store %arg21[%c0_32, %c0_33], %84 {strides = array<i32>} : memref<72x1024xbf16, #tpu.memory_space<vmem>>, vector<8x1024xbf16>,
    %86 = vector.extract_strided_slice %79 {offsets = [0, 1], sizes = [8, 1024], strides = [1, 1]} : vector<8x1090xbf16> to vector<8x1024xbf16>
    %c8_34 = arith.constant 8 : index
    %c0_35 = arith.constant 0 : index
    %87 = vector.load %arg21[%c8_34, %c0_35] : memref<72x1024xbf16, #tpu.memory_space<vmem>>, vector<8x1024xbf16>
    tpu.vector_store %arg21[%c8_34, %c0_35], %86 {strides = array<i32>} : memref<72x1024xbf16, #tpu.memory_space<vmem>>, vector<8x1024xbf16>,
    %88 = vector.extract_strided_slice %79 {offsets = [0, 2], sizes = [8, 1024], strides = [1, 1]} : vector<8x1090xbf16> to vector<8x1024xbf16>
    %cst_36 = arith.constant 0.000000e+00 : bf16
    %89 = vector.shape_cast %22 : vector<1x1024xi1> to vector<1x1024xi1>
    %90 = vector.broadcast %89 : vector<1x1024xi1> to vector<8x1024xi1>
    %91 = vector.broadcast %cst_36 : bf16 to vector<8x1024xbf16>
    %92 = arith.select %90, %88, %91 : vector<8x1024xi1>, vector<8x1024xbf16>
    %c16_37 = arith.constant 16 : index
    %c0_38 = arith.constant 0 : index
    %93 = vector.load %arg21[%c16_37, %c0_38] : memref<72x1024xbf16, #tpu.memory_space<vmem>>, vector<8x1024xbf16>
    tpu.vector_store %arg21[%c16_37, %c0_38], %92 {strides = array<i32>} : memref<72x1024xbf16, #tpu.memory_space<vmem>>, vector<8x1024xbf16>,
    %94 = vector.extract_strided_slice %79 {offsets = [0, 32], sizes = [8, 1024], strides = [1, 1]} : vector<8x1090xbf16> to vector<8x1024xbf16>
    %cst_39 = arith.constant 0.000000e+00 : bf16
    %95 = vector.shape_cast %20 : vector<1x1024xi1> to vector<1x1024xi1>
    %96 = vector.broadcast %95 : vector<1x1024xi1> to vector<8x1024xi1>
    %97 = vector.broadcast %cst_39 : bf16 to vector<8x1024xbf16>
    %98 = arith.select %96, %94, %97 : vector<8x1024xi1>, vector<8x1024xbf16>
    %c24_40 = arith.constant 24 : index
    %c0_41 = arith.constant 0 : index
    %99 = vector.load %arg21[%c24_40, %c0_41] : memref<72x1024xbf16, #tpu.memory_space<vmem>>, vector<8x1024xbf16>
    tpu.vector_store %arg21[%c24_40, %c0_41], %98 {strides = array<i32>} : memref<72x1024xbf16, #tpu.memory_space<vmem>>, vector<8x1024xbf16>,
    %100 = vector.extract_strided_slice %79 {offsets = [0, 33], sizes = [8, 1024], strides = [1, 1]} : vector<8x1090xbf16> to vector<8x1024xbf16>
    %c32_42 = arith.constant 32 : index
    %c0_43 = arith.constant 0 : index
    %101 = vector.load %arg21[%c32_42, %c0_43] : memref<72x1024xbf16, #tpu.memory_space<vmem>>, vector<8x1024xbf16>
    tpu.vector_store %arg21[%c32_42, %c0_43], %100 {strides = array<i32>} : memref<72x1024xbf16, #tpu.memory_space<vmem>>, vector<8x1024xbf16>,
    %102 = vector.extract_strided_slice %79 {offsets = [0, 34], sizes = [8, 1024], strides = [1, 1]} : vector<8x1090xbf16> to vector<8x1024xbf16>
    %cst_44 = arith.constant 0.000000e+00 : bf16
    %103 = vector.shape_cast %22 : vector<1x1024xi1> to vector<1x1024xi1>
    %104 = vector.broadcast %103 : vector<1x1024xi1> to vector<8x1024xi1>
    %105 = vector.broadcast %cst_44 : bf16 to vector<8x1024xbf16>
    %106 = arith.select %104, %102, %105 : vector<8x1024xi1>, vector<8x1024xbf16>
    %c40_45 = arith.constant 40 : index
    %c0_46 = arith.constant 0 : index
    %107 = vector.load %arg21[%c40_45, %c0_46] : memref<72x1024xbf16, #tpu.memory_space<vmem>>, vector<8x1024xbf16>
    tpu.vector_store %arg21[%c40_45, %c0_46], %106 {strides = array<i32>} : memref<72x1024xbf16, #tpu.memory_space<vmem>>, vector<8x1024xbf16>,
    %108 = vector.extract_strided_slice %79 {offsets = [0, 64], sizes = [8, 1024], strides = [1, 1]} : vector<8x1090xbf16> to vector<8x1024xbf16>
    %cst_47 = arith.constant 0.000000e+00 : bf16
    %109 = vector.shape_cast %20 : vector<1x1024xi1> to vector<1x1024xi1>
    %110 = vector.broadcast %109 : vector<1x1024xi1> to vector<8x1024xi1>
    %111 = vector.broadcast %cst_47 : bf16 to vector<8x1024xbf16>
    %112 = arith.select %110, %108, %111 : vector<8x1024xi1>, vector<8x1024xbf16>
    %c48_48 = arith.constant 48 : index
    %c0_49 = arith.constant 0 : index
    %113 = vector.load %arg21[%c48_48, %c0_49] : memref<72x1024xbf16, #tpu.memory_space<vmem>>, vector<8x1024xbf16>
    tpu.vector_store %arg21[%c48_48, %c0_49], %112 {strides = array<i32>} : memref<72x1024xbf16, #tpu.memory_space<vmem>>, vector<8x1024xbf16>,
    %114 = vector.extract_strided_slice %79 {offsets = [0, 65], sizes = [8, 1024], strides = [1, 1]} : vector<8x1090xbf16> to vector<8x1024xbf16>
    %c56_50 = arith.constant 56 : index
    %c0_51 = arith.constant 0 : index
    %115 = vector.load %arg21[%c56_50, %c0_51] : memref<72x1024xbf16, #tpu.memory_space<vmem>>, vector<8x1024xbf16>
    tpu.vector_store %arg21[%c56_50, %c0_51], %114 {strides = array<i32>} : memref<72x1024xbf16, #tpu.memory_space<vmem>>, vector<8x1024xbf16>,
    %116 = vector.extract_strided_slice %79 {offsets = [0, 66], sizes = [8, 1024], strides = [1, 1]} : vector<8x1090xbf16> to vector<8x1024xbf16>
    %cst_52 = arith.constant 0.000000e+00 : bf16
    %117 = vector.shape_cast %22 : vector<1x1024xi1> to vector<1x1024xi1>
    %118 = vector.broadcast %117 : vector<1x1024xi1> to vector<8x1024xi1>
    %119 = vector.broadcast %cst_52 : bf16 to vector<8x1024xbf16>
    %120 = arith.select %118, %116, %119 : vector<8x1024xi1>, vector<8x1024xbf16>
    %c64_53 = arith.constant 64 : index
    %c0_54 = arith.constant 0 : index
    %121 = vector.load %arg21[%c64_53, %c0_54] : memref<72x1024xbf16, #tpu.memory_space<vmem>>, vector<8x1024xbf16>
    tpu.vector_store %arg21[%c64_53, %c0_54], %120 {strides = array<i32>} : memref<72x1024xbf16, #tpu.memory_space<vmem>>, vector<8x1024xbf16>,
    %c0_55 = arith.constant 0 : index
    %c0_56 = arith.constant 0 : index
    %122 = vector.load %arg4[%c0_55, %c0_56] : memref<8x72xbf16, #tpu.memory_space<vmem>>, vector<8x72xbf16>
    %c0_57 = arith.constant 0 : index
    %c0_58 = arith.constant 0 : index
    %123 = vector.load %arg21[%c0_57, %c0_58] : memref<72x1024xbf16, #tpu.memory_space<vmem>>, vector<72x1024xbf16>
    %cst_59 = arith.constant dense<0.000000e+00> : vector<8x1024xf32>
    %124 = tpu.matmul %122, %123, %cst_59 {dimension_numbers = #tpu.dot_dimension_numbers<[1], [0], [0], [1], [0, 0, 1, 1], [], []>} : vector<8x72xbf16>, vector<72x1024xbf16>, vector<8x1024xf32> -> vector<8x1024xf32>
    %c0_60 = arith.constant 0 : index
    %c0_61 = arith.constant 0 : index
    %125 = vector.load %arg5[%c0_60, %c0_61] : memref<8x1xf32, #tpu.memory_space<vmem>>, vector<8x1xf32>
    %126 = vector.broadcast %125 : vector<8x1xf32> to vector<8x1024xf32>
    %127 = arith.addf %124, %126 : vector<8x1024xf32>
    %cst_62 = arith.constant 0.00999999977 : f32
    %128 = vector.broadcast %cst_62 : f32 to vector<8x1024xf32>
    %129 = arith.mulf %128, %127 : vector<8x1024xf32>
    %130 = arith.maximumf %127, %129 : vector<8x1024xf32>
    %131 = arith.truncf %130 : vector<8x1024xf32> to vector<8x1024xbf16>
    %cst_63 = arith.constant 0.000000e+00 : bf16
    %132 = vector.broadcast %cst_63 : bf16 to vector<8x33xbf16>
    %133 = tpu.concatenate %132, %131, %132 in 1 : vector<8x33xbf16>, vector<8x1024xbf16>, vector<8x33xbf16> -> vector<8x1090xbf16>
    %134 = vector.extract_strided_slice %133 {offsets = [0, 0], sizes = [8, 1024], strides = [1, 1]} : vector<8x1090xbf16> to vector<8x1024xbf16>
    %cst_64 = arith.constant 0.000000e+00 : bf16
    %135 = vector.shape_cast %20 : vector<1x1024xi1> to vector<1x1024xi1>
    %136 = vector.broadcast %135 : vector<1x1024xi1> to vector<8x1024xi1>
    %137 = vector.broadcast %cst_64 : bf16 to vector<8x1024xbf16>
    %138 = arith.select %136, %134, %137 : vector<8x1024xi1>, vector<8x1024xbf16>
    %c0_65 = arith.constant 0 : index
    %c0_66 = arith.constant 0 : index
    %139 = vector.load %arg21[%c0_65, %c0_66] : memref<72x1024xbf16, #tpu.memory_space<vmem>>, vector<8x1024xbf16>
    tpu.vector_store %arg21[%c0_65, %c0_66], %138 {strides = array<i32>} : memref<72x1024xbf16, #tpu.memory_space<vmem>>, vector<8x1024xbf16>,
    %140 = vector.extract_strided_slice %133 {offsets = [0, 1], sizes = [8, 1024], strides = [1, 1]} : vector<8x1090xbf16> to vector<8x1024xbf16>
    %c8_67 = arith.constant 8 : index
    %c0_68 = arith.constant 0 : index
    %141 = vector.load %arg21[%c8_67, %c0_68] : memref<72x1024xbf16, #tpu.memory_space<vmem>>, vector<8x1024xbf16>
    tpu.vector_store %arg21[%c8_67, %c0_68], %140 {strides = array<i32>} : memref<72x1024xbf16, #tpu.memory_space<vmem>>, vector<8x1024xbf16>,
    %142 = vector.extract_strided_slice %133 {offsets = [0, 2], sizes = [8, 1024], strides = [1, 1]} : vector<8x1090xbf16> to vector<8x1024xbf16>
    %cst_69 = arith.constant 0.000000e+00 : bf16
    %143 = vector.shape_cast %22 : vector<1x1024xi1> to vector<1x1024xi1>
    %144 = vector.broadcast %143 : vector<1x1024xi1> to vector<8x1024xi1>
    %145 = vector.broadcast %cst_69 : bf16 to vector<8x1024xbf16>
    %146 = arith.select %144, %142, %145 : vector<8x1024xi1>, vector<8x1024xbf16>
    %c16_70 = arith.constant 16 : index
    %c0_71 = arith.constant 0 : index
    %147 = vector.load %arg21[%c16_70, %c0_71] : memref<72x1024xbf16, #tpu.memory_space<vmem>>, vector<8x1024xbf16>
    tpu.vector_store %arg21[%c16_70, %c0_71], %146 {strides = array<i32>} : memref<72x1024xbf16, #tpu.memory_space<vmem>>, vector<8x1024xbf16>,
    %148 = vector.extract_strided_slice %133 {offsets = [0, 32], sizes = [8, 1024], strides = [1, 1]} : vector<8x1090xbf16> to vector<8x1024xbf16>
    %cst_72 = arith.constant 0.000000e+00 : bf16
    %149 = vector.shape_cast %20 : vector<1x1024xi1> to vector<1x1024xi1>
    %150 = vector.broadcast %149 : vector<1x1024xi1> to vector<8x1024xi1>
    %151 = vector.broadcast %cst_72 : bf16 to vector<8x1024xbf16>
    %152 = arith.select %150, %148, %151 : vector<8x1024xi1>, vector<8x1024xbf16>
    %c24_73 = arith.constant 24 : index
    %c0_74 = arith.constant 0 : index
    %153 = vector.load %arg21[%c24_73, %c0_74] : memref<72x1024xbf16, #tpu.memory_space<vmem>>, vector<8x1024xbf16>
    tpu.vector_store %arg21[%c24_73, %c0_74], %152 {strides = array<i32>} : memref<72x1024xbf16, #tpu.memory_space<vmem>>, vector<8x1024xbf16>,
    %154 = vector.extract_strided_slice %133 {offsets = [0, 33], sizes = [8, 1024], strides = [1, 1]} : vector<8x1090xbf16> to vector<8x1024xbf16>
    %c32_75 = arith.constant 32 : index
    %c0_76 = arith.constant 0 : index
    %155 = vector.load %arg21[%c32_75, %c0_76] : memref<72x1024xbf16, #tpu.memory_space<vmem>>, vector<8x1024xbf16>
    tpu.vector_store %arg21[%c32_75, %c0_76], %154 {strides = array<i32>} : memref<72x1024xbf16, #tpu.memory_space<vmem>>, vector<8x1024xbf16>,
    %156 = vector.extract_strided_slice %133 {offsets = [0, 34], sizes = [8, 1024], strides = [1, 1]} : vector<8x1090xbf16> to vector<8x1024xbf16>
    %cst_77 = arith.constant 0.000000e+00 : bf16
    %157 = vector.shape_cast %22 : vector<1x1024xi1> to vector<1x1024xi1>
    %158 = vector.broadcast %157 : vector<1x1024xi1> to vector<8x1024xi1>
    %159 = vector.broadcast %cst_77 : bf16 to vector<8x1024xbf16>
    %160 = arith.select %158, %156, %159 : vector<8x1024xi1>, vector<8x1024xbf16>
    %c40_78 = arith.constant 40 : index
    %c0_79 = arith.constant 0 : index
    %161 = vector.load %arg21[%c40_78, %c0_79] : memref<72x1024xbf16, #tpu.memory_space<vmem>>, vector<8x1024xbf16>
    tpu.vector_store %arg21[%c40_78, %c0_79], %160 {strides = array<i32>} : memref<72x1024xbf16, #tpu.memory_space<vmem>>, vector<8x1024xbf16>,
    %162 = vector.extract_strided_slice %133 {offsets = [0, 64], sizes = [8, 1024], strides = [1, 1]} : vector<8x1090xbf16> to vector<8x1024xbf16>
    %cst_80 = arith.constant 0.000000e+00 : bf16
    %163 = vector.shape_cast %20 : vector<1x1024xi1> to vector<1x1024xi1>
    %164 = vector.broadcast %163 : vector<1x1024xi1> to vector<8x1024xi1>
    %165 = vector.broadcast %cst_80 : bf16 to vector<8x1024xbf16>
    %166 = arith.select %164, %162, %165 : vector<8x1024xi1>, vector<8x1024xbf16>
    %c48_81 = arith.constant 48 : index
    %c0_82 = arith.constant 0 : index
    %167 = vector.load %arg21[%c48_81, %c0_82] : memref<72x1024xbf16, #tpu.memory_space<vmem>>, vector<8x1024xbf16>
    tpu.vector_store %arg21[%c48_81, %c0_82], %166 {strides = array<i32>} : memref<72x1024xbf16, #tpu.memory_space<vmem>>, vector<8x1024xbf16>,
    %168 = vector.extract_strided_slice %133 {offsets = [0, 65], sizes = [8, 1024], strides = [1, 1]} : vector<8x1090xbf16> to vector<8x1024xbf16>
    %c56_83 = arith.constant 56 : index
    %c0_84 = arith.constant 0 : index
    %169 = vector.load %arg21[%c56_83, %c0_84] : memref<72x1024xbf16, #tpu.memory_space<vmem>>, vector<8x1024xbf16>
    tpu.vector_store %arg21[%c56_83, %c0_84], %168 {strides = array<i32>} : memref<72x1024xbf16, #tpu.memory_space<vmem>>, vector<8x1024xbf16>,
    %170 = vector.extract_strided_slice %133 {offsets = [0, 66], sizes = [8, 1024], strides = [1, 1]} : vector<8x1090xbf16> to vector<8x1024xbf16>
    %cst_85 = arith.constant 0.000000e+00 : bf16
    %171 = vector.shape_cast %22 : vector<1x1024xi1> to vector<1x1024xi1>
    %172 = vector.broadcast %171 : vector<1x1024xi1> to vector<8x1024xi1>
    %173 = vector.broadcast %cst_85 : bf16 to vector<8x1024xbf16>
    %174 = arith.select %172, %170, %173 : vector<8x1024xi1>, vector<8x1024xbf16>
    %c64_86 = arith.constant 64 : index
    %c0_87 = arith.constant 0 : index
    %175 = vector.load %arg21[%c64_86, %c0_87] : memref<72x1024xbf16, #tpu.memory_space<vmem>>, vector<8x1024xbf16>
    tpu.vector_store %arg21[%c64_86, %c0_87], %174 {strides = array<i32>} : memref<72x1024xbf16, #tpu.memory_space<vmem>>, vector<8x1024xbf16>,
    %c0_88 = arith.constant 0 : index
    %c0_89 = arith.constant 0 : index
    %176 = vector.load %arg6[%c0_88, %c0_89] : memref<8x72xbf16, #tpu.memory_space<vmem>>, vector<8x72xbf16>
    %c0_90 = arith.constant 0 : index
    %c0_91 = arith.constant 0 : index
    %177 = vector.load %arg21[%c0_90, %c0_91] : memref<72x1024xbf16, #tpu.memory_space<vmem>>, vector<72x1024xbf16>
    %cst_92 = arith.constant dense<0.000000e+00> : vector<8x1024xf32>
    %178 = tpu.matmul %176, %177, %cst_92 {dimension_numbers = #tpu.dot_dimension_numbers<[1], [0], [0], [1], [0, 0, 1, 1], [], []>} : vector<8x72xbf16>, vector<72x1024xbf16>, vector<8x1024xf32> -> vector<8x1024xf32>
    %c0_93 = arith.constant 0 : index
    %c0_94 = arith.constant 0 : index
    %179 = vector.load %arg7[%c0_93, %c0_94] : memref<8x1xf32, #tpu.memory_space<vmem>>, vector<8x1xf32>
    %180 = vector.broadcast %179 : vector<8x1xf32> to vector<8x1024xf32>
    %181 = arith.addf %178, %180 : vector<8x1024xf32>
    %cst_95 = arith.constant 0.00999999977 : f32
    %182 = vector.broadcast %cst_95 : f32 to vector<8x1024xf32>
    %183 = arith.mulf %182, %181 : vector<8x1024xf32>
    %184 = arith.maximumf %181, %183 : vector<8x1024xf32>
    %185 = arith.addf %184, %76 : vector<8x1024xf32>
    %c0_96 = arith.constant 0 : index
    %c0_97 = arith.constant 0 : index
    %c0_98 = arith.constant 0 : index
    %186 = vector.load %arg18[%c0_96, %c0_97, %c0_98] : memref<1x8x1024xf32, #tpu.memory_space<vmem>>, vector<1x8x1024xf32>
    %187 = vector.shape_cast %186 : vector<1x8x1024xf32> to vector<8x1024xf32>
    %188 = vector.shape_cast %185 : vector<8x1024xf32> to vector<1x8x1024xf32>
    tpu.vector_store %arg18[%c0_96, %c0_97, %c0_98], %188 {strides = array<i32>} : memref<1x8x1024xf32, #tpu.memory_space<vmem>>, vector<1x8x1024xf32>,
    %189 = vector.extract_strided_slice %185 {offsets = [0, 0], sizes = [8, 32], strides = [1, 1]} : vector<8x1024xf32> to vector<8x32xf32>
    %190 = vector.extract_strided_slice %185 {offsets = [0, 32], sizes = [8, 32], strides = [1, 1]} : vector<8x1024xf32> to vector<8x32xf32>
    %191 = arith.addf %189, %190 : vector<8x32xf32>
    %192 = vector.extract_strided_slice %185 {offsets = [0, 64], sizes = [8, 32], strides = [1, 1]} : vector<8x1024xf32> to vector<8x32xf32>
    %193 = vector.extract_strided_slice %185 {offsets = [0, 96], sizes = [8, 32], strides = [1, 1]} : vector<8x1024xf32> to vector<8x32xf32>
    %194 = arith.addf %192, %193 : vector<8x32xf32>
    %195 = vector.extract_strided_slice %185 {offsets = [0, 128], sizes = [8, 32], strides = [1, 1]} : vector<8x1024xf32> to vector<8x32xf32>
    %196 = vector.extract_strided_slice %185 {offsets = [0, 160], sizes = [8, 32], strides = [1, 1]} : vector<8x1024xf32> to vector<8x32xf32>
    %197 = arith.addf %195, %196 : vector<8x32xf32>
    %198 = vector.extract_strided_slice %185 {offsets = [0, 192], sizes = [8, 32], strides = [1, 1]} : vector<8x1024xf32> to vector<8x32xf32>
    %199 = vector.extract_strided_slice %185 {offsets = [0, 224], sizes = [8, 32], strides = [1, 1]} : vector<8x1024xf32> to vector<8x32xf32>
    %200 = arith.addf %198, %199 : vector<8x32xf32>
    %201 = vector.extract_strided_slice %185 {offsets = [0, 256], sizes = [8, 32], strides = [1, 1]} : vector<8x1024xf32> to vector<8x32xf32>
    %202 = vector.extract_strided_slice %185 {offsets = [0, 288], sizes = [8, 32], strides = [1, 1]} : vector<8x1024xf32> to vector<8x32xf32>
    %203 = arith.addf %201, %202 : vector<8x32xf32>
    %204 = vector.extract_strided_slice %185 {offsets = [0, 320], sizes = [8, 32], strides = [1, 1]} : vector<8x1024xf32> to vector<8x32xf32>
    %205 = vector.extract_strided_slice %185 {offsets = [0, 352], sizes = [8, 32], strides = [1, 1]} : vector<8x1024xf32> to vector<8x32xf32>
    %206 = arith.addf %204, %205 : vector<8x32xf32>
    %207 = vector.extract_strided_slice %185 {offsets = [0, 384], sizes = [8, 32], strides = [1, 1]} : vector<8x1024xf32> to vector<8x32xf32>
    %208 = vector.extract_strided_slice %185 {offsets = [0, 416], sizes = [8, 32], strides = [1, 1]} : vector<8x1024xf32> to vector<8x32xf32>
    %209 = arith.addf %207, %208 : vector<8x32xf32>
    %210 = vector.extract_strided_slice %185 {offsets = [0, 448], sizes = [8, 32], strides = [1, 1]} : vector<8x1024xf32> to vector<8x32xf32>
    %211 = vector.extract_strided_slice %185 {offsets = [0, 480], sizes = [8, 32], strides = [1, 1]} : vector<8x1024xf32> to vector<8x32xf32>
    %212 = arith.addf %210, %211 : vector<8x32xf32>
    %213 = vector.extract_strided_slice %185 {offsets = [0, 512], sizes = [8, 32], strides = [1, 1]} : vector<8x1024xf32> to vector<8x32xf32>
    %214 = vector.extract_strided_slice %185 {offsets = [0, 544], sizes = [8, 32], strides = [1, 1]} : vector<8x1024xf32> to vector<8x32xf32>
    %215 = arith.addf %213, %214 : vector<8x32xf32>
    %216 = vector.extract_strided_slice %185 {offsets = [0, 576], sizes = [8, 32], strides = [1, 1]} : vector<8x1024xf32> to vector<8x32xf32>
    %217 = vector.extract_strided_slice %185 {offsets = [0, 608], sizes = [8, 32], strides = [1, 1]} : vector<8x1024xf32> to vector<8x32xf32>
    %218 = arith.addf %216, %217 : vector<8x32xf32>
    %219 = vector.extract_strided_slice %185 {offsets = [0, 640], sizes = [8, 32], strides = [1, 1]} : vector<8x1024xf32> to vector<8x32xf32>
    %220 = vector.extract_strided_slice %185 {offsets = [0, 672], sizes = [8, 32], strides = [1, 1]} : vector<8x1024xf32> to vector<8x32xf32>
    %221 = arith.addf %219, %220 : vector<8x32xf32>
    %222 = vector.extract_strided_slice %185 {offsets = [0, 704], sizes = [8, 32], strides = [1, 1]} : vector<8x1024xf32> to vector<8x32xf32>
    %223 = vector.extract_strided_slice %185 {offsets = [0, 736], sizes = [8, 32], strides = [1, 1]} : vector<8x1024xf32> to vector<8x32xf32>
    %224 = arith.addf %222, %223 : vector<8x32xf32>
    %225 = vector.extract_strided_slice %185 {offsets = [0, 768], sizes = [8, 32], strides = [1, 1]} : vector<8x1024xf32> to vector<8x32xf32>
    %226 = vector.extract_strided_slice %185 {offsets = [0, 800], sizes = [8, 32], strides = [1, 1]} : vector<8x1024xf32> to vector<8x32xf32>
    %227 = arith.addf %225, %226 : vector<8x32xf32>
    %228 = vector.extract_strided_slice %185 {offsets = [0, 832], sizes = [8, 32], strides = [1, 1]} : vector<8x1024xf32> to vector<8x32xf32>
    %229 = vector.extract_strided_slice %185 {offsets = [0, 864], sizes = [8, 32], strides = [1, 1]} : vector<8x1024xf32> to vector<8x32xf32>
    %230 = arith.addf %228, %229 : vector<8x32xf32>
    %231 = vector.extract_strided_slice %185 {offsets = [0, 896], sizes = [8, 32], strides = [1, 1]} : vector<8x1024xf32> to vector<8x32xf32>
    %232 = vector.extract_strided_slice %185 {offsets = [0, 928], sizes = [8, 32], strides = [1, 1]} : vector<8x1024xf32> to vector<8x32xf32>
    %233 = arith.addf %231, %232 : vector<8x32xf32>
    %234 = vector.extract_strided_slice %185 {offsets = [0, 960], sizes = [8, 32], strides = [1, 1]} : vector<8x1024xf32> to vector<8x32xf32>
    %235 = vector.extract_strided_slice %185 {offsets = [0, 992], sizes = [8, 32], strides = [1, 1]} : vector<8x1024xf32> to vector<8x32xf32>
    %236 = arith.addf %234, %235 : vector<8x32xf32>
    %237 = tpu.concatenate %191, %194, %197, %200, %203, %206, %209, %212, %215, %218, %221, %224, %227, %230, %233, %236 in 0 : vector<8x32xf32>, vector<8x32xf32>, vector<8x32xf32>, vector<8x32xf32>, vector<8x32xf32>, vector<8x32xf32>, vector<8x32xf32>, vector<8x32xf32>, vector<8x32xf32>, vector<8x32xf32>, vector<8x32xf32>, vector<8x32xf32>, vector<8x32xf32>, vector<8x32xf32>, vector<8x32xf32>, vector<8x32xf32> -> vector<128x32xf32>
    %238 = arith.truncf %237 : vector<128x32xf32> to vector<128x32xbf16>
    %c0_99 = arith.constant 0 : index
    %c0_100 = arith.constant 0 : index
    %239 = vector.load %arg8[%c0_99, %c0_100] : memref<32x16xbf16, #tpu.memory_space<vmem>>, vector<32x16xbf16>
    %cst_101 = arith.constant dense<0.000000e+00> : vector<128x16xf32>
    %240 = tpu.matmul %238, %239, %cst_101 {dimension_numbers = #tpu.dot_dimension_numbers<[1], [0], [0], [1], [0, 0, 1, 1], [], []>} : vector<128x32xbf16>, vector<32x16xbf16>, vector<128x16xf32> -> vector<128x16xf32>
    %241 = vector.extract_strided_slice %240 {offsets = [0, 0], sizes = [8, 16], strides = [1, 1]} : vector<128x16xf32> to vector<8x16xf32>
    %242 = vector.extract_strided_slice %240 {offsets = [8, 0], sizes = [8, 16], strides = [1, 1]} : vector<128x16xf32> to vector<8x16xf32>
    %243 = vector.extract_strided_slice %240 {offsets = [16, 0], sizes = [8, 16], strides = [1, 1]} : vector<128x16xf32> to vector<8x16xf32>
    %244 = vector.extract_strided_slice %240 {offsets = [24, 0], sizes = [8, 16], strides = [1, 1]} : vector<128x16xf32> to vector<8x16xf32>
    %245 = vector.extract_strided_slice %240 {offsets = [32, 0], sizes = [8, 16], strides = [1, 1]} : vector<128x16xf32> to vector<8x16xf32>
    %246 = vector.extract_strided_slice %240 {offsets = [40, 0], sizes = [8, 16], strides = [1, 1]} : vector<128x16xf32> to vector<8x16xf32>
    %247 = vector.extract_strided_slice %240 {offsets = [48, 0], sizes = [8, 16], strides = [1, 1]} : vector<128x16xf32> to vector<8x16xf32>
    %248 = vector.extract_strided_slice %240 {offsets = [56, 0], sizes = [8, 16], strides = [1, 1]} : vector<128x16xf32> to vector<8x16xf32>
    %249 = vector.extract_strided_slice %240 {offsets = [64, 0], sizes = [8, 16], strides = [1, 1]} : vector<128x16xf32> to vector<8x16xf32>
    %250 = vector.extract_strided_slice %240 {offsets = [72, 0], sizes = [8, 16], strides = [1, 1]} : vector<128x16xf32> to vector<8x16xf32>
    %251 = vector.extract_strided_slice %240 {offsets = [80, 0], sizes = [8, 16], strides = [1, 1]} : vector<128x16xf32> to vector<8x16xf32>
    %252 = vector.extract_strided_slice %240 {offsets = [88, 0], sizes = [8, 16], strides = [1, 1]} : vector<128x16xf32> to vector<8x16xf32>
    %253 = vector.extract_strided_slice %240 {offsets = [96, 0], sizes = [8, 16], strides = [1, 1]} : vector<128x16xf32> to vector<8x16xf32>
    %254 = vector.extract_strided_slice %240 {offsets = [104, 0], sizes = [8, 16], strides = [1, 1]} : vector<128x16xf32> to vector<8x16xf32>
    %255 = vector.extract_strided_slice %240 {offsets = [112, 0], sizes = [8, 16], strides = [1, 1]} : vector<128x16xf32> to vector<8x16xf32>
    %256 = vector.extract_strided_slice %240 {offsets = [120, 0], sizes = [8, 16], strides = [1, 1]} : vector<128x16xf32> to vector<8x16xf32>
    %257 = tpu.concatenate %241, %242, %243, %244, %245, %246, %247, %248, %249, %250, %251, %252, %253, %254, %255, %256 in 1 : vector<8x16xf32>, vector<8x16xf32>, vector<8x16xf32>, vector<8x16xf32>, vector<8x16xf32>, vector<8x16xf32>, vector<8x16xf32>, vector<8x16xf32>, vector<8x16xf32>, vector<8x16xf32>, vector<8x16xf32>, vector<8x16xf32>, vector<8x16xf32>, vector<8x16xf32>, vector<8x16xf32>, vector<8x16xf32> -> vector<8x256xf32>
    %258 = tpu.iota {dimensions = array<i32: 1>} : vector<1x256xi32>
    %c16_i32 = arith.constant 16 : i32
    %c0_i32_102 = arith.constant 0 : i32
    %259 = arith.cmpi eq, %c16_i32, %c0_i32_102 : i32
    %c1_i32_103 = arith.constant 1 : i32
    %260 = arith.select %259, %c1_i32_103, %c16_i32 : i32
    %261 = vector.broadcast %260 : i32 to vector<1x256xi32>
    %262 = arith.remsi %258, %261 : vector<1x256xi32>
    %c0_i32_104 = arith.constant 0 : i32
    %263 = vector.broadcast %c0_i32_104 : i32 to vector<1x256xi32>
    %264 = arith.cmpi ne, %262, %263 : vector<1x256xi32>
    %c0_i32_105 = arith.constant 0 : i32
    %265 = vector.broadcast %c0_i32_105 : i32 to vector<1x256xi32>
    %266 = arith.cmpi slt, %262, %265 : vector<1x256xi32>
    %c0_i32_106 = arith.constant 0 : i32
    %267 = arith.cmpi slt, %260, %c0_i32_106 : i32
    %268 = vector.broadcast %267 : i1 to vector<1x256xi1>
    %269 = vector.broadcast %268 : vector<1x256xi1> to vector<1x256xi1>
    %270 = arith.xori %266, %269 : vector<1x256xi1>
    %271 = arith.andi %270, %264 : vector<1x256xi1>
    %272 = vector.broadcast %260 : i32 to vector<1x256xi32>
    %273 = arith.addi %262, %272 : vector<1x256xi32>
    %274 = arith.select %271, %273, %262 : vector<1x256xi1>, vector<1x256xi32>
    %c0_i32_107 = arith.constant 0 : i32
    %275 = vector.broadcast %c0_i32_107 : i32 to vector<1x256xi32>
    %276 = arith.cmpi ne, %274, %275 : vector<1x256xi32>
    %c15_i32 = arith.constant 15 : i32
    %277 = vector.broadcast %c15_i32 : i32 to vector<1x256xi32>
    %278 = arith.cmpi ne, %274, %277 : vector<1x256xi32>
    %279 = arith.truncf %257 : vector<8x256xf32> to vector<8x256xbf16>
    %cst_108 = arith.constant 0.000000e+00 : bf16
    %280 = vector.broadcast %cst_108 : bf16 to vector<8x17xbf16>
    %281 = tpu.concatenate %280, %279, %280 in 1 : vector<8x17xbf16>, vector<8x256xbf16>, vector<8x17xbf16> -> vector<8x290xbf16>
    %282 = vector.extract_strided_slice %281 {offsets = [0, 0], sizes = [8, 256], strides = [1, 1]} : vector<8x290xbf16> to vector<8x256xbf16>
    %cst_109 = arith.constant 0.000000e+00 : bf16
    %283 = vector.shape_cast %276 : vector<1x256xi1> to vector<1x256xi1>
    %284 = vector.broadcast %283 : vector<1x256xi1> to vector<8x256xi1>
    %285 = vector.broadcast %cst_109 : bf16 to vector<8x256xbf16>
    %286 = arith.select %284, %282, %285 : vector<8x256xi1>, vector<8x256xbf16>
    %c0_110 = arith.constant 0 : index
    %c0_111 = arith.constant 0 : index
    %287 = vector.load %arg22[%c0_110, %c0_111] : memref<144x256xbf16, #tpu.memory_space<vmem>>, vector<8x256xbf16>
    tpu.vector_store %arg22[%c0_110, %c0_111], %286 {strides = array<i32>} : memref<144x256xbf16, #tpu.memory_space<vmem>>, vector<8x256xbf16>,
    %288 = vector.extract_strided_slice %281 {offsets = [0, 1], sizes = [8, 256], strides = [1, 1]} : vector<8x290xbf16> to vector<8x256xbf16>
    %c8_112 = arith.constant 8 : index
    %c0_113 = arith.constant 0 : index
    %289 = vector.load %arg22[%c8_112, %c0_113] : memref<144x256xbf16, #tpu.memory_space<vmem>>, vector<8x256xbf16>
    tpu.vector_store %arg22[%c8_112, %c0_113], %288 {strides = array<i32>} : memref<144x256xbf16, #tpu.memory_space<vmem>>, vector<8x256xbf16>,
    %290 = vector.extract_strided_slice %281 {offsets = [0, 2], sizes = [8, 256], strides = [1, 1]} : vector<8x290xbf16> to vector<8x256xbf16>
    %cst_114 = arith.constant 0.000000e+00 : bf16
    %291 = vector.shape_cast %278 : vector<1x256xi1> to vector<1x256xi1>
    %292 = vector.broadcast %291 : vector<1x256xi1> to vector<8x256xi1>
    %293 = vector.broadcast %cst_114 : bf16 to vector<8x256xbf16>
    %294 = arith.select %292, %290, %293 : vector<8x256xi1>, vector<8x256xbf16>
    %c16_115 = arith.constant 16 : index
    %c0_116 = arith.constant 0 : index
    %295 = vector.load %arg22[%c16_115, %c0_116] : memref<144x256xbf16, #tpu.memory_space<vmem>>, vector<8x256xbf16>
    tpu.vector_store %arg22[%c16_115, %c0_116], %294 {strides = array<i32>} : memref<144x256xbf16, #tpu.memory_space<vmem>>, vector<8x256xbf16>,
    %296 = vector.extract_strided_slice %281 {offsets = [0, 16], sizes = [8, 256], strides = [1, 1]} : vector<8x290xbf16> to vector<8x256xbf16>
    %cst_117 = arith.constant 0.000000e+00 : bf16
    %297 = vector.shape_cast %276 : vector<1x256xi1> to vector<1x256xi1>
    %298 = vector.broadcast %297 : vector<1x256xi1> to vector<8x256xi1>
    %299 = vector.broadcast %cst_117 : bf16 to vector<8x256xbf16>
    %300 = arith.select %298, %296, %299 : vector<8x256xi1>, vector<8x256xbf16>
    %c24_118 = arith.constant 24 : index
    %c0_119 = arith.constant 0 : index
    %301 = vector.load %arg22[%c24_118, %c0_119] : memref<144x256xbf16, #tpu.memory_space<vmem>>, vector<8x256xbf16>
    tpu.vector_store %arg22[%c24_118, %c0_119], %300 {strides = array<i32>} : memref<144x256xbf16, #tpu.memory_space<vmem>>, vector<8x256xbf16>,
    %302 = vector.extract_strided_slice %281 {offsets = [0, 17], sizes = [8, 256], strides = [1, 1]} : vector<8x290xbf16> to vector<8x256xbf16>
    %c32_120 = arith.constant 32 : index
    %c0_121 = arith.constant 0 : index
    %303 = vector.load %arg22[%c32_120, %c0_121] : memref<144x256xbf16, #tpu.memory_space<vmem>>, vector<8x256xbf16>
    tpu.vector_store %arg22[%c32_120, %c0_121], %302 {strides = array<i32>} : memref<144x256xbf16, #tpu.memory_space<vmem>>, vector<8x256xbf16>,
    %304 = vector.extract_strided_slice %281 {offsets = [0, 18], sizes = [8, 256], strides = [1, 1]} : vector<8x290xbf16> to vector<8x256xbf16>
    %cst_122 = arith.constant 0.000000e+00 : bf16
    %305 = vector.shape_cast %278 : vector<1x256xi1> to vector<1x256xi1>
    %306 = vector.broadcast %305 : vector<1x256xi1> to vector<8x256xi1>
    %307 = vector.broadcast %cst_122 : bf16 to vector<8x256xbf16>
    %308 = arith.select %306, %304, %307 : vector<8x256xi1>, vector<8x256xbf16>
    %c40_123 = arith.constant 40 : index
    %c0_124 = arith.constant 0 : index
    %309 = vector.load %arg22[%c40_123, %c0_124] : memref<144x256xbf16, #tpu.memory_space<vmem>>, vector<8x256xbf16>
    tpu.vector_store %arg22[%c40_123, %c0_124], %308 {strides = array<i32>} : memref<144x256xbf16, #tpu.memory_space<vmem>>, vector<8x256xbf16>,
    %310 = vector.extract_strided_slice %281 {offsets = [0, 32], sizes = [8, 256], strides = [1, 1]} : vector<8x290xbf16> to vector<8x256xbf16>
    %cst_125 = arith.constant 0.000000e+00 : bf16
    %311 = vector.shape_cast %276 : vector<1x256xi1> to vector<1x256xi1>
    %312 = vector.broadcast %311 : vector<1x256xi1> to vector<8x256xi1>
    %313 = vector.broadcast %cst_125 : bf16 to vector<8x256xbf16>
    %314 = arith.select %312, %310, %313 : vector<8x256xi1>, vector<8x256xbf16>
    %c48_126 = arith.constant 48 : index
    %c0_127 = arith.constant 0 : index
    %315 = vector.load %arg22[%c48_126, %c0_127] : memref<144x256xbf16, #tpu.memory_space<vmem>>, vector<8x256xbf16>
    tpu.vector_store %arg22[%c48_126, %c0_127], %314 {strides = array<i32>} : memref<144x256xbf16, #tpu.memory_space<vmem>>, vector<8x256xbf16>,
    %316 = vector.extract_strided_slice %281 {offsets = [0, 33], sizes = [8, 256], strides = [1, 1]} : vector<8x290xbf16> to vector<8x256xbf16>
    %c56_128 = arith.constant 56 : index
    %c0_129 = arith.constant 0 : index
    %317 = vector.load %arg22[%c56_128, %c0_129] : memref<144x256xbf16, #tpu.memory_space<vmem>>, vector<8x256xbf16>
    tpu.vector_store %arg22[%c56_128, %c0_129], %316 {strides = array<i32>} : memref<144x256xbf16, #tpu.memory_space<vmem>>, vector<8x256xbf16>,
    %318 = vector.extract_strided_slice %281 {offsets = [0, 34], sizes = [8, 256], strides = [1, 1]} : vector<8x290xbf16> to vector<8x256xbf16>
    %cst_130 = arith.constant 0.000000e+00 : bf16
    %319 = vector.shape_cast %278 : vector<1x256xi1> to vector<1x256xi1>
    %320 = vector.broadcast %319 : vector<1x256xi1> to vector<8x256xi1>
    %321 = vector.broadcast %cst_130 : bf16 to vector<8x256xbf16>
    %322 = arith.select %320, %318, %321 : vector<8x256xi1>, vector<8x256xbf16>
    %c64_131 = arith.constant 64 : index
    %c0_132 = arith.constant 0 : index
    %323 = vector.load %arg22[%c64_131, %c0_132] : memref<144x256xbf16, #tpu.memory_space<vmem>>, vector<8x256xbf16>
    tpu.vector_store %arg22[%c64_131, %c0_132], %322 {strides = array<i32>} : memref<144x256xbf16, #tpu.memory_space<vmem>>, vector<8x256xbf16>,
    %c0_133 = arith.constant 0 : index
    %c0_134 = arith.constant 0 : index
    %324 = vector.load %arg9[%c0_133, %c0_134] : memref<16x72xbf16, #tpu.memory_space<vmem>>, vector<16x72xbf16>
    %c0_135 = arith.constant 0 : index
    %c0_136 = arith.constant 0 : index
    %325 = vector.load %arg22[%c0_135, %c0_136] : memref<144x256xbf16, #tpu.memory_space<vmem>>, vector<72x256xbf16>
    %cst_137 = arith.constant dense<0.000000e+00> : vector<16x256xf32>
    %326 = tpu.matmul %324, %325, %cst_137 {dimension_numbers = #tpu.dot_dimension_numbers<[1], [0], [0], [1], [0, 0, 1, 1], [], []>} : vector<16x72xbf16>, vector<72x256xbf16>, vector<16x256xf32> -> vector<16x256xf32>
    %c0_138 = arith.constant 0 : index
    %c0_139 = arith.constant 0 : index
    %327 = vector.load %arg10[%c0_138, %c0_139] : memref<16x1xf32, #tpu.memory_space<vmem>>, vector<16x1xf32>
    %328 = vector.broadcast %327 : vector<16x1xf32> to vector<16x256xf32>
    %329 = arith.addf %326, %328 : vector<16x256xf32>
    %cst_140 = arith.constant 0.00999999977 : f32
    %330 = vector.broadcast %cst_140 : f32 to vector<16x256xf32>
    %331 = arith.mulf %330, %329 : vector<16x256xf32>
    %332 = arith.maximumf %329, %331 : vector<16x256xf32>
    %333 = arith.truncf %332 : vector<16x256xf32> to vector<16x256xbf16>
    %cst_141 = arith.constant 0.000000e+00 : bf16
    %334 = vector.broadcast %cst_141 : bf16 to vector<16x17xbf16>
    %335 = tpu.concatenate %334, %333, %334 in 1 : vector<16x17xbf16>, vector<16x256xbf16>, vector<16x17xbf16> -> vector<16x290xbf16>
    %336 = vector.extract_strided_slice %335 {offsets = [0, 0], sizes = [16, 256], strides = [1, 1]} : vector<16x290xbf16> to vector<16x256xbf16>
    %cst_142 = arith.constant 0.000000e+00 : bf16
    %337 = vector.shape_cast %276 : vector<1x256xi1> to vector<1x256xi1>
    %338 = vector.broadcast %337 : vector<1x256xi1> to vector<16x256xi1>
    %339 = vector.broadcast %cst_142 : bf16 to vector<16x256xbf16>
    %340 = arith.select %338, %336, %339 : vector<16x256xi1>, vector<16x256xbf16>
    %c0_143 = arith.constant 0 : index
    %c0_144 = arith.constant 0 : index
    %341 = vector.load %arg22[%c0_143, %c0_144] : memref<144x256xbf16, #tpu.memory_space<vmem>>, vector<16x256xbf16>
    tpu.vector_store %arg22[%c0_143, %c0_144], %340 {strides = array<i32>} : memref<144x256xbf16, #tpu.memory_space<vmem>>, vector<16x256xbf16>,
    %342 = vector.extract_strided_slice %335 {offsets = [0, 1], sizes = [16, 256], strides = [1, 1]} : vector<16x290xbf16> to vector<16x256xbf16>
    %c16_145 = arith.constant 16 : index
    %c0_146 = arith.constant 0 : index
    %343 = vector.load %arg22[%c16_145, %c0_146] : memref<144x256xbf16, #tpu.memory_space<vmem>>, vector<16x256xbf16>
    tpu.vector_store %arg22[%c16_145, %c0_146], %342 {strides = array<i32>} : memref<144x256xbf16, #tpu.memory_space<vmem>>, vector<16x256xbf16>,
    %344 = vector.extract_strided_slice %335 {offsets = [0, 2], sizes = [16, 256], strides = [1, 1]} : vector<16x290xbf16> to vector<16x256xbf16>
    %cst_147 = arith.constant 0.000000e+00 : bf16
    %345 = vector.shape_cast %278 : vector<1x256xi1> to vector<1x256xi1>
    %346 = vector.broadcast %345 : vector<1x256xi1> to vector<16x256xi1>
    %347 = vector.broadcast %cst_147 : bf16 to vector<16x256xbf16>
    %348 = arith.select %346, %344, %347 : vector<16x256xi1>, vector<16x256xbf16>
    %c32_148 = arith.constant 32 : index
    %c0_149 = arith.constant 0 : index
    %349 = vector.load %arg22[%c32_148, %c0_149] : memref<144x256xbf16, #tpu.memory_space<vmem>>, vector<16x256xbf16>
    tpu.vector_store %arg22[%c32_148, %c0_149], %348 {strides = array<i32>} : memref<144x256xbf16, #tpu.memory_space<vmem>>, vector<16x256xbf16>,
    %350 = vector.extract_strided_slice %335 {offsets = [0, 16], sizes = [16, 256], strides = [1, 1]} : vector<16x290xbf16> to vector<16x256xbf16>
    %cst_150 = arith.constant 0.000000e+00 : bf16
    %351 = vector.shape_cast %276 : vector<1x256xi1> to vector<1x256xi1>
    %352 = vector.broadcast %351 : vector<1x256xi1> to vector<16x256xi1>
    %353 = vector.broadcast %cst_150 : bf16 to vector<16x256xbf16>
    %354 = arith.select %352, %350, %353 : vector<16x256xi1>, vector<16x256xbf16>
    %c48_151 = arith.constant 48 : index
    %c0_152 = arith.constant 0 : index
    %355 = vector.load %arg22[%c48_151, %c0_152] : memref<144x256xbf16, #tpu.memory_space<vmem>>, vector<16x256xbf16>
    tpu.vector_store %arg22[%c48_151, %c0_152], %354 {strides = array<i32>} : memref<144x256xbf16, #tpu.memory_space<vmem>>, vector<16x256xbf16>,
    %356 = vector.extract_strided_slice %335 {offsets = [0, 17], sizes = [16, 256], strides = [1, 1]} : vector<16x290xbf16> to vector<16x256xbf16>
    %c64_153 = arith.constant 64 : index
    %c0_154 = arith.constant 0 : index
    %357 = vector.load %arg22[%c64_153, %c0_154] : memref<144x256xbf16, #tpu.memory_space<vmem>>, vector<16x256xbf16>
    tpu.vector_store %arg22[%c64_153, %c0_154], %356 {strides = array<i32>} : memref<144x256xbf16, #tpu.memory_space<vmem>>, vector<16x256xbf16>,
    %358 = vector.extract_strided_slice %335 {offsets = [0, 18], sizes = [16, 256], strides = [1, 1]} : vector<16x290xbf16> to vector<16x256xbf16>
    %cst_155 = arith.constant 0.000000e+00 : bf16
    %359 = vector.shape_cast %278 : vector<1x256xi1> to vector<1x256xi1>
    %360 = vector.broadcast %359 : vector<1x256xi1> to vector<16x256xi1>
    %361 = vector.broadcast %cst_155 : bf16 to vector<16x256xbf16>
    %362 = arith.select %360, %358, %361 : vector<16x256xi1>, vector<16x256xbf16>
    %c80 = arith.constant 80 : index
    %c0_156 = arith.constant 0 : index
    %363 = vector.load %arg22[%c80, %c0_156] : memref<144x256xbf16, #tpu.memory_space<vmem>>, vector<16x256xbf16>
    tpu.vector_store %arg22[%c80, %c0_156], %362 {strides = array<i32>} : memref<144x256xbf16, #tpu.memory_space<vmem>>, vector<16x256xbf16>,
    %364 = vector.extract_strided_slice %335 {offsets = [0, 32], sizes = [16, 256], strides = [1, 1]} : vector<16x290xbf16> to vector<16x256xbf16>
    %cst_157 = arith.constant 0.000000e+00 : bf16
    %365 = vector.shape_cast %276 : vector<1x256xi1> to vector<1x256xi1>
    %366 = vector.broadcast %365 : vector<1x256xi1> to vector<16x256xi1>
    %367 = vector.broadcast %cst_157 : bf16 to vector<16x256xbf16>
    %368 = arith.select %366, %364, %367 : vector<16x256xi1>, vector<16x256xbf16>
    %c96 = arith.constant 96 : index
    %c0_158 = arith.constant 0 : index
    %369 = vector.load %arg22[%c96, %c0_158] : memref<144x256xbf16, #tpu.memory_space<vmem>>, vector<16x256xbf16>
    tpu.vector_store %arg22[%c96, %c0_158], %368 {strides = array<i32>} : memref<144x256xbf16, #tpu.memory_space<vmem>>, vector<16x256xbf16>,
    %370 = vector.extract_strided_slice %335 {offsets = [0, 33], sizes = [16, 256], strides = [1, 1]} : vector<16x290xbf16> to vector<16x256xbf16>
    %c112 = arith.constant 112 : index
    %c0_159 = arith.constant 0 : index
    %371 = vector.load %arg22[%c112, %c0_159] : memref<144x256xbf16, #tpu.memory_space<vmem>>, vector<16x256xbf16>
    tpu.vector_store %arg22[%c112, %c0_159], %370 {strides = array<i32>} : memref<144x256xbf16, #tpu.memory_space<vmem>>, vector<16x256xbf16>,
    %372 = vector.extract_strided_slice %335 {offsets = [0, 34], sizes = [16, 256], strides = [1, 1]} : vector<16x290xbf16> to vector<16x256xbf16>
    %cst_160 = arith.constant 0.000000e+00 : bf16
    %373 = vector.shape_cast %278 : vector<1x256xi1> to vector<1x256xi1>
    %374 = vector.broadcast %373 : vector<1x256xi1> to vector<16x256xi1>
    %375 = vector.broadcast %cst_160 : bf16 to vector<16x256xbf16>
    %376 = arith.select %374, %372, %375 : vector<16x256xi1>, vector<16x256xbf16>
    %c128 = arith.constant 128 : index
    %c0_161 = arith.constant 0 : index
    %377 = vector.load %arg22[%c128, %c0_161] : memref<144x256xbf16, #tpu.memory_space<vmem>>, vector<16x256xbf16>
    tpu.vector_store %arg22[%c128, %c0_161], %376 {strides = array<i32>} : memref<144x256xbf16, #tpu.memory_space<vmem>>, vector<16x256xbf16>,
    %c0_162 = arith.constant 0 : index
    %c0_163 = arith.constant 0 : index
    %378 = vector.load %arg11[%c0_162, %c0_163] : memref<16x144xbf16, #tpu.memory_space<vmem>>, vector<16x144xbf16>
    %c0_164 = arith.constant 0 : index
    %c0_165 = arith.constant 0 : index
    %379 = vector.load %arg22[%c0_164, %c0_165] : memref<144x256xbf16, #tpu.memory_space<vmem>>, vector<144x256xbf16>
    %cst_166 = arith.constant dense<0.000000e+00> : vector<16x256xf32>
    %380 = tpu.matmul %378, %379, %cst_166 {dimension_numbers = #tpu.dot_dimension_numbers<[1], [0], [0], [1], [0, 0, 1, 1], [], []>} : vector<16x144xbf16>, vector<144x256xbf16>, vector<16x256xf32> -> vector<16x256xf32>
    %c0_167 = arith.constant 0 : index
    %c0_168 = arith.constant 0 : index
    %381 = vector.load %arg12[%c0_167, %c0_168] : memref<16x1xf32, #tpu.memory_space<vmem>>, vector<16x1xf32>
    %382 = vector.broadcast %381 : vector<16x1xf32> to vector<16x256xf32>
    %383 = arith.addf %380, %382 : vector<16x256xf32>
    %cst_169 = arith.constant 0.00999999977 : f32
    %384 = vector.broadcast %cst_169 : f32 to vector<16x256xf32>
    %385 = arith.mulf %384, %383 : vector<16x256xf32>
    %386 = arith.maximumf %383, %385 : vector<16x256xf32>
    %387 = arith.truncf %386 : vector<16x256xf32> to vector<16x256xbf16>
    %cst_170 = arith.constant 0.000000e+00 : bf16
    %388 = vector.broadcast %cst_170 : bf16 to vector<16x17xbf16>
    %389 = tpu.concatenate %388, %387, %388 in 1 : vector<16x17xbf16>, vector<16x256xbf16>, vector<16x17xbf16> -> vector<16x290xbf16>
    %390 = vector.extract_strided_slice %389 {offsets = [0, 0], sizes = [16, 256], strides = [1, 1]} : vector<16x290xbf16> to vector<16x256xbf16>
    %cst_171 = arith.constant 0.000000e+00 : bf16
    %391 = vector.shape_cast %276 : vector<1x256xi1> to vector<1x256xi1>
    %392 = vector.broadcast %391 : vector<1x256xi1> to vector<16x256xi1>
    %393 = vector.broadcast %cst_171 : bf16 to vector<16x256xbf16>
    %394 = arith.select %392, %390, %393 : vector<16x256xi1>, vector<16x256xbf16>
    %c0_172 = arith.constant 0 : index
    %c0_173 = arith.constant 0 : index
    %395 = vector.load %arg22[%c0_172, %c0_173] : memref<144x256xbf16, #tpu.memory_space<vmem>>, vector<16x256xbf16>
    tpu.vector_store %arg22[%c0_172, %c0_173], %394 {strides = array<i32>} : memref<144x256xbf16, #tpu.memory_space<vmem>>, vector<16x256xbf16>,
    %396 = vector.extract_strided_slice %389 {offsets = [0, 1], sizes = [16, 256], strides = [1, 1]} : vector<16x290xbf16> to vector<16x256xbf16>
    %c16_174 = arith.constant 16 : index
    %c0_175 = arith.constant 0 : index
    %397 = vector.load %arg22[%c16_174, %c0_175] : memref<144x256xbf16, #tpu.memory_space<vmem>>, vector<16x256xbf16>
    tpu.vector_store %arg22[%c16_174, %c0_175], %396 {strides = array<i32>} : memref<144x256xbf16, #tpu.memory_space<vmem>>, vector<16x256xbf16>,
    %398 = vector.extract_strided_slice %389 {offsets = [0, 2], sizes = [16, 256], strides = [1, 1]} : vector<16x290xbf16> to vector<16x256xbf16>
    %cst_176 = arith.constant 0.000000e+00 : bf16
    %399 = vector.shape_cast %278 : vector<1x256xi1> to vector<1x256xi1>
    %400 = vector.broadcast %399 : vector<1x256xi1> to vector<16x256xi1>
    %401 = vector.broadcast %cst_176 : bf16 to vector<16x256xbf16>
    %402 = arith.select %400, %398, %401 : vector<16x256xi1>, vector<16x256xbf16>
    %c32_177 = arith.constant 32 : index
    %c0_178 = arith.constant 0 : index
    %403 = vector.load %arg22[%c32_177, %c0_178] : memref<144x256xbf16, #tpu.memory_space<vmem>>, vector<16x256xbf16>
    tpu.vector_store %arg22[%c32_177, %c0_178], %402 {strides = array<i32>} : memref<144x256xbf16, #tpu.memory_space<vmem>>, vector<16x256xbf16>,
    %404 = vector.extract_strided_slice %389 {offsets = [0, 16], sizes = [16, 256], strides = [1, 1]} : vector<16x290xbf16> to vector<16x256xbf16>
    %cst_179 = arith.constant 0.000000e+00 : bf16
    %405 = vector.shape_cast %276 : vector<1x256xi1> to vector<1x256xi1>
    %406 = vector.broadcast %405 : vector<1x256xi1> to vector<16x256xi1>
    %407 = vector.broadcast %cst_179 : bf16 to vector<16x256xbf16>
    %408 = arith.select %406, %404, %407 : vector<16x256xi1>, vector<16x256xbf16>
    %c48_180 = arith.constant 48 : index
    %c0_181 = arith.constant 0 : index
    %409 = vector.load %arg22[%c48_180, %c0_181] : memref<144x256xbf16, #tpu.memory_space<vmem>>, vector<16x256xbf16>
    tpu.vector_store %arg22[%c48_180, %c0_181], %408 {strides = array<i32>} : memref<144x256xbf16, #tpu.memory_space<vmem>>, vector<16x256xbf16>,
    %410 = vector.extract_strided_slice %389 {offsets = [0, 17], sizes = [16, 256], strides = [1, 1]} : vector<16x290xbf16> to vector<16x256xbf16>
    %c64_182 = arith.constant 64 : index
    %c0_183 = arith.constant 0 : index
    %411 = vector.load %arg22[%c64_182, %c0_183] : memref<144x256xbf16, #tpu.memory_space<vmem>>, vector<16x256xbf16>
    tpu.vector_store %arg22[%c64_182, %c0_183], %410 {strides = array<i32>} : memref<144x256xbf16, #tpu.memory_space<vmem>>, vector<16x256xbf16>,
    %412 = vector.extract_strided_slice %389 {offsets = [0, 18], sizes = [16, 256], strides = [1, 1]} : vector<16x290xbf16> to vector<16x256xbf16>
    %cst_184 = arith.constant 0.000000e+00 : bf16
    %413 = vector.shape_cast %278 : vector<1x256xi1> to vector<1x256xi1>
    %414 = vector.broadcast %413 : vector<1x256xi1> to vector<16x256xi1>
    %415 = vector.broadcast %cst_184 : bf16 to vector<16x256xbf16>
    %416 = arith.select %414, %412, %415 : vector<16x256xi1>, vector<16x256xbf16>
    %c80_185 = arith.constant 80 : index
    %c0_186 = arith.constant 0 : index
    %417 = vector.load %arg22[%c80_185, %c0_186] : memref<144x256xbf16, #tpu.memory_space<vmem>>, vector<16x256xbf16>
    tpu.vector_store %arg22[%c80_185, %c0_186], %416 {strides = array<i32>} : memref<144x256xbf16, #tpu.memory_space<vmem>>, vector<16x256xbf16>,
    %418 = vector.extract_strided_slice %389 {offsets = [0, 32], sizes = [16, 256], strides = [1, 1]} : vector<16x290xbf16> to vector<16x256xbf16>
    %cst_187 = arith.constant 0.000000e+00 : bf16
    %419 = vector.shape_cast %276 : vector<1x256xi1> to vector<1x256xi1>
    %420 = vector.broadcast %419 : vector<1x256xi1> to vector<16x256xi1>
    %421 = vector.broadcast %cst_187 : bf16 to vector<16x256xbf16>
    %422 = arith.select %420, %418, %421 : vector<16x256xi1>, vector<16x256xbf16>
    %c96_188 = arith.constant 96 : index
    %c0_189 = arith.constant 0 : index
    %423 = vector.load %arg22[%c96_188, %c0_189] : memref<144x256xbf16, #tpu.memory_space<vmem>>, vector<16x256xbf16>
    tpu.vector_store %arg22[%c96_188, %c0_189], %422 {strides = array<i32>} : memref<144x256xbf16, #tpu.memory_space<vmem>>, vector<16x256xbf16>,
    %424 = vector.extract_strided_slice %389 {offsets = [0, 33], sizes = [16, 256], strides = [1, 1]} : vector<16x290xbf16> to vector<16x256xbf16>
    %c112_190 = arith.constant 112 : index
    %c0_191 = arith.constant 0 : index
    %425 = vector.load %arg22[%c112_190, %c0_191] : memref<144x256xbf16, #tpu.memory_space<vmem>>, vector<16x256xbf16>
    tpu.vector_store %arg22[%c112_190, %c0_191], %424 {strides = array<i32>} : memref<144x256xbf16, #tpu.memory_space<vmem>>, vector<16x256xbf16>,
    %426 = vector.extract_strided_slice %389 {offsets = [0, 34], sizes = [16, 256], strides = [1, 1]} : vector<16x290xbf16> to vector<16x256xbf16>
    %cst_192 = arith.constant 0.000000e+00 : bf16
    %427 = vector.shape_cast %278 : vector<1x256xi1> to vector<1x256xi1>
    %428 = vector.broadcast %427 : vector<1x256xi1> to vector<16x256xi1>
    %429 = vector.broadcast %cst_192 : bf16 to vector<16x256xbf16>
    %430 = arith.select %428, %426, %429 : vector<16x256xi1>, vector<16x256xbf16>
    %c128_193 = arith.constant 128 : index
    %c0_194 = arith.constant 0 : index
    %431 = vector.load %arg22[%c128_193, %c0_194] : memref<144x256xbf16, #tpu.memory_space<vmem>>, vector<16x256xbf16>
    tpu.vector_store %arg22[%c128_193, %c0_194], %430 {strides = array<i32>} : memref<144x256xbf16, #tpu.memory_space<vmem>>, vector<16x256xbf16>,
    %c0_195 = arith.constant 0 : index
    %c0_196 = arith.constant 0 : index
    %432 = vector.load %arg13[%c0_195, %c0_196] : memref<16x144xbf16, #tpu.memory_space<vmem>>, vector<16x144xbf16>
    %c0_197 = arith.constant 0 : index
    %c0_198 = arith.constant 0 : index
    %433 = vector.load %arg22[%c0_197, %c0_198] : memref<144x256xbf16, #tpu.memory_space<vmem>>, vector<144x256xbf16>
    %cst_199 = arith.constant dense<0.000000e+00> : vector<16x256xf32>
    %434 = tpu.matmul %432, %433, %cst_199 {dimension_numbers = #tpu.dot_dimension_numbers<[1], [0], [0], [1], [0, 0, 1, 1], [], []>} : vector<16x144xbf16>, vector<144x256xbf16>, vector<16x256xf32> -> vector<16x256xf32>
    %c0_200 = arith.constant 0 : index
    %c0_201 = arith.constant 0 : index
    %435 = vector.load %arg14[%c0_200, %c0_201] : memref<16x1xf32, #tpu.memory_space<vmem>>, vector<16x1xf32>
    %436 = vector.broadcast %435 : vector<16x1xf32> to vector<16x256xf32>
    %437 = arith.addf %434, %436 : vector<16x256xf32>
    %cst_202 = arith.constant 0.00999999977 : f32
    %438 = vector.broadcast %cst_202 : f32 to vector<16x256xf32>
    %439 = arith.mulf %438, %437 : vector<16x256xf32>
    %440 = arith.maximumf %437, %439 : vector<16x256xf32>
    %441 = arith.addf %440, %332 : vector<16x256xf32>
    %c0_203 = arith.constant 0 : index
    %c0_204 = arith.constant 0 : index
    %c0_205 = arith.constant 0 : index
    %442 = vector.load %arg19[%c0_203, %c0_204, %c0_205] : memref<1x16x256xf32, #tpu.memory_space<vmem>>, vector<1x16x256xf32>
    %443 = vector.shape_cast %442 : vector<1x16x256xf32> to vector<16x256xf32>
    %444 = vector.shape_cast %441 : vector<16x256xf32> to vector<1x16x256xf32>
    tpu.vector_store %arg19[%c0_203, %c0_204, %c0_205], %444 {strides = array<i32>} : memref<1x16x256xf32, #tpu.memory_space<vmem>>, vector<1x16x256xf32>,
    %445 = vector.extract_strided_slice %441 {offsets = [0, 0], sizes = [16, 16], strides = [1, 1]} : vector<16x256xf32> to vector<16x16xf32>
    %446 = vector.extract_strided_slice %441 {offsets = [0, 16], sizes = [16, 16], strides = [1, 1]} : vector<16x256xf32> to vector<16x16xf32>
    %447 = arith.addf %445, %446 : vector<16x16xf32>
    %448 = vector.extract_strided_slice %441 {offsets = [0, 32], sizes = [16, 16], strides = [1, 1]} : vector<16x256xf32> to vector<16x16xf32>
    %449 = vector.extract_strided_slice %441 {offsets = [0, 48], sizes = [16, 16], strides = [1, 1]} : vector<16x256xf32> to vector<16x16xf32>
    %450 = arith.addf %448, %449 : vector<16x16xf32>
    %451 = vector.extract_strided_slice %441 {offsets = [0, 64], sizes = [16, 16], strides = [1, 1]} : vector<16x256xf32> to vector<16x16xf32>
    %452 = vector.extract_strided_slice %441 {offsets = [0, 80], sizes = [16, 16], strides = [1, 1]} : vector<16x256xf32> to vector<16x16xf32>
    %453 = arith.addf %451, %452 : vector<16x16xf32>
    %454 = vector.extract_strided_slice %441 {offsets = [0, 96], sizes = [16, 16], strides = [1, 1]} : vector<16x256xf32> to vector<16x16xf32>
    %455 = vector.extract_strided_slice %441 {offsets = [0, 112], sizes = [16, 16], strides = [1, 1]} : vector<16x256xf32> to vector<16x16xf32>
    %456 = arith.addf %454, %455 : vector<16x16xf32>
    %457 = vector.extract_strided_slice %441 {offsets = [0, 128], sizes = [16, 16], strides = [1, 1]} : vector<16x256xf32> to vector<16x16xf32>
    %458 = vector.extract_strided_slice %441 {offsets = [0, 144], sizes = [16, 16], strides = [1, 1]} : vector<16x256xf32> to vector<16x16xf32>
    %459 = arith.addf %457, %458 : vector<16x16xf32>
    %460 = vector.extract_strided_slice %441 {offsets = [0, 160], sizes = [16, 16], strides = [1, 1]} : vector<16x256xf32> to vector<16x16xf32>
    %461 = vector.extract_strided_slice %441 {offsets = [0, 176], sizes = [16, 16], strides = [1, 1]} : vector<16x256xf32> to vector<16x16xf32>
    %462 = arith.addf %460, %461 : vector<16x16xf32>
    %463 = vector.extract_strided_slice %441 {offsets = [0, 192], sizes = [16, 16], strides = [1, 1]} : vector<16x256xf32> to vector<16x16xf32>
    %464 = vector.extract_strided_slice %441 {offsets = [0, 208], sizes = [16, 16], strides = [1, 1]} : vector<16x256xf32> to vector<16x16xf32>
    %465 = arith.addf %463, %464 : vector<16x16xf32>
    %466 = vector.extract_strided_slice %441 {offsets = [0, 224], sizes = [16, 16], strides = [1, 1]} : vector<16x256xf32> to vector<16x16xf32>
    %467 = vector.extract_strided_slice %441 {offsets = [0, 240], sizes = [16, 16], strides = [1, 1]} : vector<16x256xf32> to vector<16x16xf32>
    %468 = arith.addf %466, %467 : vector<16x16xf32>
    %469 = tpu.concatenate %447, %450, %453, %456, %459, %462, %465, %468 in 0 : vector<16x16xf32>, vector<16x16xf32>, vector<16x16xf32>, vector<16x16xf32>, vector<16x16xf32>, vector<16x16xf32>, vector<16x16xf32>, vector<16x16xf32> -> vector<128x16xf32>
    %470 = arith.truncf %469 : vector<128x16xf32> to vector<128x16xbf16>
    %c0_206 = arith.constant 0 : index
    %c0_207 = arith.constant 0 : index
    %471 = vector.load %arg15[%c0_206, %c0_207] : memref<16x8xbf16, #tpu.memory_space<vmem>>, vector<16x8xbf16>
    %cst_208 = arith.constant dense<0.000000e+00> : vector<128x8xf32>
    %472 = tpu.matmul %470, %471, %cst_208 {dimension_numbers = #tpu.dot_dimension_numbers<[1], [0], [0], [1], [0, 0, 1, 1], [], []>} : vector<128x16xbf16>, vector<16x8xbf16>, vector<128x8xf32> -> vector<128x8xf32>
    %473 = vector.extract_strided_slice %472 {offsets = [0, 0], sizes = [16, 8], strides = [1, 1]} : vector<128x8xf32> to vector<16x8xf32>
    %474 = vector.extract_strided_slice %472 {offsets = [16, 0], sizes = [16, 8], strides = [1, 1]} : vector<128x8xf32> to vector<16x8xf32>
    %475 = vector.extract_strided_slice %472 {offsets = [32, 0], sizes = [16, 8], strides = [1, 1]} : vector<128x8xf32> to vector<16x8xf32>
    %476 = vector.extract_strided_slice %472 {offsets = [48, 0], sizes = [16, 8], strides = [1, 1]} : vector<128x8xf32> to vector<16x8xf32>
    %477 = vector.extract_strided_slice %472 {offsets = [64, 0], sizes = [16, 8], strides = [1, 1]} : vector<128x8xf32> to vector<16x8xf32>
    %478 = vector.extract_strided_slice %472 {offsets = [80, 0], sizes = [16, 8], strides = [1, 1]} : vector<128x8xf32> to vector<16x8xf32>
    %479 = vector.extract_strided_slice %472 {offsets = [96, 0], sizes = [16, 8], strides = [1, 1]} : vector<128x8xf32> to vector<16x8xf32>
    %480 = vector.extract_strided_slice %472 {offsets = [112, 0], sizes = [16, 8], strides = [1, 1]} : vector<128x8xf32> to vector<16x8xf32>
    %481 = tpu.concatenate %473, %474, %475, %476, %477, %478, %479, %480 in 1 : vector<16x8xf32>, vector<16x8xf32>, vector<16x8xf32>, vector<16x8xf32>, vector<16x8xf32>, vector<16x8xf32>, vector<16x8xf32>, vector<16x8xf32> -> vector<16x64xf32>
    %482 = tpu.iota {dimensions = array<i32: 1>} : vector<1x64xi32>
    %c8_i32 = arith.constant 8 : i32
    %c0_i32_209 = arith.constant 0 : i32
    %483 = arith.cmpi eq, %c8_i32, %c0_i32_209 : i32
    %c1_i32_210 = arith.constant 1 : i32
    %484 = arith.select %483, %c1_i32_210, %c8_i32 : i32
    %485 = vector.broadcast %484 : i32 to vector<1x64xi32>
    %486 = arith.remsi %482, %485 : vector<1x64xi32>
    %c0_i32_211 = arith.constant 0 : i32
    %487 = vector.broadcast %c0_i32_211 : i32 to vector<1x64xi32>
    %488 = arith.cmpi ne, %486, %487 : vector<1x64xi32>
    %c0_i32_212 = arith.constant 0 : i32
    %489 = vector.broadcast %c0_i32_212 : i32 to vector<1x64xi32>
    %490 = arith.cmpi slt, %486, %489 : vector<1x64xi32>
    %c0_i32_213 = arith.constant 0 : i32
    %491 = arith.cmpi slt, %484, %c0_i32_213 : i32
    %492 = vector.broadcast %491 : i1 to vector<1x64xi1>
    %493 = vector.broadcast %492 : vector<1x64xi1> to vector<1x64xi1>
    %494 = arith.xori %490, %493 : vector<1x64xi1>
    %495 = arith.andi %494, %488 : vector<1x64xi1>
    %496 = vector.broadcast %484 : i32 to vector<1x64xi32>
    %497 = arith.addi %486, %496 : vector<1x64xi32>
    %498 = arith.select %495, %497, %486 : vector<1x64xi1>, vector<1x64xi32>
    %c0_i32_214 = arith.constant 0 : i32
    %499 = vector.broadcast %c0_i32_214 : i32 to vector<1x64xi32>
    %500 = arith.cmpi ne, %498, %499 : vector<1x64xi32>
    %c7_i32 = arith.constant 7 : i32
    %501 = vector.broadcast %c7_i32 : i32 to vector<1x64xi32>
    %502 = arith.cmpi ne, %498, %501 : vector<1x64xi32>
    %503 = arith.truncf %481 : vector<16x64xf32> to vector<16x64xbf16>
    %cst_215 = arith.constant 0.000000e+00 : bf16
    %504 = vector.broadcast %cst_215 : bf16 to vector<16x9xbf16>
    %505 = tpu.concatenate %504, %503, %504 in 1 : vector<16x9xbf16>, vector<16x64xbf16>, vector<16x9xbf16> -> vector<16x82xbf16>
    %506 = vector.extract_strided_slice %505 {offsets = [0, 0], sizes = [16, 64], strides = [1, 1]} : vector<16x82xbf16> to vector<16x64xbf16>
    %cst_216 = arith.constant 0.000000e+00 : bf16
    %507 = vector.shape_cast %500 : vector<1x64xi1> to vector<1x64xi1>
    %508 = vector.broadcast %507 : vector<1x64xi1> to vector<16x64xi1>
    %509 = vector.broadcast %cst_216 : bf16 to vector<16x64xbf16>
    %510 = arith.select %508, %506, %509 : vector<16x64xi1>, vector<16x64xbf16>
    %c0_217 = arith.constant 0 : index
    %c0_218 = arith.constant 0 : index
    %511 = vector.load %arg23[%c0_217, %c0_218] : memref<144x64xbf16, #tpu.memory_space<vmem>>, vector<16x64xbf16>
    tpu.vector_store %arg23[%c0_217, %c0_218], %510 {strides = array<i32>} : memref<144x64xbf16, #tpu.memory_space<vmem>>, vector<16x64xbf16>,
    %512 = vector.extract_strided_slice %505 {offsets = [0, 1], sizes = [16, 64], strides = [1, 1]} : vector<16x82xbf16> to vector<16x64xbf16>
    %c16_219 = arith.constant 16 : index
    %c0_220 = arith.constant 0 : index
    %513 = vector.load %arg23[%c16_219, %c0_220] : memref<144x64xbf16, #tpu.memory_space<vmem>>, vector<16x64xbf16>
    tpu.vector_store %arg23[%c16_219, %c0_220], %512 {strides = array<i32>} : memref<144x64xbf16, #tpu.memory_space<vmem>>, vector<16x64xbf16>,
    %514 = vector.extract_strided_slice %505 {offsets = [0, 2], sizes = [16, 64], strides = [1, 1]} : vector<16x82xbf16> to vector<16x64xbf16>
    %cst_221 = arith.constant 0.000000e+00 : bf16
    %515 = vector.shape_cast %502 : vector<1x64xi1> to vector<1x64xi1>
    %516 = vector.broadcast %515 : vector<1x64xi1> to vector<16x64xi1>
    %517 = vector.broadcast %cst_221 : bf16 to vector<16x64xbf16>
    %518 = arith.select %516, %514, %517 : vector<16x64xi1>, vector<16x64xbf16>
    %c32_222 = arith.constant 32 : index
    %c0_223 = arith.constant 0 : index
    %519 = vector.load %arg23[%c32_222, %c0_223] : memref<144x64xbf16, #tpu.memory_space<vmem>>, vector<16x64xbf16>
    tpu.vector_store %arg23[%c32_222, %c0_223], %518 {strides = array<i32>} : memref<144x64xbf16, #tpu.memory_space<vmem>>, vector<16x64xbf16>,
    %520 = vector.extract_strided_slice %505 {offsets = [0, 8], sizes = [16, 64], strides = [1, 1]} : vector<16x82xbf16> to vector<16x64xbf16>
    %cst_224 = arith.constant 0.000000e+00 : bf16
    %521 = vector.shape_cast %500 : vector<1x64xi1> to vector<1x64xi1>
    %522 = vector.broadcast %521 : vector<1x64xi1> to vector<16x64xi1>
    %523 = vector.broadcast %cst_224 : bf16 to vector<16x64xbf16>
    %524 = arith.select %522, %520, %523 : vector<16x64xi1>, vector<16x64xbf16>
    %c48_225 = arith.constant 48 : index
    %c0_226 = arith.constant 0 : index
    %525 = vector.load %arg23[%c48_225, %c0_226] : memref<144x64xbf16, #tpu.memory_space<vmem>>, vector<16x64xbf16>
    tpu.vector_store %arg23[%c48_225, %c0_226], %524 {strides = array<i32>} : memref<144x64xbf16, #tpu.memory_space<vmem>>, vector<16x64xbf16>,
    %526 = vector.extract_strided_slice %505 {offsets = [0, 9], sizes = [16, 64], strides = [1, 1]} : vector<16x82xbf16> to vector<16x64xbf16>
    %c64_227 = arith.constant 64 : index
    %c0_228 = arith.constant 0 : index
    %527 = vector.load %arg23[%c64_227, %c0_228] : memref<144x64xbf16, #tpu.memory_space<vmem>>, vector<16x64xbf16>
    tpu.vector_store %arg23[%c64_227, %c0_228], %526 {strides = array<i32>} : memref<144x64xbf16, #tpu.memory_space<vmem>>, vector<16x64xbf16>,
    %528 = vector.extract_strided_slice %505 {offsets = [0, 10], sizes = [16, 64], strides = [1, 1]} : vector<16x82xbf16> to vector<16x64xbf16>
    %cst_229 = arith.constant 0.000000e+00 : bf16
    %529 = vector.shape_cast %502 : vector<1x64xi1> to vector<1x64xi1>
    %530 = vector.broadcast %529 : vector<1x64xi1> to vector<16x64xi1>
    %531 = vector.broadcast %cst_229 : bf16 to vector<16x64xbf16>
    %532 = arith.select %530, %528, %531 : vector<16x64xi1>, vector<16x64xbf16>
    %c80_230 = arith.constant 80 : index
    %c0_231 = arith.constant 0 : index
    %533 = vector.load %arg23[%c80_230, %c0_231] : memref<144x64xbf16, #tpu.memory_space<vmem>>, vector<16x64xbf16>
    tpu.vector_store %arg23[%c80_230, %c0_231], %532 {strides = array<i32>} : memref<144x64xbf16, #tpu.memory_space<vmem>>, vector<16x64xbf16>,
    %534 = vector.extract_strided_slice %505 {offsets = [0, 16], sizes = [16, 64], strides = [1, 1]} : vector<16x82xbf16> to vector<16x64xbf16>
    %cst_232 = arith.constant 0.000000e+00 : bf16
    %535 = vector.shape_cast %500 : vector<1x64xi1> to vector<1x64xi1>
    %536 = vector.broadcast %535 : vector<1x64xi1> to vector<16x64xi1>
    %537 = vector.broadcast %cst_232 : bf16 to vector<16x64xbf16>
    %538 = arith.select %536, %534, %537 : vector<16x64xi1>, vector<16x64xbf16>
    %c96_233 = arith.constant 96 : index
    %c0_234 = arith.constant 0 : index
    %539 = vector.load %arg23[%c96_233, %c0_234] : memref<144x64xbf16, #tpu.memory_space<vmem>>, vector<16x64xbf16>
    tpu.vector_store %arg23[%c96_233, %c0_234], %538 {strides = array<i32>} : memref<144x64xbf16, #tpu.memory_space<vmem>>, vector<16x64xbf16>,
    %540 = vector.extract_strided_slice %505 {offsets = [0, 17], sizes = [16, 64], strides = [1, 1]} : vector<16x82xbf16> to vector<16x64xbf16>
    %c112_235 = arith.constant 112 : index
    %c0_236 = arith.constant 0 : index
    %541 = vector.load %arg23[%c112_235, %c0_236] : memref<144x64xbf16, #tpu.memory_space<vmem>>, vector<16x64xbf16>
    tpu.vector_store %arg23[%c112_235, %c0_236], %540 {strides = array<i32>} : memref<144x64xbf16, #tpu.memory_space<vmem>>, vector<16x64xbf16>,
    %542 = vector.extract_strided_slice %505 {offsets = [0, 18], sizes = [16, 64], strides = [1, 1]} : vector<16x82xbf16> to vector<16x64xbf16>
    %cst_237 = arith.constant 0.000000e+00 : bf16
    %543 = vector.shape_cast %502 : vector<1x64xi1> to vector<1x64xi1>
    %544 = vector.broadcast %543 : vector<1x64xi1> to vector<16x64xi1>
    %545 = vector.broadcast %cst_237 : bf16 to vector<16x64xbf16>
    %546 = arith.select %544, %542, %545 : vector<16x64xi1>, vector<16x64xbf16>
    %c128_238 = arith.constant 128 : index
    %c0_239 = arith.constant 0 : index
    %547 = vector.load %arg23[%c128_238, %c0_239] : memref<144x64xbf16, #tpu.memory_space<vmem>>, vector<16x64xbf16>
    tpu.vector_store %arg23[%c128_238, %c0_239], %546 {strides = array<i32>} : memref<144x64xbf16, #tpu.memory_space<vmem>>, vector<16x64xbf16>,
    %c0_240 = arith.constant 0 : index
    %c0_241 = arith.constant 0 : index
    %548 = vector.load %arg16[%c0_240, %c0_241] : memref<32x144xbf16, #tpu.memory_space<vmem>>, vector<32x144xbf16>
    %c0_242 = arith.constant 0 : index
    %c0_243 = arith.constant 0 : index
    %549 = vector.load %arg23[%c0_242, %c0_243] : memref<144x64xbf16, #tpu.memory_space<vmem>>, vector<144x64xbf16>
    %cst_244 = arith.constant dense<0.000000e+00> : vector<32x64xf32>
    %550 = tpu.matmul %548, %549, %cst_244 {dimension_numbers = #tpu.dot_dimension_numbers<[1], [0], [0], [1], [0, 0, 1, 1], [], []>} : vector<32x144xbf16>, vector<144x64xbf16>, vector<32x64xf32> -> vector<32x64xf32>
    %c0_245 = arith.constant 0 : index
    %c0_246 = arith.constant 0 : index
    %551 = vector.load %arg17[%c0_245, %c0_246] : memref<32x1xf32, #tpu.memory_space<vmem>>, vector<32x1xf32>
    %552 = vector.broadcast %551 : vector<32x1xf32> to vector<32x64xf32>
    %553 = arith.addf %550, %552 : vector<32x64xf32>
    %cst_247 = arith.constant 0.00999999977 : f32
    %554 = vector.broadcast %cst_247 : f32 to vector<32x64xf32>
    %555 = arith.mulf %554, %553 : vector<32x64xf32>
    %556 = arith.maximumf %553, %555 : vector<32x64xf32>
    %c0_248 = arith.constant 0 : index
    %c0_249 = arith.constant 0 : index
    %c0_250 = arith.constant 0 : index
    %557 = vector.load %arg20[%c0_248, %c0_249, %c0_250] : memref<1x32x64xf32, #tpu.memory_space<vmem>>, vector<1x32x64xf32>
    %558 = vector.shape_cast %557 : vector<1x32x64xf32> to vector<32x64xf32>
    %559 = vector.shape_cast %556 : vector<32x64xf32> to vector<1x32x64xf32>
    tpu.vector_store %arg20[%c0_248, %c0_249, %c0_250], %559 {strides = array<i32>} : memref<1x32x64xf32, #tpu.memory_space<vmem>>, vector<1x32x64xf32>,
    return
  }
  func.func @transform_0(%arg0: i32) -> (i32, i32, i32) {
    %c0_i32 = arith.constant 0 : i32
    %c0_i32_0 = arith.constant 0 : i32
    %c0_i32_1 = arith.constant 0 : i32
    return %arg0, %c0_i32, %c0_i32_0 : i32, i32, i32
  }
  func.func @transform_1(%arg0: i32) -> (i32, i32) {
    %c0_i32 = arith.constant 0 : i32
    %c0_i32_0 = arith.constant 0 : i32
    %c0_i32_1 = arith.constant 0 : i32
    return %c0_i32, %c0_i32_0 : i32, i32
  }
  func.func @transform_2(%arg0: i32) -> (i32, i32) {
    %c0_i32 = arith.constant 0 : i32
    %c0_i32_0 = arith.constant 0 : i32
    %c0_i32_1 = arith.constant 0 : i32
    return %c0_i32, %c0_i32_0 : i32, i32
  }
  func.func @transform_3(%arg0: i32) -> (i32, i32) {
    %c0_i32 = arith.constant 0 : i32
    %c0_i32_0 = arith.constant 0 : i32
    %c0_i32_1 = arith.constant 0 : i32
    return %c0_i32, %c0_i32_0 : i32, i32
  }
  func.func @transform_4(%arg0: i32) -> (i32, i32) {
    %c0_i32 = arith.constant 0 : i32
    %c0_i32_0 = arith.constant 0 : i32
    %c0_i32_1 = arith.constant 0 : i32
    return %c0_i32, %c0_i32_0 : i32, i32
  }
  func.func @transform_5(%arg0: i32) -> (i32, i32) {
    %c0_i32 = arith.constant 0 : i32
    %c0_i32_0 = arith.constant 0 : i32
    %c0_i32_1 = arith.constant 0 : i32
    return %c0_i32, %c0_i32_0 : i32, i32
  }
  func.func @transform_6(%arg0: i32) -> (i32, i32) {
    %c0_i32 = arith.constant 0 : i32
    %c0_i32_0 = arith.constant 0 : i32
    %c0_i32_1 = arith.constant 0 : i32
    return %c0_i32, %c0_i32_0 : i32, i32
  }
  func.func @transform_7(%arg0: i32) -> (i32, i32) {
    %c0_i32 = arith.constant 0 : i32
    %c0_i32_0 = arith.constant 0 : i32
    %c0_i32_1 = arith.constant 0 : i32
    return %c0_i32, %c0_i32_0 : i32, i32
  }
  func.func @transform_8(%arg0: i32) -> (i32, i32) {
    %c0_i32 = arith.constant 0 : i32
    %c0_i32_0 = arith.constant 0 : i32
    %c0_i32_1 = arith.constant 0 : i32
    return %c0_i32, %c0_i32_0 : i32, i32
  }
  func.func @transform_9(%arg0: i32) -> (i32, i32) {
    %c0_i32 = arith.constant 0 : i32
    %c0_i32_0 = arith.constant 0 : i32
    %c0_i32_1 = arith.constant 0 : i32
    return %c0_i32, %c0_i32_0 : i32, i32
  }
  func.func @transform_10(%arg0: i32) -> (i32, i32) {
    %c0_i32 = arith.constant 0 : i32
    %c0_i32_0 = arith.constant 0 : i32
    %c0_i32_1 = arith.constant 0 : i32
    return %c0_i32, %c0_i32_0 : i32, i32
  }
  func.func @transform_11(%arg0: i32) -> (i32, i32) {
    %c0_i32 = arith.constant 0 : i32
    %c0_i32_0 = arith.constant 0 : i32
    %c0_i32_1 = arith.constant 0 : i32
    return %c0_i32, %c0_i32_0 : i32, i32
  }
  func.func @transform_12(%arg0: i32) -> (i32, i32) {
    %c0_i32 = arith.constant 0 : i32
    %c0_i32_0 = arith.constant 0 : i32
    %c0_i32_1 = arith.constant 0 : i32
    return %c0_i32, %c0_i32_0 : i32, i32
  }
  func.func @transform_13(%arg0: i32) -> (i32, i32) {
    %c0_i32 = arith.constant 0 : i32
    %c0_i32_0 = arith.constant 0 : i32
    %c0_i32_1 = arith.constant 0 : i32
    return %c0_i32, %c0_i32_0 : i32, i32
  }
  func.func @transform_14(%arg0: i32) -> (i32, i32) {
    %c0_i32 = arith.constant 0 : i32
    %c0_i32_0 = arith.constant 0 : i32
    %c0_i32_1 = arith.constant 0 : i32
    return %c0_i32, %c0_i32_0 : i32, i32
  }
  func.func @transform_15(%arg0: i32) -> (i32, i32) {
    %c0_i32 = arith.constant 0 : i32
    %c0_i32_0 = arith.constant 0 : i32
    %c0_i32_1 = arith.constant 0 : i32
    return %c0_i32, %c0_i32_0 : i32, i32
  }
  func.func @transform_16(%arg0: i32) -> (i32, i32) {
    %c0_i32 = arith.constant 0 : i32
    %c0_i32_0 = arith.constant 0 : i32
    %c0_i32_1 = arith.constant 0 : i32
    return %c0_i32, %c0_i32_0 : i32, i32
  }
  func.func @transform_17(%arg0: i32) -> (i32, i32, i32) {
    %c0_i32 = arith.constant 0 : i32
    %c0_i32_0 = arith.constant 0 : i32
    %c0_i32_1 = arith.constant 0 : i32
    return %arg0, %c0_i32, %c0_i32_0 : i32, i32, i32
  }
  func.func @transform_18(%arg0: i32) -> (i32, i32, i32) {
    %c0_i32 = arith.constant 0 : i32
    %c0_i32_0 = arith.constant 0 : i32
    %c0_i32_1 = arith.constant 0 : i32
    return %arg0, %c0_i32, %c0_i32_0 : i32, i32, i32
  }
  func.func @transform_19(%arg0: i32) -> (i32, i32, i32) {
    %c0_i32 = arith.constant 0 : i32
    %c0_i32_0 = arith.constant 0 : i32
    %c0_i32_1 = arith.constant 0 : i32
    return %arg0, %c0_i32, %c0_i32_0 : i32, i32, i32
  }
}

</mosaic_0001>

<bundles_post_ra>
// kernel: tpu_custom_call.1
= control target key start
LH: loop header
LB: loop body
LE: loop exit
PB: predicated region body
PF: predicated region fallthrough
CT: control target
= control target key end

     0   :  { %s9452_s0 = inlined_call_operand.vmem [shape: f32[2,8,1024], index: 0, kind: input, shape index: {}]   ;;  %s9453_s1 = inlined_call_operand.hbm [shape: bf16[8,72], index: 1, kind: input, shape index: {}]   ;;  %s9454_s2 = inlined_call_operand.vmem [shape: f32[8,1], index: 2, kind: input, shape index: {}]   ;;  %s9455_s3 = inlined_call_operand.hbm [shape: bf16[8,72], index: 3, kind: input, shape index: {}]   ;;  %s9456_s4 = inlined_call_operand.vmem [shape: f32[8,1], index: 4, kind: input, shape index: {}]   ;;  %s9457_s5 = inlined_call_operand.hbm [shape: bf16[8,72], index: 5, kind: input, shape index: {}]   ;;  %s9458_s6 = inlined_call_operand.vmem [shape: f32[8,1], index: 6, kind: input, shape index: {}]   ;;  %s9459_s7 = inlined_call_operand.vmem [shape: bf16[32,16], index: 7, kind: input, shape index: {}]   ;;  %s9460_s8 = inlined_call_operand.hbm [shape: bf16[16,72], index: 8, kind: input, shape index: {}]   ;;  %s9461_s9 = inlined_call_operand.vmem [shape: f32[16,1], index: 9, kind: input, shape index: {}]   ;;  %s9462_s10 = inlined_call_operand.vmem [shape: bf16[16,144], index: 10, kind: input, shape index: {}]   ;;  %s9463_s11 = inlined_call_operand.vmem [shape: f32[16,1], index: 11, kind: input, shape index: {}]   ;;  %s9464_s12 = inlined_call_operand.vmem [shape: bf16[16,144], index: 12, kind: input, shape index: {}]   ;;  %s9465_s13 = inlined_call_operand.vmem [shape: f32[16,1], index: 13, kind: input, shape index: {}]   ;;  %s9466_s14 = inlined_call_operand.vmem [shape: bf16[16,8], index: 14, kind: input, shape index: {}]   ;;  %s9467_s15 = inlined_call_operand.vmem [shape: bf16[32,144], index: 15, kind: input, shape index: {}]   ;;  %s9468_s16 = inlined_call_operand.vmem [shape: f32[32,1], index: 16, kind: input, shape index: {}]   ;;  %s9469_s17 = inlined_call_operand.hbm [shape: f32[2,8,1024], index: 17, kind: output, shape index: {0}]   ;;  %s9470_s18 = inlined_call_operand.hbm [shape: f32[2,16,256], index: 18, kind: output, shape index: {1}]   ;;  %s9471_s19 = inlined_call_operand.hbm [shape: f32[2,32,64], index: 19, kind: output, shape index: {2}]  }
   0x1   :  { %9664 = sst [smem:[#allocation76_spill]] %s9452_s0 }
   0x2   :  { %9665 = sst [smem:[#allocation77_spill]] %s9453_s1 }
   0x3   :  { %9666 = sst [smem:[#allocation78_spill]] %s9454_s2 }
   0x4   :  { %9667 = sst [smem:[#allocation79_spill]] %s9455_s3 }
   0x5   :  { %9668 = sst [smem:[#allocation80_spill]] %s9456_s4 }
   0x6   :  { %9669 = sst [smem:[#allocation81_spill]] %s9457_s5 }
   0x7   :  { %9670 = sst [smem:[#allocation82_spill]] %s9458_s6 }
   0x8   :  { %9671 = sst [smem:[#allocation83_spill]] %s9459_s7 }
   0x9   :  { %9672 = sst [smem:[#allocation84_spill]] %s9460_s8 }
   0xa   :  { %9673 = sst [smem:[#allocation85_spill]] %s9461_s9 }
   0xb   :  { %9674 = sst [smem:[#allocation86_spill]] %s9467_s15 }
   0xc   :  { %9675 = sst [smem:[#allocation87_spill]] %s9469_s17 }
   0xd   :  { %9676 = sst [smem:[#allocation88_spill]] %s9470_s18 }
   0xe   :  { %9677 = sst [smem:[#allocation89_spill]] %s9471_s19 }
   0xf   :  { %25 = vsyncpa [#allocation6], 0 }
  0x10   :  { %26 = vsyncpa [#allocation9], 0 }
  0x11   :  { %27 = vsyncpa [#allocation12], 0 }
  0x12   :  { %28 = vsyncpa [#allocation7], 0 }
  0x13   :  { %30 = vsyncpa [#allocation7 + $0x1], 0 }
  0x14   :  { %31 = vsyncpa [#allocation15], 0 }
  0x15   :  { %33 = vsyncpa [#allocation15 + $0x1], 0  ;;  %s6831_s0 = smov 0   ;;  %s6833_s30 = smov 0  }
  0x16   :  { %s6835_s20 = smov 0   ;;  %s6837_s21 = smov 0  }
  0x17 LB: > { %9678 = sst [smem:[#allocation22_spill]] %s6675_s0  ;;  %s6852_s1 = sadd.s32 4294967295, %s6687_s21   ;;  %s6687_s21 = sphi %s6837_s21, %s10076_s21   ;;  %s6683_s20 = sphi %s6835_s20, %s10078_s20   ;;  %s6679_s30 = sphi %s6833_s30, %s10080_s30   ;;  %s6675_s0 = sphi %s6831_s0, %s10079_s0  }
  0x18   : > { %9679 = sst [smem:[#allocation23_spill]] %s6683_s20  ;;  %s9474_s22 = sadd.s32 4294967294, %s6687_s21  }
  0x19   : > { %9680 = sst [smem:[#allocation24_spill]] %s6687_s21  ;;  %s6856_s2 = sadd.s32 1, %s6687_s21  }
  0x1a   : > { %9681 = sst [smem:[#allocation25_spill]] %s6856_s2  ;;  %s408_s23 = sadd.s32 1, %s6683_s20 }
  0x1b   : > { %s405_s24 = ssub.s32 %s6687_s21, %s6856_s2  ;;  %p418_p0 = scmp.ne.s32.totalorder %s6683_s20, %s6679_s30 }
  0x1c   : > { %p406_p1 = scmp.eq.s32.totalorder %s405_s24, 0  ;;  %p419_p2 = scmp.eq.s32.totalorder %s6852_s1, 1 }
  0x1d   : > { %p424_p3 = scmp.ne.s32.totalorder %s6679_s30, %s6675_s0  ;;  %p425_p4 = scmp.eq.s32.totalorder %s9474_s22, 1 }
  0x1e   : > { %s6869_s25 = scalar_select %p406_p1, %s6683_s20, %s408_s23  }
  0x1f   : > { %p6871_p5 = por %p419_p2, %p418_p0  ;;  %p6875_p6 = por %p425_p4, %p424_p3 }
  0x20   : > { %9682 = sst [smem:[#allocation26_spill]] %s6869_s25  ;;  %p5796_p7 = scmp.ge.s32.totalorder %s6687_s21, 1 }
  0x21   : > { %s9683_s3 = scalar_select %p6871_p5, 1, 0 }
  0x22   : > { %s9685_s26 = scalar_select %p6875_p6, 1, 0 }
  0x23   : > { %9684 = sst [smem:[#allocation27_spill]] %s9683_s3  ;;  %p484_p8 = scmp.lt.s32.totalorder %s6687_s21, 3 }
  0x24   : > { %9686 = sst [smem:[#allocation28_spill]] %s9685_s26  ;;  %p9484_p9 = scmp.eq.s32.totalorder %s6852_s1, 0 }
  0x25   : > { %p6882_p10 = pnand %p5796_p7, %p484_p8  ;;  %s6689_s28 = smov [#allocation8]  }
  0x26   : > { %s511_s29 = sshll.u32 %s6689_s28, 4  ;;  %s6690_s23 = smov [#allocation5]   ;;  %s512_s29 = int_to_ptr.vmem [resolvable:$true] %s511_s29 }
  0x27   : > { %s9687_s27 = scalar_select %p6882_p10, 1, 0 }
  0x28   : > { %p6198_p11 = pneg %p6882_p10  ;;  %s497_s24 = sshll.u32 %s6690_s23, 4  ;;  %s6894_s24 = int_to_ptr.vmem [resolvable:$true] %s497_s24 }
  0x29   : > { %s6691_s25 = smov [#allocation10]   ;;  %s9689_s28 = sld [smem:[#allocation79_spill]] }
  0x2a   : > { %p6890_p12 = pnand %p9484_p9, %p6198_p11  ;;  %s525_s20 = sshll.u32 %s6691_s25, 4  ;;  %s6896_s20 = int_to_ptr.vmem [resolvable:$true] %s525_s20 }
  0x2c   : > { %p6906_p0 = pneg %p6890_p12 }
  0x2f   : > { %s6441_s0 = scalar_lea.hbm %s9689_s28, 64 }
  0x30   : > { %p6442_p13 = scmp.ne.s32.totalorder %s9689_s28, %s6441_s0  ;;  %p6448_p3 = scmp.lt.u32.totalorder %s6441_s0, %s9689_s28 }
  0x32   : > { %p6444_p1 = pnand %p6906_p0, %p6442_p13 }
  0x34   : > { %p6445_p2 = pneg %p6444_p1 }
  0x36   : > { %p6450_p4 = pnand %p6448_p3, %p6445_p2 }
  0x38   : > { %6453 = shalt.err (!%p6450_p4)
}
  0x39   : > { %s6454_s2 = scalar_lea.vmem %s512_s29, 64  ;;  %p6462_p9 = scmp.lt.s32.totalorder %s512_s29, %s512_s29 }
  0x3a   : > { %p6455_p7 = scmp.ne.s32.totalorder %s512_s29, %s6454_s2  ;;  %p6463_p6 = scmp.lt.s32.totalorder %s6454_s2, %s6454_s2 }
  0x3c   : > { %p6457_p8 = pnand %p6455_p7, %p6906_p0  ;;  %p6464_p5 = por %p6463_p6, %p6462_p9 }
  0x3e   : > { %p6458_p11 = pneg %p6457_p8 }
  0x40   : > { %p6465_p10 = pnand %p6464_p5, %p6458_p11 }
  0x42   : > { %6468 = shalt.err (!%p6465_p10)
}
  0x43   : > { %6204 = dma.hbm_to_vmem [thread:$0]  (!%p6890_p12), %s9689_s28, 64, %s512_s29, [#allocation9]  }
  0x44   : > { %s9691_s26 = sld [smem:[#allocation77_spill]] }
  0x4a   : > { %s6469_s25 = scalar_lea.hbm %s9691_s26, 64 }
  0x4b   : > { %p6470_p13 = scmp.ne.s32.totalorder %s9691_s26, %s6469_s25  ;;  %p6476_p5 = scmp.lt.u32.totalorder %s6469_s25, %s9691_s26 }
  0x4d   : > { %p6472_p1 = pnand %p6470_p13, %p6906_p0 }
  0x4f   : > { %p6473_p6 = pneg %p6472_p1 }
  0x51   : > { %p6478_p9 = pnand %p6476_p5, %p6473_p6 }
  0x53   : > { %6481 = shalt.err (!%p6478_p9)
}
  0x54   : > { %s6482_s29 = scalar_lea.vmem %s6894_s24, 64  ;;  %p6490_p4 = scmp.lt.s32.totalorder %s6894_s24, %s6894_s24 }
  0x55   : > { %p6483_p10 = scmp.ne.s32.totalorder %s6894_s24, %s6482_s29  ;;  %p6491_p7 = scmp.lt.s32.totalorder %s6482_s29, %s6482_s29 }
  0x57   : > { %p6485_p2 = pnand %p6483_p10, %p6906_p0  ;;  %p6492_p8 = por %p6491_p7, %p6490_p4 }
  0x59   : > { %p6486_p3 = pneg %p6485_p2 }
  0x5b   : > { %p6493_p11 = pnand %p6492_p8, %p6486_p3 }
  0x5d   : > { %6496 = shalt.err (!%p6493_p11)
}
  0x5e   : > { %6201 = dma.hbm_to_vmem [thread:$0]  (!%p6890_p12), %s9691_s26, 64, %s6894_s24, [#allocation6]  }
  0x5f   : > { %s9692_s5 = sld [smem:[#allocation81_spill]] }
  0x65   : > { %s6497_s21 = scalar_lea.hbm %s9692_s5, 64 }
  0x66   : > { %p6498_p13 = scmp.ne.s32.totalorder %s9692_s5, %s6497_s21  ;;  %p6504_p5 = scmp.lt.u32.totalorder %s6497_s21, %s9692_s5 }
  0x68   : > { %p6500_p1 = pnand %p6498_p13, %p6906_p0 }
  0x6a   : > { %p6501_p6 = pneg %p6500_p1 }
  0x6c   : > { %p6506_p9 = pnand %p6504_p5, %p6501_p6 }
  0x6e   : > { %6509 = shalt.err (!%p6506_p9)
}
  0x6f   : > { %s6510_s24 = scalar_lea.vmem %s6896_s20, 64  ;;  %p6518_p4 = scmp.lt.s32.totalorder %s6896_s20, %s6896_s20 }
  0x70   : > { %p6511_p10 = scmp.ne.s32.totalorder %s6896_s20, %s6510_s24  ;;  %p6519_p7 = scmp.lt.s32.totalorder %s6510_s24, %s6510_s24 }
  0x72   : > { %p6513_p2 = pnand %p6511_p10, %p6906_p0  ;;  %p6520_p8 = por %p6519_p7, %p6518_p4 }
  0x74   : > { %p6514_p3 = pneg %p6513_p2 }
  0x76   : > { %p6521_p11 = pnand %p6520_p8, %p6514_p3 }
  0x78   : > { %6524 = shalt.err (!%p6521_p11)
}
  0x79   : > { %6207 = dma.hbm_to_vmem [thread:$0]  (!%p6890_p12), %s9692_s5, 64, %s6896_s20, [#allocation9]  }
  0x7a   : > { %s6692_s18 = smov [#allocation11]   ;;  %s9693_s8 = sld [smem:[#allocation84_spill]] }
  0x7b   : > { %s541_s3 = sshll.u32 %s6692_s18, 4  ;;  %s542_s3 = int_to_ptr.vmem [resolvable:$true] %s541_s3 }
  0x80   : > { %s6525_s17 = scalar_lea.hbm %s9693_s8, 128 }
  0x81   : > { %p6526_p13 = scmp.ne.s32.totalorder %s9693_s8, %s6525_s17  ;;  %p6532_p5 = scmp.lt.u32.totalorder %s6525_s17, %s9693_s8 }
  0x83   : > { %p6528_p1 = pnand %p6526_p13, %p6906_p0 }
  0x85   : > { %p6529_p6 = pneg %p6528_p1 }
  0x87   : > { %p6534_p9 = pnand %p6532_p5, %p6529_p6 }
  0x89   : > { %6537 = shalt.err (!%p6534_p9)
}
  0x8a   : > { %s6538_s20 = scalar_lea.vmem %s542_s3, 128  ;;  %p6546_p4 = scmp.lt.s32.totalorder %s542_s3, %s542_s3 }
  0x8b   : > { %p6539_p10 = scmp.ne.s32.totalorder %s542_s3, %s6538_s20  ;;  %p6547_p7 = scmp.lt.s32.totalorder %s6538_s20, %s6538_s20 }
  0x8d   : > { %p6541_p2 = pnand %p6539_p10, %p6906_p0  ;;  %p6548_p8 = por %p6547_p7, %p6546_p4 }
  0x8f   : > { %p6542_p3 = pneg %p6541_p2 }
  0x91   : > { %p6549_p11 = pnand %p6548_p8, %p6542_p3 }
  0x93   : > { %6552 = shalt.err (!%p6549_p11)
}
  0x94   : > { %s6693_s29 = smov 64   ;;  %s6694_s15 = smov 4  }
  0x95   : > { %6210 = dma.hbm_to_vmem [thread:$0]  (!%p6890_p12), %s9693_s8, 128, %s542_s3, [#allocation12], %s6693_s29, %s6693_s29, %s6694_s15  }
  0x96   : > { %p9694_p13 = scmp.ne.s32.totalorder %s9687_s27, 0 }
  0x98   : > { %589 = sbr.rel (%p9694_p13) target bundleno = 4998 (0x1386), region = 88 }
  0x9f   : > { %p9695_p1 = scmp.eq.s32.totalorder %s6852_s1, 0 }
  0xa1   : > { %6654 = dma.done.wait (%p9695_p1), [#allocation6], 64   ;;  %p9696_p0 = pmov %p9695_p1 }
  0xa3   : > { %6656 = vsyncadd (%p9696_p0), [#allocation6], 4294967232  ;;  %p9697_p6 = pmov %p9696_p0 }
  0xa4   : > { %p9698_p5 = pmov %p9696_p0 }
  0xa5   : > { %6658 = dma.done.wait (%p9697_p6), [#allocation9], 128  }
  0xa6   : > { %6660 = vsyncadd (%p9698_p5), [#allocation9], 4294967168  ;;  %p9699_p9 = pmov %p9696_p0 }
  0xa7   : > { %p9700_p12 = pmov %p9696_p0 }
  0xa8   : > { %6662 = dma.done.wait (%p9699_p9), [#allocation12], 128  }
  0xa9   : > { %6664 = vsyncadd (%p9700_p12), [#allocation12], 4294967168  ;;  %p667_p10 = scmp.lt.s32.totalorder %s6852_s1, 1  ;;  %v683_v0 = vlaneseq  ;;  %v9499_v1 = vmov 0   ;;  %s9703_s21 = sld [smem:[#allocation76_spill]] }
  0xaa   : > { %1896 = vmatprep.mubr.bf16.mxu1 %v9499_v1  ;;  %1978 = vmatprep.mubr.bf16.mxu0 %v9499_v1  ;;  %s6696_s0 = smov 33   ;;  %s9649_s25 = smov 2  }
  0xab   : > { %s668_s22 = scalar_select %p667_p10, %s6852_s1, 1  ;;  %v7004_v2 = vand.u32 127, %v683_v0  ;;  %6301 = vset.pattern.permute.xlu0 %v9499_v1  ;;  %6302 = vset.pattern.permute.xlu1 %v9499_v1  ;;  %v884_v9 = vshrl.u32 %v683_v0, 7 }
  0xac   : > { %s9652_s2 = smov 32   ;;  %s6699_s24 = smov 34  }
  0xad   : > { %9701 = vst [vmem:[#allocation29_spill] sm:$0xff] %v7004_v2  ;;  %s6103_s27 = sshll.u32 %s668_s22, 6  ;;  %v7009_v3 = vadd.s32 128, %v7004_v2  ;;  %v696_v4 = vand.u32 31, %v7004_v2  ;;  %v686_v5 = vadd.s32 256, %v7004_v2  ;;  %v687_v6 = vadd.s32 384, %v7004_v2 }
  0xae   : > { %v7040_v22 = vsub.s32 0, %v884_v9  ;;  %v7042_v23 = vsub.s32 4, %v884_v9  ;;  %v688_v37 = vadd.s32 512, %v7004_v2  ;;  %v689_v38 = vadd.s32 640, %v7004_v2  ;;  %s9654_s20 = smov 64   ;;  %s6701_s29 = smov 66  }
  0xaf   : > { %9702 = vst [vmem:[#allocation30_spill] sm:$0xff] %v7009_v3  ;;  %s7015_s17 = scalar_lea.vmem %s9703_s21, %s6103_s27  ;;  %v703_v7 = vand.u32 31, %v7009_v3  ;;  %vm7020_vm0 = vcmp.ne.s32.totalorder %v696_v4, 31  ;;  %v710_v13 = vand.u32 31, %v686_v5  ;;  %v717_v14 = vand.u32 31, %v687_v6  ;;  %s6702_s15 = smov 127  }
  0xb0   : > { %v677_v10 = vld [vmem:[%s7015_s17 + $0x10] sm:$0xff]  ;;  %v675_v11 = vld [vmem:[%s7015_s17] sm:$0xff]  ;;  %v678_v12 = vld [vmem:[%s7015_s17 + $0x18] sm:$0xff]  ;;  %9710 = vst [vmem:[#allocation31_spill] sm:$0xff] %v7040_v22  ;;  %vm7049_vm6 = vcmp.ne.s32.totalorder %v696_v4, 0  ;;  %v724_v39 = vand.u32 31, %v688_v37 }
  0xb1   : > { %v806_v15 = vpack.c.bf16 %v677_v10, %v677_v10  ;;  %v804_v16 = vpack.c.bf16 %v675_v11, %v675_v11  ;;  %v676_v17 = vld [vmem:[%s7015_s17 + $0x8] sm:$0xff]  ;;  %vm797_vm1 = vcmp.ne.s32.totalorder %v703_v7, 31  ;;  %vm7030_vm3 = vcmp.ne.s32.totalorder %v710_v13, 31  ;;  %9711 = vst [vmem:[#allocation32_spill] sm:$0xff] %v7042_v23  ;;  %v679_v42 = vld [vmem:[%s7015_s17 + $0x20] sm:$0xff]  ;;  %v682_v55 = vld [vmem:[%s7015_s17 + $0x38] sm:$0xff] }
  0xb2   : > { %vm1024_vm2 = vmpackc.low %vm797_vm1, %vm7020_vm0  ;;  %vm7034_vm4 = vcmp.ne.s32.totalorder %v717_v14, 31  ;;  %v807_v20 = vpack.c.bf16 %v678_v12, %v678_v12  ;;  %v805_v21 = vpack.c.bf16 %v676_v17, %v676_v17  ;;  %vm789_vm7 = vcmp.ne.s32.totalorder %v703_v7, 0  ;;  %v680_v41 = vld [vmem:[%s7015_s17 + $0x28] sm:$0xff]  ;;  %v681_v56 = vld [vmem:[%s7015_s17 + $0x30] sm:$0xff]  ;;  %s6703_s18 = smov 95   ;;  %s6704_s19 = smov 63  }
  0xb3   : > { %824 = vrot.lane.b32.xlu1 %v806_v15, %s6696_s0  ;;  %820 = vrot.lane.b32.xlu0 %v804_v16, %s6696_s0  ;;  %v1028_v24 = vsel %vm1024_vm2, 65537, %v9499_v1  ;;  %vm1025_vm5 = vmpackc.low %vm7034_vm4, %vm7030_vm3  ;;  %vm790_vm9 = vcmp.ne.s32.totalorder %v710_v13, 0  ;;  %vm791_vm10 = vcmp.ne.s32.totalorder %v717_v14, 0  ;;  %v731_v40 = vand.u32 31, %v689_v38  ;;  %s6705_s22 = smov 126   ;;  %s6706_s27 = smov 96  }
  0xb4   : > { %v1039_v26 = vrot.slane %v1028_v24, %v7042_v23  ;;  %v1035_v27 = vrot.slane %v1028_v24, %v7040_v22  ;;  %v1029_v28 = vsel %vm1025_vm5, 65537, %v9499_v1  ;;  %vm875_vm8 = vmpackc.low %vm789_vm7, %vm7049_vm6  ;;  %vm800_vm12 = vcmp.ne.s32.totalorder %v724_v39, 31  ;;  %s6707_s23 = smov 94   ;;  %s6708_s3 = smov 62  }
  0xb5   : > { %v1047_v29 = vrot.slane %v1029_v28, %v7042_v23  ;;  %v1043_v30 = vrot.slane %v1029_v28, %v7040_v22  ;;  %v879_v31 = vsel %vm875_vm8, 65537, %v9499_v1  ;;  %vm876_vm11 = vmpackc.low %vm791_vm10, %vm790_vm9  ;;  %vm801_vm13 = vcmp.ne.s32.totalorder %v731_v40, 31  ;;  %s9845_s4 = sld [smem:[#allocation80_spill]]  ;;  %s9944_s6 = sld [smem:[#allocation82_spill]] }
  0xb6   : > { %v7068_v32 = vrot.slane %v879_v31, %v7042_v23  ;;  %v7071_v33 = vrot.slane %v879_v31, %v7040_v22  ;;  %v880_v34 = vsel %vm876_vm11, 65537, %v9499_v1  ;;  %vm1026_vm14 = vmpackc.low %vm801_vm13, %vm800_vm12  ;;  %vm792_vm15 = vcmp.ne.s32.totalorder %v724_v39, 0  ;;  %s9962_s7 = sld [smem:[#allocation83_spill]]  ;;  %s9634_s17 = smov 48  }
  0xb7   : > { %826 = vrot.lane.b32.xlu1 %v807_v20, %s6696_s0  ;;  %822 = vrot.lane.b32.xlu0 %v805_v21, %s6696_s0  ;;  %v7079_v35 = vrot.slane %v880_v34, %v7042_v23  ;;  %v7082_v36 = vrot.slane %v880_v34, %v7040_v22  ;;  %vm793_vm0 = vcmp.ne.s32.totalorder %v731_v40, 0  ;;  %v809_v43 = vpack.c.bf16 %v680_v41, %v680_v41  ;;  %s9989_s9 = sld [smem:[#allocation85_spill]] }
  0xb8   : > { %v808_v44 = vpack.c.bf16 %v679_v42, %v679_v42  ;;  %v1030_v45 = vsel %vm1026_vm14, 65537, %v9499_v1  ;;  %vm877_vm1 = vmpackc.low %vm793_vm0, %vm792_vm15  ;;  %v690_v49 = vadd.s32 768, %v7004_v2  ;;  %v691_v50 = vadd.s32 896, %v7004_v2 }
  0xb9   : > { %v1055_v46 = vrot.slane %v1030_v45, %v7042_v23  ;;  %v1051_v47 = vrot.slane %v1030_v45, %v7040_v22  ;;  %v881_v48 = vsel %vm877_vm1, 65537, %v9499_v1  ;;  %v811_v57 = vpack.c.bf16 %v682_v55, %v682_v55 }
  0xba   : > { %v7119_v51 = vrot.slane %v881_v48, %v7042_v23  ;;  %v7122_v52 = vrot.slane %v881_v48, %v7040_v22  ;;  %v738_v53 = vand.u32 31, %v690_v49  ;;  %v745_v54 = vand.u32 31, %v691_v50 }
  0xbb   : > { %1066 = vrot.lane.b32.xlu1 %v1039_v26, %s9649_s25  ;;  %1064 = vrot.lane.b32.xlu0 %v1035_v27, %s9649_s25  ;;  %v810_v58 = vpack.c.bf16 %v681_v56, %v681_v56  ;;  %vm836_vm8 = vcmask 269312   ;;  %vm9613_vm9 = vcmp.ne.s16.totalorder %v7071_v33, 0  ;;  %vm9496_vm10 = vcmp.ne.s16.totalorder %v7082_v36, 0 }
  0xbc   : > { %9714 = vst [vmem:[#allocation33_spill] sm:$0xff] %v7119_v51  ;;  %9715 = vst [vmem:[#allocation34_spill] sm:$0xff] %v7122_v52  ;;  %vm802_vm2 = vcmp.ne.s32.totalorder %v738_v53, 31  ;;  %vm803_vm3 = vcmp.ne.s32.totalorder %v745_v54, 31  ;;  %vm794_vm5 = vcmp.ne.s32.totalorder %v738_v53, 0  ;;  %vm795_vm6 = vcmp.ne.s32.totalorder %v745_v54, 0 }
  0xbd   : > { %vm1027_vm4 = vmpackc.low %vm803_vm3, %vm802_vm2  ;;  %vm9523_vm11 = vcmp.ne.s16.totalorder %v7068_v32, 0  ;;  %vm9495_vm12 = vcmp.ne.s16.totalorder %v7079_v35, 0  ;;  %vm9534_vm13 = vcmask 15360   ;;  %vm9536_vm15 = vcmask 261120  }
  0xbe   : > { %v1031_v59 = vsel %vm1027_vm4, 65537, %v9499_v1  ;;  %vm878_vm7 = vmpackc.low %vm795_vm6, %vm794_vm5  ;;  %vm9554_vm1 = vcmask 277504   ;;  %vm9491_vm2 = vcmp.ne.s16.totalorder %v7122_v52, 0  ;;  %vm9492_vm3 = vcmp.ne.s16.totalorder %v7119_v51, 0 }
  0xbf   : > { %1070 = vrot.lane.b32.xlu1 %v1047_v29, %s9649_s25  ;;  %1068 = vrot.lane.b32.xlu0 %v1043_v30, %s9649_s25  ;;  %v1063_v60 = vrot.slane %v1031_v59, %v7042_v23  ;;  %v1059_v61 = vrot.slane %v1031_v59, %v7040_v22  ;;  %v882_v62 = vsel %vm878_vm7, 65537, %v9499_v1 }
  0xc0   : > { %v7145_v63 = vrot.slane %v882_v62, %v7042_v23  ;;  %v7148_v0 = vrot.slane %v882_v62, %v7040_v22 }
  0xc2   : > { %9716 = vst [vmem:[#allocation35_spill] sm:$0xff] %v7145_v63  ;;  %9717 = vst [vmem:[#allocation36_spill] sm:$0xff] %v7148_v0 }
  0xc3   : > { %1163 = vrot.lane.b32.xlu1 %v7068_v32, %s9652_s2  ;;  %1161 = vrot.lane.b32.xlu0 %v7071_v33, %s9652_s2 }
  0xc7   : > { %1167 = vrot.lane.b32.xlu1 %v7079_v35, %s9652_s2  ;;  %1165 = vrot.lane.b32.xlu0 %v7082_v36, %s9652_s2 }
  0xcb   : > { %1292 = vrot.lane.b32.xlu1 %v1039_v26, %s6699_s24  ;;  %1290 = vrot.lane.b32.xlu0 %v1035_v27, %s6699_s24 }
  0xcf   : > { %1296 = vrot.lane.b32.xlu1 %v1047_v29, %s6699_s24  ;;  %1294 = vrot.lane.b32.xlu0 %v1043_v30, %s6699_s24 }
  0xd3   : > { %1389 = vrot.lane.b32.xlu1 %v7068_v32, %s9654_s20  ;;  %1387 = vrot.lane.b32.xlu0 %v7071_v33, %s9654_s20 }
  0xd7   : > { %1393 = vrot.lane.b32.xlu1 %v7079_v35, %s9654_s20  ;;  %1391 = vrot.lane.b32.xlu0 %v7082_v36, %s9654_s20 }
  0xdb   : > { %1517 = vrot.lane.b32.xlu1 %v1039_v26, %s6701_s29  ;;  %1515 = vrot.lane.b32.xlu0 %v1035_v27, %s6701_s29 }
  0xdf   : > { %1521 = vrot.lane.b32.xlu1 %v1047_v29, %s6701_s29  ;;  %1519 = vrot.lane.b32.xlu0 %v1043_v30, %s6701_s29 }
  0xe3   : > { %830 = vrot.lane.b32.xlu1 %v809_v43, %s6696_s0  ;;  %828 = vrot.lane.b32.xlu0 %v808_v44, %s6696_s0 }
  0xe7   : > { %1074 = vrot.lane.b32.xlu1 %v1055_v46, %s9649_s25  ;;  %1072 = vrot.lane.b32.xlu0 %v1051_v47, %s9649_s25 }
  0xeb   : > { %1171 = vrot.lane.b32.xlu1 %v7119_v51, %s9652_s2  ;;  %1169 = vrot.lane.b32.xlu0 %v7122_v52, %s9652_s2 }
  0xef   : > { %1300 = vrot.lane.b32.xlu1 %v1055_v46, %s6699_s24  ;;  %1298 = vrot.lane.b32.xlu0 %v1051_v47, %s6699_s24 }
  0xf3   : > { %1397 = vrot.lane.b32.xlu1 %v7119_v51, %s9654_s20  ;;  %1395 = vrot.lane.b32.xlu0 %v7122_v52, %s9654_s20 }
  0xf7   : > { %834 = vrot.lane.b32.xlu1 %v811_v57, %s6696_s0  ;;  %832 = vrot.lane.b32.xlu0 %v810_v58, %s6696_s0 }
  0xfb   : > { %1078 = vrot.lane.b32.xlu1 %v1063_v60, %s9649_s25  ;;  %1076 = vrot.lane.b32.xlu0 %v1059_v61, %s9649_s25 }
  0xff   : > { %1175 = vrot.lane.b32.xlu1 %v7145_v63, %s9652_s2  ;;  %1173 = vrot.lane.b32.xlu0 %v7148_v0, %s9652_s2 }
 0x103   : > { %1525 = vrot.lane.b32.xlu1 %v1055_v46, %s6701_s29  ;;  %1523 = vrot.lane.b32.xlu0 %v1051_v47, %s6701_s29 }
 0x107   : > { %1304 = vrot.lane.b32.xlu1 %v1063_v60, %s6699_s24  ;;  %1302 = vrot.lane.b32.xlu0 %v1059_v61, %s6699_s24 }
 0x10b   : > { %1401 = vrot.lane.b32.xlu1 %v7145_v63, %s9654_s20  ;;  %1399 = vrot.lane.b32.xlu0 %v7148_v0, %s9654_s20 }
 0x10f   : > { %1529 = vrot.lane.b32.xlu1 %v1063_v60, %s6701_s29  ;;  %1527 = vrot.lane.b32.xlu0 %v1059_v61, %s6701_s29  ;;  %s9749_s29 = sld [smem:[#allocation78_spill]] }
 0x125   : > { %v825_v4 = vpop.permute.xlu1 %824  ;;  %v821_v5 = vpop.permute.xlu0 %820 }
 0x126   : > { %v7165_v6 = vsel %vm836_vm8, 0, %v821_v5 }
 0x127   : > { %v7183_v12 = vsel %vm9613_vm9, %v7165_v6, 0 }
 0x129   : > { %v827_v7 = vpop.permute.xlu1 %826  ;;  %v823_v8 = vpop.permute.xlu0 %822 }
 0x12a   : > { %v7172_v9 = vsel %vm836_vm8, %v825_v4, %v827_v7  ;;  %v7175_v10 = vsel %vm836_vm8, %v821_v5, %v823_v8  ;;  %v7178_v11 = vsel %vm836_vm8, %v823_v8, %v825_v4 }
 0x12b   : > { %v5817_v13 = vcombine.low %v7178_v11, %v7172_v9  ;;  %v5816_v14 = vcombine.low %v7165_v6, %v7175_v10  ;;  %v7192_v15 = vsel %vm9523_vm11, %v7175_v10, 0  ;;  %v7197_v16 = vsel %vm9496_vm10, %v7178_v11, 0 }
 0x12c   : > { %v7204_v18 = vsel %vm9495_vm12, %v7172_v9, 0 }
 0x12d   : > { %v1067_v19 = vpop.permute.xlu1 %1066  ;;  %977 = vrot.lane.b32.xlu1 %v5817_v13, %s6702_s15  ;;  %975 = vrot.lane.b32.xlu0 %v5816_v14, %s6702_s15  ;;  %v7208_v20 = vpop.permute.xlu0 %1064 }
 0x12e   : > { %v7240_v44 = vsel %vm9534_vm13, %v7208_v20, %v1067_v19  ;;  %vm9498_vm14 = vcmp.ne.s16.totalorder %v7208_v20, 0 }
 0x12f   : > { %vm9513_vm0 = vcmp.ne.s16.totalorder %v7240_v44, 0  ;;  %v1097_v54 = vsel %vm9498_vm14, %v7165_v6, 0  ;;  %vm1531_vm14 = vcmask 539648  }
 0x130   : > { %v1098_v60 = vsel %vm9513_vm0, %v7175_v10, 0 }
 0x131   : > { %v7212_v24 = vpop.permute.xlu1 %1070  ;;  %1260 = vrot.lane.b32.xlu1 %v5817_v13, %s6703_s18  ;;  %1258 = vrot.lane.b32.xlu0 %v5816_v14, %s6703_s18  ;;  %v1069_v25 = vpop.permute.xlu0 %1068 }
 0x132   : > { %v7248_v47 = vsel %vm9534_vm13, %v1067_v19, %v1069_v25  ;;  %v7252_v48 = vsel %vm9534_vm13, %v1069_v25, %v7212_v24 }
 0x133   : > { %vm9494_vm4 = vcmp.ne.s16.totalorder %v7248_v47, 0  ;;  %vm9493_vm5 = vcmp.ne.s16.totalorder %v7252_v48, 0 }
 0x134   : > { %v1099_v4 = vsel %vm9494_vm4, %v7178_v11, 0  ;;  %v1100_v5 = vsel %vm9493_vm5, %v7172_v9, 0  ;;  %vm9635_vm5 = vcmask 523264  }
 0x135   : > { %v1164_v26 = vpop.permute.xlu1 %1163  ;;  %1485 = vrot.lane.b32.xlu1 %v5817_v13, %s6704_s19  ;;  %1483 = vrot.lane.b32.xlu0 %v5816_v14, %s6704_s19  ;;  %v7218_v27 = vpop.permute.xlu0 %1161 }
 0x136   : > { %v7261_v49 = vsel %vm9536_vm15, %v7218_v27, %v1164_v26  ;;  %vm9497_vm6 = vcmp.ne.s16.totalorder %v7218_v27, 0 }
 0x137   : > { %vm9504_vm7 = vcmp.ne.s16.totalorder %v7261_v49, 0 }
 0x139   : > { %v7220_v28 = vpop.permute.xlu1 %1167  ;;  %v1166_v29 = vpop.permute.xlu0 %1165 }
 0x13a   : > { %v7269_v55 = vsel %vm9536_vm15, %v1164_v26, %v1166_v29  ;;  %v7273_v56 = vsel %vm9536_vm15, %v1166_v29, %v7220_v28  ;;  %v5822_v26 = vcombine.low %v1099_v4, %v1100_v5  ;;  %v5821_v29 = vcombine.low %v1097_v54, %v1098_v60 }
 0x13d   : > { %v1293_v30 = vpop.permute.xlu1 %1292  ;;  %v7222_v31 = vpop.permute.xlu0 %1290 }
 0x13e   : > { %v7319_v14 = vsel %vm9554_vm1, %v7222_v31, %v1293_v30  ;;  %vm9503_vm4 = vcmp.ne.s16.totalorder %v7222_v31, 0 }
 0x13f   : > { %vm9512_vm12 = vcmp.ne.s16.totalorder %v7319_v14, 0 }
 0x141   : > { %v7224_v34 = vpop.permute.xlu1 %1296  ;;  %v1295_v37 = vpop.permute.xlu0 %1294 }
 0x142   : > { %v7322_v19 = vsel %vm9554_vm1, %v1293_v30, %v1295_v37  ;;  %v7326_v25 = vsel %vm9554_vm1, %v1295_v37, %v7224_v34  ;;  %v1195_v37 = vsel %vm9504_vm7, %v7175_v10, 0 }
 0x143   : > { %vm9508_vm10 = vcmp.ne.s16.totalorder %v7322_v19, 0 }
 0x145   : > { %v7226_v38 = vpop.permute.xlu1 %1389  ;;  %v7228_v39 = vpop.permute.xlu0 %1387 }
 0x146   : > { %v7351_v4 = vsel %vm9635_vm5, %v7228_v39, %v7226_v38 }
 0x147   : > { %9719 = vst [vmem:[#allocation38_spill] sm:$0xff] %v7351_v4 }
 0x149   : > { %v7230_v40 = vpop.permute.xlu1 %1393  ;;  %v7232_v41 = vpop.permute.xlu0 %1391 }
 0x14a   : > { %v7356_v5 = vsel %vm9635_vm5, %v7226_v38, %v7232_v41  ;;  %v7361_v1 = vsel %vm9635_vm5, %v7232_v41, %v7230_v40  ;;  %v1325_v38 = vsel %vm9508_vm10, %v7178_v11, 0 }
 0x14b   : > { %9720 = vst [vmem:[#allocation39_spill] sm:$0xff] %v7361_v1  ;;  %vm9518_vm7 = vcmp.ne.s16.totalorder %v7361_v1, 0 }
 0x14d   : > { %v7234_v42 = vpop.permute.xlu1 %1517  ;;  %v7236_v43 = vpop.permute.xlu0 %1515 }
 0x14e   : > { %9718 = vst [vmem:[#allocation37_spill] sm:$0xff] %v7236_v43  ;;  %v7369_v17 = vsel %vm1531_vm14, %v7236_v43, %v7234_v42 }
 0x14f   : > { %9721 = vst [vmem:[#allocation40_spill] sm:$0xff] %v7369_v17  ;;  %vm9522_vm10 = vcmp.ne.s16.totalorder %v7369_v17, 0 }
 0x151   : > { %v7242_v45 = vpop.permute.xlu1 %1521  ;;  %v7244_v46 = vpop.permute.xlu0 %1519 }
 0x152   : > { %v7397_v23 = vsel %vm1531_vm14, %v7244_v46, %v7242_v45 }
 0x153   : > { %9723 = vst [vmem:[#allocation42_spill] sm:$0xff] %v7397_v23  ;;  %vm9524_vm0 = vcmp.ne.s16.totalorder %v7397_v23, 0 }
 0x155   : > { %v7263_v50 = vpop.permute.xlu1 %830  ;;  %v829_v53 = vpop.permute.xlu0 %828 }
 0x156   : > { %v7276_v57 = vsel %vm836_vm8, %v827_v7, %v829_v53  ;;  %v7280_v58 = vsel %vm836_vm8, %v829_v53, %v7263_v50  ;;  %v1194_v53 = vsel %vm9497_vm6, %v7165_v6, 0  ;;  %vm9505_vm6 = vcmp.ne.s16.totalorder %v7326_v25, 0 }
 0x157   : > { %v7284_v59 = vcombine.low %v7276_v57, %v7280_v58  ;;  %v7292_v61 = vsel %vm9491_vm2, %v7276_v57, 0  ;;  %v7297_v62 = vsel %vm9492_vm3, %v7280_v58, 0  ;;  %vm9502_vm2 = vcmp.ne.s16.totalorder %v7269_v55, 0 }
 0x158   : > { %vm9501_vm3 = vcmp.ne.s16.totalorder %v7273_v56, 0  ;;  %v1196_v7 = vsel %vm9502_vm2, %v7178_v11, 0  ;;  %v1326_v41 = vsel %vm9505_vm6, %v7172_v9, 0  ;;  %vm9614_vm2 = vcmp.ne.s16.totalorder %v7351_v4, 0 }
 0x159   : > { %v7311_v8 = vpop.permute.xlu1 %1074  ;;  %1262 = vrot.lane.b32.xlu1 %v7284_v59, %s6703_s18  ;;  %979 = vrot.lane.b32.xlu0 %v7284_v59, %s6702_s15  ;;  %v1073_v13 = vpop.permute.xlu0 %1072  ;;  %v1197_v30 = vsel %vm9501_vm3, %v7172_v9, 0  ;;  %vm9521_vm3 = vcmp.ne.s16.totalorder %v7228_v39, 0  ;;  %vm9520_vm6 = vcmp.ne.s16.totalorder %v7236_v43, 0  ;;  %v5832_v22 = vcombine.low %v1325_v38, %v1326_v41 }
 0x15a   : > { %v5827_v21 = vcombine.low %v1196_v7, %v1197_v30  ;;  %v1324_v7 = vsel %vm9512_vm12, %v7175_v10, 0  ;;  %v7427_v2 = vsel %vm9534_vm13, %v1073_v13, %v7311_v8 }
 0x15b   : > { %9725 = vst [vmem:[#allocation44_spill] sm:$0xff] %v7427_v2 }
 0x15d   : > { %v7344_v54 = vpop.permute.xlu1 %1171  ;;  %1131 = vrot.lane.b32.xlu1 %v5822_v26, %s6705_s22  ;;  %1129 = vrot.lane.b32.xlu0 %v5821_v29, %s6705_s22  ;;  %v1170_v60 = vpop.permute.xlu0 %1169  ;;  %v5826_v26 = vcombine.low %v1194_v53, %v1195_v37  ;;  %v1323_v29 = vsel %vm9503_vm4, %v7165_v6, 0  ;;  %vm9519_vm4 = vcmp.ne.s16.totalorder %v7356_v5, 0  ;;  %v7392_v37 = vsel %vm1531_vm14, %v7234_v42, %v7244_v46 }
 0x15e   : > { %9722 = vst [vmem:[#allocation41_spill] sm:$0xff] %v7392_v37  ;;  %v5831_v3 = vcombine.low %v1323_v29, %v1324_v7  ;;  %v1420_v42 = vsel %vm9521_vm3, %v7165_v6, 0  ;;  %v1421_v46 = vsel %vm9614_vm2, %v7175_v10, 0  ;;  %vm9525_vm12 = vcmp.ne.s16.totalorder %v7392_v37, 0 }
 0x15f   : > { %v7416_v29 = vsel %vm9534_vm13, %v7212_v24, %v1073_v13  ;;  %v1548_v7 = vsel %vm9520_vm6, %v7165_v6, 0  ;;  %v7431_v24 = vsel %vm9536_vm15, %v7220_v28, %v1170_v60  ;;  %v7435_v1 = vsel %vm9536_vm15, %v1170_v60, %v7344_v54 }
 0x160   : > { %9724 = vst [vmem:[#allocation43_spill] sm:$0xff] %v7416_v29  ;;  %9726 = vst [vmem:[#allocation45_spill] sm:$0xff] %v7431_v24  ;;  %v5836_v6 = vcombine.low %v1420_v42, %v1421_v46  ;;  %vm1092_vm6 = vcmp.ne.s16.totalorder %v7416_v29, 0  ;;  %v1550_v28 = vsel %vm9525_vm12, %v7178_v11, 0  ;;  %v1551_v13 = vsel %vm9524_vm0, %v7172_v9, 0 }
 0x161   : > { %v7384_v53 = vpop.permute.xlu1 %1300  ;;  %1228 = vrot.lane.b32.xlu1 %v5827_v21, %s6706_s27  ;;  %1226 = vrot.lane.b32.xlu0 %v5826_v26, %s6706_s27  ;;  %v1299_v30 = vpop.permute.xlu0 %1298  ;;  %v1422_v21 = vsel %vm9519_vm4, %v7178_v11, 0  ;;  %v1423_v26 = vsel %vm9518_vm7, %v7172_v9, 0  ;;  %9727 = vst [vmem:[#allocation46_spill] sm:$0xff] %v7435_v1  ;;  %vm9532_vm7 = vcmp.ne.s16.totalorder %v7145_v63, 0  ;;  %vm9533_vm4 = vcmp.ne.s16.totalorder %v7148_v0, 0 }
 0x162   : > { %vm9624_vm3 = vcmp.ne.s16.totalorder %v7427_v2, 0  ;;  %vm9602_vm11 = vcmp.ne.s16.totalorder %v7435_v1, 0  ;;  %v7458_v11 = vsel %vm9554_vm1, %v7224_v34, %v1299_v30  ;;  %v7462_v9 = vsel %vm9554_vm1, %v1299_v30, %v7384_v53 }
 0x163   : > { %9728 = vst [vmem:[#allocation47_spill] sm:$0xff] %v7458_v11  ;;  %9729 = vst [vmem:[#allocation48_spill] sm:$0xff] %v7462_v9  ;;  %v5842_v46 = vcombine.low %v1550_v28, %v1551_v13  ;;  %vm9537_vm0 = vcmp.ne.s16.totalorder %v7458_v11, 0  ;;  %vm9535_vm12 = vcmp.ne.s16.totalorder %v7462_v9, 0  ;;  %v9756_v1 = vmov 0  }
 0x164   : > { %v1327_v63 = vsel %vm9537_vm0, %v7276_v57, 0 }
 0x165   : > { %v7418_v38 = vpop.permute.xlu1 %1397  ;;  %1357 = vrot.lane.b32.xlu1 %v5832_v22, %s6707_s23  ;;  %1355 = vrot.lane.b32.xlu0 %v5831_v3, %s6707_s23  ;;  %v1396_v41 = vpop.permute.xlu0 %1395  ;;  %v1549_v3 = vsel %vm9522_vm10, %v7175_v10, 0  ;;  %v5837_v22 = vcombine.low %v1422_v21, %v1423_v26  ;;  %vm1189_vm10 = vcmp.ne.s16.totalorder %v7431_v24, 0 }
 0x166   : > { %v5841_v21 = vcombine.low %v1548_v7, %v1549_v3  ;;  %v1101_v7 = vsel %vm1092_vm6, %v7276_v57, 0  ;;  %v1198_v3 = vsel %vm1189_vm10, %v7276_v57, 0  ;;  %v7508_v23 = vsel %vm9635_vm5, %v1396_v41, %v7418_v38 }
 0x167   : > { %9732 = vst [vmem:[#allocation51_spill] sm:$0xff] %v7508_v23 }
 0x169   : > { %v7452_v10 = vpop.permute.xlu1 %834  ;;  %1454 = vrot.lane.b32.xlu1 %v5837_v22, %s9654_s20  ;;  %1452 = vrot.lane.b32.xlu0 %v5836_v6, %s9654_s20  ;;  %v833_v60 = vpop.permute.xlu0 %832  ;;  %v1199_v22 = vsel %vm9602_vm11, %v7280_v58, 0  ;;  %vm9611_vm11 = vcmask 588800  }
 0x16a   : > { %v7466_v26 = vsel %vm836_vm8, %v7263_v50, %v833_v60  ;;  %v7470_v42 = vsel %vm836_vm8, %v833_v60, %v7452_v10  ;;  %v1102_v50 = vsel %vm9624_vm3, %v7280_v58, 0  ;;  %v7504_v60 = vsel %vm9635_vm5, %v7230_v40, %v1396_v41 }
 0x16b   : > { %v7478_v34 = vsel %vm9533_vm4, %v7466_v26, 0  ;;  %v7483_v30 = vsel %vm9532_vm7, %v7470_v42, 0  ;;  %9731 = vst [vmem:[#allocation50_spill] sm:$0xff] %v7504_v60  ;;  %v5823_v6 = vcombine.low %v1101_v7, %v1102_v50  ;;  %v5828_v37 = vcombine.low %v1198_v3, %v1199_v22 }
 0x16c   : > { %vm9543_vm7 = vcmp.ne.s16.totalorder %v7504_v60, 0  ;;  %vm9542_vm4 = vcmp.ne.s16.totalorder %v7508_v23, 0 }
 0x16d   : > { %v7498_v28 = vpop.permute.xlu1 %1078  ;;  %1582 = vrot.lane.b32.xlu1 %v5842_v46, %s6708_s3  ;;  %1580 = vrot.lane.b32.xlu0 %v5841_v21, %s6708_s3  ;;  %v1077_v13 = vpop.permute.xlu0 %1076  ;;  %v1328_v46 = vsel %vm9535_vm12, %v7280_v58, 0 }
 0x16e   : > { %9730 = vst [vmem:[#allocation49_spill] sm:$0xff] %v7498_v28  ;;  %v7524_v21 = vsel %vm9534_vm13, %v7311_v8, %v1077_v13  ;;  %v7528_v7 = vsel %vm9534_vm13, %v1077_v13, %v7498_v28  ;;  %v5833_v22 = vcombine.low %v1327_v63, %v1328_v46  ;;  %v1424_v8 = vsel %vm9543_vm7, %v7276_v57, 0 }
 0x16f   : > { %9734 = vst [vmem:[#allocation53_spill] sm:$0xff] %v7524_v21  ;;  %9735 = vst [vmem:[#allocation54_spill] sm:$0xff] %v7528_v7  ;;  %vm9553_vm13 = vcmp.ne.s16.totalorder %v7524_v21, 0  ;;  %vm9552_vm12 = vcmp.ne.s16.totalorder %v7528_v7, 0 }
 0x170   : > { %v1103_v23 = vsel %vm9553_vm13, %v7466_v26, 0 }
 0x171   : > { %v7518_v40 = vpop.permute.xlu1 %1175  ;;  %1133 = vrot.lane.b32.xlu1 %v5823_v6, %s6705_s22  ;;  %1230 = vrot.lane.b32.xlu0 %v5828_v37, %s6706_s27  ;;  %v1174_v41 = vpop.permute.xlu0 %1173  ;;  %v7540_v37 = vcombine.low %v7466_v26, %v7470_v42  ;;  %v1425_v6 = vsel %vm9542_vm4, %v7280_v58, 0 }
 0x172   : > { %9733 = vst [vmem:[#allocation52_spill] sm:$0xff] %v7518_v40  ;;  %v7532_v50 = vsel %vm9536_vm15, %v7344_v54, %v1174_v41  ;;  %v7536_v3 = vsel %vm9536_vm15, %v1174_v41, %v7518_v40  ;;  %v5838_v41 = vcombine.low %v1424_v8, %v1425_v6 }
 0x173   : > { %9736 = vst [vmem:[#allocation55_spill] sm:$0xff] %v7532_v50  ;;  %9737 = vst [vmem:[#allocation56_spill] sm:$0xff] %v7536_v3  ;;  %vm9578_vm15 = vcmp.ne.s16.totalorder %v7532_v50, 0  ;;  %vm9555_vm0 = vcmp.ne.s16.totalorder %v7536_v3, 0  ;;  %v857_v50 = vsel %vm836_vm8, %v7452_v10, 0 }
 0x174   : > { %v1200_v60 = vsel %vm9578_vm15, %v7466_v26, 0  ;;  %v5820_v10 = vcombine.low %v857_v50, %v857_v50  ;;  %vm1371_vm15 = vcmask 769024  }
 0x175   : > { %v1526_v63 = vpop.permute.xlu1 %1525  ;;  %1359 = vrot.lane.b32.xlu0 %v5833_v22, %s6707_s23  ;;  %981 = vrot.lane.b32.xlu1 %v7540_v37, %s6702_s15  ;;  %v1524_v54 = vpop.permute.xlu0 %1523  ;;  %v1104_v22 = vsel %vm9552_vm12, %v7470_v42, 0 }
 0x176   : > { %v7557_v13 = vsel %vm1531_vm14, %v7242_v45, %v1524_v54  ;;  %v7560_v46 = vsel %vm1531_vm14, %v1524_v54, %v1526_v63  ;;  %v1201_v45 = vsel %vm9555_vm0, %v7470_v42, 0  ;;  %v5824_v21 = vcombine.low %v1103_v23, %v1104_v22 }
 0x177   : > { %9738 = vst [vmem:[#allocation57_spill] sm:$0xff] %v7557_v13  ;;  %9739 = vst [vmem:[#allocation58_spill] sm:$0xff] %v7560_v46  ;;  %vm9600_vm4 = vcmp.ne.s16.totalorder %v7557_v13, 0  ;;  %vm9596_vm7 = vcmp.ne.s16.totalorder %v7560_v46, 0  ;;  %v5829_v3 = vcombine.low %v1200_v60, %v1201_v45  ;;  %vm9558_vm0 = vcmp.ne.s16.totalorder %v7518_v40, 0 }
 0x179   : > { %v7576_v8 = vpop.permute.xlu1 %1304  ;;  %1456 = vrot.lane.b32.xlu0 %v5838_v41, %s9654_s20  ;;  %1487 = vrot.lane.b32.xlu1 %v7284_v59, %s6704_s19  ;;  %v1303_v6 = vpop.permute.xlu0 %1302  ;;  %v1552_v41 = vsel %vm9600_vm4, %v7276_v57, 0  ;;  %v1553_v59 = vsel %vm9596_vm7, %v7280_v58, 0  ;;  %vm9615_vm7 = vcmask 515072   ;;  %vm9612_vm4 = vcmask 506880  }
 0x17a   : > { %9740 = vst [vmem:[#allocation59_spill] sm:$0xff] %v7576_v8  ;;  %v7583_v54 = vsel %vm9554_vm1, %v7384_v53, %v1303_v6  ;;  %v7587_v7 = vsel %vm9554_vm1, %v1303_v6, %v7576_v8  ;;  %v5843_v60 = vcombine.low %v1552_v41, %v1553_v59  ;;  %vm9559_vm1 = vcmp.ne.s16.totalorder %v7498_v28, 0 }
 0x17b   : > { %9741 = vst [vmem:[#allocation60_spill] sm:$0xff] %v7583_v54  ;;  %9742 = vst [vmem:[#allocation61_spill] sm:$0xff] %v7587_v7  ;;  %vm9557_vm12 = vcmp.ne.s16.totalorder %v7583_v54, 0  ;;  %vm9556_vm13 = vcmp.ne.s16.totalorder %v7587_v7, 0  ;;  %v1105_v45 = vsel %vm9559_vm1, %v857_v50, 0  ;;  %v1202_v6 = vsel %vm9558_vm0, %v857_v50, 0 }
 0x17c   : > { %v1329_v57 = vsel %vm9557_vm12, %v7466_v26, 0  ;;  %v1330_v58 = vsel %vm9556_vm13, %v7470_v42, 0  ;;  %v5825_v59 = vcombine.low %v1105_v45, %v1105_v45  ;;  %vm9571_vm0 = vcmp.ne.s16.totalorder %v7576_v8, 0 }
 0x17d   : > { %1135 = vrot.lane.b32.xlu0 %v5824_v21, %s6705_s22  ;;  %1232 = vrot.lane.b32.xlu1 %v5829_v3, %s6706_s27  ;;  %v7601_v23 = vpop.permute.xlu1 %1401  ;;  %v1400_v53 = vpop.permute.xlu0 %1399  ;;  %v5834_v22 = vcombine.low %v1329_v57, %v1330_v58 }
 0x17e   : > { %9743 = vst [vmem:[#allocation62_spill] sm:$0xff] %v7601_v23  ;;  %v7615_v21 = vsel %vm9635_vm5, %v7418_v38, %v1400_v53  ;;  %v7619_v3 = vsel %vm9635_vm5, %v1400_v53, %v7601_v23  ;;  %v5830_v53 = vcombine.low %v1202_v6, %v1202_v6  ;;  %v1331_v6 = vsel %vm9571_vm0, %v857_v50, 0 }
 0x17f   : > { %9744 = vst [vmem:[#allocation63_spill] sm:$0xff] %v7615_v21  ;;  %9745 = vst [vmem:[#allocation64_spill] sm:$0xff] %v7619_v3  ;;  %vm9561_vm13 = vcmp.ne.s16.totalorder %v7615_v21, 0  ;;  %vm9560_vm12 = vcmp.ne.s16.totalorder %v7619_v3, 0  ;;  %vm9562_vm1 = vcmp.ne.s16.totalorder %v7601_v23, 0  ;;  %vm1145_vm0 = vcmask 1031168  }
 0x180   : > { %v1427_v57 = vsel %vm9560_vm12, %v7470_v42, 0 }
 0x181   : > { %983 = vrot.lane.b32.xlu1 %v5820_v10, %s6702_s15  ;;  %1584 = vrot.lane.b32.xlu0 %v5843_v60, %s6708_s3  ;;  %v7630_v38 = vpop.permute.xlu1 %1529  ;;  %v1528_v41 = vpop.permute.xlu0 %1527  ;;  %v1426_v60 = vsel %vm9561_vm13, %v7466_v26, 0 }
 0x182   : > { %9746 = vst [vmem:[#allocation65_spill] sm:$0xff] %v7630_v38  ;;  %v7642_v58 = vsel %vm1531_vm14, %v1526_v63, %v1528_v41  ;;  %v5839_v45 = vcombine.low %v1426_v60, %v1427_v57  ;;  %v5835_v63 = vcombine.low %v1331_v6, %v1331_v6 }
 0x183   : > { %9747 = vst [vmem:[#allocation66_spill] sm:$0xff] %v7642_v58  ;;  %vm9577_vm12 = vcmp.ne.s16.totalorder %v7642_v58, 0 }
 0x185   : > { %1264 = vrot.lane.b32.xlu0 %v7540_v37, %s6703_s18  ;;  %1361 = vrot.lane.b32.xlu1 %v5834_v22, %s6707_s23  ;;  %v7646_v22 = vsel %vm1531_vm14, %v1528_v41, %v7630_v38  ;;  %v1428_v41 = vsel %vm9562_vm1, %v857_v50, 0  ;;  %vm9563_vm14 = vcmp.ne.s16.totalorder %v7630_v38, 0  ;;  %vm990_vm1 = vcmask 1043456  }
 0x186   : > { %9748 = vst [vmem:[#allocation67_spill] sm:$0xff] %v7646_v22  ;;  %vm9576_vm13 = vcmp.ne.s16.totalorder %v7646_v22, 0  ;;  %v1556_v57 = vsel %vm9563_vm14, %v857_v50, 0  ;;  %vm992_vm14 = vcmask 1039360  }
 0x189   : > { %1137 = vrot.lane.b32.xlu0 %v5825_v59, %s6705_s22  ;;  %1234 = vrot.lane.b32.xlu1 %v5830_v53, %s6706_s27  ;;  %v1554_v59 = vsel %vm9577_vm12, %v7466_v26, 0  ;;  %v1555_v53 = vsel %vm9576_vm13, %v7470_v42, 0  ;;  %v5845_v26 = vcombine.low %v1556_v57, %v1556_v57  ;;  %v1649_v42 = vld [vmem:[%s9749_s29] sm:$0xff]  ;;  %vm9656_vm13 = vcmask 785408   ;;  %s6711_s29 = smov 80  }
 0x18a   : > { %v5844_v60 = vcombine.low %v1554_v59, %v1555_v53  ;;  %v9750_v53 = vcombine.low %v7183_v12, %v7192_v15  ;;  %vm9657_vm12 = vcmask 777216  }
 0x18d   : > { %1489 = vrot.lane.b32.xlu1 %v7540_v37, %s6704_s19  ;;  %1458 = vrot.lane.b32.xlu0 %v5839_v45, %s9654_s20  ;;  %v5840_v37 = vcombine.low %v1428_v41, %v1428_v41 }
 0x191   : > { %1363 = vrot.lane.b32.xlu1 %v5835_v63, %s6707_s23  ;;  %1266 = vrot.lane.b32.xlu0 %v5820_v10, %s6703_s18 }
 0x195   : > { %1460 = vrot.lane.b32.xlu1 %v5840_v37, %s9654_s20  ;;  %1586 = vrot.lane.b32.xlu0 %v5844_v60, %s6708_s3 }
 0x199   : > { %1588 = vrot.lane.b32.xlu1 %v5845_v26, %s6708_s3  ;;  %1491 = vrot.lane.b32.xlu0 %v5820_v10, %s6704_s19 }
 0x19d   : > { %1652 = vperm.xlu0 %6301, %v1649_v42  }
 0x19f   : > { %v978_v45 = vpop.permute.xlu1 %977  ;;  %v976_v6 = vpop.permute.xlu0 %975 }
 0x1a0   : > { %v986_v63 = vrot.slane %v978_v45, 4  ;;  %v985_v41 = vrot.slane %v976_v6, 4 }
 0x1a2   : > { %v991_v50 = vsel %vm990_vm1, %v985_v41, %v986_v63 }
 0x1a3   : > { %v993_v59 = vsel %vm992_vm14, %v976_v6, %v991_v50  ;;  %v7682_v60 = vpop.permute.xlu1 %1260  ;;  %v1259_v57 = vpop.permute.xlu0 %1258 }
 0x1a4   : > { %v5847_v37 = vcombine.high %v9750_v53, %v993_v59  ;;  %v6107_v10 = vcombine.low %v7183_v12, %v993_v59 }
 0x1a6   : > { %1864 = vmatprep.subr.bf16.mxu1 %v5847_v37 }
 0x1a7   : > { %1865 = vmatpush1.bf16.msra.mxu1 %v6107_v10  ;;  %v7684_v26 = vpop.permute.xlu1 %1485  ;;  %v1484_v42 = vpop.permute.xlu0 %1483  ;;  %v9751_v10 = vcombine.low %v7197_v16, %v7204_v18 }
 0x1a8   : > { %v9601_v40 = vrot.slane %v7684_v26, 4  ;;  %v1493_v28 = vrot.slane %v1484_v42, 4 }
 0x1cb   : > { %v7686_v38 = vpop.permute.xlu1 %1262  ;;  %v7688_v23 = vpop.permute.xlu0 %979 }
 0x1cc   : > { %v9570_v6 = vrot.slane %v7688_v23, 4 }
 0x1ce   : > { %v994_v15 = vsel %vm990_vm1, %v986_v63, %v9570_v6  ;;  %v9597_v63 = vrot.slane %v7682_v60, 4  ;;  %v1268_v6 = vrot.slane %v1259_v57, 4 }
 0x1cf   : > { %v7694_v41 = vpop.permute.xlu1 %1131  ;;  %v1130_v12 = vpop.permute.xlu0 %1129  ;;  %v7697_v50 = vsel %vm992_vm14, %v978_v45, %v994_v15 }
 0x1d0   : > { %v9587_v59 = vrot.slane %v7694_v41, 4  ;;  %v1139_v53 = vrot.slane %v1130_v12, 4  ;;  %v7706_v8 = vcombine.high %v9751_v10, %v7697_v50  ;;  %v1273_v18 = vsel %vm990_vm1, %v1268_v6, %v9597_v63 }
 0x1d2   : > { %v1144_v15 = vsel %vm990_vm1, %v1139_v53, %v9587_v59 }
 0x1d3   : > { %v7709_v22 = vpop.permute.xlu1 %1228  ;;  %v1227_v45 = vpop.permute.xlu0 %1226  ;;  %v1146_v3 = vsel %vm1145_vm0, %v1130_v12, %v1144_v15  ;;  %v1498_v12 = vsel %vm990_vm1, %v1493_v28, %v9601_v40 }
 0x1d4   : > { %v1237_v58 = vrot.slane %v7709_v22, 4  ;;  %v1236_v37 = vrot.slane %v1227_v45, 4 }
 0x1d6   : > { %v1241_v10 = vsel %vm990_vm1, %v1236_v37, %v1237_v58  ;;  %v1275_v37 = vsel %vm9657_vm12, %v1259_v57, %v1273_v18 }
 0x1d7   : > { %v1243_v21 = vsel %vm9656_vm13, %v1227_v45, %v1241_v10  ;;  %v7722_v53 = vpop.permute.xlu1 %1357  ;;  %v1356_v59 = vpop.permute.xlu0 %1355 }
 0x1d8   : > { %v1366_v7 = vrot.slane %v7722_v53, 4  ;;  %v1365_v54 = vrot.slane %v1356_v59, 4  ;;  %v5855_v46 = vcombine.high %v1146_v3, %v1243_v21  ;;  %v5854_v13 = vcombine.low %v1146_v3, %v1243_v21 }
 0x1da   : > { %v1370_v6 = vsel %vm990_vm1, %v1365_v54, %v1366_v7  ;;  %1866 = vmatprep.subr.bf16.mxu1 %v5855_v46  ;;  %v1500_v54 = vsel %vm9615_vm7, %v1484_v42, %v1498_v12 }
 0x1db   : > { %v1372_v45 = vsel %vm1371_vm15, %v1356_v59, %v1370_v6  ;;  %v7731_v15 = vpop.permute.xlu1 %1454  ;;  %1867 = vmatpush1.bf16.msra.mxu1 %v5854_v13  ;;  %v1453_v10 = vpop.permute.xlu0 %1452 }
 0x1dc   : > { %v1463_v63 = vrot.slane %v7731_v15, 4  ;;  %v1462_v9 = vrot.slane %v1453_v10, 4  ;;  %v5863_v21 = vcombine.high %v1275_v37, %v1372_v45  ;;  %v5862_v3 = vcombine.low %v1275_v37, %v1372_v45 }
 0x1de   : > { %v1467_v46 = vsel %vm990_vm1, %v1462_v9, %v1463_v63  ;;  %1868 = vmatprep.subr.bf16.mxu1 %v5863_v21 }
 0x1df   : > { %v1468_v57 = vsel %vm9635_vm5, %v1453_v10, %v1467_v46  ;;  %v7737_v18 = vpop.permute.xlu1 %1582  ;;  %1869 = vmatpush1.bf16.msra.mxu1 %v5862_v3  ;;  %v1581_v28 = vpop.permute.xlu0 %1580  ;;  %v1270_v46 = vrot.slane %v7686_v38, 4 }
 0x1e0   : > { %v9603_v13 = vrot.slane %v7737_v18, 4  ;;  %v1590_v59 = vrot.slane %v1581_v28, 4  ;;  %v5871_v6 = vcombine.high %v1468_v57, %v1500_v54  ;;  %v5870_v40 = vcombine.low %v1468_v57, %v1500_v54 }
 0x1e1   : > { %v9752_v57 = vrot.slane %v7694_v41, 4 }
 0x1e2   : > { %v1595_v37 = vsel %vm990_vm1, %v1590_v59, %v9603_v13  ;;  %1870 = vmatprep.subr.bf16.mxu1 %v5871_v6 }
 0x1e3   : > { %v1597_v9 = vsel %vm9612_vm4, %v1581_v28, %v1595_v37  ;;  %v1134_v42 = vpop.permute.xlu1 %1133  ;;  %1871 = vmatpush1.bf16.msra.mxu1 %v5870_v40  ;;  %v1231_v12 = vpop.permute.xlu0 %1230  ;;  %v7755_v37 = vld [vmem:[#allocation5] sm:$0xf] }
 0x1e4   : > { %v5879_v45 = vcombine.high %v1597_v9, %v1597_v9  ;;  %v1141_v10 = vrot.slane %v1134_v42, 4  ;;  %v1238_v21 = vrot.slane %v1231_v12, 4  ;;  %v5878_v3 = vcombine.low %v1597_v9, %v1597_v9 }
 0x1e6   : > { %5886 = vmatprep.subr.msk.bf16.mxu1 %vm990_vm1, %v5879_v45  ;;  %v1841_v54 = vsel %vm990_vm1, %v5878_v3, 0  ;;  %v1147_v59 = vsel %vm990_vm1, %v9752_v57, %v1141_v10  ;;  %v1244_v6 = vsel %vm990_vm1, %v1237_v58, %v1238_v21 }
 0x1e7   : > { %v7751_v28 = vpop.permute.xlu1 %981  ;;  %1873 = vmatpush1.bf16.msra.mxu1 %v1841_v54  ;;  %v7753_v40 = vpop.permute.xlu0 %1359  ;;  %v1148_v9 = vsel %vm1145_vm0, %v7694_v41, %v1147_v59  ;;  %v1245_v45 = vsel %vm9656_vm13, %v7709_v22, %v1244_v6  ;;  %v9753_v54 = vrot.slane %v7688_v23, 4  ;;  %v9754_v41 = vrot.slane %v7682_v60, 4 }
 0x1e8   : > { %v988_v3 = vrot.slane %v7751_v28, 4  ;;  %v9610_v57 = vrot.slane %v7753_v40, 4  ;;  %1905 = vmatprep.subr.bf16.mxu1 %v7706_v8  ;;  %v5857_v58 = vcombine.high %v1148_v9, %v1245_v45  ;;  %v9755_v8 = vcombine.low %v7197_v16, %v7697_v50 }
 0x1e9   : > { %v1276_v22 = vsel %vm990_vm1, %v9754_v41, %v1270_v46 }
 0x1ea   : > { %5887 = vmatmul.mubr.msk.bf16.vlgmr.msra.gmra.mrb[0].mxu1 %vm9611_vm11, %v7755_v37  ;;  %v996_v13 = vsel %vm990_vm1, %v9753_v54, %v988_v3  ;;  %v1373_v59 = vsel %vm990_vm1, %v1366_v7, %v9610_v57  ;;  %v9757_v57 = vcombine.low %v7292_v61, %v7297_v62 }
 0x1eb   : > { %v7777_v6 = vpop.permute.xlu1 %1487  ;;  %1906 = vmatpush1.bf16.msra.mxu1 %v9755_v8  ;;  %v7782_v11 = vpop.permute.xlu0 %1456  ;;  %v997_v54 = vsel %vm992_vm14, %v7688_v23, %v996_v13  ;;  %v1374_v0 = vsel %vm1371_vm15, %v7722_v53, %v1373_v59  ;;  %1937 = vmatprep.mubr.bf16.mxu1 %v9756_v1  ;;  %v5856_v8 = vcombine.low %v1148_v9, %v1245_v45 }
 0x1ec   : > { %v1495_v41 = vrot.slane %v7777_v6, 4  ;;  %v1464_v7 = vrot.slane %v7782_v11, 4  ;;  %1907 = vmatprep.subr.bf16.mxu1 %v5857_v58  ;;  %v5851_v16 = vcombine.high %v9757_v57, %v997_v54  ;;  %v6109_v50 = vcombine.low %v7292_v61, %v997_v54 }
 0x1ed   : > { %v1277_v23 = vsel %vm9657_vm12, %v7682_v60, %v1276_v22  ;;  %v9758_v58 = vrot.slane %v7684_v26, 4 }
 0x1ee   : > { %1946 = vmatprep.subr.bf16.mxu0 %v5851_v16  ;;  %v5865_v13 = vcombine.high %v1277_v23, %v1374_v0  ;;  %v1469_v53 = vsel %vm990_vm1, %v1463_v63, %v1464_v7  ;;  %v5864_v57 = vcombine.low %v1277_v23, %v1374_v0 }
 0x1ef   : > { %v1501_v59 = vsel %vm990_vm1, %v9758_v58, %v1495_v41  ;;  %v7805_v62 = vpop.permute.xlu1 %1232  ;;  %1908 = vmatpush1.bf16.msra.mxu1 %v5856_v8  ;;  %1947 = vmatpush1.bf16.msra.mxu0 %v6109_v50  ;;  %v1136_v61 = vpop.permute.xlu0 %1135  ;;  %v1470_v60 = vsel %vm9635_vm5, %v7731_v15, %v1469_v53 }
 0x1f0   : > { %v1502_v9 = vsel %vm9615_vm7, %v7684_v26, %v1501_v59  ;;  %v1239_v45 = vrot.slane %v7805_v62, 4  ;;  %v1142_v63 = vrot.slane %v1136_v61, 4  ;;  %1909 = vmatprep.subr.bf16.mxu1 %v5865_v13 }
 0x1f1   : > { %v5873_v22 = vcombine.high %v1470_v60, %v1502_v9  ;;  %v5872_v0 = vcombine.low %v1470_v60, %v1502_v9 }
 0x1f2   : > { %v1149_v54 = vsel %vm990_vm1, %v1141_v10, %v1142_v63  ;;  %v1246_v16 = vsel %vm990_vm1, %v1238_v21, %v1239_v45  ;;  %v9759_v10 = vrot.slane %v7737_v18, 4 }
 0x1f3   : > { %v984_v58 = vpop.permute.xlu1 %983  ;;  %1910 = vmatpush1.bf16.msra.mxu1 %v5864_v57  ;;  %v7814_v50 = vpop.permute.xlu0 %1584  ;;  %v1150_v8 = vsel %vm1145_vm0, %v1134_v42, %v1149_v54  ;;  %v1247_v15 = vsel %vm9656_vm13, %v1231_v12, %v1246_v16 }
 0x1f4   : > { %v989_v53 = vrot.slane %v984_v58, 4  ;;  %v1592_v26 = vrot.slane %v7814_v50, 4  ;;  %1911 = vmatprep.subr.bf16.mxu1 %v5873_v22  ;;  %v5859_v59 = vcombine.high %v1150_v8, %v1247_v15  ;;  %v5858_v13 = vcombine.low %v1150_v8, %v1247_v15 }
 0x1f5   : > { %v9760_v58 = vcombine.low %v7478_v34, %v7483_v30 }
 0x1f6   : > { %v998_v23 = vsel %vm990_vm1, %v988_v3, %v989_v53  ;;  %v1598_v21 = vsel %vm990_vm1, %v9759_v10, %v1592_v26  ;;  %1948 = vmatprep.subr.bf16.mxu0 %v5859_v59 }
 0x1f7   : > { %v1362_v57 = vpop.permute.xlu1 %1361  ;;  %1912 = vmatpush1.bf16.msra.mxu1 %v5872_v0  ;;  %1949 = vmatpush1.bf16.msra.mxu0 %v5858_v13  ;;  %v1265_v42 = vpop.permute.xlu0 %1264  ;;  %v1599_v12 = vsel %vm9612_vm4, %v7737_v18, %v1598_v21  ;;  %v999_v22 = vsel %vm992_vm14, %v7751_v28, %v998_v23  ;;  %v9761_v18 = vrot.slane %v7753_v40, 4 }
 0x1f8   : > { %v1368_v60 = vrot.slane %v1362_v57, 4  ;;  %v1271_v9 = vrot.slane %v1265_v42, 4  ;;  %v5881_v3 = vcombine.high %v1599_v12, %v1599_v12  ;;  %v5880_v54 = vcombine.low %v1599_v12, %v1599_v12 }
 0x1f9   : > { %v5853_v8 = vcombine.high %v9760_v58, %v999_v22 }
 0x1fa   : > { %5888 = vmatprep.subr.msk.bf16.mxu1 %vm990_vm1, %v5881_v3  ;;  %v1847_v16 = vsel %vm990_vm1, %v5880_v54, 0  ;;  %v1278_v15 = vsel %vm990_vm1, %v1270_v46, %v1271_v9  ;;  %v1375_v28 = vsel %vm990_vm1, %v9761_v18, %v1368_v60  ;;  %v6110_v46 = vcombine.low %v7478_v34, %v999_v22 }
 0x1fb   : > { %v1235_v53 = vpop.permute.xlu1 %1234  ;;  %1914 = vmatpush1.bf16.msra.mxu1 %v1847_v16  ;;  %v1138_v59 = vpop.permute.xlu0 %1137  ;;  %v1279_v13 = vsel %vm9657_vm12, %v7686_v38, %v1278_v15  ;;  %v1376_v0 = vsel %vm1371_vm15, %v7753_v40, %v1375_v28 }
 0x1fc   : > { %v1240_v23 = vrot.slane %v1235_v53, 4  ;;  %v1143_v30 = vrot.slane %v1138_v59, 4  ;;  %1987 = vmatprep.subr.bf16.mxu1 %v5853_v8  ;;  %v5867_v10 = vcombine.high %v1279_v13, %v1376_v0  ;;  %v5866_v21 = vcombine.low %v1279_v13, %v1376_v0 }
 0x1fe   : > { %v1248_v12 = vsel %vm990_vm1, %v1239_v45, %v1240_v23  ;;  %v1151_v3 = vsel %vm990_vm1, %v1142_v63, %v1143_v30  ;;  %5889 = vmatmul.mubr.msk.bf16.vlgmr.msra.gmra.mrb[4].mxu1 %vm9611_vm11, %v7755_v37  ;;  %1950 = vmatprep.subr.bf16.mxu0 %v5867_v10 }
 0x1ff   : > { %v1490_v54 = vpop.permute.xlu1 %1489  ;;  %1951 = vmatpush1.bf16.msra.mxu0 %v5866_v21  ;;  %1988 = vmatpush1.bf16.msra.mxu1 %v6110_v46  ;;  %v1459_v38 = vpop.permute.xlu0 %1458  ;;  %v1152_v40 = vsel %vm1145_vm0, %v1136_v61, %v1151_v3  ;;  %v1249_v16 = vsel %vm9656_vm13, %v7805_v62, %v1248_v12 }
 0x200   : > { %v1496_v58 = vrot.slane %v1490_v54, 4  ;;  %v1465_v8 = vrot.slane %v1459_v38, 4  ;;  %v5860_v34 = vcombine.low %v1152_v40, %v1249_v16  ;;  %v5861_v22 = vcombine.high %v1152_v40, %v1249_v16  ;;  %2019 = vmatprep.mubr.bf16.mxu1 %v9756_v1 }
 0x202   : > { %1989 = vmatprep.subr.bf16.mxu1 %v5861_v22  ;;  %v1471_v45 = vsel %vm990_vm1, %v1464_v7, %v1465_v8  ;;  %v1503_v63 = vsel %vm990_vm1, %v1495_v41, %v1496_v58 }
 0x203   : > { %v1364_v15 = vpop.permute.xlu1 %1363  ;;  %1990 = vmatpush1.bf16.msra.mxu1 %v5860_v34  ;;  %v1267_v61 = vpop.permute.xlu0 %1266  ;;  %v1472_v62 = vsel %vm9635_vm5, %v7782_v11, %v1471_v45  ;;  %v1504_v18 = vsel %vm9615_vm7, %v7777_v6, %v1503_v63 }
 0x204   : > { %v1369_v28 = vrot.slane %v1364_v15, 4  ;;  %v1272_v53 = vrot.slane %v1267_v61, 4  ;;  %v5875_v59 = vcombine.high %v1472_v62, %v1504_v18  ;;  %v5874_v13 = vcombine.low %v1472_v62, %v1504_v18 }
 0x206   : > { %v1377_v0 = vsel %vm990_vm1, %v1368_v60, %v1369_v28  ;;  %v1280_v7 = vsel %vm990_vm1, %v1271_v9, %v1272_v53  ;;  %1952 = vmatprep.subr.bf16.mxu0 %v5875_v59 }
 0x207   : > { %v1461_v23 = vpop.permute.xlu1 %1460  ;;  %1953 = vmatpush1.bf16.msra.mxu0 %v5874_v13  ;;  %v1587_v41 = vpop.permute.xlu0 %1586  ;;  %v1281_v30 = vsel %vm9657_vm12, %v1265_v42, %v1280_v7  ;;  %v1378_v10 = vsel %vm1371_vm15, %v1362_v57, %v1377_v0 }
 0x208   : > { %v1466_v11 = vrot.slane %v1461_v23, 4  ;;  %v1593_v21 = vrot.slane %v1587_v41, 4  ;;  %v5868_v46 = vcombine.low %v1281_v30, %v1378_v10  ;;  %v5869_v6 = vcombine.high %v1281_v30, %v1378_v10 }
 0x20a   : > { %v1600_v12 = vsel %vm990_vm1, %v1592_v26, %v1593_v21  ;;  %1991 = vmatprep.subr.bf16.mxu1 %v5869_v6  ;;  %v1473_v60 = vsel %vm990_vm1, %v1465_v8, %v1466_v11 }
 0x20b   : > { %v1589_v9 = vpop.permute.xlu1 %1588  ;;  %1992 = vmatpush1.bf16.msra.mxu1 %v5868_v46  ;;  %v1492_v3 = vpop.permute.xlu0 %1491  ;;  %v1601_v40 = vsel %vm9612_vm4, %v7814_v50, %v1600_v12  ;;  %v1474_v8 = vsel %vm9635_vm5, %v1459_v38, %v1473_v60 }
 0x20c   : > { %v1594_v42 = vrot.slane %v1589_v9, 4  ;;  %v1497_v16 = vrot.slane %v1492_v3, 4  ;;  %v5883_v57 = vcombine.high %v1601_v40, %v1601_v40  ;;  %v5882_v34 = vcombine.low %v1601_v40, %v1601_v40 }
 0x20e   : > { %v1602_v22 = vsel %vm990_vm1, %v1593_v21, %v1594_v42  ;;  %v1505_v45 = vsel %vm990_vm1, %v1496_v58, %v1497_v16  ;;  %5890 = vmatprep.subr.msk.bf16.mxu0 %vm990_vm1, %v5883_v57  ;;  %v1853_v26 = vsel %vm990_vm1, %v5882_v34, 0 }
 0x20f   : > { %1955 = vmatpush1.bf16.msra.mxu0 %v1853_v26  ;;  %v1506_v63 = vsel %vm9615_vm7, %v1490_v54, %v1505_v45  ;;  %v1603_v15 = vsel %vm9612_vm4, %v1587_v41, %v1602_v22  ;;  %vm9771_vm4 = vcmp.ne.s16.totalorder %v7228_v39, 0  ;;  %vm9775_vm7 = vcmp.ne.s16.totalorder %v7208_v20, 0 }
 0x210   : > { %v5876_v50 = vcombine.low %v1474_v8, %v1506_v63  ;;  %v5877_v61 = vcombine.high %v1474_v8, %v1506_v63  ;;  %v5885_v62 = vcombine.high %v1603_v15, %v1603_v15  ;;  %v5884_v18 = vcombine.low %v1603_v15, %v1603_v15 }
 0x212   : > { %5891 = vmatmul.mubr.msk.bf16.vlgmr.msra.gmra.mrb[0].mxu0 %vm9611_vm11, %v7755_v37  ;;  %1993 = vmatprep.subr.bf16.mxu1 %v5877_v61  ;;  %v1859_v58 = vsel %vm990_vm1, %v5884_v18, 0 }
 0x213   : > { %1994 = vmatpush1.bf16.msra.mxu1 %v5876_v50  ;;  %2838 = vmatprep.mubr.bf16.mxu0 %v9756_v1 }
 0x214   : > { %5892 = vmatprep.subr.msk.bf16.mxu1 %vm990_vm1, %v5885_v62 }
 0x217   : > { %1996 = vmatpush1.bf16.msra.mxu1 %v1859_v58 }
 0x21a   : > { %5893 = vmatmul.mubr.msk.bf16.vlgmr.msra.gmra.mrb[8].mxu1 %vm9611_vm11, %v7755_v37  ;;  %vm9770_vm11 = vcmp.ne.s16.totalorder %v7068_v32, 0 }
 0x21b   : > { %2879 = vmatprep.mubr.bf16.mxu1 %v9756_v1 }
 0x21c   : > { %v1653_v54 = vpop.permute.xlu0 %1652 }
 0x2bd   : > { %v1898_v38 = vpop.f32.mrb[0].mxu1 }
 0x2be   : > { %v1900_v28 = vpop.f32.mrb[1].mxu1  ;;  %v1899_v53 = vadd.f32 %v1898_v38, %v1653_v54 }
 0x2bf   : > { %v1901_v59 = vadd.f32 %v1900_v28, %v1653_v54  ;;  %v1902_v13 = vpop.f32.mrb[2].mxu1 }
 0x2c0   : > { %v2028_v0 = vmul.f32 0.01, %v1899_v53  ;;  %v1903_v7 = vpop.f32.mrb[3].mxu1 }
 0x2c1   : > { %v2029_v23 = vmul.f32 0.01, %v1901_v59 }
 0x2c2   : > { %v7888_v41 = vmax.f32 %v1899_v53, %v2028_v0 }
 0x2c3   : > { %v7890_v30 = vmax.f32 %v1901_v59, %v2029_v23 }
 0x2c4   : > { %9762 = vst [vmem:[#allocation68_spill] sm:$0xff] %v7888_v41  ;;  %v2044_v10 = vpack.c.bf16 %v7888_v41, %v7888_v41  ;;  %v9811_v41 = vld [vmem:[#allocation57_spill] sm:$0xff] }
 0x2c5   : > { %9763 = vst [vmem:[#allocation69_spill] sm:$0xff] %v7890_v30  ;;  %v2045_v37 = vpack.c.bf16 %v7890_v30, %v7890_v30 }
 0x2c6   : > { %2060 = vrot.lane.b32.xlu1 %v2044_v10, %s6696_s0 }
 0x2ca   : > { %2062 = vrot.lane.b32.xlu1 %v2045_v37, %s6696_s0 }
 0x2d1   : > { %v1939_v11 = vpop.f32.mrb[4].mxu1 }
 0x2d2   : > { %v1940_v21 = vadd.f32 %v1939_v11, %v1653_v54  ;;  %v1941_v46 = vpop.f32.mrb[5].mxu1 }
 0x2d3   : > { %v1942_v6 = vadd.f32 %v1941_v46, %v1653_v54  ;;  %v1943_v12 = vpop.f32.mrb[6].mxu1 }
 0x2d4   : > { %v2030_v60 = vmul.f32 0.01, %v1940_v21  ;;  %v1944_v9 = vpop.f32.mrb[7].mxu1 }
 0x2d5   : > { %v2031_v3 = vmul.f32 0.01, %v1942_v6 }
 0x2d6   : > { %v7898_v40 = vmax.f32 %v1940_v21, %v2030_v60 }
 0x2d7   : > { %v7900_v42 = vmax.f32 %v1942_v6, %v2031_v3 }
 0x2d8   : > { %9764 = vst [vmem:[#allocation70_spill] sm:$0xff] %v7898_v40  ;;  %v2046_v16 = vpack.c.bf16 %v7898_v40, %v7898_v40 }
 0x2d9   : > { %9765 = vst [vmem:[#allocation71_spill] sm:$0xff] %v7900_v42  ;;  %v2047_v57 = vpack.c.bf16 %v7900_v42, %v7900_v42 }
 0x2da   : > { %2064 = vrot.lane.b32.xlu0 %v2046_v16, %s6696_s0 }
 0x2db   : > { %2066 = vrot.lane.b32.xlu1 %v2047_v57, %s6696_s0 }
 0x2e5   : > { %v1980_v34 = vpop.f32.mrb[0].mxu0 }
 0x2e6   : > { %v1981_v22 = vadd.f32 %v1980_v34, %v1653_v54  ;;  %v1982_v45 = vpop.f32.mrb[1].mxu0  ;;  %v9799_v34 = vld [vmem:[#allocation47_spill] sm:$0xff] }
 0x2e7   : > { %v1983_v26 = vadd.f32 %v1982_v45, %v1653_v54  ;;  %v1984_v8 = vpop.f32.mrb[2].mxu0 }
 0x2e8   : > { %v2032_v63 = vmul.f32 0.01, %v1981_v22  ;;  %v1985_v15 = vpop.f32.mrb[3].mxu0 }
 0x2e9   : > { %v2033_v50 = vmul.f32 0.01, %v1983_v26 }
 0x2ea   : > { %v7908_v61 = vmax.f32 %v1981_v22, %v2032_v63 }
 0x2eb   : > { %v7910_v62 = vmax.f32 %v1983_v26, %v2033_v50 }
 0x2ec   : > { %9766 = vst [vmem:[#allocation72_spill] sm:$0xff] %v7908_v61  ;;  %v2048_v18 = vpack.c.bf16 %v7908_v61, %v7908_v61  ;;  %v9805_v61 = vld [vmem:[#allocation42_spill] sm:$0xff] }
 0x2ed   : > { %9767 = vst [vmem:[#allocation73_spill] sm:$0xff] %v7910_v62  ;;  %v2021_v58 = vpop.f32.mrb[8].mxu1  ;;  %v2049_v38 = vpack.c.bf16 %v7910_v62, %v7910_v62 }
 0x2ee   : > { %v2022_v28 = vadd.f32 %v2021_v58, %v1653_v54  ;;  %v2023_v53 = vpop.f32.mrb[9].mxu1  ;;  %2068 = vrot.lane.b32.xlu0 %v2048_v18, %s6696_s0 }
 0x2ef   : > { %v2024_v59 = vadd.f32 %v2023_v53, %v1653_v54  ;;  %2070 = vrot.lane.b32.xlu1 %v2049_v38, %s6696_s0  ;;  %v2025_v13 = vpop.f32.mrb[10].mxu1 }
 0x2f0   : > { %v2034_v0 = vmul.f32 0.01, %v2022_v28  ;;  %v2026_v7 = vpop.f32.mrb[11].mxu1 }
 0x2f1   : > { %v2035_v23 = vmul.f32 0.01, %v2024_v59 }
 0x2f2   : > { %v7918_v10 = vmax.f32 %v2022_v28, %v2034_v0 }
 0x2f3   : > { %v7920_v37 = vmax.f32 %v2024_v59, %v2035_v23 }
 0x2f4   : > { %9768 = vst [vmem:[#allocation74_spill] sm:$0xff] %v7918_v10  ;;  %v2050_v11 = vpack.c.bf16 %v7918_v10, %v7918_v10  ;;  %v9801_v10 = vld [vmem:[#allocation48_spill] sm:$0xff] }
 0x2f5   : > { %9769 = vst [vmem:[#allocation75_spill] sm:$0xff] %v7920_v37  ;;  %v2051_v21 = vpack.c.bf16 %v7920_v37, %v7920_v37 }
 0x2f6   : > { %2072 = vrot.lane.b32.xlu0 %v2050_v11, %s6696_s0 }
 0x2f7   : > { %2074 = vrot.lane.b32.xlu1 %v2051_v21, %s6696_s0 }
 0x338   : > { %v2061_v54 = vpop.permute.xlu1 %2060 }
 0x339   : > { %v2091_v6 = vsel %vm836_vm8, 0, %v2061_v54 }
 0x33a   : > { %v7932_v9 = vsel %vm9613_vm9, %v2091_v6, 0  ;;  %v2399_v57 = vsel %vm9771_vm4, %v2091_v6, 0  ;;  %vm9772_vm9 = vcmp.ne.s16.totalorder %v7369_v17, 0  ;;  %v2179_v63 = vsel %vm9775_vm7, %v2091_v6, 0 }
 0x33b   : > { %vm9776_vm4 = vcmp.ne.s16.totalorder %v7261_v49, 0  ;;  %vm9779_vm7 = vcmp.ne.s16.totalorder %v7222_v31, 0 }
 0x33c   : > { %v2063_v46 = vpop.permute.xlu1 %2062  ;;  %v2336_v0 = vsel %vm9779_vm7, %v2091_v6, 0  ;;  %vm9784_vm7 = vcmp.ne.s16.totalorder %v7122_v52, 0 }
 0x33d   : > { %v2076_v12 = vsel %vm836_vm8, %v2061_v54, %v2063_v46 }
 0x33e   : > { %v5898_v60 = vcombine.low %v2091_v6, %v2076_v12  ;;  %v2400_v3 = vsel %vm9614_vm2, %v2076_v12, 0  ;;  %v7940_v16 = vsel %vm9770_vm11, %v2076_v12, 0  ;;  %v2494_v45 = vsel %vm9772_vm9, %v2076_v12, 0 }
 0x33f   : > { %v5918_v22 = vcombine.low %v2399_v57, %v2400_v3  ;;  %vm9773_vm2 = vcmp.ne.s16.totalorder %v7240_v44, 0  ;;  %vm9774_vm11 = vcmp.ne.s16.totalorder %v7236_v43, 0  ;;  %v2243_v18 = vsel %vm9776_vm4, %v2076_v12, 0 }
 0x340   : > { %2462 = vrot.lane.b32.xlu1 %v5898_v60, %s6704_s19  ;;  %2148 = vrot.lane.b32.xlu0 %v5898_v60, %s6702_s15  ;;  %v2180_v26 = vsel %vm9773_vm2, %v2076_v12, 0  ;;  %v2493_v8 = vsel %vm9774_vm11, %v2091_v6, 0  ;;  %vm9777_vm9 = vcmp.ne.s16.totalorder %v7218_v27, 0  ;;  %vm9778_vm2 = vcmp.ne.s16.totalorder %v7319_v14, 0 }
 0x341   : > { %v5923_v15 = vcombine.low %v2493_v8, %v2494_v45  ;;  %v5903_v50 = vcombine.low %v2179_v63, %v2180_v26  ;;  %v2242_v58 = vsel %vm9777_vm9, %v2091_v6, 0  ;;  %v2337_v28 = vsel %vm9778_vm2, %v2076_v12, 0 }
 0x342   : > { %v5908_v38 = vcombine.low %v2242_v58, %v2243_v18  ;;  %v5913_v23 = vcombine.low %v2336_v0, %v2337_v28  ;;  %vm9780_vm11 = vcmp.ne.s16.totalorder %v7082_v36, 0  ;;  %vm9781_vm4 = vcmp.ne.s16.totalorder %v7079_v35, 0 }
 0x343   : > { %vm9782_vm9 = vcmp.ne.s16.totalorder %v7248_v47, 0  ;;  %vm9783_vm2 = vcmp.ne.s16.totalorder %v7252_v48, 0 }
 0x344   : > { %2431 = vrot.lane.b32.xlu1 %v5918_v22, %s9654_s20  ;;  %2305 = vrot.lane.b32.xlu0 %v5898_v60, %s6703_s18 }
 0x348   : > { %2525 = vrot.lane.b32.xlu1 %v5923_v15, %s6708_s3  ;;  %2211 = vrot.lane.b32.xlu0 %v5903_v50, %s6705_s22 }
 0x34c   : > { %v2065_v53 = vpop.permute.xlu0 %2064  ;;  %2274 = vrot.lane.b32.xlu0 %v5908_v38, %s6706_s27 }
 0x34d   : > { %v2077_v59 = vsel %vm836_vm8, %v2063_v46, %v2065_v53  ;;  %v2067_v13 = vpop.permute.xlu1 %2066  ;;  %v9793_v46 = vld [vmem:[#allocation46_spill] sm:$0xff] }
 0x34e   : > { %v2078_v7 = vsel %vm836_vm8, %v2065_v53, %v2067_v13  ;;  %v7973_v21 = vsel %vm9780_vm11, %v2077_v59, 0  ;;  %v2181_v22 = vsel %vm9782_vm9, %v2077_v59, 0  ;;  %vm9785_vm11 = vcmp.ne.s16.totalorder %v7119_v51, 0 }
 0x34f   : > { %v5899_v11 = vcombine.low %v2077_v59, %v2078_v7  ;;  %v7977_v54 = vsel %vm9781_vm4, %v2078_v7, 0  ;;  %v2182_v45 = vsel %vm9783_vm2, %v2078_v7, 0  ;;  %vm9786_vm4 = vcmp.ne.s16.totalorder %v7269_v55, 0 }
 0x350   : > { %2368 = vrot.lane.b32.xlu0 %v5913_v23, %s6707_s23  ;;  %v5904_v63 = vcombine.low %v2181_v22, %v2182_v45  ;;  %v2244_v50 = vsel %vm9786_vm4, %v2077_v59, 0  ;;  %vm9787_vm9 = vcmp.ne.s16.totalorder %v7273_v56, 0  ;;  %vm9788_vm2 = vcmp.ne.s16.totalorder %v7322_v19, 0  ;;  %v9791_v23 = vld [vmem:[#allocation39_spill] sm:$0xff] }
 0x351   : > { %2150 = vrot.lane.b32.xlu1 %v5899_v11, %s6702_s15  ;;  %v2245_v18 = vsel %vm9787_vm9, %v2078_v7, 0  ;;  %v2338_v53 = vsel %vm9788_vm2, %v2077_v59, 0  ;;  %vm9792_vm4 = vcmp.ne.s16.totalorder %v9791_v23, 0  ;;  %vm9794_vm9 = vcmp.ne.s16.totalorder %v9793_v46, 0 }
 0x352   : > { %v5909_v28 = vcombine.low %v2244_v50, %v2245_v18 }
 0x355   : > { %2307 = vrot.lane.b32.xlu1 %v5899_v11, %s6703_s18 }
 0x360   : > { %v2069_v6 = vpop.permute.xlu0 %2068 }
 0x361   : > { %v2079_v12 = vsel %vm836_vm8, %v2067_v13, %v2069_v6  ;;  %v2071_v60 = vpop.permute.xlu1 %2070 }
 0x362   : > { %v2080_v3 = vsel %vm836_vm8, %v2069_v6, %v2071_v60  ;;  %v7992_v26 = vsel %vm9784_vm7, %v2079_v12, 0  ;;  %vm9789_vm7 = vcmp.ne.s16.totalorder %v7326_v25, 0  ;;  %v2402_v6 = vsel %vm9792_vm4, %v2078_v7, 0 }
 0x363   : > { %v5900_v57 = vcombine.low %v2079_v12, %v2080_v3  ;;  %v7996_v8 = vsel %vm9785_vm11, %v2080_v3, 0  ;;  %v2339_v13 = vsel %vm9789_vm7, %v2078_v7, 0  ;;  %vm9790_vm11 = vcmp.ne.s16.totalorder %v7356_v5, 0 }
 0x364   : > { %v2401_v0 = vsel %vm9790_vm11, %v2077_v59, 0  ;;  %v5914_v45 = vcombine.low %v2338_v53, %v2339_v13  ;;  %v2183_v50 = vsel %vm1092_vm6, %v2079_v12, 0  ;;  %v2184_v18 = vsel %vm9624_vm3, %v2080_v3, 0 }
 0x365   : > { %2466 = vrot.lane.b32.xlu1 %v5900_v57, %s6704_s19  ;;  %2152 = vrot.lane.b32.xlu0 %v5900_v57, %s6702_s15  ;;  %v2246_v15 = vsel %vm1189_vm10, %v2079_v12, 0  ;;  %vm9800_vm11 = vcmp.ne.s16.totalorder %v9799_v34, 0  ;;  %vm9802_vm4 = vcmp.ne.s16.totalorder %v9801_v10, 0 }
 0x366   : > { %v2340_v37 = vsel %vm9800_vm11, %v2079_v12, 0 }
 0x368   : > { %v2073_v58 = vpop.permute.xlu0 %2072 }
 0x369   : > { %2213 = vrot.lane.b32.xlu1 %v5904_v63, %s6705_s22  ;;  %2464 = vrot.lane.b32.xlu0 %v5899_v11, %s6704_s19  ;;  %v2075_v38 = vpop.permute.xlu1 %2074  ;;  %v2081_v11 = vsel %vm836_vm8, %v2071_v60, %v2073_v58  ;;  %v5919_v63 = vcombine.low %v2401_v0, %v2402_v6  ;;  %v9795_v60 = vld [vmem:[#allocation36_spill] sm:$0xff]  ;;  %v5905_v0 = vcombine.low %v2183_v50, %v2184_v18  ;;  %v9807_v50 = vld [vmem:[#allocation50_spill] sm:$0xff]  ;;  %v9809_v18 = vld [vmem:[#allocation51_spill] sm:$0xff] }
 0x36a   : > { %v2082_v22 = vsel %vm836_vm8, %v2073_v58, %v2075_v38  ;;  %vm9796_vm2 = vcmp.ne.s16.totalorder %v9795_v60, 0  ;;  %v9797_v58 = vld [vmem:[#allocation35_spill] sm:$0xff]  ;;  %vm9810_vm11 = vcmp.ne.s16.totalorder %v9809_v18, 0  ;;  %v9833_v18 = vld [vmem:[#allocation52_spill] sm:$0xff] }
 0x36b   : > { %vm9798_vm7 = vcmp.ne.s16.totalorder %v9797_v58, 0  ;;  %v5901_v30 = vcombine.low %v2081_v11, %v2082_v22 }
 0x36c   : > { %v8034_v53 = vsel %vm9798_vm7, %v2082_v22, 0  ;;  %vm9808_vm7 = vcmp.ne.s16.totalorder %v9807_v50, 0 }
 0x36d   : > { %2276 = vrot.lane.b32.xlu1 %v5909_v28, %s6706_s27  ;;  %2309 = vrot.lane.b32.xlu0 %v5900_v57, %s6703_s18  ;;  %v2247_v28 = vsel %vm9794_vm9, %v2080_v3, 0  ;;  %v8030_v57 = vsel %vm9796_vm2, %v2081_v11, 0  ;;  %vm9806_vm2 = vcmp.ne.s16.totalorder %v9805_v61, 0 }
 0x36e   : > { %v5910_v6 = vcombine.low %v2246_v15, %v2247_v28  ;;  %v2496_v42 = vsel %vm9806_vm2, %v2078_v7, 0  ;;  %v2403_v15 = vsel %vm9808_vm7, %v2079_v12, 0  ;;  %v2404_v28 = vsel %vm9810_vm11, %v2080_v3, 0 }
 0x36f   : > { %v2094_v7 = vsel %vm836_vm8, %v2075_v38, 0  ;;  %v9819_v38 = vld [vmem:[#allocation53_spill] sm:$0xff] }
 0x370   : > { %vm9820_vm11 = vcmp.ne.s16.totalorder %v9819_v38, 0 }
 0x371   : > { %2370 = vrot.lane.b32.xlu1 %v5914_v45, %s6707_s23  ;;  %2433 = vrot.lane.b32.xlu0 %v5919_v63, %s9654_s20  ;;  %v2341_v45 = vsel %vm9802_vm4, %v2080_v3, 0  ;;  %v9803_v63 = vld [vmem:[#allocation41_spill] sm:$0xff]  ;;  %vm9812_vm4 = vcmp.ne.s16.totalorder %v9811_v41, 0  ;;  %v9827_v41 = vld [vmem:[#allocation63_spill] sm:$0xff] }
 0x372   : > { %vm9804_vm9 = vcmp.ne.s16.totalorder %v9803_v63, 0  ;;  %v5915_v40 = vcombine.low %v2340_v37, %v2341_v45  ;;  %v5902_v37 = vcombine.low %v2094_v7, %v2094_v7  ;;  %v9815_v45 = vld [vmem:[#allocation55_spill] sm:$0xff] }
 0x373   : > { %v2495_v62 = vsel %vm9804_vm9, %v2077_v59, 0  ;;  %v5920_v59 = vcombine.low %v2403_v15, %v2404_v28  ;;  %vm9816_vm2 = vcmp.ne.s16.totalorder %v9815_v45, 0  ;;  %v9821_v28 = vld [vmem:[#allocation54_spill] sm:$0xff] }
 0x374   : > { %v5924_v13 = vcombine.low %v2495_v62, %v2496_v42 }
 0x375   : > { %2215 = vrot.lane.b32.xlu1 %v5905_v0, %s6705_s22  ;;  %2278 = vrot.lane.b32.xlu0 %v5910_v6, %s6706_s27  ;;  %v2497_v0 = vsel %vm9812_vm4, %v2079_v12, 0  ;;  %v9813_v6 = vld [vmem:[#allocation58_spill] sm:$0xff]  ;;  %vm9822_vm4 = vcmp.ne.s16.totalorder %v9821_v28, 0  ;;  %v9831_v28 = vld [vmem:[#allocation49_spill] sm:$0xff] }
 0x376   : > { %vm9814_vm9 = vcmp.ne.s16.totalorder %v9813_v6, 0  ;;  %v9823_v6 = vld [vmem:[#allocation60_spill] sm:$0xff] }
 0x377   : > { %v2498_v42 = vsel %vm9814_vm9, %v2080_v3, 0  ;;  %v2185_v3 = vsel %vm9820_vm11, %v2081_v11, 0  ;;  %vm9824_vm9 = vcmp.ne.s16.totalorder %v9823_v6, 0  ;;  %vm9832_vm11 = vcmp.ne.s16.totalorder %v9831_v28, 0 }
 0x378   : > { %v5925_v62 = vcombine.low %v2497_v0, %v2498_v42  ;;  %v2342_v0 = vsel %vm9824_vm9, %v2081_v11, 0  ;;  %v9825_v42 = vld [vmem:[#allocation61_spill] sm:$0xff] }
 0x379   : > { %2372 = vrot.lane.b32.xlu1 %v5915_v40, %s6707_s23  ;;  %2527 = vrot.lane.b32.xlu0 %v5924_v13, %s6708_s3  ;;  %v2248_v40 = vsel %vm9816_vm2, %v2081_v11, 0  ;;  %v9817_v13 = vld [vmem:[#allocation56_spill] sm:$0xff]  ;;  %vm9826_vm3 = vcmp.ne.s16.totalorder %v9825_v42, 0  ;;  %vm9828_vm2 = vcmp.ne.s16.totalorder %v9827_v41, 0  ;;  %v2187_v42 = vsel %vm9832_vm11, %v2094_v7, 0 }
 0x37a   : > { %vm9818_vm7 = vcmp.ne.s16.totalorder %v9817_v13, 0  ;;  %v2343_v45 = vsel %vm9826_vm3, %v2082_v22, 0  ;;  %vm9834_vm3 = vcmp.ne.s16.totalorder %v9833_v18, 0  ;;  %v9841_v18 = vld [vmem:[#allocation62_spill] sm:$0xff] }
 0x37b   : > { %v2249_v15 = vsel %vm9818_vm7, %v2082_v22, 0  ;;  %v5916_v13 = vcombine.low %v2342_v0, %v2343_v45  ;;  %v2250_v50 = vsel %vm9834_vm3, %v2094_v7, 0  ;;  %v5907_v45 = vcombine.low %v2187_v42, %v2187_v42  ;;  %v9837_v0 = vld [vmem:[#allocation67_spill] sm:$0xff] }
 0x37c   : > { %v5911_v12 = vcombine.low %v2248_v40, %v2249_v15  ;;  %v2405_v40 = vsel %vm9828_vm2, %v2081_v11, 0  ;;  %v9829_v15 = vld [vmem:[#allocation64_spill] sm:$0xff]  ;;  %vm9838_vm9 = vcmp.ne.s16.totalorder %v9837_v0, 0  ;;  %vm9848_vm3 = vcmask 515072  }
 0x37d   : > { %2435 = vrot.lane.b32.xlu0 %v5920_v59, %s9654_s20  ;;  %2154 = vrot.lane.b32.xlu1 %v5901_v30, %s6702_s15  ;;  %v2186_v59 = vsel %vm9822_vm4, %v2082_v22, 0  ;;  %vm9830_vm7 = vcmp.ne.s16.totalorder %v9829_v15, 0 }
 0x37e   : > { %v2406_v38 = vsel %vm9830_vm7, %v2082_v22, 0  ;;  %vm9842_vm7 = vcmp.ne.s16.totalorder %v9841_v18, 0 }
 0x37f   : > { %v5921_v6 = vcombine.low %v2405_v40, %v2406_v38  ;;  %v9839_v38 = vld [vmem:[#allocation59_spill] sm:$0xff] }
 0x380   : > { %vm9840_vm2 = vcmp.ne.s16.totalorder %v9839_v38, 0 }
 0x381   : > { %2529 = vrot.lane.b32.xlu0 %v5925_v62, %s6708_s3  ;;  %2156 = vrot.lane.b32.xlu1 %v5902_v37, %s6702_s15  ;;  %v5906_v62 = vcombine.low %v2185_v3, %v2186_v59  ;;  %v9835_v3 = vld [vmem:[#allocation66_spill] sm:$0xff]  ;;  %v2344_v40 = vsel %vm9840_vm2, %v2094_v7, 0  ;;  %vm9853_vm2 = vcmask 588800  }
 0x382   : > { %vm9836_vm4 = vcmp.ne.s16.totalorder %v9835_v3, 0 }
 0x383   : > { %v2499_v59 = vsel %vm9836_vm4, %v2081_v11, 0  ;;  %vm9849_vm4 = vcmask 506880  }
 0x385   : > { %2311 = vrot.lane.b32.xlu0 %v5901_v30, %s6703_s18  ;;  %2280 = vrot.lane.b32.xlu1 %v5911_v12, %s6706_s27  ;;  %v5912_v12 = vcombine.low %v2250_v50, %v2250_v50  ;;  %v9843_v50 = vld [vmem:[#allocation65_spill] sm:$0xff] }
 0x386   : > { %vm9844_vm11 = vcmp.ne.s16.totalorder %v9843_v50, 0 }
 0x389   : > { %2217 = vrot.lane.b32.xlu0 %v5906_v62, %s6705_s22  ;;  %2374 = vrot.lane.b32.xlu1 %v5916_v13, %s6707_s23  ;;  %v2500_v62 = vsel %vm9838_vm9, %v2082_v22, 0  ;;  %v2501_v22 = vsel %vm9844_vm11, %v2094_v7, 0  ;;  %vm9851_vm9 = vmmov %vm9848_vm3 }
 0x38a   : > { %v5926_v13 = vcombine.low %v2499_v59, %v2500_v62  ;;  %v5927_v42 = vcombine.low %v2501_v22, %v2501_v22  ;;  %vm9856_vm11 = vmmov %vm9853_vm2 }
 0x38d   : > { %2437 = vrot.lane.b32.xlu0 %v5921_v6, %s9654_s20  ;;  %2468 = vrot.lane.b32.xlu1 %v5901_v30, %s6704_s19  ;;  %v2407_v6 = vsel %vm9842_vm7, %v2094_v7, 0  ;;  %v5917_v30 = vcombine.low %v2344_v40, %v2344_v40  ;;  %vm9854_vm7 = vmmov %vm9849_vm4 }
 0x38e   : > { %v5922_v11 = vcombine.low %v2407_v6, %v2407_v6 }
 0x391   : > { %2219 = vrot.lane.b32.xlu0 %v5907_v45, %s6705_s22  ;;  %2282 = vrot.lane.b32.xlu1 %v5912_v12, %s6706_s27  ;;  %v2593_v45 = vld [vmem:[%s9845_s4] sm:$0xff] }
 0x395   : > { %2531 = vrot.lane.b32.xlu0 %v5926_v13, %s6708_s3  ;;  %2313 = vrot.lane.b32.xlu1 %v5902_v37, %s6703_s18 }
 0x399   : > { %2376 = vrot.lane.b32.xlu0 %v5917_v30, %s6707_s23  ;;  %2439 = vrot.lane.b32.xlu1 %v5922_v11, %s9654_s20 }
 0x39d   : > { %2470 = vrot.lane.b32.xlu0 %v5902_v37, %s6704_s19  ;;  %2533 = vrot.lane.b32.xlu1 %v5927_v42, %s6708_s3 }
 0x3a1   : > { %2596 = vperm.xlu0 %6301, %v2593_v45   ;;  %v9846_v45 = vcombine.low %v7932_v9, %v7940_v16 }
 0x3b2   : > { %v8110_v12 = vpop.permute.xlu1 %2462  ;;  %v2149_v62 = vpop.permute.xlu0 %2148 }
 0x3b3   : > { %v2158_v6 = vrot.slane %v2149_v62, 4 }
 0x3b6   : > { %v2432_v59 = vpop.permute.xlu1 %2431  ;;  %v2306_v7 = vpop.permute.xlu0 %2305 }
 0x3b7   : > { %v2441_v34 = vrot.slane %v2432_v59, 4 }
 0x3ba   : > { %v8112_v13 = vpop.permute.xlu1 %2525  ;;  %v2212_v37 = vpop.permute.xlu0 %2211 }
 0x3bb   : > { %v2221_v41 = vrot.slane %v2212_v37, 4 }
 0x3be   : > { %v2275_v18 = vpop.permute.xlu0 %2274 }
 0x3c2   : > { %v2369_v38 = vpop.permute.xlu0 %2368 }
 0x3c3   : > { %v2151_v40 = vpop.permute.xlu1 %2150 }
 0x3c4   : > { %v2159_v30 = vrot.slane %v2151_v40, 4 }
 0x3c6   : > { %v2163_v11 = vsel %vm990_vm1, %v2158_v6, %v2159_v30 }
 0x3c7   : > { %v2164_v22 = vsel %vm992_vm14, %v2149_v62, %v2163_v11  ;;  %v8120_v0 = vpop.permute.xlu1 %2307 }
 0x3c8   : > { %v6111_v42 = vcombine.low %v7932_v9, %v2164_v22  ;;  %v5929_v50 = vcombine.high %v9846_v45, %v2164_v22  ;;  %v2316_v28 = vrot.slane %v8120_v0, 4 }
 0x3ca   : > { %2806 = vmatprep.subr.bf16.mxu0 %v5929_v50 }
 0x3cb   : > { %2807 = vmatpush1.bf16.msra.mxu0 %v6111_v42  ;;  %v9847_v42 = vcombine.low %v7973_v21, %v7977_v54  ;;  %v2378_v54 = vrot.slane %v2369_v38, 4 }
 0x3d7   : > { %v8122_v3 = vpop.permute.xlu0 %2152  ;;  %v8124_v15 = vpop.permute.xlu1 %2466 }
 0x3d8   : > { %v9626_v6 = vrot.slane %v8122_v3, 4 }
 0x3da   : > { %v2165_v62 = vsel %vm990_vm1, %v2159_v30, %v9626_v6  ;;  %v2284_v6 = vrot.slane %v2275_v18, 4 }
 0x3db   : > { %v8130_v11 = vpop.permute.xlu0 %2464  ;;  %v2214_v9 = vpop.permute.xlu1 %2213  ;;  %v2166_v16 = vsel %vm992_vm14, %v2151_v40, %v2165_v62  ;;  %v2315_v40 = vrot.slane %v2306_v7, 4  ;;  %v2472_v62 = vrot.slane %v8110_v12, 4 }
 0x3dc   : > { %v2222_v50 = vrot.slane %v2214_v9, 4  ;;  %v6112_v22 = vcombine.low %v7973_v21, %v2166_v16  ;;  %v5931_v45 = vcombine.high %v9847_v42, %v2166_v16  ;;  %v2473_v58 = vrot.slane %v8130_v11, 4 }
 0x3dd   : > { %v2320_v60 = vsel %vm990_vm1, %v2315_v40, %v2316_v28 }
 0x3de   : > { %2847 = vmatprep.subr.bf16.mxu1 %v5931_v45  ;;  %v2226_v10 = vsel %vm990_vm1, %v2221_v41, %v2222_v50  ;;  %v2477_v51 = vsel %vm990_vm1, %v2472_v62, %v2473_v58 }
 0x3df   : > { %v8138_v2 = vpop.permute.xlu0 %2309  ;;  %2848 = vmatpush1.bf16.msra.mxu1 %v6112_v22  ;;  %v2277_v30 = vpop.permute.xlu1 %2276  ;;  %v2227_v45 = vsel %vm1145_vm0, %v2212_v37, %v2226_v10  ;;  %v2478_v62 = vsel %vm9848_vm3, %v8110_v12, %v2477_v51 }
 0x3e0   : > { %v2285_v29 = vrot.slane %v2277_v30, 4  ;;  %v2317_v52 = vrot.slane %v8138_v2, 4 }
 0x3e2   : > { %v2289_v21 = vsel %vm990_vm1, %v2284_v6, %v2285_v29 }
 0x3e3   : > { %v8144_v16 = vpop.permute.xlu0 %2433  ;;  %v2371_v42 = vpop.permute.xlu1 %2370  ;;  %v2290_v22 = vsel %vm9656_vm13, %v2275_v18, %v2289_v21  ;;  %v2321_v18 = vsel %vm9657_vm12, %v2306_v7, %v2320_v60 }
 0x3e4   : > { %v2442_v41 = vrot.slane %v8144_v16, 4  ;;  %v2379_v46 = vrot.slane %v2371_v42, 4  ;;  %v5936_v24 = vcombine.low %v2227_v45, %v2290_v22  ;;  %v5937_v17 = vcombine.high %v2227_v45, %v2290_v22 }
 0x3e5   : > { %v2535_v45 = vrot.slane %v8112_v13, 4  ;;  %v2322_v22 = vsel %vm990_vm1, %v2316_v28, %v2317_v52 }
 0x3e6   : > { %2808 = vmatprep.subr.bf16.mxu0 %v5937_v17  ;;  %v2383_v43 = vsel %vm990_vm1, %v2378_v54, %v2379_v46  ;;  %v2446_v6 = vsel %vm990_vm1, %v2441_v34, %v2442_v41 }
 0x3e7   : > { %v8154_v4 = vpop.permute.xlu0 %2278  ;;  %2809 = vmatpush1.bf16.msra.mxu0 %v5936_v24  ;;  %v8156_v10 = vpop.permute.xlu1 %2215  ;;  %v2384_v37 = vsel %vm1371_vm15, %v2369_v38, %v2383_v43  ;;  %v2447_v40 = vsel %vm9635_vm5, %v2432_v59, %v2446_v6  ;;  %v2474_v38 = vrot.slane %v8124_v15, 4 }
 0x3e8   : > { %v2286_v17 = vrot.slane %v8154_v4, 4  ;;  %v2223_v21 = vrot.slane %v8156_v10, 4  ;;  %v5944_v34 = vcombine.low %v2321_v18, %v2384_v37  ;;  %v5945_v54 = vcombine.high %v2321_v18, %v2384_v37 }
 0x3e9   : > { %v5953_v24 = vcombine.high %v2447_v40, %v2478_v62  ;;  %v5952_v37 = vcombine.low %v2447_v40, %v2478_v62  ;;  %v2323_v40 = vsel %vm9657_vm12, %v8120_v0, %v2322_v22 }
 0x3ea   : > { %2810 = vmatprep.subr.bf16.mxu0 %v5945_v54  ;;  %v2228_v60 = vsel %vm990_vm1, %v2222_v50, %v2223_v21  ;;  %v2291_v43 = vsel %vm990_vm1, %v2285_v29, %v2286_v17 }
 0x3eb   : > { %v2528_v59 = vpop.permute.xlu0 %2527  ;;  %2811 = vmatpush1.bf16.msra.mxu0 %v5944_v34  ;;  %v8173_v7 = vpop.permute.xlu1 %2372  ;;  %v2229_v51 = vsel %vm1145_vm0, %v2214_v9, %v2228_v60  ;;  %v2292_v12 = vsel %vm9656_vm13, %v2277_v30, %v2291_v43  ;;  %v2479_v34 = vsel %vm990_vm1, %v2473_v58, %v2474_v38 }
 0x3ec   : > { %v2536_v6 = vrot.slane %v2528_v59, 4  ;;  %v2380_v50 = vrot.slane %v8173_v7, 4  ;;  %2812 = vmatprep.subr.bf16.mxu0 %v5953_v24  ;;  %v5938_v18 = vcombine.low %v2229_v51, %v2292_v12  ;;  %v5939_v29 = vcombine.high %v2229_v51, %v2292_v12 }
 0x3ed   : > { %v2480_v0 = vsel %vm9851_vm9, %v8130_v11, %v2479_v34  ;;  %vm9857_vm9 = vmmov %vm9853_vm2 }
 0x3ee   : > { %v2540_v54 = vsel %vm990_vm1, %v2535_v45, %v2536_v6  ;;  %2849 = vmatprep.subr.bf16.mxu1 %v5939_v29  ;;  %v2385_v9 = vsel %vm990_vm1, %v2379_v46, %v2380_v50 }
 0x3ef   : > { %v8188_v30 = vpop.permute.xlu0 %2435  ;;  %2813 = vmatpush1.bf16.msra.mxu0 %v5952_v37  ;;  %2850 = vmatpush1.bf16.msra.mxu1 %v5938_v18  ;;  %v2155_v28 = vpop.permute.xlu1 %2154  ;;  %v2541_v24 = vsel %vm9849_vm4, %v8112_v13, %v2540_v54  ;;  %v2386_v58 = vsel %vm1371_vm15, %v2371_v42, %v2385_v9  ;;  %v9850_v13 = vrot.slane %v8122_v3, 4 }
 0x3f0   : > { %v2443_v62 = vrot.slane %v8188_v30, 4  ;;  %v2161_v45 = vrot.slane %v2155_v28, 4  ;;  %v5961_v60 = vcombine.high %v2541_v24, %v2541_v24  ;;  %v5946_v43 = vcombine.low %v2323_v40, %v2386_v58 }
 0x3f1   : > { %v5947_v51 = vcombine.high %v2323_v40, %v2386_v58  ;;  %v5960_v46 = vcombine.low %v2541_v24, %v2541_v24  ;;  %v8213_v24 = vld [vmem:[#allocation8] sm:$0xf]  ;;  %v9852_v58 = vcombine.low %v7992_v26, %v7996_v8 }
 0x3f2   : > { %5968 = vmatprep.subr.msk.bf16.mxu0 %vm990_vm1, %v5961_v60  ;;  %v2448_v12 = vsel %vm990_vm1, %v2442_v41, %v2443_v62  ;;  %v2167_v18 = vsel %vm990_vm1, %v9850_v13, %v2161_v45 }
 0x3f3   : > { %2851 = vmatprep.subr.bf16.mxu1 %v5947_v51  ;;  %v8205_v42 = vpop.permute.xlu0 %2529  ;;  %v2783_v22 = vsel %vm990_vm1, %v5960_v46, 0  ;;  %v2157_v29 = vpop.permute.xlu1 %2156  ;;  %v2449_v37 = vsel %vm9635_vm5, %v8144_v16, %v2448_v12  ;;  %v2168_v54 = vsel %vm992_vm14, %v8122_v3, %v2167_v18 }
 0x3f4   : > { %v2537_v41 = vrot.slane %v8205_v42, 4  ;;  %2815 = vmatpush1.bf16.msra.mxu0 %v2783_v22  ;;  %2852 = vmatpush1.bf16.msra.mxu1 %v5946_v43  ;;  %v2162_v9 = vrot.slane %v2157_v29, 4  ;;  %v5954_v11 = vcombine.low %v2449_v37, %v2480_v0  ;;  %v5955_v34 = vcombine.high %v2449_v37, %v2480_v0 }
 0x3f5   : > { %v6113_v40 = vcombine.low %v7992_v26, %v2168_v54  ;;  %v5933_v60 = vcombine.high %v9852_v58, %v2168_v54 }
 0x3f6   : > { %v2542_v16 = vsel %vm990_vm1, %v2536_v6, %v2537_v41  ;;  %v2169_v3 = vsel %vm990_vm1, %v2161_v45, %v2162_v9  ;;  %2853 = vmatprep.subr.bf16.mxu1 %v5955_v34 }
 0x3f7   : > { %5969 = vmatmul.mubr.msk.bf16.vlgmr.msra.gmra.mrb[4].mxu0 %vm9853_vm2, %v8213_v24  ;;  %2888 = vmatprep.subr.bf16.mxu0 %v5933_v60  ;;  %v8225_v43 = vpop.permute.xlu0 %2311  ;;  %v2281_v51 = vpop.permute.xlu1 %2280  ;;  %v2543_v46 = vsel %vm9854_vm7, %v2528_v59, %v2542_v16  ;;  %v2170_v13 = vsel %vm992_vm14, %v2155_v28, %v2169_v3  ;;  %v9855_v59 = vcombine.low %v8030_v57, %v8034_v53  ;;  %vm9858_vm2 = vmmov %vm9848_vm3 }
 0x3f8   : > { %2854 = vmatpush1.bf16.msra.mxu1 %v5954_v11  ;;  %2889 = vmatpush1.bf16.msra.mxu0 %v6113_v40  ;;  %v2287_v26 = vrot.slane %v2281_v51, 4  ;;  %v5963_v8 = vcombine.high %v2543_v46, %v2543_v46  ;;  %v5962_v12 = vcombine.low %v2543_v46, %v2543_v46  ;;  %v2318_v6 = vrot.slane %v8225_v43, 4  ;;  %vm9859_vm7 = vmmov %vm9849_vm4 }
 0x3f9   : > { %2920 = vmatprep.mubr.bf16.mxu0 %v9756_v1  ;;  %v5935_v22 = vcombine.high %v9855_v59, %v2170_v13  ;;  %v6114_v54 = vcombine.low %v8030_v57, %v2170_v13 }
 0x3fa   : > { %5970 = vmatprep.subr.msk.bf16.mxu1 %vm990_vm1, %v5963_v8  ;;  %v2789_v45 = vsel %vm990_vm1, %v5962_v12, 0  ;;  %v2293_v28 = vsel %vm990_vm1, %v2286_v17, %v2287_v26  ;;  %v2324_v53 = vsel %vm990_vm1, %v2317_v52, %v2318_v6 }
 0x3fb   : > { %v2218_v18 = vpop.permute.xlu0 %2217  ;;  %v8233_v0 = vpop.permute.xlu1 %2374  ;;  %v2325_v16 = vsel %vm9657_vm12, %v8138_v2, %v2324_v53 }
 0x3fc   : > { %v2224_v29 = vrot.slane %v2218_v18, 4  ;;  %2856 = vmatpush1.bf16.msra.mxu1 %v2789_v45  ;;  %v2381_v37 = vrot.slane %v8233_v0, 4 }
 0x3fd   : > { %2929 = vmatprep.subr.bf16.mxu1 %v5935_v22 }
 0x3fe   : > { %v2230_v9 = vsel %vm990_vm1, %v2223_v21, %v2224_v29  ;;  %v2387_v11 = vsel %vm990_vm1, %v2380_v50, %v2381_v37  ;;  %v2294_v21 = vsel %vm9656_vm13, %v8154_v4, %v2293_v28 }
 0x3ff   : > { %5971 = vmatmul.mubr.msk.bf16.vlgmr.msra.gmra.mrb[12].mxu1 %vm9856_vm11, %v8213_v24  ;;  %v8254_v34 = vpop.permute.xlu0 %2437  ;;  %v8256_v17 = vpop.permute.xlu1 %2468  ;;  %v2231_v57 = vsel %vm1145_vm0, %v8156_v10, %v2230_v9  ;;  %v2388_v52 = vsel %vm1371_vm15, %v8173_v7, %v2387_v11  ;;  %vm9860_vm11 = vmmov %vm9857_vm9 }
 0x400   : > { %v2444_v40 = vrot.slane %v8254_v34, 4  ;;  %2930 = vmatpush1.bf16.msra.mxu1 %v6114_v54  ;;  %v2475_v50 = vrot.slane %v8256_v17, 4  ;;  %v5940_v58 = vcombine.low %v2231_v57, %v2294_v21  ;;  %v5941_v60 = vcombine.high %v2231_v57, %v2294_v21  ;;  %2961 = vmatprep.mubr.bf16.mxu1 %v9756_v1 }
 0x401   : > { %v5949_v10 = vcombine.high %v2325_v16, %v2388_v52  ;;  %v5948_v45 = vcombine.low %v2325_v16, %v2388_v52 }
 0x402   : > { %2890 = vmatprep.subr.bf16.mxu0 %v5941_v60  ;;  %v2450_v4 = vsel %vm990_vm1, %v2443_v62, %v2444_v40  ;;  %v2481_v7 = vsel %vm990_vm1, %v2474_v38, %v2475_v50 }
 0x403   : > { %v2220_v3 = vpop.permute.xlu0 %2219  ;;  %2891 = vmatpush1.bf16.msra.mxu0 %v5940_v58  ;;  %v2283_v46 = vpop.permute.xlu1 %2282  ;;  %v2451_v8 = vsel %vm9635_vm5, %v8188_v30, %v2450_v4  ;;  %v2482_v12 = vsel %vm9848_vm3, %v8124_v15, %v2481_v7  ;;  %vm9861_vm3 = vcmp.ne.s16.totalorder %v7071_v33, 0 }
 0x404   : > { %v2225_v2 = vrot.slane %v2220_v3, 4  ;;  %v2288_v13 = vrot.slane %v2283_v46, 4  ;;  %2892 = vmatprep.subr.bf16.mxu0 %v5949_v10  ;;  %v5957_v22 = vcombine.high %v2451_v8, %v2482_v12  ;;  %v5956_v57 = vcombine.low %v2451_v8, %v2482_v12 }
 0x406   : > { %v2232_v59 = vsel %vm990_vm1, %v2224_v29, %v2225_v2  ;;  %v2295_v62 = vsel %vm990_vm1, %v2287_v26, %v2288_v13 }
 0x407   : > { %v2532_v28 = vpop.permute.xlu0 %2531  ;;  %2893 = vmatpush1.bf16.msra.mxu0 %v5948_v45  ;;  %v2314_v38 = vpop.permute.xlu1 %2313  ;;  %v2233_v54 = vsel %vm1145_vm0, %v2218_v18, %v2232_v59  ;;  %v2296_v9 = vsel %vm9656_vm13, %v2281_v51, %v2295_v62 }
 0x408   : > { %v2538_v30 = vrot.slane %v2532_v28, 4  ;;  %v2319_v53 = vrot.slane %v2314_v38, 4  ;;  %2894 = vmatprep.subr.bf16.mxu0 %v5957_v22  ;;  %v5942_v15 = vcombine.low %v2233_v54, %v2296_v9  ;;  %v5943_v11 = vcombine.high %v2233_v54, %v2296_v9 }
 0x40a   : > { %v2544_v29 = vsel %vm990_vm1, %v2537_v41, %v2538_v30  ;;  %2931 = vmatprep.subr.bf16.mxu1 %v5943_v11  ;;  %v2326_v26 = vsel %vm990_vm1, %v2318_v6, %v2319_v53 }
 0x40b   : > { %v2377_v21 = vpop.permute.xlu0 %2376  ;;  %2895 = vmatpush1.bf16.msra.mxu0 %v5956_v57  ;;  %2932 = vmatpush1.bf16.msra.mxu1 %v5942_v15  ;;  %v2440_v52 = vpop.permute.xlu1 %2439  ;;  %v2545_v51 = vsel %vm9849_vm4, %v8205_v42, %v2544_v29  ;;  %v2327_v3 = vsel %vm9657_vm12, %v8225_v43, %v2326_v26  ;;  %vm9862_vm4 = vcmp.ne.s16.totalorder %v7068_v32, 0 }
 0x40c   : > { %v2382_v18 = vrot.slane %v2377_v21, 4  ;;  %v2445_v58 = vrot.slane %v2440_v52, 4  ;;  %v5965_v60 = vcombine.high %v2545_v51, %v2545_v51  ;;  %v5964_v16 = vcombine.low %v2545_v51, %v2545_v51 }
 0x40e   : > { %v2389_v10 = vsel %vm990_vm1, %v2381_v37, %v2382_v18  ;;  %5972 = vmatprep.subr.msk.bf16.mxu0 %vm990_vm1, %v5965_v60  ;;  %v2795_v41 = vsel %vm990_vm1, %v5964_v16, 0  ;;  %v2452_v4 = vsel %vm990_vm1, %v2444_v40, %v2445_v58 }
 0x40f   : > { %v2471_v6 = vpop.permute.xlu0 %2470  ;;  %2897 = vmatpush1.bf16.msra.mxu0 %v2795_v41  ;;  %v2534_v7 = vpop.permute.xlu1 %2533  ;;  %v2390_v42 = vsel %vm1371_vm15, %v8233_v0, %v2389_v10  ;;  %v2453_v40 = vsel %vm9635_vm5, %v8254_v34, %v2452_v4 }
 0x410   : > { %v2476_v46 = vrot.slane %v2471_v6, 4  ;;  %v2539_v8 = vrot.slane %v2534_v7, 4  ;;  %v5950_v12 = vcombine.low %v2327_v3, %v2390_v42  ;;  %v5951_v2 = vcombine.high %v2327_v3, %v2390_v42 }
 0x412   : > { %v2483_v37 = vsel %vm990_vm1, %v2475_v50, %v2476_v46  ;;  %v2546_v13 = vsel %vm990_vm1, %v2538_v30, %v2539_v8  ;;  %5973 = vmatmul.mubr.msk.bf16.vlgmr.msra.gmra.mrb[8].mxu0 %vm9857_vm9, %v8213_v24  ;;  %2933 = vmatprep.subr.bf16.mxu1 %v5951_v2  ;;  %vm9863_vm9 = vcmp.ne.s16.totalorder %v7082_v36, 0 }
 0x413   : > { %2934 = vmatpush1.bf16.msra.mxu1 %v5950_v12  ;;  %v2484_v43 = vsel %vm9858_vm2, %v8256_v17, %v2483_v37  ;;  %v2547_v0 = vsel %vm9859_vm7, %v2532_v28, %v2546_v13  ;;  %3780 = vmatprep.mubr.bf16.mxu0 %v9756_v1  ;;  %vm9864_vm2 = vcmp.ne.s16.totalorder %v7079_v35, 0  ;;  %vm9865_vm7 = vcmp.ne.s16.totalorder %v7208_v20, 0 }
 0x414   : > { %v5958_v45 = vcombine.low %v2453_v40, %v2484_v43  ;;  %v5959_v59 = vcombine.high %v2453_v40, %v2484_v43  ;;  %v5967_v50 = vcombine.high %v2547_v0, %v2547_v0  ;;  %v5966_v62 = vcombine.low %v2547_v0, %v2547_v0 }
 0x416   : > { %2935 = vmatprep.subr.bf16.mxu1 %v5959_v59  ;;  %v2801_v22 = vsel %vm990_vm1, %v5966_v62, 0 }
 0x417   : > { %2936 = vmatpush1.bf16.msra.mxu1 %v5958_v45 }
 0x418   : > { %5974 = vmatprep.subr.msk.bf16.mxu1 %vm990_vm1, %v5967_v50 }
 0x41b   : > { %2938 = vmatpush1.bf16.msra.mxu1 %v2801_v22 }
 0x41e   : > { %5975 = vmatmul.mubr.msk.bf16.vlgmr.msra.gmra.mrb[16].mxu1 %vm9860_vm11, %v8213_v24  ;;  %vm9866_vm11 = vcmp.ne.s16.totalorder %v7240_v44, 0 }
 0x41f   : > { %3821 = vmatprep.mubr.bf16.mxu1 %v9756_v1 }
 0x420   : > { %v2597_v34 = vpop.permute.xlu0 %2596 }
 0x4ca   : > { %v2840_v17 = vpop.f32.mrb[4].mxu0 }
 0x4cb   : > { %v2841_v28 = vadd.f32 %v2840_v17, %v2597_v34  ;;  %v2842_v38 = vpop.f32.mrb[5].mxu0 }
 0x4cc   : > { %v2843_v54 = vadd.f32 %v2842_v38, %v2597_v34  ;;  %v2844_v9 = vpop.f32.mrb[6].mxu0 }
 0x4cd   : > { %v2970_v30 = vmul.f32 0.01, %v2841_v28  ;;  %v2845_v53 = vpop.f32.mrb[7].mxu0 }
 0x4ce   : > { %v2971_v15 = vmul.f32 0.01, %v2843_v54 }
 0x4cf   : > { %v2978_v11 = vmax.f32 %v2841_v28, %v2970_v30 }
 0x4d0   : > { %v2979_v57 = vmax.f32 %v2843_v54, %v2971_v15 }
 0x4d1   : > { %v2986_v29 = vpack.c.bf16 %v2978_v11, %v2978_v11 }
 0x4d2   : > { %v2987_v26 = vpack.c.bf16 %v2979_v57, %v2979_v57  ;;  %v2881_v21 = vpop.f32.mrb[12].mxu1 }
 0x4d3   : > { %v2882_v52 = vadd.f32 %v2881_v21, %v2597_v34  ;;  %3002 = vrot.lane.b32.xlu1 %v2986_v29, %s6696_s0  ;;  %v2883_v24 = vpop.f32.mrb[13].mxu1 }
 0x4d4   : > { %v2884_v51 = vadd.f32 %v2883_v24, %v2597_v34  ;;  %3004 = vrot.lane.b32.xlu0 %v2987_v26, %s6696_s0  ;;  %v2885_v18 = vpop.f32.mrb[14].mxu1 }
 0x4d5   : > { %v2972_v58 = vmul.f32 0.01, %v2882_v52  ;;  %v2886_v60 = vpop.f32.mrb[15].mxu1 }
 0x4d6   : > { %v2973_v16 = vmul.f32 0.01, %v2884_v51 }
 0x4d7   : > { %v2980_v10 = vmax.f32 %v2882_v52, %v2972_v58 }
 0x4d8   : > { %v2981_v41 = vmax.f32 %v2884_v51, %v2973_v16 }
 0x4d9   : > { %v2988_v4 = vpack.c.bf16 %v2980_v10, %v2980_v10 }
 0x4da   : > { %v2989_v6 = vpack.c.bf16 %v2981_v41, %v2981_v41 }
 0x4db   : > { %3006 = vrot.lane.b32.xlu1 %v2988_v4, %s6696_s0 }
 0x4dc   : > { %3008 = vrot.lane.b32.xlu0 %v2989_v6, %s6696_s0 }
 0x4e5   : > { %v2922_v7 = vpop.f32.mrb[8].mxu0 }
 0x4e6   : > { %v2923_v3 = vadd.f32 %v2922_v7, %v2597_v34  ;;  %v2924_v42 = vpop.f32.mrb[9].mxu0 }
 0x4e7   : > { %v2925_v46 = vadd.f32 %v2924_v42, %v2597_v34  ;;  %v2926_v8 = vpop.f32.mrb[10].mxu0 }
 0x4e8   : > { %v2974_v12 = vmul.f32 0.01, %v2923_v3  ;;  %v2927_v2 = vpop.f32.mrb[11].mxu0 }
 0x4e9   : > { %v2975_v37 = vmul.f32 0.01, %v2925_v46 }
 0x4ea   : > { %v2982_v13 = vmax.f32 %v2923_v3, %v2974_v12 }
 0x4eb   : > { %v2983_v40 = vmax.f32 %v2925_v46, %v2975_v37 }
 0x4ec   : > { %v2990_v43 = vpack.c.bf16 %v2982_v13, %v2982_v13  ;;  %v9882_v13 = vld [vmem:[#allocation38_spill] sm:$0xff] }
 0x4ed   : > { %v2991_v0 = vpack.c.bf16 %v2983_v40, %v2983_v40 }
 0x4ee   : > { %3010 = vrot.lane.b32.xlu1 %v2990_v43, %s6696_s0  ;;  %v9884_v43 = vld [vmem:[#allocation34_spill] sm:$0xff] }
 0x4ef   : > { %3012 = vrot.lane.b32.xlu0 %v2991_v0, %s6696_s0 }
 0x4f1   : > { %v2963_v45 = vpop.f32.mrb[16].mxu1 }
 0x4f2   : > { %v2964_v59 = vadd.f32 %v2963_v45, %v2597_v34  ;;  %v2965_v50 = vpop.f32.mrb[17].mxu1  ;;  %v9886_v45 = vld [vmem:[#allocation33_spill] sm:$0xff] }
 0x4f3   : > { %v2966_v62 = vadd.f32 %v2965_v50, %v2597_v34  ;;  %v2967_v22 = vpop.f32.mrb[18].mxu1  ;;  %v9888_v50 = vld [vmem:[#allocation37_spill] sm:$0xff] }
 0x4f4   : > { %v2976_v17 = vmul.f32 0.01, %v2964_v59  ;;  %v2968_v28 = vpop.f32.mrb[19].mxu1  ;;  %v9890_v22 = vld [vmem:[#allocation40_spill] sm:$0xff] }
 0x4f5   : > { %v2977_v38 = vmul.f32 0.01, %v2966_v62 }
 0x4f6   : > { %v2984_v54 = vmax.f32 %v2964_v59, %v2976_v17 }
 0x4f7   : > { %v2985_v9 = vmax.f32 %v2966_v62, %v2977_v38 }
 0x4f8   : > { %v2992_v30 = vpack.c.bf16 %v2984_v54, %v2984_v54 }
 0x4f9   : > { %v2993_v53 = vpack.c.bf16 %v2985_v9, %v2985_v9 }
 0x4fa   : > { %3014 = vrot.lane.b32.xlu1 %v2992_v30, %s6696_s0 }
 0x4fb   : > { %3016 = vrot.lane.b32.xlu0 %v2993_v53, %s6696_s0  ;;  %s9650_s0 = smov 16  }
 0x545   : > { %v3003_v15 = vpop.permute.xlu1 %3002 }
 0x546   : > { %v3033_v11 = vsel %vm836_vm8, 0, %v3003_v15  ;;  %v3005_v57 = vpop.permute.xlu0 %3004 }
 0x547   : > { %v3018_v29 = vsel %vm836_vm8, %v3003_v15, %v3005_v57  ;;  %v8325_v34 = vsel %vm9861_vm3, %v3033_v11, 0  ;;  %v3121_v10 = vsel %vm9865_vm7, %v3033_v11, 0  ;;  %vm9867_vm3 = vcmp.ne.s16.totalorder %v7218_v27, 0 }
 0x548   : > { %v5980_v26 = vcombine.low %v3033_v11, %v3018_v29  ;;  %v8329_v21 = vsel %vm9862_vm4, %v3018_v29, 0  ;;  %v3122_v41 = vsel %vm9866_vm11, %v3018_v29, 0  ;;  %v3184_v4 = vsel %vm9867_vm3, %v3033_v11, 0 }
 0x549   : > { %v5976_v52 = vcombine.low %v8325_v34, %v8329_v21  ;;  %v5985_v36 = vcombine.low %v3121_v10, %v3122_v41  ;;  %vm9868_vm4 = vcmp.ne.s16.totalorder %v7261_v49, 0  ;;  %vm9871_vm7 = vcmp.ne.s16.totalorder %v7322_v19, 0 }
 0x54a   : > { %3090 = vrot.lane.b32.xlu1 %v5980_v26, %s6702_s15  ;;  %v3185_v35 = vsel %vm9868_vm4, %v3018_v29, 0  ;;  %vm9872_vm11 = vcmp.ne.s16.totalorder %v7326_v25, 0  ;;  %vm9873_vm3 = vcmp.ne.s16.totalorder %v7269_v55, 0  ;;  %vm9874_vm4 = vcmp.ne.s16.totalorder %v7273_v56, 0 }
 0x54b   : > { %v5990_v44 = vcombine.low %v3184_v4, %v3185_v35  ;;  %v9899_v4 = vld [vmem:[#allocation47_spill] sm:$0xff] }
 0x54d   : > { %v3007_v24 = vpop.permute.xlu1 %3006 }
 0x54e   : > { %v3019_v51 = vsel %vm836_vm8, %v3005_v57, %v3007_v24  ;;  %v3009_v18 = vpop.permute.xlu0 %3008 }
 0x54f   : > { %v3020_v58 = vsel %vm836_vm8, %v3007_v24, %v3009_v18  ;;  %v8339_v33 = vsel %vm9863_vm9, %v3019_v51, 0  ;;  %vm9869_vm9 = vcmp.ne.s16.totalorder %v7248_v47, 0  ;;  %v3280_v3 = vsel %vm9871_vm7, %v3019_v51, 0  ;;  %v9893_v24 = vld [vmem:[#allocation46_spill] sm:$0xff] }
 0x550   : > { %v5981_v60 = vcombine.low %v3019_v51, %v3020_v58  ;;  %v8343_v32 = vsel %vm9864_vm2, %v3020_v58, 0  ;;  %v3123_v6 = vsel %vm9869_vm9, %v3019_v51, 0  ;;  %vm9870_vm2 = vcmp.ne.s16.totalorder %v7252_v48, 0 }
 0x551   : > { %v5977_v16 = vcombine.low %v8339_v33, %v8343_v32  ;;  %v3124_v20 = vsel %vm9870_vm2, %v3020_v58, 0  ;;  %v3281_v27 = vsel %vm9872_vm11, %v3020_v58, 0  ;;  %v3186_v49 = vsel %vm9873_vm3, %v3019_v51, 0 }
 0x552   : > { %3249 = vrot.lane.b32.xlu1 %v5981_v60, %s6703_s18  ;;  %3092 = vrot.lane.b32.xlu0 %v5981_v60, %s6702_s15  ;;  %v5986_v7 = vcombine.low %v3123_v6, %v3124_v20  ;;  %v3187_v47 = vsel %vm9874_vm4, %v3020_v58, 0  ;;  %v5996_v42 = vcombine.low %v3280_v3, %v3281_v27  ;;  %vm9875_vm9 = vcmp.ne.s16.totalorder %v7356_v5, 0  ;;  %v9901_v6 = vld [vmem:[#allocation48_spill] sm:$0xff] }
 0x553   : > { %v5991_v46 = vcombine.low %v3186_v49, %v3187_v47  ;;  %v3343_v19 = vsel %vm9875_vm9, %v3019_v51, 0  ;;  %vm9876_vm2 = vcmp.ne.s16.totalorder %v9791_v23, 0  ;;  %vm9877_vm7 = vcmp.ne.s16.totalorder %v7222_v31, 0  ;;  %v9904_v3 = vld [vmem:[#allocation44_spill] sm:$0xff] }
 0x554   : > { %v3344_v25 = vsel %vm9876_vm2, %v3020_v58, 0  ;;  %v3278_v55 = vsel %vm9877_vm7, %v3033_v11, 0  ;;  %vm9878_vm11 = vcmp.ne.s16.totalorder %v7319_v14, 0  ;;  %vm9879_vm3 = vcmp.ne.s16.totalorder %v7228_v39, 0 }
 0x555   : > { %v3279_v56 = vsel %vm9878_vm11, %v3018_v29, 0  ;;  %v6001_v37 = vcombine.low %v3343_v19, %v3344_v25  ;;  %v3341_v23 = vsel %vm9879_vm3, %v3033_v11, 0  ;;  %vm9880_vm4 = vcmp.ne.s16.totalorder %v9803_v63, 0  ;;  %v9910_v25 = vld [vmem:[#allocation53_spill] sm:$0xff] }
 0x556   : > { %3406 = vrot.lane.b32.xlu1 %v5981_v60, %s6704_s19  ;;  %3247 = vrot.lane.b32.xlu0 %v5980_v26, %s6703_s18  ;;  %v5995_v5 = vcombine.low %v3278_v55, %v3279_v56  ;;  %v3437_v31 = vsel %vm9880_vm4, %v3019_v51, 0  ;;  %vm9881_vm9 = vcmp.ne.s16.totalorder %v9805_v61, 0  ;;  %vm9883_vm2 = vcmp.ne.s16.totalorder %v9882_v13, 0  ;;  %v9897_v60 = vld [vmem:[#allocation35_spill] sm:$0xff]  ;;  %v9912_v56 = vld [vmem:[#allocation54_spill] sm:$0xff] }
 0x557   : > { %v3438_v14 = vsel %vm9881_vm9, %v3020_v58, 0  ;;  %v3342_v40 = vsel %vm9883_vm2, %v3018_v29, 0  ;;  %vm9885_vm7 = vcmp.ne.s16.totalorder %v9884_v43, 0  ;;  %vm9887_vm11 = vcmp.ne.s16.totalorder %v9886_v45, 0  ;;  %v9920_v45 = vld [vmem:[#allocation56_spill] sm:$0xff] }
 0x558   : > { %v6006_v61 = vcombine.low %v3437_v31, %v3438_v14  ;;  %v6000_v59 = vcombine.low %v3341_v23, %v3342_v40  ;;  %vm9889_vm3 = vcmp.ne.s16.totalorder %v9888_v50, 0  ;;  %vm9891_vm4 = vcmp.ne.s16.totalorder %v9890_v22, 0  ;;  %v9914_v23 = vld [vmem:[#allocation57_spill] sm:$0xff]  ;;  %v9916_v14 = vld [vmem:[#allocation58_spill] sm:$0xff]  ;;  %v9918_v40 = vld [vmem:[#allocation55_spill] sm:$0xff] }
 0x559   : > { %v3435_v62 = vsel %vm9889_vm3, %v3033_v11, 0  ;;  %v3436_v17 = vsel %vm9891_vm4, %v3018_v29, 0  ;;  %vm9894_vm9 = vcmp.ne.s16.totalorder %v9893_v24, 0  ;;  %v9930_v29 = vld [vmem:[#allocation64_spill] sm:$0xff] }
 0x55a   : > { %3153 = vrot.lane.b32.xlu1 %v5985_v36, %s6705_s22  ;;  %3404 = vrot.lane.b32.xlu0 %v5980_v26, %s6704_s19  ;;  %v6005_v38 = vcombine.low %v3435_v62, %v3436_v17  ;;  %v9922_v62 = vld [vmem:[#allocation49_spill] sm:$0xff]  ;;  %v9932_v24 = vld [vmem:[#allocation52_spill] sm:$0xff] }
 0x55e   : > { %3216 = vrot.lane.b32.xlu1 %v5990_v44, %s6706_s27  ;;  %3155 = vrot.lane.b32.xlu0 %v5986_v7, %s6705_s22 }
 0x560   : > { %v3011_v48 = vpop.permute.xlu1 %3010 }
 0x561   : > { %v3013_v8 = vpop.permute.xlu0 %3012  ;;  %v3021_v12 = vsel %vm836_vm8, %v3009_v18, %v3011_v48  ;;  %v9895_v18 = vld [vmem:[#allocation36_spill] sm:$0xff] }
 0x562   : > { %3312 = vrot.lane.b32.xlu1 %v5996_v42, %s6707_s23  ;;  %3218 = vrot.lane.b32.xlu0 %v5991_v46, %s6706_s27  ;;  %v3022_v2 = vsel %vm836_vm8, %v3011_v48, %v3013_v8  ;;  %v8395_v0 = vsel %vm9885_vm7, %v3021_v12, 0  ;;  %v3188_v26 = vsel %vm1189_vm10, %v3021_v12, 0  ;;  %vm9896_vm2 = vcmp.ne.s16.totalorder %v9895_v18, 0  ;;  %v9906_v48 = vld [vmem:[#allocation50_spill] sm:$0xff]  ;;  %v9908_v46 = vld [vmem:[#allocation51_spill] sm:$0xff] }
 0x563   : > { %v8401_v39 = vsel %vm9887_vm11, %v3022_v2, 0  ;;  %v5982_v54 = vcombine.low %v3021_v12, %v3022_v2  ;;  %v3189_v51 = vsel %vm9894_vm9, %v3022_v2, 0  ;;  %vm9900_vm10 = vcmp.ne.s16.totalorder %v9899_v4, 0 }
 0x564   : > { %v5978_v63 = vcombine.low %v8395_v0, %v8401_v39  ;;  %v5992_v36 = vcombine.low %v3188_v26, %v3189_v51  ;;  %v3282_v35 = vsel %vm9900_vm10, %v3021_v12, 0  ;;  %vm9902_vm7 = vcmp.ne.s16.totalorder %v9901_v6, 0 }
 0x565   : > { %v3283_v20 = vsel %vm9902_vm7, %v3022_v2, 0  ;;  %v3125_v7 = vsel %vm1092_vm6, %v3021_v12, 0  ;;  %vm9905_vm11 = vcmp.ne.s16.totalorder %v9904_v3, 0  ;;  %vm9907_vm3 = vcmp.ne.s16.totalorder %v9906_v48, 0 }
 0x566   : > { %3375 = vrot.lane.b32.xlu1 %v6001_v37, %s9654_s20  ;;  %3310 = vrot.lane.b32.xlu0 %v5995_v5, %s6707_s23  ;;  %v3126_v27 = vsel %vm9905_vm11, %v3022_v2, 0  ;;  %v5997_v49 = vcombine.low %v3282_v35, %v3283_v20  ;;  %v3345_v42 = vsel %vm9907_vm3, %v3021_v12, 0  ;;  %vm9909_vm4 = vcmp.ne.s16.totalorder %v9908_v46, 0  ;;  %v9936_v35 = vld [vmem:[#allocation67_spill] sm:$0xff] }
 0x567   : > { %v5987_v47 = vcombine.low %v3125_v7, %v3126_v27  ;;  %vm9911_vm6 = vcmp.ne.s16.totalorder %v9910_v25, 0  ;;  %vm9913_vm9 = vcmp.ne.s16.totalorder %v9912_v56, 0  ;;  %vm9919_vm10 = vcmp.ne.s16.totalorder %v9918_v40, 0  ;;  %v9938_v20 = vld [vmem:[#allocation59_spill] sm:$0xff]  ;;  %v9940_v27 = vld [vmem:[#allocation62_spill] sm:$0xff] }
 0x568   : > { %vm9921_vm7 = vcmp.ne.s16.totalorder %v9920_v45, 0  ;;  %vm9923_vm11 = vcmp.ne.s16.totalorder %v9922_v62, 0 }
 0x56a   : > { %3469 = vrot.lane.b32.xlu1 %v6006_v61, %s6708_s3  ;;  %3373 = vrot.lane.b32.xlu0 %v6000_v59, %s9654_s20 }
 0x56c   : > { %v3015_v28 = vpop.permute.xlu1 %3014 }
 0x56d   : > { %v3023_v9 = vsel %vm836_vm8, %v3013_v8, %v3015_v28  ;;  %v3017_v30 = vpop.permute.xlu0 %3016  ;;  %v3346_v8 = vsel %vm9909_vm4, %v3022_v2, 0 }
 0x56e   : > { %v3024_v53 = vsel %vm836_vm8, %v3015_v28, %v3017_v30  ;;  %3467 = vrot.lane.b32.xlu0 %v6005_v38, %s6708_s3  ;;  %3094 = vrot.lane.b32.xlu1 %v5982_v54, %s6702_s15  ;;  %v8416_v11 = vsel %vm836_vm8, %v3017_v30, 0  ;;  %v8428_v58 = vsel %vm9896_vm2, %v3023_v9, 0  ;;  %vm9898_vm8 = vcmp.ne.s16.totalorder %v9897_v60, 0  ;;  %v9928_v30 = vld [vmem:[#allocation63_spill] sm:$0xff] }
 0x56f   : > { %v5983_v15 = vcombine.low %v3023_v9, %v3024_v53  ;;  %v5984_v57 = vcombine.low %v8416_v11, %v8416_v11  ;;  %v8432_v10 = vsel %vm9898_vm8, %v3024_v53, 0  ;;  %v6002_v19 = vcombine.low %v3345_v42, %v3346_v8  ;;  %v3535_v42 = vld [vmem:[%s9944_s6] sm:$0xff] }
 0x570   : > { %v5979_v41 = vcombine.low %v8428_v58, %v8432_v10  ;;  %v3127_v55 = vsel %vm9911_vm6, %v3023_v9, 0  ;;  %v3128_v37 = vsel %vm9913_vm9, %v3024_v53, 0  ;;  %vm9915_vm2 = vcmp.ne.s16.totalorder %v9914_v23, 0 }
 0x571   : > { %v5988_v5 = vcombine.low %v3127_v55, %v3128_v37  ;;  %v3439_v31 = vsel %vm9915_vm2, %v3021_v12, 0  ;;  %vm9917_vm8 = vcmp.ne.s16.totalorder %v9916_v14, 0  ;;  %v3190_v43 = vsel %vm9919_vm10, %v3023_v9, 0  ;;  %v9924_v12 = vld [vmem:[#allocation60_spill] sm:$0xff] }
 0x572   : > { %3251 = vrot.lane.b32.xlu0 %v5982_v54, %s6703_s18  ;;  %3253 = vrot.lane.b32.xlu1 %v5983_v15, %s6703_s18  ;;  %v3440_v13 = vsel %vm9917_vm8, %v3022_v2, 0  ;;  %v3191_v61 = vsel %vm9921_vm7, %v3024_v53, 0  ;;  %v3129_v22 = vsel %vm9923_vm11, %v8416_v11, 0  ;;  %vm9925_vm3 = vcmp.ne.s16.totalorder %v9924_v12, 0  ;;  %v9926_v2 = vld [vmem:[#allocation61_spill] sm:$0xff] }
 0x573   : > { %v6007_v59 = vcombine.low %v3439_v31, %v3440_v13  ;;  %v5993_v50 = vcombine.low %v3190_v43, %v3191_v61  ;;  %v3284_v17 = vsel %vm9925_vm3, %v3023_v9, 0  ;;  %vm9927_vm4 = vcmp.ne.s16.totalorder %v9926_v2, 0 }
 0x574   : > { %v3285_v28 = vsel %vm9927_vm4, %v3024_v53, 0  ;;  %v5989_v38 = vcombine.low %v3129_v22, %v3129_v22  ;;  %vm9929_vm6 = vcmp.ne.s16.totalorder %v9928_v30, 0  ;;  %vm9931_vm9 = vcmp.ne.s16.totalorder %v9930_v29, 0 }
 0x575   : > { %v3348_v26 = vsel %vm9931_vm9, %v3024_v53, 0  ;;  %vm9933_vm2 = vcmp.ne.s16.totalorder %v9932_v24, 0  ;;  %vm9937_vm10 = vcmp.ne.s16.totalorder %v9936_v35, 0  ;;  %vm9939_vm7 = vcmp.ne.s16.totalorder %v9938_v20, 0 }
 0x576   : > { %3255 = vrot.lane.b32.xlu1 %v5984_v57, %s6703_s18  ;;  %3096 = vrot.lane.b32.xlu0 %v5983_v15, %s6702_s15  ;;  %v3192_v51 = vsel %vm9933_vm2, %v8416_v11, 0  ;;  %v3442_v6 = vsel %vm9937_vm10, %v3024_v53, 0  ;;  %v3286_v44 = vsel %vm9939_vm7, %v8416_v11, 0  ;;  %vm9941_vm11 = vcmp.ne.s16.totalorder %v9940_v27, 0  ;;  %v9942_v53 = vld [vmem:[#allocation65_spill] sm:$0xff] }
 0x577   : > { %v5994_v60 = vcombine.low %v3192_v51, %v3192_v51  ;;  %v5999_v3 = vcombine.low %v3286_v44, %v3286_v44  ;;  %vm9943_vm3 = vcmp.ne.s16.totalorder %v9942_v53, 0  ;;  %vm9945_vm4 = vcmask 515072  }
 0x578   : > { %vm9947_vm9 = vcmask 588800   ;;  %vm9948_vm2 = vmmov %vm9945_vm4 }
 0x579   : > { %vm9950_vm10 = vmmov %vm9947_vm9 }
 0x57a   : > { %3220 = vrot.lane.b32.xlu1 %v5992_v36, %s6706_s27  ;;  %3408 = vrot.lane.b32.xlu0 %v5982_v54, %s6704_s19  ;;  %v5998_v54 = vcombine.low %v3284_v17, %v3285_v28  ;;  %v9934_v36 = vld [vmem:[#allocation66_spill] sm:$0xff]  ;;  %vm9951_vm7 = vmmov %vm9948_vm2 }
 0x57b   : > { %vm9935_vm8 = vcmp.ne.s16.totalorder %v9934_v36, 0 }
 0x57c   : > { %v3441_v4 = vsel %vm9935_vm8, %v3023_v9, 0 }
 0x57d   : > { %v6008_v7 = vcombine.low %v3441_v4, %v3442_v6 }
 0x57e   : > { %3314 = vrot.lane.b32.xlu1 %v5997_v49, %s6707_s23  ;;  %3157 = vrot.lane.b32.xlu0 %v5987_v47, %s6705_s22  ;;  %v3349_v49 = vsel %vm9941_vm11, %v8416_v11, 0  ;;  %v3443_v47 = vsel %vm9943_vm3, %v8416_v11, 0  ;;  %vm9953_vm3 = vmmov %vm9948_vm2 }
 0x57f   : > { %v6009_v48 = vcombine.low %v3443_v47, %v3443_v47 }
 0x582   : > { %3377 = vrot.lane.b32.xlu1 %v6002_v19, %s9654_s20  ;;  %3098 = vrot.lane.b32.xlu0 %v5984_v57, %s6702_s15 }
 0x586   : > { %3159 = vrot.lane.b32.xlu1 %v5988_v5, %s6705_s22  ;;  %3410 = vrot.lane.b32.xlu0 %v5983_v15, %s6704_s19  ;;  %v3347_v15 = vsel %vm9929_vm6, %v3023_v9, 0  ;;  %v6004_v9 = vcombine.low %v3349_v49, %v3349_v49  ;;  %vm9946_vm6 = vcmask 506880  }
 0x587   : > { %v6003_v18 = vcombine.low %v3347_v15, %v3348_v26  ;;  %vm9949_vm8 = vmmov %vm9946_vm6 }
 0x588   : > { %vm9952_vm11 = vmmov %vm9946_vm6 }
 0x58a   : > { %3471 = vrot.lane.b32.xlu1 %v6007_v59, %s6708_s3  ;;  %3222 = vrot.lane.b32.xlu0 %v5993_v50, %s6706_s27 }
 0x58e   : > { %3161 = vrot.lane.b32.xlu1 %v5989_v38, %s6705_s22  ;;  %3316 = vrot.lane.b32.xlu0 %v5998_v54, %s6707_s23 }
 0x592   : > { %3379 = vrot.lane.b32.xlu1 %v6003_v18, %s9654_s20  ;;  %3224 = vrot.lane.b32.xlu0 %v5994_v60, %s6706_s27 }
 0x596   : > { %3473 = vrot.lane.b32.xlu1 %v6008_v7, %s6708_s3  ;;  %3318 = vrot.lane.b32.xlu0 %v5999_v3, %s6707_s23 }
 0x59a   : > { %3412 = vrot.lane.b32.xlu1 %v5984_v57, %s6704_s19  ;;  %3381 = vrot.lane.b32.xlu0 %v6004_v9, %s9654_s20  ;;  %s8728_s19 = sand.u32 1, %s6679_s30  }
 0x59e   : > { %3475 = vrot.lane.b32.xlu0 %v6009_v48, %s6708_s3  ;;  %3538 = vperm.xlu1 %6302, %v3535_v42   ;;  %s5807_s3 = sshll.u32 %s8728_s19, 6 }
 0x59f   : > { %s8736_s21 = scalar_lea.vmem [#allocation13], %s5807_s3  ;;  %s6712_s3 = smov 112  }
 0x5bc   : > { %v3091_v46 = vpop.permute.xlu1 %3090 }
 0x5bd   : > { %v3100_v25 = vrot.slane %v3091_v46, 4 }
 0x5c4   : > { %v8511_v8 = vpop.permute.xlu0 %3092  ;;  %v8513_v19 = vpop.permute.xlu1 %3249 }
 0x5c5   : > { %v3101_v11 = vrot.slane %v8511_v8, 4  ;;  %v3258_v21 = vrot.slane %v8513_v19, 4 }
 0x5c7   : > { %v3105_v57 = vsel %vm990_vm1, %v3100_v25, %v3101_v11 }
 0x5c8   : > { %v3248_v55 = vpop.permute.xlu0 %3247  ;;  %v8517_v56 = vpop.permute.xlu1 %3406  ;;  %v3106_v37 = vsel %vm992_vm14, %v3091_v46, %v3105_v57 }
 0x5c9   : > { %v6115_v5 = vcombine.low %v8325_v34, %v3106_v37  ;;  %v6011_v23 = vcombine.high %v5976_v52, %v3106_v37  ;;  %v3257_v61 = vrot.slane %v3248_v55, 4  ;;  %v3415_v24 = vrot.slane %v8517_v56, 4 }
 0x5cb   : > { %3748 = vmatprep.subr.bf16.mxu0 %v6011_v23  ;;  %v3262_v12 = vsel %vm990_vm1, %v3257_v61, %v3258_v21 }
 0x5cc   : > { %v3405_v31 = vpop.permute.xlu0 %3404  ;;  %3749 = vmatpush1.bf16.msra.mxu0 %v6115_v5  ;;  %v3154_v14 = vpop.permute.xlu1 %3153  ;;  %v3263_v18 = vsel %vm9657_vm12, %v3248_v55, %v3262_v12 }
 0x5cd   : > { %v3163_v45 = vrot.slane %v3154_v14, 4  ;;  %v3414_v17 = vrot.slane %v3405_v31, 4 }
 0x5cf   : > { %v3419_v60 = vsel %vm990_vm1, %v3414_v17, %v3415_v24 }
 0x5d0   : > { %v8524_v13 = vpop.permute.xlu0 %3155  ;;  %v3217_v40 = vpop.permute.xlu1 %3216  ;;  %v3420_v27 = vsel %vm9945_vm4, %v3405_v31, %v3419_v60  ;;  %vm9954_vm4 = vmmov %vm9947_vm9 }
 0x5d1   : > { %v3164_v43 = vrot.slane %v8524_v13, 4  ;;  %v3226_v62 = vrot.slane %v3217_v40, 4 }
 0x5d3   : > { %v3168_v34 = vsel %vm990_vm1, %v3163_v45, %v3164_v43 }
 0x5d4   : > { %v8527_v59 = vpop.permute.xlu0 %3218  ;;  %v8529_v50 = vpop.permute.xlu1 %3312  ;;  %v3169_v38 = vsel %vm1145_vm0, %v3154_v14, %v3168_v34 }
 0x5d5   : > { %v3227_v22 = vrot.slane %v8527_v59, 4  ;;  %v3321_v30 = vrot.slane %v8529_v50, 4 }
 0x5d7   : > { %v3231_v52 = vsel %vm990_vm1, %v3226_v62, %v3227_v22 }
 0x5d8   : > { %v3311_v2 = vpop.permute.xlu0 %3310  ;;  %v8542_v28 = vpop.permute.xlu1 %3375  ;;  %v3232_v54 = vsel %vm9656_vm13, %v3217_v40, %v3231_v52  ;;  %v8586_v52 = vld [vmem:[#allocation10] sm:$0xf] }
 0x5d9   : > { %v3320_v15 = vrot.slane %v3311_v2, 4  ;;  %v6018_v29 = vcombine.low %v3169_v38, %v3232_v54  ;;  %v6019_v26 = vcombine.high %v3169_v38, %v3232_v54  ;;  %v3384_v20 = vrot.slane %v8542_v28, 4 }
 0x5db   : > { %v3325_v51 = vsel %vm990_vm1, %v3320_v15, %v3321_v30  ;;  %3750 = vmatprep.subr.bf16.mxu0 %v6019_v26 }
 0x5dc   : > { %v3326_v36 = vsel %vm1371_vm15, %v3311_v2, %v3325_v51  ;;  %v3374_v4 = vpop.permute.xlu0 %3373  ;;  %3751 = vmatpush1.bf16.msra.mxu0 %v6018_v29  ;;  %v8556_v35 = vpop.permute.xlu1 %3469 }
 0x5dd   : > { %v6026_v6 = vcombine.low %v3263_v18, %v3326_v36  ;;  %v3383_v44 = vrot.slane %v3374_v4, 4  ;;  %v6027_v7 = vcombine.high %v3263_v18, %v3326_v36  ;;  %v3478_v9 = vrot.slane %v8556_v35, 4 }
 0x5df   : > { %v3388_v3 = vsel %vm990_vm1, %v3383_v44, %v3384_v20  ;;  %3752 = vmatprep.subr.bf16.mxu0 %v6027_v7 }
 0x5e0   : > { %v3389_v49 = vsel %vm9635_vm5, %v3374_v4, %v3388_v3  ;;  %v3468_v53 = vpop.permute.xlu0 %3467  ;;  %3753 = vmatpush1.bf16.msra.mxu0 %v6026_v6  ;;  %v3095_v47 = vpop.permute.xlu1 %3094 }
 0x5e1   : > { %v6034_v48 = vcombine.low %v3389_v49, %v3420_v27  ;;  %v3477_v42 = vrot.slane %v3468_v53, 4  ;;  %v3102_v46 = vrot.slane %v3095_v47, 4  ;;  %v6035_v25 = vcombine.high %v3389_v49, %v3420_v27 }
 0x5e3   : > { %v3482_v57 = vsel %vm990_vm1, %v3477_v42, %v3478_v9  ;;  %3754 = vmatprep.subr.bf16.mxu0 %v6035_v25  ;;  %v3107_v55 = vsel %vm990_vm1, %v3101_v11, %v3102_v46 }
 0x5e4   : > { %v3483_v37 = vsel %vm9946_vm6, %v3468_v53, %v3482_v57  ;;  %v8570_v5 = vpop.permute.xlu0 %3251  ;;  %3755 = vmatpush1.bf16.msra.mxu0 %v6034_v48  ;;  %v8572_v23 = vpop.permute.xlu1 %3253  ;;  %v3108_v31 = vsel %vm992_vm14, %v8511_v8, %v3107_v55 }
 0x5e5   : > { %v6042_v14 = vcombine.low %v3483_v37, %v3483_v37  ;;  %v6043_v40 = vcombine.high %v3483_v37, %v3483_v37  ;;  %v6116_v45 = vcombine.low %v8339_v33, %v3108_v31  ;;  %v6013_v61 = vcombine.high %v5977_v16, %v3108_v31 }
 0x5e6   : > { %v3259_v54 = vrot.slane %v8570_v5, 4  ;;  %v3260_v48 = vrot.slane %v8572_v23, 4 }
 0x5e7   : > { %6050 = vmatprep.subr.msk.bf16.mxu0 %vm990_vm1, %v6043_v40  ;;  %v3725_v11 = vsel %vm990_vm1, %v6042_v14, 0  ;;  %3789 = vmatprep.subr.bf16.mxu1 %v6013_v61 }
 0x5e8   : > { %v8582_v62 = vpop.permute.xlu0 %3096  ;;  %3757 = vmatpush1.bf16.msra.mxu0 %v3725_v11  ;;  %v8584_v34 = vpop.permute.xlu1 %3255  ;;  %3790 = vmatpush1.bf16.msra.mxu1 %v6116_v45  ;;  %v3264_v39 = vsel %vm990_vm1, %v3258_v21, %v3259_v54  ;;  %v3266_v40 = vsel %vm990_vm1, %v3259_v54, %v3260_v48 }
 0x5e9   : > { %v3103_v8 = vrot.slane %v8582_v62, 4  ;;  %v3265_v3 = vsel %vm9657_vm12, %v8513_v19, %v3264_v39  ;;  %v3261_v54 = vrot.slane %v8584_v34, 4 }
 0x5eb   : > { %6051 = vmatmul.mubr.msk.bf16.vlgmr.msra.gmra.mrb[12].mxu0 %vm9947_vm9, %v8586_v52  ;;  %v3109_v33 = vsel %vm990_vm1, %v3102_v46, %v3103_v8  ;;  %vm9955_vm9 = vmmov %vm9954_vm4 }
 0x5ec   : > { %v8592_v32 = vpop.permute.xlu0 %3408  ;;  %v3221_v16 = vpop.permute.xlu1 %3220  ;;  %v3110_v12 = vsel %vm992_vm14, %v3095_v47, %v3109_v33  ;;  %3862 = vmatprep.mubr.bf16.mxu0 %v9756_v1 }
 0x5ed   : > { %v3228_v17 = vrot.slane %v3221_v16, 4  ;;  %v6117_v2 = vcombine.low %v8395_v0, %v3110_v12  ;;  %v6015_v38 = vcombine.high %v5978_v63, %v3110_v12  ;;  %v3416_v60 = vrot.slane %v8592_v32, 4 }
 0x5ef   : > { %3830 = vmatprep.subr.bf16.mxu0 %v6015_v38  ;;  %v3233_v18 = vsel %vm990_vm1, %v3227_v22, %v3228_v17 }
 0x5f0   : > { %v3158_v15 = vpop.permute.xlu0 %3157  ;;  %3831 = vmatpush1.bf16.msra.mxu0 %v6117_v2  ;;  %v8601_v29 = vpop.permute.xlu1 %3314  ;;  %v3234_v6 = vsel %vm9656_vm13, %v8527_v59, %v3233_v18  ;;  %v3421_v59 = vsel %vm990_vm1, %v3415_v24, %v3416_v60 }
 0x5f1   : > { %v3165_v26 = vrot.slane %v3158_v15, 4  ;;  %v3322_v51 = vrot.slane %v8601_v29, 4 }
 0x5f3   : > { %v3170_v0 = vsel %vm990_vm1, %v3164_v43, %v3165_v26  ;;  %v3327_v63 = vsel %vm990_vm1, %v3321_v30, %v3322_v51 }
 0x5f4   : > { %v3099_v36 = vpop.permute.xlu0 %3098  ;;  %v8617_v4 = vpop.permute.xlu1 %3377  ;;  %v3171_v22 = vsel %vm1145_vm0, %v8524_v13, %v3170_v0  ;;  %v3328_v43 = vsel %vm1371_vm15, %v8529_v50, %v3327_v63 }
 0x5f5   : > { %v3385_v44 = vrot.slane %v8617_v4, 4  ;;  %v6020_v7 = vcombine.low %v3171_v22, %v3234_v6  ;;  %v6021_v21 = vcombine.high %v3171_v22, %v3234_v6  ;;  %v6029_v30 = vcombine.high %v3265_v3, %v3328_v43 }
 0x5f6   : > { %v3104_v50 = vrot.slane %v3099_v36, 4  ;;  %v6028_v47 = vcombine.low %v3265_v3, %v3328_v43  ;;  %v3268_v22 = vsel %vm990_vm1, %v3260_v48, %v3261_v54 }
 0x5f7   : > { %3791 = vmatprep.subr.bf16.mxu1 %v6021_v21  ;;  %v3390_v13 = vsel %vm990_vm1, %v3384_v20, %v3385_v44  ;;  %v3422_v20 = vsel %vm9948_vm2, %v8517_v56, %v3421_v59  ;;  %v3269_v48 = vsel %vm9657_vm12, %v8572_v23, %v3268_v22  ;;  %vm9965_vm2 = vcmask 261120  }
 0x5f8   : > { %v8638_v27 = vpop.permute.xlu0 %3410  ;;  %3792 = vmatpush1.bf16.msra.mxu1 %v6020_v7  ;;  %v8640_v49 = vpop.permute.xlu1 %3159  ;;  %v3391_v19 = vsel %vm9635_vm5, %v8542_v28, %v3390_v13  ;;  %v3111_v24 = vsel %vm990_vm1, %v3103_v8, %v3104_v50 }
 0x5f9   : > { %v3166_v53 = vrot.slane %v8640_v49, 4  ;;  %3793 = vmatprep.subr.bf16.mxu1 %v6029_v30  ;;  %v6037_v42 = vcombine.high %v3391_v19, %v3422_v20  ;;  %v6036_v37 = vcombine.low %v3391_v19, %v3422_v20  ;;  %v3112_v14 = vsel %vm992_vm14, %v8582_v62, %v3111_v24 }
 0x5fa   : > { %v3417_v45 = vrot.slane %v8638_v27, 4  ;;  %v6017_v18 = vcombine.high %v5979_v41, %v3112_v14  ;;  %v6118_v43 = vcombine.low %v8428_v58, %v3112_v14 }
 0x5fb   : > { %v3172_v28 = vsel %vm990_vm1, %v3165_v26, %v3166_v53 }
 0x5fc   : > { %v3223_v46 = vpop.permute.xlu0 %3222  ;;  %3794 = vmatpush1.bf16.msra.mxu1 %v6028_v47  ;;  %v8649_v25 = vpop.permute.xlu1 %3471  ;;  %v3173_v33 = vsel %vm1145_vm0, %v3158_v15, %v3172_v28  ;;  %v3423_v10 = vsel %vm990_vm1, %v3416_v60, %v3417_v45 }
 0x5fd   : > { %v3229_v57 = vrot.slane %v3223_v46, 4  ;;  %v3479_v55 = vrot.slane %v8649_v25, 4  ;;  %3795 = vmatprep.subr.bf16.mxu1 %v6037_v42  ;;  %v3424_v3 = vsel %vm9951_vm7, %v8592_v32, %v3423_v10  ;;  %vm9968_vm7 = vmmov %vm9965_vm2 }
 0x5ff   : > { %v3484_v56 = vsel %vm990_vm1, %v3478_v9, %v3479_v55  ;;  %v3235_v31 = vsel %vm990_vm1, %v3228_v17, %v3229_v57 }
 0x600   : > { %v3317_v61 = vpop.permute.xlu0 %3316  ;;  %3796 = vmatpush1.bf16.msra.mxu1 %v6036_v37  ;;  %v3162_v11 = vpop.permute.xlu1 %3161  ;;  %v3485_v8 = vsel %vm9949_vm8, %v8556_v35, %v3484_v56  ;;  %v3236_v12 = vsel %vm9656_vm13, %v3221_v16, %v3235_v31  ;;  %v3267_v35 = vsel %vm9657_vm12, %v8570_v5, %v3266_v40  ;;  %vm9966_vm8 = vmmov %vm9965_vm2 }
 0x601   : > { %v3323_v9 = vrot.slane %v3317_v61, 4  ;;  %v3167_v2 = vrot.slane %v3162_v11, 4  ;;  %v6045_v17 = vcombine.high %v3485_v8, %v3485_v8  ;;  %v6022_v38 = vcombine.low %v3173_v33, %v3236_v12 }
 0x602   : > { %v6023_v26 = vcombine.high %v3173_v33, %v3236_v12  ;;  %v6044_v62 = vcombine.low %v3485_v8, %v3485_v8 }
 0x603   : > { %6052 = vmatprep.subr.msk.bf16.mxu1 %vm990_vm1, %v6045_v17  ;;  %v3329_v15 = vsel %vm990_vm1, %v3322_v51, %v3323_v9  ;;  %v3174_v16 = vsel %vm990_vm1, %v3166_v53, %v3167_v2 }
 0x604   : > { %3832 = vmatprep.subr.bf16.mxu0 %v6023_v26  ;;  %v3225_v0 = vpop.permute.xlu0 %3224  ;;  %v3731_v39 = vsel %vm990_vm1, %v6044_v62, 0  ;;  %v3380_v63 = vpop.permute.xlu1 %3379  ;;  %v3330_v34 = vsel %vm1371_vm15, %v8601_v29, %v3329_v15  ;;  %v3175_v30 = vsel %vm1145_vm0, %v8640_v49, %v3174_v16 }
 0x605   : > { %v3230_v41 = vrot.slane %v3225_v0, 4  ;;  %3798 = vmatpush1.bf16.msra.mxu1 %v3731_v39  ;;  %3833 = vmatpush1.bf16.msra.mxu0 %v6022_v38  ;;  %v3386_v5 = vrot.slane %v3380_v63, 4  ;;  %v6030_v51 = vcombine.low %v3267_v35, %v3330_v34  ;;  %v6031_v36 = vcombine.high %v3267_v35, %v3330_v34  ;;  %v9956_v39 = vld [vmem:[#allocation68_spill] sm:$0xff] }
 0x606   : > { %3871 = vmatprep.subr.bf16.mxu1 %v6017_v18 }
 0x607   : > { %v3237_v6 = vsel %vm990_vm1, %v3229_v57, %v3230_v41  ;;  %3834 = vmatprep.subr.bf16.mxu0 %v6031_v36  ;;  %v3392_v29 = vsel %vm990_vm1, %v3385_v44, %v3386_v5 }
 0x608   : > { %6053 = vmatmul.mubr.msk.bf16.vlgmr.msra.gmra.mrb[20].mxu1 %vm9950_vm10, %v8586_v52  ;;  %v3319_v60 = vpop.permute.xlu0 %3318  ;;  %v3474_v7 = vpop.permute.xlu1 %3473  ;;  %v3393_v21 = vsel %vm9635_vm5, %v8617_v4, %v3392_v29  ;;  %v3238_v58 = vsel %vm9656_vm13, %v3223_v46, %v3237_v6  ;;  %vm9967_vm10 = vmmov %vm9965_vm2 }
 0x609   : > { %v3324_v13 = vrot.slane %v3319_v60, 4  ;;  %3835 = vmatpush1.bf16.msra.mxu0 %v6030_v51  ;;  %3872 = vmatpush1.bf16.msra.mxu1 %v6118_v43  ;;  %v3480_v44 = vrot.slane %v3474_v7, 4  ;;  %v6038_v59 = vcombine.low %v3393_v21, %v3424_v3  ;;  %v6039_v50 = vcombine.high %v3393_v21, %v3424_v3  ;;  %v9959_v3 = vld [vmem:[#allocation71_spill] sm:$0xff] }
 0x60a   : > { %v6024_v19 = vcombine.low %v3175_v30, %v3238_v58  ;;  %v6025_v53 = vcombine.high %v3175_v30, %v3238_v58  ;;  %3903 = vmatprep.mubr.bf16.mxu1 %v9756_v1 }
 0x60b   : > { %v3331_v4 = vsel %vm990_vm1, %v3323_v9, %v3324_v13  ;;  %v3486_v32 = vsel %vm990_vm1, %v3479_v55, %v3480_v44  ;;  %3836 = vmatprep.subr.bf16.mxu0 %v6039_v50 }
 0x60c   : > { %3873 = vmatprep.subr.bf16.mxu1 %v6025_v53  ;;  %v3382_v49 = vpop.permute.xlu0 %3381  ;;  %v3413_v47 = vpop.permute.xlu1 %3412  ;;  %v3487_v20 = vsel %vm9952_vm11, %v8649_v25, %v3486_v32  ;;  %v3332_v42 = vsel %vm1371_vm15, %v3317_v61, %v3331_v4  ;;  %vm9969_vm11 = vmmov %vm9965_vm2 }
 0x60d   : > { %v3387_v24 = vrot.slane %v3382_v49, 4  ;;  %3837 = vmatpush1.bf16.msra.mxu0 %v6038_v59  ;;  %3874 = vmatpush1.bf16.msra.mxu1 %v6024_v19  ;;  %v3418_v46 = vrot.slane %v3413_v47, 4  ;;  %v6047_v57 = vcombine.high %v3487_v20, %v3487_v20  ;;  %v6032_v28 = vcombine.low %v3269_v48, %v3332_v42  ;;  %v9960_v47 = vld [vmem:[#allocation72_spill] sm:$0xff] }
 0x60e   : > { %v6033_v37 = vcombine.high %v3269_v48, %v3332_v42  ;;  %v6046_v55 = vcombine.low %v3487_v20, %v3487_v20  ;;  %v9961_v48 = vld [vmem:[#allocation73_spill] sm:$0xff] }
 0x60f   : > { %v3394_v56 = vsel %vm990_vm1, %v3386_v5, %v3387_v24  ;;  %v3425_v31 = vsel %vm990_vm1, %v3417_v45, %v3418_v46  ;;  %6054 = vmatprep.subr.msk.bf16.mxu0 %vm990_vm1, %v6047_v57 }
 0x610   : > { %3875 = vmatprep.subr.bf16.mxu1 %v6033_v37  ;;  %v3476_v23 = vpop.permute.xlu0 %3475  ;;  %v3737_v25 = vsel %vm990_vm1, %v6046_v55, 0  ;;  %v3395_v14 = vsel %vm9635_vm5, %v3380_v63, %v3394_v56  ;;  %v3426_v40 = vsel %vm9953_vm3, %v8638_v27, %v3425_v31  ;;  %vm9970_vm3 = vmmov %vm9965_vm2 }
 0x611   : > { %v3481_v61 = vrot.slane %v3476_v23, 4  ;;  %3839 = vmatpush1.bf16.msra.mxu0 %v3737_v25  ;;  %3876 = vmatpush1.bf16.msra.mxu1 %v6032_v28  ;;  %v6040_v11 = vcombine.low %v3395_v14, %v3426_v40  ;;  %v6041_v8 = vcombine.high %v3395_v14, %v3426_v40  ;;  %v6423_v28 = vld [vmem:[%s9962_s7] sm:$0xff]   ;;  %v9963_v40 = vld [vmem:[#allocation74_spill] sm:$0xff] }
 0x612   : > { %6138 = vmatprep.subr.bf16.mxu0 %v6423_v28 }
 0x613   : > { %v3488_v33 = vsel %vm990_vm1, %v3480_v44, %v3481_v61  ;;  %3877 = vmatprep.subr.bf16.mxu1 %v6041_v8 }
 0x614   : > { %6055 = vmatmul.mubr.msk.bf16.vlgmr.msra.gmra.mrb[16].mxu0 %vm9954_vm4, %v8586_v52  ;;  %v3489_v45 = vsel %vm9946_vm6, %v3474_v7, %v3488_v33  ;;  %v9958_v7 = vld [vmem:[#allocation70_spill] sm:$0xff]  ;;  %v6424_v33 = vld [vmem:[%s9962_s7 + $0x8] sm:$0xff]   ;;  %vm9971_vm4 = vmmov %vm9965_vm2 }
 0x615   : > { %3878 = vmatpush1.bf16.msra.mxu1 %v6040_v11  ;;  %v6049_v12 = vcombine.high %v3489_v45, %v3489_v45  ;;  %v6048_v9 = vcombine.low %v3489_v45, %v3489_v45  ;;  %6139 = vmatpush3.bf16.msra.mxu0 %v6423_v28  ;;  %v9964_v11 = vld [vmem:[#allocation75_spill] sm:$0xff]  ;;  %vm9972_vm6 = vmmov %vm9965_vm2 }
 0x616   : > { %6140 = vmatprep.subr.bf16.mxu0 %v6424_v33 }
 0x617   : > { %6056 = vmatprep.subr.msk.bf16.mxu1 %vm990_vm1, %v6049_v12  ;;  %v3743_v27 = vsel %vm990_vm1, %v6048_v9, 0 }
 0x619   : > { %3880 = vmatpush1.bf16.msra.mxu1 %v3743_v27  ;;  %6141 = vmatpush3.bf16.msra.mxu0 %v6424_v33 }
 0x61c   : > { %6057 = vmatmul.mubr.msk.bf16.vlgmr.msra.gmra.mrb[24].mxu1 %vm9955_vm9, %v8586_v52  ;;  %v9957_v52 = vld [vmem:[#allocation69_spill] sm:$0xff] }
 0x61d   : > { %4570 = vmatprep.mubr.bf16.mxu1 %v9756_v1  ;;  %v3539_v2 = vpop.permute.xlu1 %3538 }
 0x6be   : > { %v3782_v17 = vpop.f32.mrb[12].mxu0 }
 0x6bf   : > { %v3784_v38 = vpop.f32.mrb[13].mxu0  ;;  %v3783_v26 = vadd.f32 %v3782_v17, %v3539_v2 }
 0x6c0   : > { %v3785_v62 = vadd.f32 %v3784_v38, %v3539_v2  ;;  %v3786_v54 = vpop.f32.mrb[14].mxu0 }
 0x6c1   : > { %v3912_v18 = vmul.f32 0.01, %v3783_v26  ;;  %v3787_v35 = vpop.f32.mrb[15].mxu0 }
 0x6c2   : > { %v3913_v15 = vmul.f32 0.01, %v3785_v62 }
 0x6c3   : > { %v3920_v16 = vmax.f32 %v3783_v26, %v3912_v18 }
 0x6c4   : > { %v3921_v0 = vmax.f32 %v3785_v62, %v3913_v15 }
 0x6c5   : > { %v3928_v63 = vadd.f32 %v3920_v16, %v9956_v39 }
 0x6c6   : > { %v8733_v34 = vadd.f32 %v3921_v0, %v9957_v52 }
 0x6c7   : > { %3945 = vrot.lane.b32.xlu0 %v3928_v63, %s6706_s27  ;;  %3936 = vst [vmem:[%s8736_s21] sm:$0xff] %v3928_v63 }
 0x6c8   : > { %3937 = vst [vmem:[%s8736_s21 + $0x8] sm:$0xff] %v8733_v34  ;;  %3950 = vrot.lane.b32.xlu1 %v8733_v34, %s6706_s27 }
 0x6db   : > { %v3823_v10 = vpop.f32.mrb[20].mxu1 }
 0x6dc   : > { %v3824_v41 = vadd.f32 %v3823_v10, %v3539_v2  ;;  %v3825_v5 = vpop.f32.mrb[21].mxu1 }
 0x6dd   : > { %v3826_v51 = vadd.f32 %v3825_v5, %v3539_v2  ;;  %v3827_v36 = vpop.f32.mrb[22].mxu1 }
 0x6de   : > { %v3914_v22 = vmul.f32 0.01, %v3824_v41  ;;  %v3828_v6 = vpop.f32.mrb[23].mxu1 }
 0x6df   : > { %v3915_v43 = vmul.f32 0.01, %v3826_v51 }
 0x6e0   : > { %v3922_v29 = vmax.f32 %v3824_v41, %v3914_v22 }
 0x6e1   : > { %v3923_v60 = vmax.f32 %v3826_v51, %v3915_v43 }
 0x6e2   : > { %v3930_v21 = vadd.f32 %v3922_v29, %v9958_v7 }
 0x6e3   : > { %v3931_v30 = vadd.f32 %v3923_v60, %v9959_v3 }
 0x6e4   : > { %3938 = vst [vmem:[%s8736_s21 + $0x10] sm:$0xff] %v3930_v21  ;;  %3955 = vrot.lane.b32.xlu0 %v3930_v21, %s6706_s27 }
 0x6e5   : > { %3939 = vst [vmem:[%s8736_s21 + $0x18] sm:$0xff] %v3931_v30  ;;  %3960 = vrot.lane.b32.xlu1 %v3931_v30, %s6706_s27 }
 0x6e7   : > { %v3864_v58 = vpop.f32.mrb[16].mxu0 }
 0x6e8   : > { %v3865_v13 = vadd.f32 %v3864_v58, %v3539_v2  ;;  %v3866_v44 = vpop.f32.mrb[17].mxu0 }
 0x6e9   : > { %v3867_v59 = vadd.f32 %v3866_v44, %v3539_v2  ;;  %v3868_v50 = vpop.f32.mrb[18].mxu0 }
 0x6ea   : > { %v3916_v19 = vmul.f32 0.01, %v3865_v13  ;;  %v3869_v53 = vpop.f32.mrb[19].mxu0 }
 0x6eb   : > { %v3917_v4 = vmul.f32 0.01, %v3867_v59 }
 0x6ec   : > { %v3924_v32 = vmax.f32 %v3865_v13, %v3916_v19 }
 0x6ed   : > { %v3925_v49 = vmax.f32 %v3867_v59, %v3917_v4 }
 0x6ee   : > { %v3932_v20 = vadd.f32 %v3924_v32, %v9960_v47 }
 0x6ef   : > { %v3933_v42 = vadd.f32 %v3925_v49, %v9961_v48  ;;  %v3905_v24 = vpop.f32.mrb[24].mxu1 }
 0x6f0   : > { %3940 = vst [vmem:[%s8736_s21 + $0x20] sm:$0xff] %v3932_v20  ;;  %v3906_v46 = vadd.f32 %v3905_v24, %v3539_v2  ;;  %v3907_v57 = vpop.f32.mrb[25].mxu1  ;;  %3965 = vrot.lane.b32.xlu0 %v3932_v20, %s6706_s27 }
 0x6f1   : > { %3941 = vst [vmem:[%s8736_s21 + $0x28] sm:$0xff] %v3933_v42  ;;  %v3908_v37 = vadd.f32 %v3907_v57, %v3539_v2  ;;  %v3909_v55 = vpop.f32.mrb[26].mxu1  ;;  %3970 = vrot.lane.b32.xlu1 %v3933_v42, %s6706_s27 }
 0x6f2   : > { %v3918_v56 = vmul.f32 0.01, %v3906_v46  ;;  %v3910_v31 = vpop.f32.mrb[27].mxu1 }
 0x6f3   : > { %v3919_v23 = vmul.f32 0.01, %v3908_v37 }
 0x6f4   : > { %v3926_v25 = vmax.f32 %v3906_v46, %v3918_v56 }
 0x6f5   : > { %v3927_v14 = vmax.f32 %v3908_v37, %v3919_v23  ;;  %v9973_v23 = vld [vmem:[#allocation29_spill] sm:$0xff] }
 0x6f6   : > { %v3934_v61 = vadd.f32 %v3926_v25, %v9963_v40  ;;  %v4242_v25 = vand.u32 15, %v9973_v23 }
 0x6f7   : > { %v3935_v8 = vadd.f32 %v3927_v14, %v9964_v11  ;;  %v9974_v14 = vld [vmem:[#allocation30_spill] sm:$0xff] }
 0x6f8   : > { %3942 = vst [vmem:[%s8736_s21 + $0x30] sm:$0xff] %v3934_v61  ;;  %3975 = vrot.lane.b32.xlu0 %v3934_v61, %s6706_s27  ;;  %v4249_v40 = vand.u32 15, %v9974_v14  ;;  %vm8784_vm9 = vcmp.ne.s32.totalorder %v4242_v25, 0 }
 0x6f9   : > { %3943 = vst [vmem:[%s8736_s21 + $0x38] sm:$0xff] %v3935_v8  ;;  %3980 = vrot.lane.b32.xlu1 %v3935_v8, %s6706_s27 }
 0x739   : > { %v3946_v45 = vpop.permute.xlu0 %3945 }
 0x73a   : > { %v3948_v12 = vadd.f32 %v3946_v45, %v3928_v63  ;;  %v3951_v9 = vpop.permute.xlu1 %3950 }
 0x73b   : > { %v3953_v27 = vadd.f32 %v3951_v9, %v8733_v34 }
 0x73d   : > { %v6303_v2 = vpack.i.bf16 %v3953_v27, %v3948_v12 }
 0x73f   : > { %6304 = vrot.lane.b32.xlu0 %v6303_v2, %s9654_s20 }
 0x756   : > { %v3956_v17 = vpop.permute.xlu0 %3955 }
 0x757   : > { %v3958_v38 = vadd.f32 %v3956_v17, %v3930_v21  ;;  %v3961_v26 = vpop.permute.xlu1 %3960 }
 0x758   : > { %v3963_v62 = vadd.f32 %v3961_v26, %v3931_v30 }
 0x75a   : > { %v6308_v54 = vpack.i.bf16 %v3963_v62, %v3958_v38 }
 0x75c   : > { %6309 = vrot.lane.b32.xlu1 %v6308_v54, %s9654_s20  ;;  %v9983_v54 = vld [vmem:[#allocation31_spill] sm:$0xff] }
 0x762   : > { %v3966_v18 = vpop.permute.xlu0 %3965 }
 0x763   : > { %v3968_v35 = vadd.f32 %v3966_v18, %v3932_v20  ;;  %v3971_v15 = vpop.permute.xlu1 %3970 }
 0x764   : > { %v3973_v16 = vadd.f32 %v3971_v15, %v3933_v42 }
 0x766   : > { %v6313_v0 = vpack.i.bf16 %v3973_v16, %v3968_v35 }
 0x768   : > { %6314 = vrot.lane.b32.xlu0 %v6313_v0, %s9654_s20 }
 0x76a   : > { %v3976_v39 = vpop.permute.xlu0 %3975 }
 0x76b   : > { %v3978_v63 = vadd.f32 %v3976_v39, %v3934_v61  ;;  %v3981_v52 = vpop.permute.xlu1 %3980 }
 0x76c   : > { %v3983_v34 = vadd.f32 %v3981_v52, %v3935_v8 }
 0x76e   : > { %v6318_v10 = vpack.i.bf16 %v3983_v34, %v3978_v63 }
 0x770   : > { %6319 = vrot.lane.b32.xlu1 %v6318_v10, %s9654_s20 }
 0x7b1   : > { %v6305_v41 = vpop.permute.xlu0 %6304 }
 0x7b2   : > { %v6307_v5 = vunpack.i.h.bf16 %v6305_v41  ;;  %v6306_v51 = vunpack.i.l.bf16 %v6305_v41 }
 0x7b4   : > { %v4017_v36 = vpack.c.bf16 %v6307_v5, %v3953_v27  ;;  %v4016_v22 = vpack.c.bf16 %v6306_v51, %v3948_v12 }
 0x7b6   : > { %6142 = vmatprep.mubr.msk.bf16.mxu0 %vm9965_vm2, %v4016_v22  ;;  %vm8788_vm2 = vcmp.ne.s32.totalorder %v4249_v40, 0 }
 0x7b7   : > { %6143 = vmatmul.mubr.msk.bf16.vlgmr.msra.gmra.mrb[20].mxu0 %vm9966_vm8, %v4017_v36  ;;  %vm4288_vm8 = vmpackc.low %vm8788_vm2, %vm8784_vm9  ;;  %vm4225_vm2 = vcmask 654336  }
 0x7b8   : > { %vm9985_vm9 = vmmov %vm9972_vm6 }
 0x7ce   : > { %v6310_v6 = vpop.permute.xlu1 %6309 }
 0x7cf   : > { %v6312_v43 = vunpack.i.h.bf16 %v6310_v6  ;;  %v6311_v29 = vunpack.i.l.bf16 %v6310_v6 }
 0x7d1   : > { %v4019_v60 = vpack.c.bf16 %v6312_v43, %v3963_v62  ;;  %v4018_v7 = vpack.c.bf16 %v6311_v29, %v3958_v38  ;;  %v4289_v62 = vsel %vm4288_vm8, 65537, %v9756_v1  ;;  %vm4229_vm8 = vcmask 916480  }
 0x7d2   : > { %v8813_v18 = vrot.slane %v4289_v62, %v9983_v54 }
 0x7d3   : > { %6146 = vmatprep.mubr.msk.bf16.mxu0 %vm9967_vm10, %v4018_v7  ;;  %vm8797_vm10 = vcmp.ne.s32.totalorder %v4242_v25, 15 }
 0x7d4   : > { %6147 = vmatmul.mubr.msk.bf16.gmra.mrb[24].mxu0 %vm9968_vm7, %v4019_v60  ;;  %vm8801_vm7 = vcmp.ne.s32.totalorder %v4249_v40, 15 }
 0x7da   : > { %v6315_v21 = vpop.permute.xlu0 %6314 }
 0x7db   : > { %v6317_v3 = vunpack.i.h.bf16 %v6315_v21  ;;  %v6316_v30 = vunpack.i.l.bf16 %v6315_v21 }
 0x7dd   : > { %v4021_v58 = vpack.c.bf16 %v6317_v3, %v3973_v16  ;;  %v4020_v13 = vpack.c.bf16 %v6316_v30, %v3968_v35  ;;  %v9984_v35 = vld [vmem:[#allocation32_spill] sm:$0xff] }
 0x7de   : > { %v8817_v15 = vrot.slane %v4289_v62, %v9984_v35 }
 0x7df   : > { %6150 = vmatprep.mubr.msk.bf16.mxu0 %vm9969_vm11, %v4020_v13  ;;  %vm4325_vm11 = vmpackc.low %vm8801_vm7, %vm8797_vm10  ;;  %vm4274_vm10 = vcmask 138240   ;;  %vm4298_vm7 = vcmp.ne.s16.totalorder %v8813_v18, 0 }
 0x7e0   : > { %6151 = vmatmul.mubr.msk.bf16.gmra.mrb[28].mxu0 %vm9970_vm3, %v4021_v58  ;;  %vm9645_vm3 = vcmask 130048  }
 0x7e2   : > { %v6320_v44 = vpop.permute.xlu1 %6319 }
 0x7e3   : > { %v6322_v59 = vunpack.i.h.bf16 %v6320_v44  ;;  %v6321_v50 = vunpack.i.l.bf16 %v6320_v44 }
 0x7e5   : > { %v4023_v19 = vpack.c.bf16 %v6322_v59, %v3983_v34  ;;  %v4022_v53 = vpack.c.bf16 %v6321_v50, %v3978_v63 }
 0x7e7   : > { %6154 = vmatprep.mubr.msk.bf16.mxu0 %vm9971_vm4, %v4022_v53  ;;  %vm9637_vm4 = vcmask 392192  }
 0x7e8   : > { %6155 = vmatmul.mubr.msk.bf16.gmra.mrb[32].mxu0 %vm9972_vm6, %v4023_v19 }
 0x88a   : > { %v6144_v4 = vpop.f32.mrb[20].mxu0 }
 0x88b   : > { %v4099_v32 = vpop.f32.mrb[21].mxu0 }
 0x88c   : > { %v6145_v49 = vpop.f32.mrb[22].mxu0 }
 0x88d   : > { %v4102_v47 = vpop.f32.mrb[23].mxu0 }
 0x8a7   : > { %v6148_v20 = vpop.f32.mrb[24].mxu0 }
 0x8a8   : > { %v4115_v48 = vpop.f32.mrb[25].mxu0 }
 0x8a9   : > { %v6149_v42 = vpop.f32.mrb[26].mxu0 }
 0x8aa   : > { %v4118_v24 = vpop.f32.mrb[27].mxu0 }
 0x8b3   : > { %v6152_v46 = vpop.f32.mrb[28].mxu0 }
 0x8b4   : > { %v6323_v57 = vpack.i.bf16 %v6152_v46, %v6144_v4  ;;  %v4131_v28 = vpop.f32.mrb[29].mxu0  ;;  %v4326_v46 = vsel %vm4325_vm11, 65537, %v9756_v1  ;;  %vm9658_vm11 = vcmp.ne.s16.totalorder %v8817_v15, 0 }
 0x8b5   : > { %v6153_v37 = vpop.f32.mrb[30].mxu0 }
 0x8b6   : > { %v6328_v55 = vpack.i.bf16 %v6153_v37, %v6145_v49  ;;  %6324 = vrot.lane.b32.xlu1 %v6323_v57, %s9652_s2  ;;  %v4134_v56 = vpop.f32.mrb[31].mxu0  ;;  %v4334_v37 = vrot.slane %v4326_v46, %v9984_v35 }
 0x8b7   : > { %v6333_v31 = vpack.i.bf16 %v4134_v56, %v4102_v47 }
 0x8b8   : > { %6329 = vrot.lane.b32.xlu0 %v6328_v55, %s9634_s17  ;;  %v4330_v55 = vrot.slane %v4326_v46, %v9983_v54  ;;  %s9636_s17 = smov 18  }
 0x8bb   : > { %v6156_v8 = vpop.f32.mrb[32].mxu0 }
 0x8bc   : > { %v6343_v33 = vpack.i.bf16 %v6156_v8, %v6148_v20  ;;  %6334 = vrot.lane.b32.xlu0 %v6333_v31, %s9650_s0  ;;  %v4147_v45 = vpop.f32.mrb[33].mxu0 }
 0x8bd   : > { %v6338_v12 = vpack.i.bf16 %v4147_v45, %v4115_v48  ;;  %v6157_v9 = vpop.f32.mrb[34].mxu0 }
 0x8be   : > { %v6353_v17 = vpack.i.bf16 %v6157_v9, %v6149_v42  ;;  %v4150_v38 = vpop.f32.mrb[35].mxu0 }
 0x8bf   : > { %v6348_v26 = vpack.i.bf16 %v4150_v38, %v4118_v24  ;;  %6339 = vrot.lane.b32.xlu1 %v6338_v12, %s9654_s20  ;;  %s10035_s20 = smov 16  }
 0x8c1   : > { %6349 = vrot.lane.b32.xlu0 %v6348_v26, %s6711_s29  ;;  %s6713_s29 = smov 17  }
 0x8c3   : > { %6344 = vrot.lane.b32.xlu1 %v6343_v33, %s6706_s27 }
 0x8c5   : > { %6354 = vrot.lane.b32.xlu0 %v6353_v17, %s6712_s3 }
 0x8c7   : > { %4361 = vrot.lane.b32.xlu1 %v8813_v18, %s9650_s0 }
 0x8c9   : > { %4363 = vrot.lane.b32.xlu0 %v8817_v15, %s9650_s0  ;;  %s6719_s0 = smov 40  }
 0x928   : > { %v6325_v0 = vpop.permute.xlu1 %6324 }
 0x929   : > { %v6327_v34 = vunpack.i.h.bf16 %v6325_v0  ;;  %v6326_v10 = vunpack.i.l.bf16 %v6325_v0 }
 0x92a   : > { %v6330_v16 = vpop.permute.xlu0 %6329 }
 0x92b   : > { %v6332_v41 = vunpack.i.h.bf16 %v6330_v16  ;;  %v6331_v5 = vunpack.i.l.bf16 %v6330_v16 }
 0x92e   : > { %v6335_v39 = vpop.permute.xlu0 %6334 }
 0x92f   : > { %v6337_v63 = vunpack.i.h.bf16 %v6335_v39  ;;  %v6336_v52 = vunpack.i.l.bf16 %v6335_v39 }
 0x931   : > { %v4231_v51 = vsel %vm9645_vm3, %v4131_v28, %v6337_v63  ;;  %v4219_v36 = vsel %vm9645_vm3, %v4099_v32, %v6336_v52  ;;  %v6340_v22 = vpop.permute.xlu1 %6339 }
 0x932   : > { %v4232_v6 = vsel %vm9972_vm6, %v4231_v51, %v6327_v34  ;;  %v4220_v43 = vsel %vm9985_vm9, %v4219_v36, %v6326_v10  ;;  %v6342_v29 = vunpack.i.h.bf16 %v6340_v22  ;;  %v6341_v60 = vunpack.i.l.bf16 %v6340_v22 }
 0x933   : > { %v4222_v7 = vsel %vm9637_vm4, %v4220_v43, %v6331_v5  ;;  %v4233_v21 = vsel %vm9637_vm4, %v4232_v6, %v6332_v41  ;;  %v6350_v3 = vpop.permute.xlu0 %6349  ;;  %vm9986_vm4 = vcmask 15360  }
 0x934   : > { %v4234_v30 = vsel %vm9635_vm5, %v4233_v21, %v6342_v29  ;;  %v4224_v58 = vsel %vm9635_vm5, %v4222_v7, %v6341_v60  ;;  %v6352_v13 = vunpack.i.h.bf16 %v6350_v3  ;;  %v6351_v44 = vunpack.i.l.bf16 %v6350_v3 }
 0x935   : > { %v6345_v59 = vpop.permute.xlu1 %6344 }
 0x936   : > { %v4235_v50 = vsel %vm4225_vm2, %v4234_v30, %v6352_v13  ;;  %v4226_v19 = vsel %vm4225_vm2, %v4224_v58, %v6351_v44  ;;  %v6347_v53 = vunpack.i.h.bf16 %v6345_v59  ;;  %v6346_v4 = vunpack.i.l.bf16 %v6345_v59 }
 0x937   : > { %v6355_v32 = vpop.permute.xlu0 %6354 }
 0x938   : > { %v4228_v49 = vsel %vm9656_vm13, %v4226_v19, %v6346_v4  ;;  %v4236_v47 = vsel %vm9656_vm13, %v4235_v50, %v6347_v53  ;;  %v6357_v20 = vunpack.i.h.bf16 %v6355_v32  ;;  %v6356_v48 = vunpack.i.l.bf16 %v6355_v32  ;;  %v4512_v4 = vld [vmem:[%s9989_s9] sm:$0xff]  ;;  %v4513_v32 = vld [vmem:[%s9989_s9 + $0x8] sm:$0xff] }
 0x939   : > { %v8855_v56 = vpop.permute.xlu1 %4361 }
 0x93a   : > { %v4237_v42 = vsel %vm4229_vm8, %v4236_v47, %v6357_v20  ;;  %v4230_v24 = vsel %vm4229_vm8, %v4228_v49, %v6356_v48  ;;  %vm9639_vm6 = vcmp.ne.s16.totalorder %v8855_v56, 0 }
 0x93b   : > { %v4267_v57 = vpack.c.bf16 %v4237_v42, %v4237_v42  ;;  %v4266_v28 = vpack.c.bf16 %v4230_v24, %v4230_v24  ;;  %v8857_v31 = vpop.permute.xlu0 %4363 }
 0x93c   : > { %v8949_v22 = vsel %vm9645_vm3, %v8855_v56, %v8857_v31 }
 0x93d   : > { %4272 = vrot.lane.b32.xlu0 %v4267_v57, %s6713_s29  ;;  %4270 = vrot.lane.b32.xlu1 %v4266_v28, %s6713_s29 }
 0x941   : > { %4337 = vrot.lane.b32.xlu0 %v4334_v37, %s9649_s25  ;;  %4335 = vrot.lane.b32.xlu1 %v4330_v55, %s9649_s25  ;;  %s9661_s25 = sshll.u32 %s8728_s19, 5 }
 0x945   : > { %4407 = vrot.lane.b32.xlu0 %v4334_v37, %s9636_s17  ;;  %4405 = vrot.lane.b32.xlu1 %v4330_v55, %s9636_s17  ;;  %s6716_s17 = smov 110  }
 0x949   : > { %4438 = vrot.lane.b32.xlu0 %v8817_v15, %s9652_s2  ;;  %4436 = vrot.lane.b32.xlu1 %v8813_v18, %s9652_s2  ;;  %s9229_s2 = scalar_lea.vmem [#allocation14], %s9661_s25  ;;  %s10037_s25 = smov 2  }
 0x94d   : > { %4476 = vrot.lane.b32.xlu0 %v4334_v37, %s6699_s24  ;;  %4474 = vrot.lane.b32.xlu1 %v4330_v55, %s6699_s24  ;;  %s6715_s24 = smov 111  }
 0x9af   : > { %v4273_v25 = vpop.permute.xlu0 %4272  ;;  %v4271_v14 = vpop.permute.xlu1 %4270 }
 0x9b0   : > { %v8862_v40 = vsel %vm4274_vm10, %v4271_v14, %v4273_v25  ;;  %v8865_v61 = vsel %vm4274_vm10, 0, %v4271_v14  ;;  %v4282_v0 = vsel %vm4274_vm10, %v4273_v25, 0 }
 0x9b1   : > { %v4300_v11 = vsel %vm4298_vm7, %v8865_v61, 0  ;;  %v4301_v8 = vsel %vm9658_vm11, %v8862_v40, 0  ;;  %4392 = vrot.lane.b32.xlu0 %v8865_v61, %s6715_s24  ;;  %v4306_v33 = vrot.slane %v8865_v61, 4  ;;  %v4370_v45 = vsel %vm9639_vm6, %v8865_v61, 0 }
 0x9b2   : > { %4302 = vst [vmem:[#allocation3] sm:$0xf] %v4300_v11  ;;  %4303 = vst [vmem:[#allocation3 + $0x8] sm:$0xf] %v4301_v8  ;;  %v4376_v2 = vrot.slane %v4370_v45, 4  ;;  %v4307_v51 = vrot.slane %v8862_v40, 4 }
 0x9b3   : > { %4309 = vrot.lane.b32.xlu1 %v4306_v33, %s6702_s15  ;;  %v8883_v12 = vpop.permute.xlu1 %4335  ;;  %v8885_v9 = vpop.permute.xlu0 %4337  ;;  %v4308_v36 = vrot.slane %v4282_v0, 4 }
 0x9b4   : > { %vm9641_vm9 = vcmp.ne.s16.totalorder %v8883_v12, 0  ;;  %v8913_v39 = vsel %vm9986_vm4, %v8883_v12, %v8885_v9 }
 0x9b5   : > { %v4343_v27 = vsel %vm9641_vm9, %v8865_v61, 0  ;;  %vm9659_vm6 = vcmp.ne.s16.totalorder %v8913_v39, 0 }
 0x9b6   : > { %4349 = vrot.lane.b32.xlu0 %v4343_v27, %s6705_s22  ;;  %v4344_v10 = vsel %vm9659_vm6, %v8862_v40, 0 }
 0x9b7   : > { %4379 = vrot.lane.b32.xlu1 %v4376_v2, %s6712_s3  ;;  %v8893_v17 = vpop.permute.xlu1 %4405  ;;  %v8899_v26 = vpop.permute.xlu0 %4407 }
 0x9b8   : > { %vm9638_vm2 = vcmp.ne.s16.totalorder %v8893_v17, 0 }
 0x9b9   : > { %v4414_v38 = vsel %vm9638_vm2, %v8865_v61, 0  ;;  %vm9642_vm2 = vcmp.ne.s16.totalorder %v8885_v9, 0 }
 0x9ba   : > { %v4420_v62 = vrot.slane %v4414_v38, 4  ;;  %v4345_v34 = vsel %vm9642_vm2, %v4282_v0, 0  ;;  %vm4409_vm2 = vcmask 146432  }
 0x9bb   : > { %v8901_v35 = vpop.permute.xlu1 %4436  ;;  %v8916_v63 = vpop.permute.xlu0 %4438  ;;  %v8954_v6 = vsel %vm4409_vm2, %v8893_v17, %v8899_v26  ;;  %vm9988_vm2 = vcmask 277504  }
 0x9bc   : > { %vm9640_vm5 = vcmp.ne.s16.totalorder %v8901_v35, 0  ;;  %4423 = vrot.lane.b32.xlu1 %v4420_v62, %s6716_s17  ;;  %vm9643_vm4 = vcmp.ne.s16.totalorder %v8916_v63, 0  ;;  %vm9647_vm3 = vcmp.ne.s16.totalorder %v8954_v6, 0 }
 0x9bd   : > { %v4444_v16 = vsel %vm9640_vm5, %v8865_v61, 0  ;;  %vm9987_vm5 = vcmask 261120   ;;  %v4446_v41 = vsel %vm9643_vm4, %v4282_v0, 0  ;;  %vm9648_vm4 = vcmp.ne.s16.totalorder %v8949_v22, 0 }
 0x9be   : > { %4450 = vrot.lane.b32.xlu0 %v4444_v16, %s6706_s27  ;;  %v8925_v52 = vsel %vm9987_vm5, %v8901_v35, %v8916_v63  ;;  %vm9660_vm5 = vcmp.ne.s16.totalorder %v8857_v31, 0  ;;  %v4371_v29 = vsel %vm9648_vm4, %v8862_v40, 0  ;;  %v4415_v3 = vsel %vm9647_vm3, %v8862_v40, 0 }
 0x9bf   : > { %vm9644_vm9 = vcmp.ne.s16.totalorder %v8925_v52, 0  ;;  %v4372_v43 = vsel %vm9660_vm5, %v4282_v0, 0  ;;  %v4377_v21 = vrot.slane %v4371_v29, 4  ;;  %v8972_v58 = vpop.permute.xlu0 %4476  ;;  %v8974_v13 = vpop.permute.xlu1 %4474  ;;  %v4421_v44 = vrot.slane %v4415_v3, 4 }
 0x9c0   : > { %4396 = vrot.lane.b32.xlu1 %v4282_v0, %s6715_s24  ;;  %v4445_v5 = vsel %vm9644_vm9, %v8862_v40, 0  ;;  %vm9646_vm9 = vcmp.ne.s16.totalorder %v8899_v26, 0  ;;  %v4378_v60 = vrot.slane %v4372_v43, 4  ;;  %v8981_v59 = vsel %vm9988_vm2, %v8974_v13, %v8972_v58 }
 0x9c1   : > { %v4416_v7 = vsel %vm9646_vm9, %v4282_v0, 0  ;;  %vm4479_vm9 = vcmp.ne.s16.totalorder %v8974_v13, 0  ;;  %vm4480_vm3 = vcmp.ne.s16.totalorder %v8981_v59, 0  ;;  %vm4481_vm4 = vcmp.ne.s16.totalorder %v8972_v58, 0  ;;  %v5001_v59 = vld [vmem:[%s9465_s13 + $0x8] sm:$0xff] }
 0x9c2   : > { %4394 = vrot.lane.b32.xlu0 %v8862_v40, %s6715_s24  ;;  %v4422_v30 = vrot.slane %v4416_v7, 4  ;;  %v4482_v50 = vsel %vm4479_vm9, %v8865_v61, 0  ;;  %v4483_v19 = vsel %vm4480_vm3, %v8862_v40, 0  ;;  %v4484_v53 = vsel %vm4481_vm4, %v4282_v0, 0 }
 0x9c3   : > { %vm4398_vm2 = vcmask 908288  }
 0x9c4   : > { %4353 = vrot.lane.b32.xlu1 %v4345_v34, %s6705_s22 }
 0x9c6   : > { %4351 = vrot.lane.b32.xlu0 %v4344_v10, %s6705_s22 }
 0x9c8   : > { %4454 = vrot.lane.b32.xlu1 %v4446_v41, %s6706_s27 }
 0x9ca   : > { %4452 = vrot.lane.b32.xlu0 %v4445_v5, %s6706_s27 }
 0x9cc   : > { %4311 = vrot.lane.b32.xlu1 %v4307_v51, %s6702_s15 }
 0x9ce   : > { %4313 = vrot.lane.b32.xlu0 %v4308_v36, %s6702_s15 }
 0x9d0   : > { %4466 = vrot.lane.b32.xlu1 %v4308_v36, %s6703_s18 }
 0x9d2   : > { %4464 = vrot.lane.b32.xlu0 %v4307_v51, %s6703_s18 }
 0x9d4   : > { %4383 = vrot.lane.b32.xlu1 %v4378_v60, %s6712_s3 }
 0x9d6   : > { %4381 = vrot.lane.b32.xlu0 %v4377_v21, %s6712_s3 }
 0x9d8   : > { %4427 = vrot.lane.b32.xlu1 %v4422_v30, %s6716_s17 }
 0x9da   : > { %4425 = vrot.lane.b32.xlu0 %v4421_v44, %s6716_s17 }
 0x9dc   : > { %4462 = vrot.lane.b32.xlu1 %v4306_v33, %s6703_s18 }
 0x9de   : > { %4488 = vrot.lane.b32.xlu0 %v4482_v50, %s6707_s23 }
 0x9e0   : > { %4490 = vrot.lane.b32.xlu1 %v4483_v19, %s6707_s23 }
 0x9e2   : > { %4492 = vrot.lane.b32.xlu0 %v4484_v53, %s6707_s23 }
 0x9e4   : > { %4516 = vperm.xlu1 %6302, %v4512_v4  }
 0x9e6   : > { %4521 = vperm.xlu0 %6301, %v4513_v32  }
 0xa23   : > { %v4393_v47 = vpop.permute.xlu0 %4392 }
 0xa25   : > { %v4310_v49 = vpop.permute.xlu1 %4309 }
 0xa28   : > { %v4350_v48 = vpop.permute.xlu0 %4349 }
 0xa29   : > { %v4380_v20 = vpop.permute.xlu1 %4379 }
 0xa2e   : > { %v4424_v42 = vpop.permute.xlu1 %4423 }
 0xa30   : > { %v4451_v24 = vpop.permute.xlu0 %4450 }
 0xa32   : > { %v4397_v46 = vpop.permute.xlu1 %4396 }
 0xa34   : > { %v4395_v57 = vpop.permute.xlu0 %4394 }
 0xa35   : > { %v4399_v28 = vsel %vm4398_vm2, %v4393_v47, %v4395_v57  ;;  %v4400_v37 = vsel %vm4398_vm2, %v4395_v57, %v4397_v46  ;;  %v6425_v57 = vld [vmem:[#allocation11] sm:$0xff]  }
 0xa36   : > { %4403 = vst [vmem:[#allocation3 + $0x20] sm:$0xf] %v4399_v28  ;;  %4404 = vst [vmem:[#allocation3 + $0x28] sm:$0xf] %v4400_v37  ;;  %v4354_v55 = vpop.permute.xlu1 %4353 }
 0xa38   : > { %v4352_v25 = vpop.permute.xlu0 %4351 }
 0xa39   : > { %v4355_v14 = vsel %vm1145_vm0, %v4350_v48, %v4352_v25  ;;  %v4356_v40 = vsel %vm1145_vm0, %v4352_v25, %v4354_v55 }
 0xa3a   : > { %4359 = vst [vmem:[#allocation3 + $0x10] sm:$0xf] %v4355_v14  ;;  %4360 = vst [vmem:[#allocation3 + $0x18] sm:$0xf] %v4356_v40  ;;  %v4455_v61 = vpop.permute.xlu1 %4454 }
 0xa3c   : > { %v4453_v11 = vpop.permute.xlu0 %4452 }
 0xa3d   : > { %v4456_v8 = vsel %vm9656_vm13, %v4451_v24, %v4453_v11  ;;  %v4457_v33 = vsel %vm9656_vm13, %v4453_v11, %v4455_v61  ;;  %vm4429_vm13 = vcmask 900096  }
 0xa3e   : > { %4460 = vst [vmem:[#allocation3 + $0x30] sm:$0xf] %v4456_v8  ;;  %4461 = vst [vmem:[#allocation3 + $0x38] sm:$0xf] %v4457_v33  ;;  %v4312_v45 = vpop.permute.xlu1 %4311 }
 0xa3f   : > { %v4315_v27 = vsel %vm992_vm14, %v4310_v49, %v4312_v45 }
 0xa40   : > { %4319 = vst [vmem:[#allocation3] sm:$0xf0] %v4315_v27  ;;  %v4314_v2 = vpop.permute.xlu0 %4313 }
 0xa41   : > { %v4316_v38 = vsel %vm992_vm14, %v4312_v45, %v4314_v2 }
 0xa42   : > { %4320 = vst [vmem:[#allocation3 + $0x8] sm:$0xf0] %v4316_v38  ;;  %v4467_v62 = vpop.permute.xlu1 %4466 }
 0xa44   : > { %v4465_v16 = vpop.permute.xlu0 %4464 }
 0xa45   : > { %v4469_v0 = vsel %vm9657_vm12, %v4465_v16, %v4467_v62 }
 0xa46   : > { %4473 = vst [vmem:[#allocation3 + $0x38] sm:$0xf0] %v4469_v0  ;;  %v4384_v34 = vpop.permute.xlu1 %4383 }
 0xa47   : > { %v4502_v43 = vld [vmem:[#allocation3] sm:$0xff] }
 0xa48   : > { %v4382_v10 = vpop.permute.xlu0 %4381 }
 0xa49   : > { %v4386_v41 = vsel %vm4229_vm8, %v4380_v20, %v4382_v10  ;;  %v4387_v5 = vsel %vm4229_vm8, %v4382_v10, %v4384_v34  ;;  %v4503_v51 = vld [vmem:[#allocation3 + $0x8] sm:$0xff] }
 0xa4a   : > { %4390 = vst [vmem:[#allocation3 + $0x10] sm:$0xf0] %v4386_v41  ;;  %4391 = vst [vmem:[#allocation3 + $0x18] sm:$0xf0] %v4387_v5  ;;  %4538 = vmatprep.subr.bf16.mxu1 %v4503_v51  ;;  %v4428_v36 = vpop.permute.xlu1 %4427 }
 0xa4b   : > { %4539 = vmatpush1.bf16.msra.mxu1 %v4502_v43 }
 0xa4c   : > { %v4426_v29 = vpop.permute.xlu0 %4425 }
 0xa4d   : > { %v4430_v60 = vsel %vm4429_vm13, %v4424_v42, %v4426_v29  ;;  %v4431_v7 = vsel %vm4429_vm13, %v4426_v29, %v4428_v36  ;;  %v4509_v20 = vld [vmem:[#allocation3 + $0x38] sm:$0xff] }
 0xa4e   : > { %4434 = vst [vmem:[#allocation3 + $0x20] sm:$0xf0] %v4430_v60  ;;  %4435 = vst [vmem:[#allocation3 + $0x28] sm:$0xf0] %v4431_v7  ;;  %v4463_v21 = vpop.permute.xlu1 %4462 }
 0xa4f   : > { %v4468_v3 = vsel %vm9657_vm12, %v4463_v21, %v4465_v16  ;;  %vm9990_vm12 = vcmask 588800  }
 0xa50   : > { %4472 = vst [vmem:[#allocation3 + $0x30] sm:$0xf0] %v4468_v3  ;;  %v4489_v30 = vpop.permute.xlu0 %4488 }
 0xa51   : > { %v4505_v44 = vld [vmem:[#allocation3 + $0x18] sm:$0xff]  ;;  %v4504_v50 = vld [vmem:[#allocation3 + $0x10] sm:$0xff] }
 0xa52   : > { %4540 = vmatprep.subr.bf16.mxu1 %v4505_v44  ;;  %v4491_v19 = vpop.permute.xlu1 %4490 }
 0xa53   : > { %v4494_v53 = vsel %vm1371_vm15, %v4489_v30, %v4491_v19  ;;  %4541 = vmatpush1.bf16.msra.mxu1 %v4504_v50 }
 0xa54   : > { %4498 = vst [vmem:[#allocation3 + $0x40] sm:$0xf] %v4494_v53  ;;  %v4493_v4 = vpop.permute.xlu0 %4492 }
 0xa55   : > { %v4495_v32 = vsel %vm1371_vm15, %v4491_v19, %v4493_v4  ;;  %v4507_v49 = vld [vmem:[#allocation3 + $0x28] sm:$0xff]  ;;  %v4506_v47 = vld [vmem:[#allocation3 + $0x20] sm:$0xff] }
 0xa56   : > { %4499 = vst [vmem:[#allocation3 + $0x48] sm:$0xf] %v4495_v32  ;;  %4542 = vmatprep.subr.bf16.mxu1 %v4507_v49 }
 0xa57   : > { %4543 = vmatpush1.bf16.msra.mxu1 %v4506_v47  ;;  %v4508_v48 = vld [vmem:[#allocation3 + $0x30] sm:$0xff]  ;;  %v6428_v47 = vld [vmem:[%s9462_s10 + $0x4] ss:$8 sps:$4 sm:$0xff]  }
 0xa58   : > { %4544 = vmatprep.subr.bf16.mxu1 %v4509_v20 }
 0xa5b   : > { %4545 = vmatpush1.bf16.msra.mxu1 %v4508_v48  ;;  %v4510_v42 = vld [vmem:[#allocation3 + $0x40] sm:$0xf] }
 0xa5c   : > { %v4533_v46 = vsel %vm990_vm1, %v4510_v42, 0 }
 0xa5d   : > { %v4511_v24 = vld [vmem:[#allocation3 + $0x48] sm:$0xf] }
 0xa5e   : > { %6069 = vmatprep.subr.msk.bf16.mxu1 %vm990_vm1, %v4511_v24  ;;  %vm9992_vm1 = vcmp.ne.s16.totalorder %v8855_v56, 0 }
 0xa5f   : > { %4547 = vmatpush1.bf16.msra.mxu1 %v4533_v46  ;;  %v4757_v46 = vld [vmem:[%s9463_s11] sm:$0xff] }
 0xa62   : > { %6070 = vmatmul.mubr.msk.bf16.vlgmr.msra.gmra.mrb[28].mxu1 %vm9990_vm12, %v6425_v57  ;;  %vm9991_vm12 = vcmp.ne.s16.totalorder %v8883_v12, 0  ;;  %v4758_v57 = vld [vmem:[%s9463_s11 + $0x8] sm:$0xff] }
 0xa63   : > { %v4517_v28 = vpop.permute.xlu1 %4516 }
 0xa65   : > { %v4522_v14 = vpop.permute.xlu0 %4521 }
 0xb35   : > { %v4572_v37 = vpop.f32.mrb[28].mxu1 }
 0xb36   : > { %v4573_v55 = vadd.f32 %v4572_v37, %v4517_v28  ;;  %v4574_v25 = vpop.f32.mrb[29].mxu1 }
 0xb37   : > { %v4575_v40 = vadd.f32 %v4574_v25, %v4517_v28  ;;  %v4576_v61 = vpop.f32.mrb[30].mxu1 }
 0xb38   : > { %v4581_v11 = vmul.f32 0.01, %v4573_v55  ;;  %v4577_v8 = vadd.f32 %v4576_v61, %v4522_v14  ;;  %v4578_v33 = vpop.f32.mrb[31].mxu1 }
 0xb39   : > { %v4582_v45 = vmul.f32 0.01, %v4575_v40  ;;  %v4579_v27 = vadd.f32 %v4578_v33, %v4522_v14 }
 0xb3a   : > { %v4583_v2 = vmul.f32 0.01, %v4577_v8  ;;  %v9026_v62 = vmax.f32 %v4573_v55, %v4581_v11 }
 0xb3b   : > { %v4584_v38 = vmul.f32 0.01, %v4579_v27  ;;  %v9030_v0 = vmax.f32 %v4575_v40, %v4582_v45 }
 0xb3c   : > { %v9028_v16 = vmax.f32 %v4577_v8, %v4583_v2 }
 0xb3d   : > { %v9032_v34 = vmax.f32 %v4579_v27, %v4584_v38 }
 0xb3e   : > { %v4589_v10 = vpack.c.bf16 %v9028_v16, %v9026_v62 }
 0xb3f   : > { %v4590_v41 = vpack.c.bf16 %v9032_v34, %v9030_v0 }
 0xb40   : > { %4593 = vrot.lane.b32.xlu1 %v4589_v10, %s6713_s29 }
 0xb41   : > { %4595 = vrot.lane.b32.xlu0 %v4590_v41, %s6713_s29 }
 0xbb2   : > { %v4594_v5 = vpop.permute.xlu1 %4593 }
 0xbb3   : > { %v4600_v51 = vsel %vm4274_vm10, 0, %v4594_v5  ;;  %v4596_v36 = vpop.permute.xlu0 %4595 }
 0xbb4   : > { %v4597_v43 = vsel %vm4274_vm10, %v4594_v5, %v4596_v36  ;;  %4659 = vrot.lane.b32.xlu0 %v4600_v51, %s6715_s24  ;;  %4611 = vrot.lane.b32.xlu1 %v4600_v51, %s6702_s15  ;;  %v4605_v29 = vsel %vm4298_vm7, %v4600_v51, 0  ;;  %v4603_v60 = vsel %vm4274_vm10, %v4596_v36, 0  ;;  %v4623_v7 = vsel %vm9991_vm12, %v4600_v51, 0 }
 0xbb5   : > { %6439 = vmatprep.subr.msk.bf16.mxu0 %vm9658_vm11, %v4597_v43  ;;  %v4641_v21 = vsel %vm9992_vm1, %v4600_v51, 0  ;;  %vm9993_vm11 = vcmp.ne.s16.totalorder %v8893_v17, 0  ;;  %v4624_v30 = vsel %vm9659_vm6, %v4597_v43, 0  ;;  %vm9994_vm12 = vcmp.ne.s16.totalorder %v8885_v9, 0 }
 0xbb6   : > { %4782 = vmatpush1.bf16.msra.mxu0 %v4605_v29  ;;  %v4671_v3 = vsel %vm9993_vm11, %v4600_v51, 0  ;;  %v4625_v44 = vsel %vm9994_vm12, %v4603_v60, 0  ;;  %v4643_v50 = vsel %vm9660_vm5, %v4603_v60, 0  ;;  %vm9995_vm1 = vcmp.ne.s16.totalorder %v8949_v22, 0 }
 0xbb7   : > { %v4642_v19 = vsel %vm9995_vm1, %v4597_v43, 0  ;;  %vm9996_vm11 = vcmp.ne.s16.totalorder %v8901_v35, 0  ;;  %vm9997_vm6 = vcmp.ne.s16.totalorder %v8899_v26, 0  ;;  %vm9998_vm12 = vcmp.ne.s16.totalorder %v8954_v6, 0 }
 0xbb8   : > { %4615 = vrot.lane.b32.xlu0 %v4603_v60, %s6702_s15  ;;  %4613 = vrot.lane.b32.xlu1 %v4597_v43, %s6702_s15  ;;  %v4689_v53 = vsel %vm9996_vm11, %v4600_v51, 0  ;;  %v4673_v4 = vsel %vm9997_vm6, %v4603_v60, 0  ;;  %v4672_v32 = vsel %vm9998_vm12, %v4597_v43, 0  ;;  %vm9999_vm5 = vcmp.ne.s16.totalorder %v8925_v52, 0 }
 0xbb9   : > { %v4690_v49 = vsel %vm9999_vm5, %v4597_v43, 0  ;;  %vm10000_vm6 = vcmp.ne.s16.totalorder %v8916_v63, 0  ;;  %vm10001_vm1 = vcmask 130048   ;;  %v4720_v48 = vsel %vm4480_vm3, %v4597_v43, 0 }
 0xbba   : > { %v4691_v20 = vsel %vm10000_vm6, %v4603_v60, 0  ;;  %6073 = vmatprep.mubr.msk.bf16.mxu0 %vm10001_vm1, %v6428_v47  ;;  %v4721_v42 = vsel %vm4481_vm4, %v4603_v60, 0  ;;  %v4719_v24 = vsel %vm4479_vm9, %v4600_v51, 0  ;;  %vm10002_vm5 = vcmask 785408  }
 0xbbb   : > { %vm10003_vm11 = vmmov %vm10002_vm5  ;;  %vm10004_vm12 = vcmask 777216   ;;  %vm10006_vm1 = vcmp.ne.s16.totalorder %v8817_v15, 0 }
 0xbbc   : > { %4629 = vrot.lane.b32.xlu0 %v4623_v7, %s6705_s22  ;;  %4647 = vrot.lane.b32.xlu1 %v4641_v21, %s6712_s3  ;;  %vm10005_vm6 = vmmov %vm10004_vm12 }
 0xbc0   : > { %4661 = vrot.lane.b32.xlu0 %v4597_v43, %s6715_s24  ;;  %4663 = vrot.lane.b32.xlu1 %v4603_v60, %s6715_s24 }
 0xbc4   : > { %4677 = vrot.lane.b32.xlu1 %v4671_v3, %s6716_s17  ;;  %4631 = vrot.lane.b32.xlu0 %v4624_v30, %s6705_s22 }
 0xbc8   : > { %4633 = vrot.lane.b32.xlu1 %v4625_v44, %s6705_s22  ;;  %4651 = vrot.lane.b32.xlu0 %v4643_v50, %s6712_s3 }
 0xbcc   : > { %4649 = vrot.lane.b32.xlu1 %v4642_v19, %s6712_s3  ;;  %4695 = vrot.lane.b32.xlu0 %v4689_v53, %s6706_s27 }
 0xbd0   : > { %4709 = vrot.lane.b32.xlu1 %v4597_v43, %s6703_s18  ;;  %4681 = vrot.lane.b32.xlu0 %v4673_v4, %s6716_s17 }
 0xbd4   : > { %4679 = vrot.lane.b32.xlu1 %v4672_v32, %s6716_s17  ;;  %4697 = vrot.lane.b32.xlu0 %v4690_v49, %s6706_s27 }
 0xbd8   : > { %4699 = vrot.lane.b32.xlu1 %v4691_v20, %s6706_s27  ;;  %4711 = vrot.lane.b32.xlu0 %v4603_v60, %s6703_s18 }
 0xbdc   : > { %4707 = vrot.lane.b32.xlu1 %v4600_v51, %s6703_s18  ;;  %4727 = vrot.lane.b32.xlu0 %v4720_v48, %s6707_s23 }
 0xbe0   : > { %4729 = vrot.lane.b32.xlu1 %v4721_v42, %s6707_s23  ;;  %4725 = vrot.lane.b32.xlu0 %v4719_v24, %s6707_s23 }
 0xbe4   : > { %4761 = vperm.xlu1 %6302, %v4757_v46   ;;  %4766 = vperm.xlu0 %6301, %v4758_v57  }
 0xc26   : > { %v4660_v28 = vpop.permute.xlu0 %4659  ;;  %v4612_v37 = vpop.permute.xlu1 %4611 }
 0xc2a   : > { %v4616_v55 = vpop.permute.xlu0 %4615  ;;  %v4614_v25 = vpop.permute.xlu1 %4613 }
 0xc2b   : > { %v4617_v14 = vsel %vm992_vm14, %v4612_v37, %v4614_v25  ;;  %v4618_v40 = vsel %vm992_vm14, %v4614_v25, %v4616_v55 }
 0xc2c   : > { %4783 = vmatprep.subr.bf16.mxu0 %v4618_v40 }
 0xc2d   : > { %4784 = vmatpush1.bf16.msra.mxu0 %v4617_v14 }
 0xc2e   : > { %v4630_v61 = vpop.permute.xlu0 %4629  ;;  %v4648_v11 = vpop.permute.xlu1 %4647 }
 0xc32   : > { %v4662_v8 = vpop.permute.xlu0 %4661  ;;  %v4664_v33 = vpop.permute.xlu1 %4663 }
 0xc33   : > { %v4666_v29 = vsel %vm4398_vm2, %v4662_v8, %v4664_v33  ;;  %v4665_v21 = vsel %vm4398_vm2, %v4660_v28, %v4662_v8  ;;  %v6426_v28 = vld [vmem:[%s9462_s10] ss:$8 sps:$4 sm:$0xff]  }
 0xc36   : > { %v4678_v45 = vpop.permute.xlu1 %4677  ;;  %v4632_v27 = vpop.permute.xlu0 %4631 }
 0xc37   : > { %v4635_v41 = vsel %vm1145_vm0, %v4630_v61, %v4632_v27 }
 0xc3a   : > { %v4634_v2 = vpop.permute.xlu1 %4633  ;;  %v4652_v38 = vpop.permute.xlu0 %4651 }
 0xc3b   : > { %v4636_v10 = vsel %vm1145_vm0, %v4632_v27, %v4634_v2 }
 0xc3c   : > { %4785 = vmatprep.subr.bf16.mxu0 %v4636_v10 }
 0xc3d   : > { %4786 = vmatpush1.bf16.msra.mxu0 %v4635_v41 }
 0xc3e   : > { %v4650_v5 = vpop.permute.xlu1 %4649  ;;  %v4696_v51 = vpop.permute.xlu0 %4695 }
 0xc3f   : > { %v4653_v36 = vsel %vm4229_vm8, %v4648_v11, %v4650_v5  ;;  %v4654_v43 = vsel %vm4229_vm8, %v4650_v5, %v4652_v38 }
 0xc40   : > { %4787 = vmatprep.subr.bf16.mxu0 %v4654_v43 }
 0xc41   : > { %4788 = vmatpush1.bf16.msra.mxu0 %v4653_v36 }
 0xc42   : > { %v4710_v60 = vpop.permute.xlu1 %4709  ;;  %v4682_v7 = vpop.permute.xlu0 %4681  ;;  %4789 = vmatprep.subr.bf16.mxu0 %v4666_v29 }
 0xc45   : > { %4790 = vmatpush1.bf16.msra.mxu0 %v4665_v21 }
 0xc46   : > { %v4680_v3 = vpop.permute.xlu1 %4679  ;;  %v4698_v30 = vpop.permute.xlu0 %4697 }
 0xc47   : > { %v4683_v44 = vsel %vm4429_vm13, %v4678_v45, %v4680_v3  ;;  %v4684_v50 = vsel %vm4429_vm13, %v4680_v3, %v4682_v7  ;;  %v4701_v32 = vsel %vm10003_vm11, %v4696_v51, %v4698_v30  ;;  %vm10009_vm11 = vcmp.ne.s16.totalorder %v8855_v56, 0 }
 0xc48   : > { %4791 = vmatprep.subr.bf16.mxu0 %v4684_v50 }
 0xc49   : > { %4792 = vmatpush1.bf16.msra.mxu0 %v4683_v44 }
 0xc4a   : > { %v4700_v19 = vpop.permute.xlu1 %4699  ;;  %v4712_v53 = vpop.permute.xlu0 %4711 }
 0xc4b   : > { %v4702_v4 = vsel %vm10002_vm5, %v4698_v30, %v4700_v19  ;;  %v4714_v49 = vsel %vm10004_vm12, %v4710_v60, %v4712_v53  ;;  %vm10007_vm5 = vmmov %vm10006_vm1  ;;  %vm10011_vm12 = vcmp.ne.s16.totalorder %v8913_v39, 0 }
 0xc4c   : > { %4793 = vmatprep.subr.bf16.mxu0 %v4702_v4  ;;  %v5000_v4 = vld [vmem:[%s9465_s13] sm:$0xff] }
 0xc4d   : > { %4794 = vmatpush1.bf16.msra.mxu0 %v4701_v32 }
 0xc4e   : > { %v4708_v47 = vpop.permute.xlu1 %4707  ;;  %v4728_v20 = vpop.permute.xlu0 %4727  ;;  %4795 = vmatprep.subr.bf16.mxu0 %v4714_v49 }
 0xc4f   : > { %v4713_v48 = vsel %vm10005_vm6, %v4708_v47, %v4710_v60  ;;  %vm10012_vm6 = vcmp.ne.s16.totalorder %v8885_v9, 0 }
 0xc51   : > { %4796 = vmatpush1.bf16.msra.mxu0 %v4713_v48 }
 0xc52   : > { %v4730_v42 = vpop.permute.xlu1 %4729  ;;  %v4726_v24 = vpop.permute.xlu0 %4725 }
 0xc53   : > { %v4732_v46 = vsel %vm1371_vm15, %v4728_v20, %v4730_v42  ;;  %v4731_v57 = vsel %vm1371_vm15, %v4726_v24, %v4728_v20 }
 0xc54   : > { %4797 = vmatprep.subr.bf16.mxu0 %v4732_v46 }
 0xc55   : > { %4798 = vmatpush1.bf16.msra.mxu0 %v4731_v57 }
 0xc58   : > { %4814 = vmatmul.mubr.bf16.vlgmr.msra.gmra.mrb[36].mxu0 %v6426_v28 }
 0xc63   : > { %v4762_v37 = vpop.permute.xlu1 %4761  ;;  %v4767_v40 = vpop.permute.xlu0 %4766 }
 0xd2b   : > { %v4815_v55 = vpop.f32.mrb[36].mxu0 }
 0xd2c   : > { %v4816_v25 = vadd.f32 %v4815_v55, %v4762_v37  ;;  %v4817_v14 = vpop.f32.mrb[37].mxu0 }
 0xd2d   : > { %v4818_v61 = vadd.f32 %v4817_v14, %v4762_v37  ;;  %v4819_v11 = vpop.f32.mrb[38].mxu0 }
 0xd2e   : > { %v4824_v8 = vmul.f32 0.01, %v4816_v25  ;;  %v4820_v33 = vadd.f32 %v4819_v11, %v4767_v40  ;;  %v4821_v45 = vpop.f32.mrb[39].mxu0 }
 0xd2f   : > { %v4825_v27 = vmul.f32 0.01, %v4818_v61  ;;  %v4822_v2 = vadd.f32 %v4821_v45, %v4767_v40 }
 0xd30   : > { %v4826_v38 = vmul.f32 0.01, %v4820_v33  ;;  %v4828_v41 = vmax.f32 %v4816_v25, %v4824_v8 }
 0xd31   : > { %v4827_v10 = vmul.f32 0.01, %v4822_v2  ;;  %v4829_v51 = vmax.f32 %v4818_v61, %v4825_v27 }
 0xd32   : > { %v4830_v5 = vmax.f32 %v4820_v33, %v4826_v38 }
 0xd33   : > { %v4831_v36 = vmax.f32 %v4822_v2, %v4827_v10 }
 0xd34   : > { %v4832_v43 = vpack.c.bf16 %v4830_v5, %v4828_v41 }
 0xd35   : > { %v4833_v29 = vpack.c.bf16 %v4831_v36, %v4829_v51 }
 0xd36   : > { %4836 = vrot.lane.b32.xlu1 %v4832_v43, %s6713_s29 }
 0xd37   : > { %4838 = vrot.lane.b32.xlu0 %v4833_v29, %s6713_s29  ;;  %s10025_s29 = smov 64  }
 0xda8   : > { %v4837_v60 = vpop.permute.xlu1 %4836 }
 0xda9   : > { %v4843_v7 = vsel %vm4274_vm10, 0, %v4837_v60  ;;  %v4839_v21 = vpop.permute.xlu0 %4838 }
 0xdaa   : > { %v4848_v3 = vsel %vm4298_vm7, %v4843_v7, 0  ;;  %v4840_v30 = vsel %vm4274_vm10, %v4837_v60, %v4839_v21  ;;  %4902 = vrot.lane.b32.xlu0 %v4843_v7, %s6715_s24  ;;  %4854 = vrot.lane.b32.xlu1 %v4843_v7, %s6702_s15  ;;  %v4846_v50 = vsel %vm4274_vm10, %v4839_v21, 0  ;;  %vm10008_vm7 = vcmp.ne.s16.totalorder %v8883_v12, 0 }
 0xdab   : > { %4850 = vst [vmem:[#allocation3] sm:$0xff] %v4848_v3  ;;  %v4849_v44 = vsel %vm10006_vm1, %v4840_v30, 0  ;;  %6440 = vmatprep.subr.msk.bf16.mxu1 %vm10007_vm5, %v4840_v30  ;;  %v4866_v18 = vsel %vm10008_vm7, %v4843_v7, 0  ;;  %v4884_v19 = vsel %vm10009_vm11, %v4843_v7, 0  ;;  %vm10010_vm10 = vcmp.ne.s16.totalorder %v8893_v17, 0 }
 0xdac   : > { %4851 = vst [vmem:[#allocation3 + $0x8] sm:$0xff] %v4849_v44  ;;  %5025 = vmatpush1.bf16.msra.mxu1 %v4848_v3  ;;  %v4914_v15 = vsel %vm10010_vm10, %v4843_v7, 0  ;;  %v4867_v53 = vsel %vm10011_vm12, %v4840_v30, 0  ;;  %v4868_v56 = vsel %vm10012_vm6, %v4846_v50, 0  ;;  %vm10013_vm1 = vcmp.ne.s16.totalorder %v8857_v31, 0 }
 0xdad   : > { %v4886_v12 = vsel %vm10013_vm1, %v4846_v50, 0  ;;  %vm10014_vm5 = vcmp.ne.s16.totalorder %v8949_v22, 0  ;;  %vm10015_vm7 = vcmp.ne.s16.totalorder %v8901_v35, 0  ;;  %vm10016_vm11 = vcmp.ne.s16.totalorder %v8899_v26, 0  ;;  %v6429_v35 = vld [vmem:[%s9464_s12 + $0x4] ss:$8 sps:$4 sm:$0xff]  }
 0xdae   : > { %4858 = vrot.lane.b32.xlu0 %v4846_v50, %s6702_s15  ;;  %4856 = vrot.lane.b32.xlu1 %v4840_v30, %s6702_s15  ;;  %v4885_v17 = vsel %vm10014_vm5, %v4840_v30, 0  ;;  %v4932_v39 = vsel %vm10015_vm7, %v4843_v7, 0  ;;  %v4916_v9 = vsel %vm10016_vm11, %v4846_v50, 0  ;;  %vm10017_vm10 = vcmp.ne.s16.totalorder %v8954_v6, 0 }
 0xdaf   : > { %v4915_v31 = vsel %vm10017_vm10, %v4840_v30, 0  ;;  %vm10018_vm12 = vcmp.ne.s16.totalorder %v8925_v52, 0  ;;  %vm10019_vm6 = vcmp.ne.s16.totalorder %v8916_v63, 0  ;;  %vm10020_vm1 = vcmask 130048  }
 0xdb0   : > { %v4933_v22 = vsel %vm10018_vm12, %v4840_v30, 0  ;;  %v4934_v26 = vsel %vm10019_vm6, %v4846_v50, 0  ;;  %6076 = vmatprep.mubr.msk.bf16.mxu1 %vm10020_vm1, %v6429_v35  ;;  %v4963_v52 = vsel %vm4480_vm3, %v4840_v30, 0  ;;  %v4964_v6 = vsel %vm4481_vm4, %v4846_v50, 0  ;;  %vm10030_vm4 = vmmov %vm10020_vm1 }
 0xdb1   : > { %v4962_v63 = vsel %vm4479_vm9, %v4843_v7, 0  ;;  %vm10023_vm3 = vcmask 777216   ;;  %vm10029_vm9 = vmmov %vm10020_vm1  ;;  %vm5336_vm6 = vcmask 64512  }
 0xdb2   : > { %4872 = vrot.lane.b32.xlu0 %v4866_v18, %s6705_s22  ;;  %4890 = vrot.lane.b32.xlu1 %v4884_v19, %s6712_s3  ;;  %v6431_v19 = vld [vmem:[%s9464_s12] ss:$8 sps:$4 sm:$0xff]   ;;  %vm10032_vm5 = vmmov %vm10020_vm1 }
 0xdb3   : > { %vm10033_vm7 = vmmov %vm10020_vm1 }
 0xdb4   : > { %vm10034_vm11 = vmmov %vm10020_vm1 }
 0xdb6   : > { %4904 = vrot.lane.b32.xlu0 %v4840_v30, %s6715_s24  ;;  %4906 = vrot.lane.b32.xlu1 %v4846_v50, %s6715_s24 }
 0xdba   : > { %4920 = vrot.lane.b32.xlu1 %v4914_v15, %s6716_s17  ;;  %4874 = vrot.lane.b32.xlu0 %v4867_v53, %s6705_s22 }
 0xdbe   : > { %4876 = vrot.lane.b32.xlu1 %v4868_v56, %s6705_s22  ;;  %4894 = vrot.lane.b32.xlu0 %v4886_v12, %s6712_s3 }
 0xdc2   : > { %4892 = vrot.lane.b32.xlu1 %v4885_v17, %s6712_s3  ;;  %4938 = vrot.lane.b32.xlu0 %v4932_v39, %s6706_s27 }
 0xdc6   : > { %4952 = vrot.lane.b32.xlu1 %v4840_v30, %s6703_s18  ;;  %4924 = vrot.lane.b32.xlu0 %v4916_v9, %s6716_s17 }
 0xdca   : > { %4922 = vrot.lane.b32.xlu1 %v4915_v31, %s6716_s17  ;;  %4940 = vrot.lane.b32.xlu0 %v4933_v22, %s6706_s27 }
 0xdce   : > { %4942 = vrot.lane.b32.xlu1 %v4934_v26, %s6706_s27  ;;  %4954 = vrot.lane.b32.xlu0 %v4846_v50, %s6703_s18 }
 0xdd2   : > { %4950 = vrot.lane.b32.xlu1 %v4843_v7, %s6703_s18  ;;  %4970 = vrot.lane.b32.xlu0 %v4963_v52, %s6707_s23  ;;  %s10027_s18 = smov 32  }
 0xdd6   : > { %4972 = vrot.lane.b32.xlu1 %v4964_v6, %s6707_s23  ;;  %4968 = vrot.lane.b32.xlu0 %v4962_v63, %s6707_s23  ;;  %s6718_s23 = smov 24  }
 0xdda   : > { %5004 = vperm.xlu1 %6302, %v5000_v4   ;;  %5009 = vperm.xlu0 %6301, %v5001_v59  }
 0xe1c   : > { %v4903_v32 = vpop.permute.xlu0 %4902  ;;  %v4855_v58 = vpop.permute.xlu1 %4854 }
 0xe20   : > { %v4859_v49 = vpop.permute.xlu0 %4858  ;;  %v4857_v47 = vpop.permute.xlu1 %4856 }
 0xe21   : > { %v4860_v13 = vsel %vm992_vm14, %v4855_v58, %v4857_v47  ;;  %v4861_v20 = vsel %vm992_vm14, %v4857_v47, %v4859_v49 }
 0xe22   : > { %4864 = vst [vmem:[#allocation3 + $0x10] sm:$0xff] %v4860_v13  ;;  %4865 = vst [vmem:[#allocation3 + $0x18] sm:$0xff] %v4861_v20  ;;  %5026 = vmatprep.subr.bf16.mxu1 %v4861_v20 }
 0xe23   : > { %5027 = vmatpush1.bf16.msra.mxu1 %v4860_v13 }
 0xe24   : > { %v4873_v48 = vpop.permute.xlu0 %4872  ;;  %v4891_v42 = vpop.permute.xlu1 %4890 }
 0xe28   : > { %v4905_v24 = vpop.permute.xlu0 %4904  ;;  %v4907_v46 = vpop.permute.xlu1 %4906 }
 0xe29   : > { %v4908_v57 = vsel %vm4398_vm2, %v4903_v32, %v4905_v24  ;;  %v4909_v28 = vsel %vm4398_vm2, %v4905_v24, %v4907_v46  ;;  %vm10031_vm2 = vmmov %vm10020_vm1 }
 0xe2a   : > { %4912 = vst [vmem:[#allocation3 + $0x40] sm:$0xff] %v4908_v57  ;;  %4913 = vst [vmem:[#allocation3 + $0x48] sm:$0xff] %v4909_v28 }
 0xe2c   : > { %v4921_v37 = vpop.permute.xlu1 %4920  ;;  %v4875_v55 = vpop.permute.xlu0 %4874 }
 0xe2d   : > { %v4878_v25 = vsel %vm1145_vm0, %v4873_v48, %v4875_v55 }
 0xe2e   : > { %4882 = vst [vmem:[#allocation3 + $0x20] sm:$0xff] %v4878_v25 }
 0xe30   : > { %v4877_v14 = vpop.permute.xlu1 %4876  ;;  %v4895_v40 = vpop.permute.xlu0 %4894 }
 0xe31   : > { %v4879_v61 = vsel %vm1145_vm0, %v4875_v55, %v4877_v14  ;;  %vm10021_vm0 = vcmask 785408  }
 0xe32   : > { %4883 = vst [vmem:[#allocation3 + $0x28] sm:$0xff] %v4879_v61  ;;  %5028 = vmatprep.subr.bf16.mxu1 %v4879_v61  ;;  %vm10022_vm14 = vmmov %vm10021_vm0 }
 0xe33   : > { %5029 = vmatpush1.bf16.msra.mxu1 %v4878_v25 }
 0xe34   : > { %v4893_v11 = vpop.permute.xlu1 %4892  ;;  %v4939_v8 = vpop.permute.xlu0 %4938 }
 0xe35   : > { %v4896_v33 = vsel %vm4229_vm8, %v4891_v42, %v4893_v11  ;;  %v4897_v45 = vsel %vm4229_vm8, %v4893_v11, %v4895_v40  ;;  %vm10024_vm8 = vmmov %vm10023_vm3 }
 0xe36   : > { %4900 = vst [vmem:[#allocation3 + $0x30] sm:$0xff] %v4896_v33  ;;  %4901 = vst [vmem:[#allocation3 + $0x38] sm:$0xff] %v4897_v45  ;;  %5030 = vmatprep.subr.bf16.mxu1 %v4897_v45 }
 0xe37   : > { %5031 = vmatpush1.bf16.msra.mxu1 %v4896_v33 }
 0xe38   : > { %v4953_v27 = vpop.permute.xlu1 %4952  ;;  %v4925_v2 = vpop.permute.xlu0 %4924  ;;  %5032 = vmatprep.subr.bf16.mxu1 %v4909_v28 }
 0xe3b   : > { %5033 = vmatpush1.bf16.msra.mxu1 %v4908_v57 }
 0xe3c   : > { %v4923_v38 = vpop.permute.xlu1 %4922  ;;  %v4941_v10 = vpop.permute.xlu0 %4940 }
 0xe3d   : > { %v4926_v41 = vsel %vm4429_vm13, %v4921_v37, %v4923_v38  ;;  %v4927_v5 = vsel %vm4429_vm13, %v4923_v38, %v4925_v2  ;;  %v4944_v51 = vsel %vm10021_vm0, %v4939_v8, %v4941_v10  ;;  %vm10026_vm13 = vmmov %vm10020_vm1 }
 0xe3e   : > { %5034 = vmatprep.subr.bf16.mxu1 %v4927_v5  ;;  %vm10039_vm0 = vmmov %vm10031_vm2 }
 0xe3f   : > { %5035 = vmatpush1.bf16.msra.mxu1 %v4926_v41 }
 0xe40   : > { %v4943_v36 = vpop.permute.xlu1 %4942  ;;  %v4955_v43 = vpop.permute.xlu0 %4954 }
 0xe41   : > { %v4945_v29 = vsel %vm10022_vm14, %v4941_v10, %v4943_v36  ;;  %v4957_v60 = vsel %vm10023_vm3, %v4953_v27, %v4955_v43  ;;  %vm10040_vm14 = vmmov %vm10039_vm0 }
 0xe42   : > { %5036 = vmatprep.subr.bf16.mxu1 %v4945_v29 }
 0xe43   : > { %5037 = vmatpush1.bf16.msra.mxu1 %v4944_v51 }
 0xe44   : > { %v4951_v7 = vpop.permute.xlu1 %4950  ;;  %v4971_v21 = vpop.permute.xlu0 %4970  ;;  %5038 = vmatprep.subr.bf16.mxu1 %v4957_v60 }
 0xe45   : > { %v4956_v3 = vsel %vm10024_vm8, %v4951_v7, %v4953_v27  ;;  %vm10043_vm8 = vcmask 261120  }
 0xe47   : > { %5039 = vmatpush1.bf16.msra.mxu1 %v4956_v3 }
 0xe48   : > { %v4973_v30 = vpop.permute.xlu1 %4972  ;;  %v4969_v44 = vpop.permute.xlu0 %4968 }
 0xe49   : > { %v4975_v50 = vsel %vm1371_vm15, %v4971_v21, %v4973_v30  ;;  %v4974_v18 = vsel %vm1371_vm15, %v4969_v44, %v4971_v21  ;;  %vm10028_vm15 = vmmov %vm10020_vm1  ;;  %vm5341_vm1 = vcmask 195584  }
 0xe4a   : > { %5040 = vmatprep.subr.bf16.mxu1 %v4975_v50 }
 0xe4b   : > { %5041 = vmatpush1.bf16.msra.mxu1 %v4974_v18 }
 0xe4e   : > { %5057 = vmatmul.mubr.bf16.vlgmr.msra.gmra.mrb[32].mxu1 %v6431_v19 }
 0xe59   : > { %v5005_v15 = vpop.permute.xlu1 %5004  ;;  %v5010_v17 = vpop.permute.xlu0 %5009 }
 0xf21   : > { %v5058_v53 = vpop.f32.mrb[32].mxu1 }
 0xf22   : > { %v5059_v56 = vadd.f32 %v5058_v53, %v5005_v15  ;;  %v5060_v12 = vpop.f32.mrb[33].mxu1 }
 0xf23   : > { %v5061_v39 = vadd.f32 %v5060_v12, %v5005_v15  ;;  %v5062_v9 = vpop.f32.mrb[34].mxu1 }
 0xf24   : > { %v5067_v31 = vmul.f32 0.01, %v5059_v56  ;;  %v5063_v22 = vadd.f32 %v5062_v9, %v5010_v17  ;;  %v5064_v35 = vpop.f32.mrb[35].mxu1 }
 0xf25   : > { %v5068_v26 = vmul.f32 0.01, %v5061_v39  ;;  %v5065_v52 = vadd.f32 %v5064_v35, %v5010_v17 }
 0xf26   : > { %v5071_v6 = vmax.f32 %v5059_v56, %v5067_v31  ;;  %v5069_v63 = vmul.f32 0.01, %v5063_v22 }
 0xf27   : > { %v5072_v4 = vmax.f32 %v5061_v39, %v5068_v26  ;;  %v5070_v59 = vmul.f32 0.01, %v5065_v52  ;;  %v5358_v26 = vand.u32 7, %v9973_v23 }
 0xf28   : > { %v5075_v32 = vadd.f32 %v5071_v6, %v9026_v62  ;;  %v5073_v58 = vmax.f32 %v5063_v22, %v5069_v63  ;;  %v6432_v62 = vld [vmem:[%s9466_s14] sm:$0xff]  }
 0xf29   : > { %v5076_v49 = vadd.f32 %v5072_v4, %v9030_v0  ;;  %v5074_v47 = vmax.f32 %v5065_v52, %v5070_v59  ;;  %6158 = vmatprep.subr.bf16.mxu0 %v6432_v62  ;;  %vm5367_vm10 = vcmp.ne.s32.totalorder %v5358_v26, 7  ;;  %vm9270_vm3 = vcmp.ne.s32.totalorder %v5358_v26, 0 }
 0xf2a   : > { %5079 = vst [vmem:[%s9229_s2] sm:$0xff] %v5075_v32  ;;  %v5077_v13 = vadd.f32 %v5073_v58, %v9028_v16  ;;  %5085 = vrot.lane.b32.xlu1 %v5075_v32, %s6712_s3  ;;  %6159 = vmatpush3.bf16.msra.mxu0 %v6432_v62  ;;  %vm5396_vm12 = vmpackc.low %vm5367_vm10, %vm5367_vm10 }
 0xf2b   : > { %5080 = vst [vmem:[%s9229_s2 + $0x8] sm:$0xff] %v5076_v49  ;;  %v5078_v20 = vadd.f32 %v5074_v47, %v9032_v34  ;;  %5516 = vmatprep.subr.bf16.mxu0 %v9756_v1  ;;  %v5397_v47 = vsel %vm5396_vm12, 65537, %v9756_v1 }
 0xf2c   : > { %5081 = vst [vmem:[%s9229_s2 + $0x10] sm:$0xff] %v5077_v13  ;;  %5087 = vrot.lane.b32.xlu0 %v5077_v13, %s6712_s3  ;;  %v5401_v23 = vrot.slane %v5397_v47, %v9983_v54 }
 0xf2d   : > { %5082 = vst [vmem:[%s9229_s2 + $0x18] sm:$0xff] %v5078_v20 }
 0xf2e   : > { %5095 = vrot.lane.b32.xlu1 %v5076_v49, %s6712_s3 }
 0xf30   : > { %5097 = vrot.lane.b32.xlu0 %v5078_v20, %s6712_s3 }
 0xf9c   : > { %v5086_v16 = vpop.permute.xlu1 %5085 }
 0xf9d   : > { %v5091_v48 = vadd.f32 %v5086_v16, %v5075_v32 }
 0xf9e   : > { %v5088_v0 = vpop.permute.xlu0 %5087 }
 0xf9f   : > { %v5092_v34 = vadd.f32 %v5088_v0, %v5077_v13 }
 0xfa0   : > { %v5096_v42 = vpop.permute.xlu1 %5095 }
 0xfa1   : > { %v6363_v24 = vpack.i.bf16 %v5092_v34, %v5091_v48  ;;  %v5143_v46 = vpack.c.bf16 %v5092_v34, %v5091_v48  ;;  %v5101_v28 = vadd.f32 %v5096_v42, %v5076_v49 }
 0xfa2   : > { %v5098_v57 = vpop.permute.xlu0 %5097 }
 0xfa3   : > { %v5102_v37 = vadd.f32 %v5098_v57, %v5078_v20  ;;  %6364 = vrot.lane.b32.xlu0 %v6363_v24, %s10025_s29  ;;  %6359 = vrot.lane.b32.xlu1 %v6363_v24, %s6706_s27 }
 0xfa4   : > { %6160 = vmatprep.mubr.msk.bf16.mxu0 %vm10026_vm13, %v5143_v46  ;;  %vm10044_vm13 = vmmov %vm10043_vm8 }
 0xfa5   : > { %v6373_v55 = vpack.i.bf16 %v5102_v37, %v5101_v28  ;;  %v5147_v25 = vpack.c.bf16 %v5102_v37, %v5101_v28 }
 0xfa7   : > { %6369 = vrot.lane.b32.xlu1 %v6363_v24, %s10027_s18  ;;  %6374 = vrot.lane.b32.xlu0 %v6373_v55, %s6706_s27  ;;  %s9662_s27 = smov 8  }
 0xfab   : > { %6379 = vrot.lane.b32.xlu1 %v6373_v55, %s10025_s29  ;;  %6384 = vrot.lane.b32.xlu0 %v6373_v55, %s10027_s18  ;;  %s6720_s29 = smov 56  }
0x1015   : > { %v6365_v14 = vpop.permute.xlu0 %6364  ;;  %v6360_v40 = vpop.permute.xlu1 %6359 }
0x1016   : > { %v6367_v61 = vunpack.i.h.bf16 %v6365_v14  ;;  %v6366_v11 = vunpack.i.l.bf16 %v6365_v14  ;;  %v6362_v8 = vunpack.i.h.bf16 %v6360_v40  ;;  %v6361_v33 = vunpack.i.l.bf16 %v6360_v40 }
0x1018   : > { %v5145_v45 = vpack.c.bf16 %v6367_v61, %v6366_v11  ;;  %v5144_v27 = vpack.c.bf16 %v6362_v8, %v6361_v33 }
0x1019   : > { %v6370_v2 = vpop.permute.xlu1 %6369  ;;  %v6375_v5 = vpop.permute.xlu0 %6374 }
0x101a   : > { %6161 = vmatmul.mubr.msk.bf16.vlgmr.msra.gmra.mrb[40].mxu0 %vm10028_vm15, %v5144_v27  ;;  %v6372_v38 = vunpack.i.h.bf16 %v6370_v2  ;;  %v6371_v10 = vunpack.i.l.bf16 %v6370_v2  ;;  %v6377_v36 = vunpack.i.h.bf16 %v6375_v5  ;;  %v6376_v43 = vunpack.i.l.bf16 %v6375_v5 }
0x101b   : > { %6164 = vmatprep.mubr.msk.bf16.mxu0 %vm10029_vm9, %v5145_v45  ;;  %vm5346_vm15 = vcmask 326656   ;;  %vm5351_vm9 = vcmask 457728  }
0x101c   : > { %v5146_v41 = vpack.c.bf16 %v6372_v38, %v6371_v10  ;;  %v5148_v7 = vpack.c.bf16 %v6377_v36, %v6376_v43 }
0x101d   : > { %v6380_v51 = vpop.permute.xlu1 %6379  ;;  %v6385_v21 = vpop.permute.xlu0 %6384 }
0x101e   : > { %v6382_v29 = vunpack.i.h.bf16 %v6380_v51  ;;  %v6381_v60 = vunpack.i.l.bf16 %v6380_v51  ;;  %v6387_v30 = vunpack.i.h.bf16 %v6385_v21  ;;  %v6386_v44 = vunpack.i.l.bf16 %v6385_v21 }
0x1020   : > { %v5149_v3 = vpack.c.bf16 %v6382_v29, %v6381_v60  ;;  %v5150_v50 = vpack.c.bf16 %v6387_v30, %v6386_v44 }
0x1022   : > { %6165 = vmatmul.mubr.msk.bf16.gmra.mrb[44].mxu0 %vm10030_vm4, %v5146_v41  ;;  %vm5380_vm4 = vmpackc.low %vm9270_vm3, %vm9270_vm3 }
0x1023   : > { %6168 = vmatprep.mubr.msk.bf16.mxu0 %vm10031_vm2, %v5147_v25  ;;  %vm10045_vm2 = vcmask 392192  }
0x102a   : > { %6169 = vmatmul.mubr.msk.bf16.gmra.mrb[48].mxu0 %vm10032_vm5, %v5148_v7  ;;  %vm10046_vm5 = vmmov %vm10045_vm2 }
0x102b   : > { %6172 = vmatprep.mubr.msk.bf16.mxu0 %vm10033_vm7, %v5149_v3  ;;  %vm5372_vm7 = vcmask 72704  }
0x1032   : > { %6173 = vmatmul.mubr.msk.bf16.gmra.mrb[52].mxu0 %vm10034_vm11, %v5150_v50  ;;  %vm5375_vm11 = vcmask 596992  }
0x10ed   : > { %v6162_v18 = vpop.f32.mrb[40].mxu0 }
0x10ee   : > { %v5217_v19 = vpop.f32.mrb[41].mxu0 }
0x10ef   : > { %v6163_v15 = vpop.f32.mrb[42].mxu0 }
0x10f0   : > { %v6388_v53 = vpack.i.bf16 %v6163_v15, %v6162_v18  ;;  %v5220_v56 = vpop.f32.mrb[43].mxu0  ;;  %v5381_v18 = vsel %vm5380_vm4, 65537, %v9756_v1 }
0x10f1   : > { %v5385_v15 = vrot.slane %v5381_v18, %v9983_v54 }
0x10f2   : > { %6389 = vrot.lane.b32.xlu1 %v6388_v53, %s9662_s27 }
0x10f3   : > { %vm5386_vm10 = vcmp.ne.s16.totalorder %v5385_v15, 0 }
0x10f5   : > { %v6166_v12 = vpop.f32.mrb[44].mxu0 }
0x10f6   : > { %v5233_v17 = vpop.f32.mrb[45].mxu0 }
0x10f7   : > { %v6167_v39 = vpop.f32.mrb[46].mxu0 }
0x10f8   : > { %v6393_v9 = vpack.i.bf16 %v6167_v39, %v6166_v12  ;;  %v5236_v31 = vpop.f32.mrb[47].mxu0 }
0x10f9   : > { %v6398_v22 = vpack.i.bf16 %v5236_v31, %v5233_v17 }
0x10fa   : > { %6394 = vrot.lane.b32.xlu1 %v6393_v9, %s6718_s23  ;;  %s10036_s23 = smov 48  }
0x10fb   : > { %6399 = vrot.lane.b32.xlu0 %v6398_v22, %s10035_s20 }
0x10fd   : > { %v6170_v35 = vpop.f32.mrb[48].mxu0 }
0x10fe   : > { %v5249_v52 = vpop.f32.mrb[49].mxu0 }
0x10ff   : > { %v6171_v6 = vpop.f32.mrb[50].mxu0 }
0x1100   : > { %v6403_v63 = vpack.i.bf16 %v6171_v6, %v6170_v35  ;;  %v5252_v4 = vpop.f32.mrb[51].mxu0 }
0x1101   : > { %v6408_v59 = vpack.i.bf16 %v5252_v4, %v5249_v52 }
0x1102   : > { %6404 = vrot.lane.b32.xlu1 %v6403_v63, %s6719_s0  ;;  %s6721_s0 = smov 10  }
0x1103   : > { %6409 = vrot.lane.b32.xlu0 %v6408_v59, %s10027_s18  ;;  %s10038_s18 = smov 18   ;;  %v5468_v59 = vld [vmem:[%s9468_s16] sm:$0xff] }
0x1105   : > { %v6174_v32 = vpop.f32.mrb[52].mxu0 }
0x1106   : > { %v5265_v58 = vpop.f32.mrb[53].mxu0 }
0x1107   : > { %v6175_v49 = vpop.f32.mrb[54].mxu0 }
0x1108   : > { %v6418_v13 = vpack.i.bf16 %v6175_v49, %v6174_v32  ;;  %v5268_v20 = vpop.f32.mrb[55].mxu0  ;;  %v5469_v32 = vld [vmem:[%s9468_s16 + $0x8] sm:$0xff]  ;;  %v5471_v49 = vld [vmem:[%s9468_s16 + $0x18] sm:$0xff] }
0x1109   : > { %v6413_v62 = vpack.i.bf16 %v5268_v20, %v5265_v58  ;;  %v5470_v58 = vld [vmem:[%s9468_s16 + $0x10] sm:$0xff] }
0x110a   : > { %6419 = vrot.lane.b32.xlu1 %v6418_v13, %s6720_s29  ;;  %s6723_s29 = smov 120  }
0x110b   : > { %6414 = vrot.lane.b32.xlu0 %v6413_v62, %s10036_s23  ;;  %s6724_s23 = smov 119  }
0x110e   : > { %5402 = vrot.lane.b32.xlu1 %v5401_v23, %s10037_s25  ;;  %s6722_s25 = smov 9  }
0x1112   : > { %5424 = vrot.lane.b32.xlu1 %v5401_v23, %s6721_s0  ;;  %s6725_s0 = smov 118  }
0x1116   : > { %5446 = vrot.lane.b32.xlu1 %v5401_v23, %s10038_s18 }
0x1164   : > { %v6390_v16 = vpop.permute.xlu1 %6389 }
0x1165   : > { %v6392_v48 = vunpack.i.h.bf16 %v6390_v16  ;;  %v6391_v34 = vunpack.i.l.bf16 %v6390_v16 }
0x1167   : > { %v5337_v28 = vsel %vm5336_vm6, %v5217_v19, %v6391_v34  ;;  %v5338_v37 = vsel %vm5336_vm6, %v5220_v56, %v6392_v48  ;;  %vm10047_vm6 = vcmask 523264  }
0x1168   : > { %vm10053_vm4 = vmmov %vm10047_vm6 }
0x116c   : > { %v6395_v42 = vpop.permute.xlu1 %6394 }
0x116d   : > { %v6400_v0 = vpop.permute.xlu0 %6399  ;;  %v6397_v11 = vunpack.i.h.bf16 %v6395_v42  ;;  %v6396_v8 = vunpack.i.l.bf16 %v6395_v42 }
0x116e   : > { %v6402_v24 = vunpack.i.h.bf16 %v6400_v0  ;;  %v6401_v46 = vunpack.i.l.bf16 %v6400_v0 }
0x1170   : > { %v5340_v55 = vsel %vm10039_vm0, %v5338_v37, %v6402_v24  ;;  %v5339_v25 = vsel %vm10040_vm14, %v5337_v28, %v6401_v46 }
0x1171   : > { %v5342_v33 = vsel %vm5341_vm1, %v5339_v25, %v6396_v8  ;;  %v5343_v45 = vsel %vm5341_vm1, %v5340_v55, %v6397_v11 }
0x1174   : > { %v6405_v14 = vpop.permute.xlu1 %6404 }
0x1175   : > { %v6410_v57 = vpop.permute.xlu0 %6409  ;;  %v6407_v41 = vunpack.i.h.bf16 %v6405_v14  ;;  %v6406_v5 = vunpack.i.l.bf16 %v6405_v14 }
0x1176   : > { %v6412_v40 = vunpack.i.h.bf16 %v6410_v57  ;;  %v6411_v61 = vunpack.i.l.bf16 %v6410_v57 }
0x1178   : > { %v5345_v2 = vsel %vm10043_vm8, %v5343_v45, %v6412_v40  ;;  %v5344_v38 = vsel %vm10044_vm13, %v5342_v33, %v6411_v61  ;;  %vm10049_vm8 = vcmask 130048   ;;  %vm10050_vm13 = vmmov %vm10047_vm6 }
0x1179   : > { %v5347_v7 = vsel %vm5346_vm15, %v5344_v38, %v6406_v5  ;;  %v5348_v21 = vsel %vm5346_vm15, %v5345_v2, %v6407_v41  ;;  %vm10051_vm15 = vmmov %vm10047_vm6 }
0x117c   : > { %v6420_v10 = vpop.permute.xlu1 %6419 }
0x117d   : > { %v6415_v51 = vpop.permute.xlu0 %6414  ;;  %v6422_v29 = vunpack.i.h.bf16 %v6420_v10  ;;  %v6421_v60 = vunpack.i.l.bf16 %v6420_v10 }
0x117e   : > { %v6417_v36 = vunpack.i.h.bf16 %v6415_v51  ;;  %v6416_v43 = vunpack.i.l.bf16 %v6415_v51 }
0x1180   : > { %v5350_v3 = vsel %vm10045_vm2, %v5348_v21, %v6417_v36  ;;  %v5349_v30 = vsel %vm10046_vm5, %v5347_v7, %v6416_v43  ;;  %v5403_v53 = vpop.permute.xlu1 %5402  ;;  %vm10054_vm2 = vmmov %vm10053_vm4 }
0x1181   : > { %v5352_v44 = vsel %vm5351_vm9, %v5349_v30, %v6421_v60  ;;  %v5353_v50 = vsel %vm5351_vm9, %v5350_v3, %v6422_v29  ;;  %vm5404_vm12 = vcmp.ne.s16.totalorder %v5403_v53, 0  ;;  %vm10052_vm9 = vmmov %vm10047_vm6 }
0x1182   : > { %v5368_v19 = vpack.c.bf16 %v5353_v50, %v5352_v44  ;;  %vm10055_vm5 = vmmov %vm10054_vm2 }
0x1184   : > { %5370 = vrot.lane.b32.xlu0 %v5368_v19, %s6722_s25  ;;  %v5425_v39 = vpop.permute.xlu1 %5424  ;;  %s10058_s25 = sld [smem:[#allocation27_spill]] }
0x1185   : > { %vm5426_vm0 = vcmp.ne.s16.totalorder %v5425_v39, 0 }
0x1188   : > { %5411 = vrot.lane.b32.xlu0 %v5385_v15, %s9662_s27  ;;  %v5447_v26 = vpop.permute.xlu1 %5446 }
0x1189   : > { %vm5448_vm3 = vcmp.ne.s16.totalorder %v5447_v26, 0 }
0x118a   : > { %p10061_p3 = scmp.ne.s32.totalorder %s10058_s25, 0 }
0x118c   : > { %5433 = vrot.lane.b32.xlu0 %v5385_v15, %s10035_s20 }
0x11f6   : > { %v5371_v56 = vpop.permute.xlu0 %5370 }
0x11f7   : > { %v5374_v12 = vsel %vm5372_vm7, 0, %v5371_v56  ;;  %vm10056_vm7 = vmmov %vm10054_vm2 }
0x11f8   : > { %v5376_v17 = vsel %vm5375_vm11, %v5374_v12, 0  ;;  %vm10057_vm11 = vmmov %vm10054_vm2 }
0x11f9   : > { %v5387_v9 = vsel %vm5386_vm10, %v5376_v17, 0  ;;  %5390 = vrot.lane.b32.xlu0 %v5376_v17, %s6702_s15  ;;  %v5405_v31 = vsel %vm5404_vm12, %v5376_v17, 0  ;;  %v5427_v6 = vsel %vm5426_vm0, %v5376_v17, 0  ;;  %v5449_v4 = vsel %vm5448_vm3, %v5376_v17, 0  ;;  %s10048_s15 = sld [smem:[#allocation86_spill]]  ;;  %vm10059_vm10 = vmmov %vm10049_vm8 }
0x11fa   : > { %5388 = vst.msk [vmem:[#allocation4] sm:$0xff] %vm10047_vm6, %v5387_v9  ;;  %5407 = vrot.lane.b32.xlu1 %v5405_v31, %s6705_s22  ;;  %v5412_v54 = vpop.permute.xlu0 %5411  ;;  %s9663_s22 = sshll.u32 %s6852_s1, 9 }
0x11fb   : > { %vm5413_vm1 = vcmp.ne.s16.totalorder %v5412_v54, 0 }
0x11fc   : > { %v5414_v22 = vsel %vm5413_vm1, %v5376_v17, 0 }
0x11fd   : > { %5416 = vrot.lane.b32.xlu0 %v5414_v22, %s6723_s29 }
0x11fe   : > { %5420 = vrot.lane.b32.xlu1 %v5376_v17, %s6724_s23  ;;  %v5434_v35 = vpop.permute.xlu0 %5433  ;;  %s10060_s23 = sld [smem:[#allocation88_spill]] }
0x11ff   : > { %vm5435_vm14 = vcmp.ne.s16.totalorder %v5434_v35, 0  ;;  %v6435_v47 = vld [vmem:[%s10048_s15 + $0x4] ss:$8 sps:$4 sm:$0xff]   ;;  %v6433_v14 = vld [vmem:[%s10048_s15] ss:$8 sps:$4 sm:$0xff]  }
0x1200   : > { %v5436_v52 = vsel %vm5435_vm14, %v5376_v17, 0  ;;  %6090 = vmatprep.mubr.msk.bf16.mxu0 %vm10049_vm8, %v6435_v47  ;;  %v6436_v40 = vld [vmem:[%s10048_s15 + $0x14] ss:$8 sps:$4 sm:$0xff]   ;;  %v6438_v61 = vld [vmem:[%s10048_s15 + $0x10] ss:$8 sps:$4 sm:$0xff]  }
0x1201   : > { %5429 = vrot.lane.b32.xlu0 %v5427_v6, %s6725_s0  ;;  %v5459_v63 = vld [vmem:[#allocation4] sm:$0xff] }
0x1202   : > { %5517 = vmatpush1.bf16.msra.mxu0 %v5459_v63  ;;  %5438 = vrot.lane.b32.xlu1 %v5436_v52, %s6712_s3 }
0x1203   : > { %5518 = vmatprep.subr.bf16.mxu0 %v9756_v1 }
0x1204   : > { %s9343_s27 = scalar_lea.hbm %s10060_s23, %s9663_s22 }
0x1205   : > { %5442 = vrot.lane.b32.xlu0 %v5376_v17, %s6715_s24  ;;  %s5582_s24 = sand.u32 1, %s6852_s1  }
0x1206   : > { %5451 = vrot.lane.b32.xlu1 %v5449_v4, %s6716_s17  ;;  %s5615_s17 = sshll.u32 %s9229_s2, 4  ;;  %s9345_s4 = scalar_lea.sflag [#allocation15], %s5582_s24  ;;  %s9334_s17 = int_to_ptr.vmem [resolvable:$true] %s5615_s17 }
0x1207   : > { %s6553_s5 = scalar_lea.vmem %s9334_s17, 512  ;;  %s6726_s2 = smov [#allocation14]  }
0x1208   : > { %p6554_p2 = scmp.ne.s32.totalorder %s9334_s17, %s6553_s5  ;;  %s6557_s3 = sshll.u32 %s6726_s2, 4  ;;  %s6558_s3 = int_to_ptr.vmem [resolvable:$false] %s6557_s3 }
0x1209   : > { %5474 = vperm.xlu0 %6301, %v5468_v59   ;;  %s6559_s0 = scalar_lea.vmem %s6558_s3, 1024  ;;  %p6560_p8 = scmp.lt.s32.totalorder %s9334_s17, %s6558_s3 }
0x120a   : > { %5479 = vperm.xlu1 %6302, %v5469_v32   ;;  %p6555_p4 = pnand %p6554_p2, %p10061_p3  ;;  %p6561_p11 = scmp.lt.s32.totalorder %s6559_s0, %s6553_s5 }
0x120c   : > { %p6556_p7 = pneg %p6555_p4  ;;  %p6562_p13 = por %p6561_p11, %p6560_p8 }
0x120d   : > { %5484 = vperm.xlu0 %6301, %v5470_v58  }
0x120e   : > { %5489 = vperm.xlu1 %6302, %v5471_v49   ;;  %p6563_p1 = pnand %p6562_p13, %p6556_p7 }
0x126b   : > { %v5391_v13 = vpop.permute.xlu0 %5390 }
0x126c   : > { %5393 = vst.msk [vmem:[#allocation4 + $0x8] sm:$0xff] %vm10050_vm13, %v5391_v13  ;;  %v5408_v20 = vpop.permute.xlu1 %5407 }
0x126d   : > { %5410 = vst.msk [vmem:[#allocation4 + $0x10] sm:$0xff] %vm10051_vm15, %v5408_v20 }
0x126f   : > { %v5417_v62 = vpop.permute.xlu0 %5416 }
0x1270   : > { %5419 = vst.msk [vmem:[#allocation4 + $0x18] sm:$0xff] %vm10052_vm9, %v5417_v62  ;;  %v5421_v23 = vpop.permute.xlu1 %5420 }
0x1271   : > { %5423 = vst.msk [vmem:[#allocation4 + $0x20] sm:$0xff] %vm10053_vm4, %v5421_v23 }
0x1273   : > { %v5430_v16 = vpop.permute.xlu0 %5429  ;;  %v5460_v0 = vld [vmem:[#allocation4 + $0x8] sm:$0xff] }
0x1274   : > { %5432 = vst.msk [vmem:[#allocation4 + $0x28] sm:$0xff] %vm10054_vm2, %v5430_v16  ;;  %v5439_v48 = vpop.permute.xlu1 %5438  ;;  %5519 = vmatpush1.bf16.msra.mxu0 %v5460_v0  ;;  %v5461_v42 = vld [vmem:[#allocation4 + $0x10] sm:$0xff] }
0x1275   : > { %5441 = vst.msk [vmem:[#allocation4 + $0x30] sm:$0xff] %vm10055_vm5, %v5439_v48  ;;  %5520 = vmatprep.subr.bf16.mxu0 %v9756_v1 }
0x1277   : > { %v5443_v34 = vpop.permute.xlu0 %5442  ;;  %v5462_v46 = vld [vmem:[#allocation4 + $0x18] sm:$0xff] }
0x1278   : > { %5445 = vst.msk [vmem:[#allocation4 + $0x38] sm:$0xff] %vm10056_vm7, %v5443_v34  ;;  %v5452_v24 = vpop.permute.xlu1 %5451  ;;  %5521 = vmatpush1.bf16.msra.mxu0 %v5461_v42  ;;  %v5463_v57 = vld [vmem:[#allocation4 + $0x20] sm:$0xff] }
0x1279   : > { %5454 = vst.msk [vmem:[#allocation4 + $0x40] sm:$0xff] %vm10057_vm11, %v5452_v24  ;;  %5522 = vmatprep.subr.bf16.mxu0 %v9756_v1 }
0x127b   : > { %v5464_v28 = vld [vmem:[#allocation4 + $0x28] sm:$0xff] }
0x127c   : > { %5523 = vmatpush1.bf16.msra.mxu0 %v5462_v46  ;;  %v5465_v37 = vld [vmem:[#allocation4 + $0x30] sm:$0xff] }
0x127d   : > { %5524 = vmatprep.subr.bf16.mxu0 %v9756_v1 }
0x127f   : > { %v5466_v55 = vld [vmem:[#allocation4 + $0x38] sm:$0xff] }
0x1280   : > { %5525 = vmatpush1.bf16.msra.mxu0 %v5463_v57  ;;  %v5467_v25 = vld [vmem:[#allocation4 + $0x40] sm:$0xff] }
0x1281   : > { %5526 = vmatprep.subr.bf16.mxu0 %v9756_v1 }
0x1284   : > { %5527 = vmatpush1.bf16.msra.mxu0 %v5464_v28 }
0x1285   : > { %5528 = vmatprep.subr.bf16.mxu0 %v9756_v1 }
0x1288   : > { %5529 = vmatpush1.bf16.msra.mxu0 %v5465_v37 }
0x1289   : > { %5530 = vmatprep.subr.bf16.mxu0 %v9756_v1 }
0x128c   : > { %5531 = vmatpush1.bf16.msra.mxu0 %v5466_v55 }
0x128d   : > { %5532 = vmatprep.subr.bf16.mxu0 %v9756_v1 }
0x1290   : > { %5533 = vmatpush1.bf16.msra.mxu0 %v5467_v25 }
0x1293   : > { %5549 = vmatmul.mubr.bf16.vlgmr.msra.gmra.mrb[56].mxu0 %v6433_v14 }
0x1294   : > { %6091 = vmatprep.mubr.msk.bf16.mxu0 %vm10059_vm10, %v6436_v40 }
0x129b   : > { %5557 = vmatmul.mubr.bf16.gmra.mrb[60].mxu0 %v6438_v61 }
0x129c   : > { %6566 = shalt.err (!%p6563_p1)
}
0x129d   : > { %s6567_s24 = scalar_lea.hbm %s9343_s27, 512  ;;  %s6571_s2 = scalar_lea.hbm %s10060_s23, 1024 }
0x129e   : > { %p6568_p0 = scmp.ne.s32.totalorder %s9343_s27, %s6567_s24  ;;  %p6572_p9 = scmp.lt.u32.totalorder %s9343_s27, %s10060_s23 }
0x129f   : > { %p6573_p12 = scmp.lt.u32.totalorder %s6571_s2, %s6567_s24  ;;  %p6575_p2 = scmp.lt.u32.totalorder %s6567_s24, %s9343_s27 }
0x12a0   : > { %p6569_p6 = pnand %p6568_p0, %p10061_p3 }
0x12a1   : > { %p6574_p10 = por %p6573_p12, %p6572_p9 }
0x12a2   : > { %p6570_p5 = pneg %p6569_p6 }
0x12a3   : > { %p6576_p4 = por %p6575_p2, %p6574_p10 }
0x12a5   : > { %p6577_p7 = pnand %p6576_p4, %p6570_p5 }
0x12a7   : > { %6580 = shalt.err (!%p6577_p7)
}
0x12a8   : > { %s6727_s5 = smov 256   ;;  %s6104_s22 = sshll.u32 %s6852_s1, 10 }
0x12a9   : > { %6193 = dma.vmem_to_hbm [thread:$0]  (%p10061_p3), %s9334_s17, 512, %s9343_s27, %s9345_s4, %s6727_s5, %s6727_s5, %s10035_s20  }
0x12aa   : > { %s5602_s0 = sshll.u32 %s8736_s21, 4  ;;  %s10062_s24 = sld [smem:[#allocation87_spill]]  ;;  %s5603_s0 = int_to_ptr.vmem [resolvable:$true] %s5602_s0 }
0x12ab   : > { %s5578_s3 = scalar_lea.sflag [#allocation7], %s8728_s19  ;;  %s6581_s6 = scalar_lea.vmem %s5603_s0, 1024 }
0x12ac   : > { %p6582_p8 = scmp.ne.s32.totalorder %s5603_s0, %s6581_s6  ;;  %s6728_s7 = smov [#allocation13]  }
0x12ad   : > { %s6585_s8 = sshll.u32 %s6728_s7, 4  ;;  %s6586_s8 = int_to_ptr.vmem [resolvable:$false] %s6585_s8 }
0x12ae   : > { %p6583_p11 = pnand %p6582_p8, %p10061_p3  ;;  %s6587_s9 = scalar_lea.vmem %s6586_s8, 2048 }
0x12af   : > { %p6588_p1 = scmp.lt.s32.totalorder %s5603_s0, %s6586_s8  ;;  %p6589_p0 = scmp.lt.s32.totalorder %s6587_s9, %s6581_s6 }
0x12b0   : > { %s9375_s2 = scalar_lea.hbm %s10062_s24, %s6104_s22  ;;  %p6584_p13 = pneg %p6583_p11 }
0x12b1   : > { %p6590_p6 = por %p6589_p0, %p6588_p1 }
0x12b3   : > { %p6591_p5 = pnand %p6590_p6, %p6584_p13 }
0x12b5   : > { %6594 = shalt.err (!%p6591_p5)
}
0x12b6   : > { %s6595_s21 = scalar_lea.hbm %s9375_s2, 1024  ;;  %s6599_s7 = scalar_lea.hbm %s10062_s24, 2048 }
0x12b7   : > { %p6596_p9 = scmp.ne.s32.totalorder %s9375_s2, %s6595_s21  ;;  %p6600_p2 = scmp.lt.u32.totalorder %s9375_s2, %s10062_s24 }
0x12b8   : > { %p6601_p4 = scmp.lt.u32.totalorder %s6599_s7, %s6595_s21  ;;  %p6603_p8 = scmp.lt.u32.totalorder %s6595_s21, %s9375_s2 }
0x12b9   : > { %p6597_p12 = pnand %p6596_p9, %p10061_p3 }
0x12ba   : > { %p6602_p7 = por %p6601_p4, %p6600_p2 }
0x12bb   : > { %p6598_p10 = pneg %p6597_p12 }
0x12bc   : > { %p6604_p11 = por %p6603_p8, %p6602_p7 }
0x12be   : > { %p6605_p13 = pnand %p6604_p11, %p6598_p10 }
0x12c0   : > { %6608 = shalt.err (!%p6605_p13)
}
0x12c1   : > { %6192 = dma.vmem_to_hbm [thread:$0]  (%p10061_p3), %s5603_s0, 1024, %s9375_s2, %s5578_s3   ;;  %v5475_v1 = vpop.permute.xlu0 %5474  ;;  %v5480_v45 = vpop.permute.xlu1 %5479  ;;  %vm10064_vm12 = vmmov %vm10054_vm2 }
0x12c2   : > { %s10063_s6 = sshll.u32 %s8728_s19, 5  ;;  %vm10065_vm6 = vmmov %vm10054_vm2  ;;  %s10067_s19 = sshll.u32 %s6852_s1, 9 }
0x12c3   : > { %s666_s9 = scalar_lea.vmem [#allocation16], %s10063_s6  ;;  %vm10066_vm1 = vmmov %vm10054_vm2  ;;  %s10068_s18 = sld [smem:[#allocation89_spill]] }
0x12c4   : > { %s5631_s5 = sshll.u32 %s666_s9, 4  ;;  %vm10069_vm0 = vmmov %vm10066_vm1  ;;  %s6729_s3 = smov [#allocation16]   ;;  %s9399_s5 = int_to_ptr.vmem [resolvable:$true] %s5631_s5 }
0x12c5   : > { %v5485_v36 = vpop.permute.xlu0 %5484  ;;  %v5490_v7 = vpop.permute.xlu1 %5489  ;;  %s6609_s2 = scalar_lea.vmem %s9399_s5, 512  ;;  %s6613_s21 = sshll.u32 %s6729_s3, 4  ;;  %s6614_s21 = int_to_ptr.vmem [resolvable:$false] %s6613_s21 }
0x12c6   : > { %p6610_p1 = scmp.ne.s32.totalorder %s9399_s5, %s6609_s2  ;;  %s6615_s27 = scalar_lea.vmem %s6614_s21, 1024 }
0x12c7   : > { %p6616_p5 = scmp.lt.s32.totalorder %s9399_s5, %s6614_s21  ;;  %p6617_p9 = scmp.lt.s32.totalorder %s6615_s27, %s6609_s2 }
0x12c8   : > { %p6611_p0 = pnand %p6610_p1, %p10061_p3 }
0x12c9   : > { %s9407_s29 = scalar_lea.hbm %s10068_s18, %s10067_s19  ;;  %p6618_p12 = por %p6617_p9, %p6616_p5 }
0x12ca   : > { %p6612_p6 = pneg %p6611_p0 }
0x12cc   : > { %p6619_p10 = pnand %p6618_p12, %p6612_p6 }
0x1366   : > { %v5550_v11 = vpop.f32.mrb[56].mxu0 }
0x1367   : > { %v5551_v8 = vadd.f32 %v5550_v11, %v5475_v1  ;;  %v5552_v33 = vpop.f32.mrb[57].mxu0 }
0x1368   : > { %v5553_v27 = vpop.f32.mrb[58].mxu0 }
0x1369   : > { %v5565_v2 = vmul.f32 0.01, %v5551_v8  ;;  %v5554_v38 = vadd.f32 %v5553_v27, %v5480_v45  ;;  %v5555_v10 = vpop.f32.mrb[59].mxu0 }
0x136b   : > { %v5569_v41 = vmax.f32 %v5551_v8, %v5565_v2  ;;  %v5566_v5 = vmul.f32 0.01, %v5554_v38 }
0x136d   : > { %5573 = vst.msk [vmem:[%s666_s9] sm:$0xff] %vm10064_vm12, %v5569_v41  ;;  %v5570_v51 = vmax.f32 %v5554_v38, %v5566_v5 }
0x136e   : > { %v5558_v43 = vpop.f32.mrb[60].mxu0 }
0x136f   : > { %5574 = vst.msk [vmem:[%s666_s9 + $0x8] sm:$0xff] %vm10065_vm6, %v5570_v51  ;;  %v5559_v29 = vadd.f32 %v5558_v43, %v5485_v36  ;;  %v5560_v60 = vpop.f32.mrb[61].mxu0 }
0x1370   : > { %v5561_v21 = vpop.f32.mrb[62].mxu0 }
0x1371   : > { %v5567_v3 = vmul.f32 0.01, %v5559_v29  ;;  %v5562_v30 = vadd.f32 %v5561_v21, %v5490_v7  ;;  %v5563_v44 = vpop.f32.mrb[63].mxu0 }
0x1373   : > { %v5571_v50 = vmax.f32 %v5559_v29, %v5567_v3  ;;  %v5568_v18 = vmul.f32 0.01, %v5562_v30 }
0x1375   : > { %5575 = vst.msk [vmem:[%s666_s9 + $0x10] sm:$0xff] %vm10066_vm1, %v5571_v50  ;;  %v5572_v19 = vmax.f32 %v5562_v30, %v5568_v18 }
0x1377   : > { %5576 = vst.msk [vmem:[%s666_s9 + $0x18] sm:$0xff] %vm10069_vm0, %v5572_v19 }
0x1378   : > { %6622 = shalt.err (!%p6619_p10)
}
0x1379   : > { %s6623_s1 = scalar_lea.hbm %s9407_s29, 512  ;;  %s6627_s17 = scalar_lea.hbm %s10068_s18, 1024 }
0x137a   : > { %p6624_p2 = scmp.ne.s32.totalorder %s9407_s29, %s6623_s1  ;;  %p6628_p8 = scmp.lt.u32.totalorder %s9407_s29, %s10068_s18 }
0x137b   : > { %p6629_p11 = scmp.lt.u32.totalorder %s6627_s17, %s6623_s1  ;;  %p6631_p1 = scmp.lt.u32.totalorder %s6623_s1, %s9407_s29 }
0x137c   : > { %p6625_p4 = pnand %p6624_p2, %p10061_p3 }
0x137d   : > { %p6630_p13 = por %p6629_p11, %p6628_p8 }
0x137e   : > { %p6626_p7 = pneg %p6625_p4 }
0x137f   : > { %p6632_p0 = por %p6631_p1, %p6630_p13 }
0x1381   : > { %p6633_p6 = pnand %p6632_p0, %p6626_p7 }
0x1383   : > { %6636 = shalt.err (!%p6633_p6)
}
0x1384   : > { %s6730_s9 = smov 128   ;;  %s10070_s19 = smov 8  }
0x1385   : > { %6194 = dma.vmem_to_hbm [thread:$0]  (%p10061_p3), %s9399_s5, 512, %s9407_s29, %s9345_s4, %s6730_s9, %s6730_s9, %s10070_s19  }
0x1386 PF: > { %s10071_s22 = sld [smem:[#allocation24_spill]]  ;;  %s10072_s0 = sld [smem:[#allocation22_spill]] }
0x1387   : > { %s10073_s2 = sld [smem:[#allocation28_spill]] }
0x138c   : > { %p6229_p5 = scmp.ge.s32.totalorder %s10071_s22, 2  ;;  %s5646_s3 = sand.u32 1, %s10072_s0  }
0x138d   : > { %p10074_p9 = scmp.ne.s32.totalorder %s10073_s2, 0  ;;  %s5647_s21 = scalar_lea.sflag [#allocation7], %s5646_s3 }
0x138f   : > { %p6212_p12 = pnand %p6229_p5, %p10074_p9 }
0x1391   : > { %6666 = dma.done.wait (!%p6212_p12), %s5647_s21, 1024  }
0x1392   : > { %6668 = vsyncadd (!%p6212_p12), %s5647_s21, 4294966272  ;;  %s10075_s27 = sadd.s32 4294967294, %s10071_s22  }
0x1393   : > { %s5655_s1 = sand.u32 1, %s10075_s27  }
0x1394   : > { %s5656_s25 = scalar_lea.sflag [#allocation15], %s5655_s1 }
0x1395   : > { %6670 = dma.done.wait (!%p6212_p12), %s5656_s25, 1024  }
0x1396   : > { %6672 = vsyncadd (!%p6212_p12), %s5656_s25, 4294966272  ;;  %s10076_s21 = sld [smem:[#allocation25_spill]]  ;;  %s10077_s4 = sld [smem:[#allocation23_spill]] }
0x1397   : > { %s10078_s20 = sld [smem:[#allocation26_spill]]  ;;  %s10079_s0 = smov %s6679_s30 }
0x139c   : > { %p36_p3 = scmp.ge.s32.totalorder %s10076_s21, 4   ;;  %s10080_s30 = smov %s10077_s4 }
0x139e   :  { %38 = sbr.rel (!%p36_p3) target bundleno = 23 (0x17), region = 172 }
0x13a5   :  { %5670 = vsyncpa [#allocation6], 1 }
0x13a6   :  { %5672 = vsyncpa [#allocation6 + $0x1], 1 }
0x13a7   :  { %5673 = vsyncpa [#allocation9], 1 }
0x13a8   :  { %5674 = vsyncpa [#allocation12], 1 }
0x13a9   :  { %5675 = vsyncpa [#allocation7], 1 }
0x13aa   :  { %5677 = vsyncpa [#allocation7 + $0x1], 1 }
0x13ab   :  { %5678 = vsyncpa [#allocation15], 1 }
0x13ac   :  { %5680 = vsyncpa [#allocation15 + $0x1], 1 }

</bundles_post_ra>
